<compile_context>
chip_gen: v7x
topology: tpu7x:2x2x1
jax: 0.10.0
libtpu: 0.0.40
codegen_flags: <defaults>
</compile_context>

<pallas_src>
import functools

import jax
import jax.numpy as jnp
from jax import lax
from jax.experimental import pallas as pl
from jax.experimental.pallas import tpu as pltpu

EPS = 1e-5


def _round_up(x, m):
    return (x + m - 1) // m * m


def _pick_tile(dim, max_tile, quantum):
    """Largest multiple of `quantum` that divides `dim` and is <= max_tile."""
    t = min(max_tile, dim)
    t -= t % quantum
    while dim % t:
        t -= quantum
    return t


# ------------------------ Pallas kernel: tiled matmul ------------------------

def _matmul_bias_kernel(a_ref, b_ref, bias_ref, o_ref, acc_ref, *, activation):
    @pl.when(pl.program_id(2) == 0)
    def _():
        acc_ref[...] = jnp.zeros_like(acc_ref)

    acc_ref[...] += jnp.dot(a_ref[...], b_ref[...],
                            preferred_element_type=jnp.float32)

    @pl.when(pl.program_id(2) == pl.num_programs(2) - 1)
    def _():
        y = acc_ref[...] + bias_ref[...]
        if activation == "tanh":
            y = jnp.tanh(y)
        o_ref[...] = y


def matmul_bias(a, b_p, bias_p, n_out, activation=None,
                max_tm=512, max_tn=256, max_tk=512):
    """a: (M, K) f32; b_p: (Kp, Np) bf16 pre-padded weights; bias_p: (1, Np) f32.

    Returns (M, n_out) f32 = a @ b + bias (optionally tanh'ed)."""
    M, K = a.shape
    Kp, Np = b_p.shape
    Mp = _round_up(M, 8)
    if Mp != M or Kp != K:
        # zero padding on K is required for correct accumulation; M pad is sliced off
        a = jnp.pad(a, ((0, Mp - M), (0, Kp - K)))
    a = a.astype(jnp.bfloat16)      # MXU operands in bf16, accumulation stays f32

    tm = _pick_tile(Mp, max_tm, 8)
    tn = _pick_tile(Np, max_tn, 128)
    tk = _pick_tile(Kp, max_tk, 128)

    out = pl.pallas_call(
        functools.partial(_matmul_bias_kernel, activation=activation),
        out_shape=jax.ShapeDtypeStruct((Mp, Np), jnp.float32),
        grid=(Mp // tm, Np // tn, Kp // tk),
        in_specs=[
            pl.BlockSpec((tm, tk), lambda i, j, k: (i, k)),
            pl.BlockSpec((tk, tn), lambda i, j, k: (k, j)),
            pl.BlockSpec((1, tn), lambda i, j, k: (0, j)),
        ],
        out_specs=pl.BlockSpec((tm, tn), lambda i, j, k: (i, j)),
        scratch_shapes=[pltpu.VMEM((tm, tn), jnp.float32)],
        compiler_params=pltpu.CompilerParams(
            dimension_semantics=("parallel", "parallel", "arbitrary")),
    )(a, b_p, bias_p)
    return out[:M, :n_out]


# --------------------- Pallas kernels: instance norm (VPU) -------------------

def _inorm_kernel(x_ref, o_ref, *, relu, inv_hw):
    x = x_ref[...]                                  # (1, H*W, tc) f32
    s1 = jnp.sum(x, axis=1, keepdims=True)
    s2 = jnp.sum(x * x, axis=1, keepdims=True)
    mean = s1 * inv_hw
    var = jnp.maximum(s2 * inv_hw - mean * mean, 0.0)
    y = (x - mean) * lax.rsqrt(var + EPS)
    if relu:
        y = jnp.maximum(y, 0.0)
    o_ref[...] = y


def _inorm_residual_kernel(x_ref, r_ref, o_ref, *, inv_hw):
    x = x_ref[...]
    s1 = jnp.sum(x, axis=1, keepdims=True)
    s2 = jnp.sum(x * x, axis=1, keepdims=True)
    mean = s1 * inv_hw
    var = jnp.maximum(s2 * inv_hw - mean * mean, 0.0)
    o_ref[...] = (x - mean) * lax.rsqrt(var + EPS) + r_ref[...]


def instance_norm(x_nhwc, relu=False, residual=None):
    # TODO(synk): for very large H*W (e.g. 256x256 @ C=64) add a spatially blocked
    # two-pass / carry variant to bound per-block VMEM below ~8 MiB on v7x.
    N, H, W, C = x_nhwc.shape
    HW = H * W
    xf = x_nhwc.reshape(N, HW, C)
    tc = 128 if C % 128 == 0 else C                 # lane tile: mult of 128 or full C
    grid = (N, C // tc)
    spec = pl.BlockSpec((1, HW, tc), lambda n, c: (n, 0, c))
    cp = pltpu.CompilerParams(dimension_semantics=("parallel", "parallel"))
    inv_hw = 1.0 / float(HW)
    if residual is None:
        out = pl.pallas_call(
            functools.partial(_inorm_kernel, relu=relu, inv_hw=inv_hw),
            out_shape=jax.ShapeDtypeStruct(xf.shape, jnp.float32),
            grid=grid, in_specs=[spec], out_specs=spec, compiler_params=cp,
        )(xf)
    else:
        rf = residual.reshape(N, HW, C)
        out = pl.pallas_call(
            functools.partial(_inorm_residual_kernel, inv_hw=inv_hw),
            out_shape=jax.ShapeDtypeStruct(xf.shape, jnp.float32),
            grid=grid, in_specs=[spec, spec], out_specs=spec, compiler_params=cp,
        )(xf, rf)
    return out.reshape(N, H, W, C)


# -------------------------- conv lowering (JAX glue) -------------------------

def _im2col(xp, KH, KW, stride):
    """xp: padded NHWC input -> (N*Ho*Wo, KH*KW*C) column matrix."""
    # TODO(synk): replace im2col with KH*KW shifted-window matmuls driven by an
    # extra "arbitrary" grid axis to avoid the 9x/49x activation read inflation.
    N, Hp, Wp, C = xp.shape
    Ho = (Hp - KH) // stride + 1
    Wo = (Wp - KW) // stride + 1
    cols = []
    for kh in range(KH):
        for kw in range(KW):
            cols.append(xp[:, kh:kh + stride * (Ho - 1) + 1:stride,
                              kw:kw + stride * (Wo - 1) + 1:stride, :])
    a = jnp.concatenate(cols, axis=-1)              # (N, Ho, Wo, KH*KW*C)
    return a.reshape(N * Ho * Wo, KH * KW * C), (N, Ho, Wo)


def conv2d(x, wmat_p, bias_p, cout, ksize, stride=1, padding=0,
           pad_mode="zero", activation=None):
    """x: NHWC; wmat_p/bias_p: pre-padded matmul weights from _prep_conv."""
    if padding > 0:
        mode = "reflect" if pad_mode == "reflect" else "constant"
        x = jnp.pad(x, ((0, 0), (padding,) * 2, (padding,) * 2, (0, 0)), mode=mode)
    a, (N, Ho, Wo) = _im2col(x, ksize, ksize, stride)
    out = matmul_bias(a, wmat_p, bias_p, cout, activation=activation)
    return out.reshape(N, Ho, Wo, cout)


def conv_transpose2d(x, wmat_p, bias_p, cout):
    """PyTorch ConvTranspose2d(k=3, stride=2, padding=1, output_padding=1) via the
    sub-pixel decomposition: one matmul on the un-dilated input; the 4*cout output
    columns are the 4 output phases, interleaved afterwards."""
    N, H, W, Cin = x.shape
    xp = jnp.pad(x, ((0, 0), (0, 1), (0, 1), (0, 0)))
    taps = [xp[:, dy:dy + H, dx:dx + W, :] for dy in (0, 1) for dx in (0, 1)]
    a = jnp.concatenate(taps, axis=-1).reshape(N * H * W, 4 * Cin)
    out = matmul_bias(a, wmat_p, bias_p, 4 * cout)
    out = out.reshape(N, H, W, 2, 2, cout)
    out = jnp.transpose(out, (0, 1, 3, 2, 4, 5)).reshape(N, 2 * H, 2 * W, cout)
    return out


# ------------------ weight preparation (done once, not per call) -------------

def _pad_matmul_weights(wmat, b):
    K, N = wmat.shape
    Kp, Np = _round_up(K, 128), _round_up(N, 128)
    wp = jnp.pad(wmat, ((0, Kp - K), (0, Np - N))).astype(jnp.bfloat16)
    bp = jnp.pad(b.astype(jnp.float32), (0, Np - N)).reshape(1, Np)
    return wp, bp


def _prep_conv(w, b):
    """w: (Cout, Cin, KH, KW) PyTorch Conv2d layout."""
    Cout, Cin, KH, KW = w.shape
    wmat = jnp.transpose(w, (2, 3, 1, 0)).reshape(KH * KW * Cin, Cout)
    return _pad_matmul_weights(wmat, b)


# (phase, tap_offset) -> kernel index, for stride=2, k=3, pad=1, out_pad=1
_PHASE_TAP_TO_K = {(0, 0): 1, (1, 0): 2, (1, 1): 0}


def _prep_convT(w, b):
    """w: (Cin, Cout, 3, 3) PyTorch ConvTranspose2d layout -> (4Cin, 4Cout) matrix."""
    Cin, Cout = w.shape[0], w.shape[1]
    rows = []
    for dy in (0, 1):
        for dx in (0, 1):
            cols = []
            for py in (0, 1):
                for px in (0, 1):
                    kh = _PHASE_TAP_TO_K.get((py, dy))
                    kw = _PHASE_TAP_TO_K.get((px, dx))
                    if kh is None or kw is None:
                        cols.append(jnp.zeros((Cin, Cout), w.dtype))
                    else:
                        cols.append(w[:, :, kh, kw])
            rows.append(jnp.concatenate(cols, axis=1))   # (Cin, 4*Cout)
    wmat = jnp.concatenate(rows, axis=0)                 # (4*Cin, 4*Cout)
    return _pad_matmul_weights(wmat, jnp.tile(b, 4))


def prepare_params(params, n_residual_blocks=9):
    pp = {"c0": _prep_conv(*params["c0"]), "cout": _prep_conv(*params["cout"])}
    for i in range(2):
        pp[f"down{i}"] = _prep_conv(*params[f"down{i}"])
        pp[f"up{i}"] = _prep_convT(*params[f"up{i}"])
    for i in range(n_residual_blocks):
        pp[f"res{i}_c1"] = _prep_conv(*params[f"res{i}_c1"])
        pp[f"res{i}_c2"] = _prep_conv(*params[f"res{i}_c2"])
    return pp


# ------------------------------ model definition -----------------------------

def init_params(key, input_nc=1, output_nc=1, n_residual_blocks=9):
    params = {}
    keys = iter(jax.random.split(key, 64))

    def rnd(shape):
        return jax.random.normal(next(keys), shape, jnp.float32) * 0.05

    params["c0"] = (rnd((64, input_nc, 7, 7)), rnd((64,)))
    ch = 64
    for i in range(2):
        params[f"down{i}"] = (rnd((2 * ch, ch, 3, 3)), rnd((2 * ch,)))
        ch *= 2
    for i in range(n_residual_blocks):
        params[f"res{i}_c1"] = (rnd((ch, ch, 3, 3)), rnd((ch,)))
        params[f"res{i}_c2"] = (rnd((ch, ch, 3, 3)), rnd((ch,)))
    for i in range(2):
        # ConvTranspose2d weight layout: (Cin, Cout, KH, KW)
        params[f"up{i}"] = (rnd((ch, ch // 2, 3, 3)), rnd((ch // 2,)))
        ch //= 2
    params["cout"] = (rnd((output_nc, 64, 7, 7)), rnd((output_nc,)))
    return params


def generator_forward(pp, x_nchw, n_residual_blocks=9, output_nc=1):
    x = jnp.transpose(x_nchw, (0, 2, 3, 1)).astype(jnp.float32)    # NCHW -> NHWC

    # initial: ReflPad(3) Conv7 IN ReLU
    w, b = pp["c0"]
    h = conv2d(x, w, b, 64, 7, padding=3, pad_mode="reflect")
    h = instance_norm(h, relu=True)

    # downsampling
    ch = 64
    for i in range(2):
        ch *= 2
        w, b = pp[f"down{i}"]
        h = conv2d(h, w, b, ch, 3, stride=2, padding=1)
        h = instance_norm(h, relu=True)

    # residual blocks
    for i in range(n_residual_blocks):
        w1, b1 = pp[f"res{i}_c1"]
        w2, b2 = pp[f"res{i}_c2"]
        t = conv2d(h, w1, b1, ch, 3, padding=1, pad_mode="reflect")
        t = instance_norm(t, relu=True)
        t = conv2d(t, w2, b2, ch, 3, padding=1, pad_mode="reflect")
        h = instance_norm(t, residual=h)

    # upsampling (sub-pixel ConvTranspose)
    for i in range(2):
        ch //= 2
        w, b = pp[f"up{i}"]
        h = conv_transpose2d(h, w, b, ch)
        h = instance_norm(h, relu=True)

    # output: ReflPad(3) Conv7 Tanh  (tanh fused into the matmul epilogue)
    w, b = pp["cout"]
    h = conv2d(h, w, b, output_nc, 7, padding=3, pad_mode="reflect", activation="tanh")
    return jnp.transpose(h, (0, 3, 1, 2))                           # NHWC -> NCHW


# ------------------------- pure-JAX f32 reference (check) --------------------

def _ref_forward(params, x_nchw, n_residual_blocks=9):
    x = jnp.transpose(x_nchw, (0, 2, 3, 1)).astype(jnp.float32)
    dn = ("NHWC", "HWIO", "NHWC")

    def conv(h, w, b, stride=1, padding=0, reflect=False):
        if padding and reflect:
            h = jnp.pad(h, ((0, 0), (padding,) * 2, (padding,) * 2, (0, 0)),
                        mode="reflect")
            pad_cfg = "VALID"
        elif padding:
            pad_cfg = [(padding, padding)] * 2
        else:
            pad_cfg = "VALID"
        w_hwio = jnp.transpose(w, (2, 3, 1, 0))
        return lax.conv_general_dilated(h, w_hwio, (stride, stride), pad_cfg,
                                        dimension_numbers=dn) + b

    def convT(h, w, b):   # k=3, stride=2, padding=1, output_padding=1
        w_eq = jnp.transpose(w[:, :, ::-1, ::-1], (1, 0, 2, 3))     # (Cout,Cin,3,3)
        w_hwio = jnp.transpose(w_eq, (2, 3, 1, 0))
        return lax.conv_general_dilated(h, w_hwio, (1, 1), [(1, 2), (1, 2)],
                                        lhs_dilation=(2, 2),
                                        dimension_numbers=dn) + b

    def inorm(h, relu=False, residual=None):
        mean = jnp.mean(h, axis=(1, 2), keepdims=True)
        var = jnp.mean(jnp.square(h - mean), axis=(1, 2), keepdims=True)
        y = (h - mean) * lax.rsqrt(var + EPS)
        if relu:
            y = jnp.maximum(y, 0.0)
        if residual is not None:
            y = y + residual
        return y

    w, b = params["c0"]
    h = inorm(conv(x, w, b, padding=3, reflect=True), relu=True)
    for i in range(2):
        w, b = params[f"down{i}"]
        h = inorm(conv(h, w, b, stride=2, padding=1), relu=True)
    for i in range(n_residual_blocks):
        w1, b1 = params[f"res{i}_c1"]
        w2, b2 = params[f"res{i}_c2"]
        t = inorm(conv(h, w1, b1, padding=1, reflect=True), relu=True)
        h = inorm(conv(t, w2, b2, padding=1, reflect=True), residual=h)
    for i in range(2):
        w, b = params[f"up{i}"]
        h = inorm(convT(h, w, b), relu=True)
    w, b = params["cout"]
    h = jnp.tanh(conv(h, w, b, padding=3, reflect=True))
    return jnp.transpose(h, (0, 3, 1, 2))


# ------------------------------------ main ------------------------------------

if __name__ == "__main__":
    N_RES = 9
    key = jax.random.PRNGKey(0)
    k_in, k_par = jax.random.split(key)

    x = jax.random.normal(k_in, (2, 1, 16, 16), jnp.float32)        # NCHW
    params = init_params(k_par, input_nc=1, output_nc=1, n_residual_blocks=N_RES)
    prepped = prepare_params(params, n_residual_blocks=N_RES)       # once, not per fwd

    fwd = jax.jit(functools.partial(generator_forward, n_residual_blocks=N_RES))
    y = fwd(prepped, x)
    jax.block_until_ready(y)

    assert y.shape == (2, 1, 16, 16), y.shape
    assert bool(jnp.all(jnp.isfinite(y)))
    assert bool(jnp.all(jnp.abs(y) <= 1.0 + 1e-6))                  # tanh range

    # structural correctness vs f32 XLA reference (loose tol: bf16 MXU operands)
    y_ref = jax.jit(functools.partial(_ref_forward, n_residual_blocks=N_RES))(params, x)
    err = float(jnp.max(jnp.abs(y - y_ref)))
    assert err < 0.25, f"max |pallas - reference| = {err}"

    print("KERNEL_OK")
</pallas_src>

<mosaic_0001>
module attributes {stable_mosaic.version = 11 : i64} {
  func.func @_matmul_bias_kernel(%arg0: i32, %arg1: i32, %arg2: i32, %arg3: memref<512x128xbf16, #tpu.memory_space<vmem>>, %arg4: memref<128x128xbf16, #tpu.memory_space<vmem>>, %arg5: memref<1x128xf32, #tpu.memory_space<vmem>>, %arg6: memref<512x128xf32, #tpu.memory_space<vmem>>, %arg7: memref<512x128xf32, #tpu.memory_space<vmem>>) attributes {dimension_semantics = [#tpu.dimension_semantics<parallel>, #tpu.dimension_semantics<parallel>, #tpu.dimension_semantics<arbitrary>], iteration_bounds = array<i64: 1, 1, 1>, scalar_prefetch = 0 : i64, scratch_operands = 1 : i64, tpu.core_type = #tpu.core_type<tc>, window_params = [{transform_indices = @transform_0, window_bounds = array<i64: 512, 128>}, {transform_indices = @transform_1, window_bounds = array<i64: 128, 128>}, {transform_indices = @transform_2, window_bounds = array<i64: 1, 128>}, {transform_indices = @transform_3, window_bounds = array<i64: 512, 128>}]} {
    %c0_i32 = arith.constant 0 : i32
    %0 = arith.cmpi eq, %arg2, %c0_i32 : i32
    %1 = arith.extui %0 : i1 to i32
    %c0_i32_0 = arith.constant 0 : i32
    %2 = arith.cmpi ne, %1, %c0_i32_0 : i32
    scf.if %2 {
      %cst_10 = arith.constant 0.000000e+00 : f32
      %12 = vector.broadcast %cst_10 : f32 to vector<512x128xf32>
      %c0_11 = arith.constant 0 : index
      %c0_12 = arith.constant 0 : index
      %13 = vector.load %arg7[%c0_11, %c0_12] : memref<512x128xf32, #tpu.memory_space<vmem>>, vector<512x128xf32>
      tpu.vector_store %arg7[%c0_11, %c0_12], %12 {strides = array<i32>} : memref<512x128xf32, #tpu.memory_space<vmem>>, vector<512x128xf32>,
    } else {
    }
    %c0 = arith.constant 0 : index
    %c0_1 = arith.constant 0 : index
    %3 = vector.load %arg7[%c0, %c0_1] : memref<512x128xf32, #tpu.memory_space<vmem>>, vector<512x128xf32>
    %c0_2 = arith.constant 0 : index
    %c0_3 = arith.constant 0 : index
    %4 = vector.load %arg3[%c0_2, %c0_3] : memref<512x128xbf16, #tpu.memory_space<vmem>>, vector<512x128xbf16>
    %c0_4 = arith.constant 0 : index
    %c0_5 = arith.constant 0 : index
    %5 = vector.load %arg4[%c0_4, %c0_5] : memref<128x128xbf16, #tpu.memory_space<vmem>>, vector<128x128xbf16>
    %cst = arith.constant dense<0.000000e+00> : vector<512x128xf32>
    %6 = tpu.matmul %4, %5, %cst {dimension_numbers = #tpu.dot_dimension_numbers<[1], [0], [0], [1], [0, 0, 1, 1], [], []>} : vector<512x128xbf16>, vector<128x128xbf16>, vector<512x128xf32> -> vector<512x128xf32>
    %7 = arith.addf %3, %6 : vector<512x128xf32>
    %c0_6 = arith.constant 0 : index
    %c0_7 = arith.constant 0 : index
    %8 = vector.load %arg7[%c0_6, %c0_7] : memref<512x128xf32, #tpu.memory_space<vmem>>, vector<512x128xf32>
    tpu.vector_store %arg7[%c0_6, %c0_7], %7 {strides = array<i32>} : memref<512x128xf32, #tpu.memory_space<vmem>>, vector<512x128xf32>,
    %c0_i32_8 = arith.constant 0 : i32
    %9 = arith.cmpi eq, %arg2, %c0_i32_8 : i32
    %10 = arith.extui %9 : i1 to i32
    %c0_i32_9 = arith.constant 0 : i32
    %11 = arith.cmpi ne, %10, %c0_i32_9 : i32
    scf.if %11 {
      %c0_10 = arith.constant 0 : index
      %c0_11 = arith.constant 0 : index
      %12 = vector.load %arg7[%c0_10, %c0_11] : memref<512x128xf32, #tpu.memory_space<vmem>>, vector<512x128xf32>
      %c0_12 = arith.constant 0 : index
      %c0_13 = arith.constant 0 : index
      %13 = vector.load %arg5[%c0_12, %c0_13] : memref<1x128xf32, #tpu.memory_space<vmem>>, vector<1x128xf32>
      %14 = vector.broadcast %13 : vector<1x128xf32> to vector<512x128xf32>
      %15 = arith.addf %12, %14 : vector<512x128xf32>
      %c0_14 = arith.constant 0 : index
      %c0_15 = arith.constant 0 : index
      %16 = vector.load %arg6[%c0_14, %c0_15] : memref<512x128xf32, #tpu.memory_space<vmem>>, vector<512x128xf32>
      tpu.vector_store %arg6[%c0_14, %c0_15], %15 {strides = array<i32>} : memref<512x128xf32, #tpu.memory_space<vmem>>, vector<512x128xf32>,
    } else {
    }
    return
  }
  func.func @transform_0(%arg0: i32, %arg1: i32, %arg2: i32) -> (i32, i32) {
    %c0_i32 = arith.constant 0 : i32
    return %arg0, %arg2 : i32, i32
  }
  func.func @transform_1(%arg0: i32, %arg1: i32, %arg2: i32) -> (i32, i32) {
    %c0_i32 = arith.constant 0 : i32
    return %arg2, %arg1 : i32, i32
  }
  func.func @transform_2(%arg0: i32, %arg1: i32, %arg2: i32) -> (i32, i32) {
    %c0_i32 = arith.constant 0 : i32
    %c0_i32_0 = arith.constant 0 : i32
    return %c0_i32, %arg1 : i32, i32
  }
  func.func @transform_3(%arg0: i32, %arg1: i32, %arg2: i32) -> (i32, i32) {
    %c0_i32 = arith.constant 0 : i32
    return %arg0, %arg1 : i32, i32
  }
}

module attributes {stable_mosaic.version = 11 : i64} {
  func.func @_inorm_kernel(%arg0: i32, %arg1: i32, %arg2: memref<1x256x64xf32, #tpu.memory_space<vmem>>, %arg3: memref<1x256x64xf32, #tpu.memory_space<vmem>>) attributes {dimension_semantics = [#tpu.dimension_semantics<parallel>, #tpu.dimension_semantics<parallel>], iteration_bounds = array<i64: 2, 1>, scalar_prefetch = 0 : i64, scratch_operands = 0 : i64, tpu.core_type = #tpu.core_type<tc>, window_params = [{transform_indices = @transform_0, window_bounds = array<i64: 1, 256, 64>}, {transform_indices = @transform_1, window_bounds = array<i64: 1, 256, 64>}]} {
    %c0 = arith.constant 0 : index
    %c0_0 = arith.constant 0 : index
    %c0_1 = arith.constant 0 : index
    %0 = vector.load %arg2[%c0, %c0_0, %c0_1] : memref<1x256x64xf32, #tpu.memory_space<vmem>>, vector<1x256x64xf32>
    %cst = arith.constant dense<0.000000e+00> : vector<1x64xf32>
    %1 = vector.multi_reduction <add>, %0, %cst [1] : vector<1x256x64xf32> to vector<1x64xf32>
    %2 = vector.shape_cast %1 : vector<1x64xf32> to vector<1x1x64xf32>
    %3 = arith.mulf %0, %0 : vector<1x256x64xf32>
    %cst_2 = arith.constant dense<0.000000e+00> : vector<1x64xf32>
    %4 = vector.multi_reduction <add>, %3, %cst_2 [1] : vector<1x256x64xf32> to vector<1x64xf32>
    %5 = vector.shape_cast %4 : vector<1x64xf32> to vector<1x1x64xf32>
    %cst_3 = arith.constant 3.906250e-03 : f32
    %6 = vector.broadcast %cst_3 : f32 to vector<1x1x64xf32>
    %7 = arith.mulf %2, %6 : vector<1x1x64xf32>
    %cst_4 = arith.constant 3.906250e-03 : f32
    %8 = vector.broadcast %cst_4 : f32 to vector<1x1x64xf32>
    %9 = arith.mulf %5, %8 : vector<1x1x64xf32>
    %10 = arith.mulf %7, %7 : vector<1x1x64xf32>
    %11 = arith.subf %9, %10 : vector<1x1x64xf32>
    %cst_5 = arith.constant 0.000000e+00 : f32
    %12 = vector.broadcast %cst_5 : f32 to vector<1x1x64xf32>
    %13 = arith.maximumf %11, %12 : vector<1x1x64xf32>
    %14 = vector.broadcast %7 : vector<1x1x64xf32> to vector<1x256x64xf32>
    %15 = arith.subf %0, %14 : vector<1x256x64xf32>
    %cst_6 = arith.constant 9.99999974E-6 : f32
    %16 = vector.broadcast %cst_6 : f32 to vector<1x1x64xf32>
    %17 = arith.addf %13, %16 : vector<1x1x64xf32>
    %18 = math.rsqrt %17 : vector<1x1x64xf32>
    %19 = vector.broadcast %18 : vector<1x1x64xf32> to vector<1x256x64xf32>
    %20 = arith.mulf %15, %19 : vector<1x256x64xf32>
    %cst_7 = arith.constant 0.000000e+00 : f32
    %21 = vector.broadcast %cst_7 : f32 to vector<1x256x64xf32>
    %22 = arith.maximumf %20, %21 : vector<1x256x64xf32>
    %c0_8 = arith.constant 0 : index
    %c0_9 = arith.constant 0 : index
    %c0_10 = arith.constant 0 : index
    %23 = vector.load %arg3[%c0_8, %c0_9, %c0_10] : memref<1x256x64xf32, #tpu.memory_space<vmem>>, vector<1x256x64xf32>
    tpu.vector_store %arg3[%c0_8, %c0_9, %c0_10], %22 {strides = array<i32>} : memref<1x256x64xf32, #tpu.memory_space<vmem>>, vector<1x256x64xf32>,
    return
  }
  func.func @transform_0(%arg0: i32, %arg1: i32) -> (i32, i32, i32) {
    %c0_i32 = arith.constant 0 : i32
    %c0_i32_0 = arith.constant 0 : i32
    return %arg0, %c0_i32, %arg1 : i32, i32, i32
  }
  func.func @transform_1(%arg0: i32, %arg1: i32) -> (i32, i32, i32) {
    %c0_i32 = arith.constant 0 : i32
    %c0_i32_0 = arith.constant 0 : i32
    return %arg0, %c0_i32, %arg1 : i32, i32, i32
  }
}

module attributes {stable_mosaic.version = 11 : i64} {
  func.func @_matmul_bias_kernel(%arg0: i32, %arg1: i32, %arg2: i32, %arg3: memref<128x128xbf16, #tpu.memory_space<vmem>>, %arg4: memref<128x128xbf16, #tpu.memory_space<vmem>>, %arg5: memref<1x128xf32, #tpu.memory_space<vmem>>, %arg6: memref<128x128xf32, #tpu.memory_space<vmem>>, %arg7: memref<128x128xf32, #tpu.memory_space<vmem>>) attributes {dimension_semantics = [#tpu.dimension_semantics<parallel>, #tpu.dimension_semantics<parallel>, #tpu.dimension_semantics<arbitrary>], iteration_bounds = array<i64: 1, 1, 5>, scalar_prefetch = 0 : i64, scratch_operands = 1 : i64, tpu.core_type = #tpu.core_type<tc>, window_params = [{transform_indices = @transform_0, window_bounds = array<i64: 128, 128>}, {transform_indices = @transform_1, window_bounds = array<i64: 128, 128>}, {transform_indices = @transform_2, window_bounds = array<i64: 1, 128>}, {transform_indices = @transform_3, window_bounds = array<i64: 128, 128>}]} {
    %c0_i32 = arith.constant 0 : i32
    %0 = arith.cmpi eq, %arg2, %c0_i32 : i32
    %1 = arith.extui %0 : i1 to i32
    %c0_i32_0 = arith.constant 0 : i32
    %2 = arith.cmpi ne, %1, %c0_i32_0 : i32
    scf.if %2 {
      %cst_9 = arith.constant 0.000000e+00 : f32
      %12 = vector.broadcast %cst_9 : f32 to vector<128x128xf32>
      %c0_10 = arith.constant 0 : index
      %c0_11 = arith.constant 0 : index
      %13 = vector.load %arg7[%c0_10, %c0_11] : memref<128x128xf32, #tpu.memory_space<vmem>>, vector<128x128xf32>
      tpu.vector_store %arg7[%c0_10, %c0_11], %12 {strides = array<i32>} : memref<128x128xf32, #tpu.memory_space<vmem>>, vector<128x128xf32>,
    } else {
    }
    %c0 = arith.constant 0 : index
    %c0_1 = arith.constant 0 : index
    %3 = vector.load %arg7[%c0, %c0_1] : memref<128x128xf32, #tpu.memory_space<vmem>>, vector<128x128xf32>
    %c0_2 = arith.constant 0 : index
    %c0_3 = arith.constant 0 : index
    %4 = vector.load %arg3[%c0_2, %c0_3] : memref<128x128xbf16, #tpu.memory_space<vmem>>, vector<128x128xbf16>
    %c0_4 = arith.constant 0 : index
    %c0_5 = arith.constant 0 : index
    %5 = vector.load %arg4[%c0_4, %c0_5] : memref<128x128xbf16, #tpu.memory_space<vmem>>, vector<128x128xbf16>
    %cst = arith.constant dense<0.000000e+00> : vector<128x128xf32>
    %6 = tpu.matmul %4, %5, %cst {dimension_numbers = #tpu.dot_dimension_numbers<[1], [0], [0], [1], [0, 0, 1, 1], [], []>} : vector<128x128xbf16>, vector<128x128xbf16>, vector<128x128xf32> -> vector<128x128xf32>
    %7 = arith.addf %3, %6 : vector<128x128xf32>
    %c0_6 = arith.constant 0 : index
    %c0_7 = arith.constant 0 : index
    %8 = vector.load %arg7[%c0_6, %c0_7] : memref<128x128xf32, #tpu.memory_space<vmem>>, vector<128x128xf32>
    tpu.vector_store %arg7[%c0_6, %c0_7], %7 {strides = array<i32>} : memref<128x128xf32, #tpu.memory_space<vmem>>, vector<128x128xf32>,
    %c4_i32 = arith.constant 4 : i32
    %9 = arith.cmpi eq, %arg2, %c4_i32 : i32
    %10 = arith.extui %9 : i1 to i32
    %c0_i32_8 = arith.constant 0 : i32
    %11 = arith.cmpi ne, %10, %c0_i32_8 : i32
    scf.if %11 {
      %c0_9 = arith.constant 0 : index
      %c0_10 = arith.constant 0 : index
      %12 = vector.load %arg7[%c0_9, %c0_10] : memref<128x128xf32, #tpu.memory_space<vmem>>, vector<128x128xf32>
      %c0_11 = arith.constant 0 : index
      %c0_12 = arith.constant 0 : index
      %13 = vector.load %arg5[%c0_11, %c0_12] : memref<1x128xf32, #tpu.memory_space<vmem>>, vector<1x128xf32>
      %14 = vector.broadcast %13 : vector<1x128xf32> to vector<128x128xf32>
      %15 = arith.addf %12, %14 : vector<128x128xf32>
      %c0_13 = arith.constant 0 : index
      %c0_14 = arith.constant 0 : index
      %16 = vector.load %arg6[%c0_13, %c0_14] : memref<128x128xf32, #tpu.memory_space<vmem>>, vector<128x128xf32>
      tpu.vector_store %arg6[%c0_13, %c0_14], %15 {strides = array<i32>} : memref<128x128xf32, #tpu.memory_space<vmem>>, vector<128x128xf32>,
    } else {
    }
    return
  }
  func.func @transform_0(%arg0: i32, %arg1: i32, %arg2: i32) -> (i32, i32) {
    %c0_i32 = arith.constant 0 : i32
    return %arg0, %arg2 : i32, i32
  }
  func.func @transform_1(%arg0: i32, %arg1: i32, %arg2: i32) -> (i32, i32) {
    %c0_i32 = arith.constant 0 : i32
    return %arg2, %arg1 : i32, i32
  }
  func.func @transform_2(%arg0: i32, %arg1: i32, %arg2: i32) -> (i32, i32) {
    %c0_i32 = arith.constant 0 : i32
    %c0_i32_0 = arith.constant 0 : i32
    return %c0_i32, %arg1 : i32, i32
  }
  func.func @transform_3(%arg0: i32, %arg1: i32, %arg2: i32) -> (i32, i32) {
    %c0_i32 = arith.constant 0 : i32
    return %arg0, %arg1 : i32, i32
  }
}

module attributes {stable_mosaic.version = 11 : i64} {
  func.func @_inorm_kernel(%arg0: i32, %arg1: i32, %arg2: memref<1x64x128xf32, #tpu.memory_space<vmem>>, %arg3: memref<1x64x128xf32, #tpu.memory_space<vmem>>) attributes {dimension_semantics = [#tpu.dimension_semantics<parallel>, #tpu.dimension_semantics<parallel>], iteration_bounds = array<i64: 2, 1>, scalar_prefetch = 0 : i64, scratch_operands = 0 : i64, tpu.core_type = #tpu.core_type<tc>, window_params = [{transform_indices = @transform_0, window_bounds = array<i64: 1, 64, 128>}, {transform_indices = @transform_1, window_bounds = array<i64: 1, 64, 128>}]} {
    %c0 = arith.constant 0 : index
    %c0_0 = arith.constant 0 : index
    %c0_1 = arith.constant 0 : index
    %0 = vector.load %arg2[%c0, %c0_0, %c0_1] : memref<1x64x128xf32, #tpu.memory_space<vmem>>, vector<1x64x128xf32>
    %cst = arith.constant dense<0.000000e+00> : vector<1x128xf32>
    %1 = vector.multi_reduction <add>, %0, %cst [1] : vector<1x64x128xf32> to vector<1x128xf32>
    %2 = vector.shape_cast %1 : vector<1x128xf32> to vector<1x1x128xf32>
    %3 = arith.mulf %0, %0 : vector<1x64x128xf32>
    %cst_2 = arith.constant dense<0.000000e+00> : vector<1x128xf32>
    %4 = vector.multi_reduction <add>, %3, %cst_2 [1] : vector<1x64x128xf32> to vector<1x128xf32>
    %5 = vector.shape_cast %4 : vector<1x128xf32> to vector<1x1x128xf32>
    %cst_3 = arith.constant 1.562500e-02 : f32
    %6 = vector.broadcast %cst_3 : f32 to vector<1x1x128xf32>
    %7 = arith.mulf %2, %6 : vector<1x1x128xf32>
    %cst_4 = arith.constant 1.562500e-02 : f32
    %8 = vector.broadcast %cst_4 : f32 to vector<1x1x128xf32>
    %9 = arith.mulf %5, %8 : vector<1x1x128xf32>
    %10 = arith.mulf %7, %7 : vector<1x1x128xf32>
    %11 = arith.subf %9, %10 : vector<1x1x128xf32>
    %cst_5 = arith.constant 0.000000e+00 : f32
    %12 = vector.broadcast %cst_5 : f32 to vector<1x1x128xf32>
    %13 = arith.maximumf %11, %12 : vector<1x1x128xf32>
    %14 = vector.broadcast %7 : vector<1x1x128xf32> to vector<1x64x128xf32>
    %15 = arith.subf %0, %14 : vector<1x64x128xf32>
    %cst_6 = arith.constant 9.99999974E-6 : f32
    %16 = vector.broadcast %cst_6 : f32 to vector<1x1x128xf32>
    %17 = arith.addf %13, %16 : vector<1x1x128xf32>
    %18 = math.rsqrt %17 : vector<1x1x128xf32>
    %19 = vector.broadcast %18 : vector<1x1x128xf32> to vector<1x64x128xf32>
    %20 = arith.mulf %15, %19 : vector<1x64x128xf32>
    %cst_7 = arith.constant 0.000000e+00 : f32
    %21 = vector.broadcast %cst_7 : f32 to vector<1x64x128xf32>
    %22 = arith.maximumf %20, %21 : vector<1x64x128xf32>
    %c0_8 = arith.constant 0 : index
    %c0_9 = arith.constant 0 : index
    %c0_10 = arith.constant 0 : index
    %23 = vector.load %arg3[%c0_8, %c0_9, %c0_10] : memref<1x64x128xf32, #tpu.memory_space<vmem>>, vector<1x64x128xf32>
    tpu.vector_store %arg3[%c0_8, %c0_9, %c0_10], %22 {strides = array<i32>} : memref<1x64x128xf32, #tpu.memory_space<vmem>>, vector<1x64x128xf32>,
    return
  }
  func.func @transform_0(%arg0: i32, %arg1: i32) -> (i32, i32, i32) {
    %c0_i32 = arith.constant 0 : i32
    %c0_i32_0 = arith.constant 0 : i32
    return %arg0, %c0_i32, %arg1 : i32, i32, i32
  }
  func.func @transform_1(%arg0: i32, %arg1: i32) -> (i32, i32, i32) {
    %c0_i32 = arith.constant 0 : i32
    %c0_i32_0 = arith.constant 0 : i32
    return %arg0, %c0_i32, %arg1 : i32, i32, i32
  }
}

module attributes {stable_mosaic.version = 11 : i64} {
  func.func @_matmul_bias_kernel(%arg0: i32, %arg1: i32, %arg2: i32, %arg3: memref<32x384xbf16, #tpu.memory_space<vmem>>, %arg4: memref<384x256xbf16, #tpu.memory_space<vmem>>, %arg5: memref<1x256xf32, #tpu.memory_space<vmem>>, %arg6: memref<32x256xf32, #tpu.memory_space<vmem>>, %arg7: memref<32x256xf32, #tpu.memory_space<vmem>>) attributes {dimension_semantics = [#tpu.dimension_semantics<parallel>, #tpu.dimension_semantics<parallel>, #tpu.dimension_semantics<arbitrary>], iteration_bounds = array<i64: 1, 1, 3>, scalar_prefetch = 0 : i64, scratch_operands = 1 : i64, tpu.core_type = #tpu.core_type<tc>, window_params = [{transform_indices = @transform_0, window_bounds = array<i64: 32, 384>}, {transform_indices = @transform_1, window_bounds = array<i64: 384, 256>}, {transform_indices = @transform_2, window_bounds = array<i64: 1, 256>}, {transform_indices = @transform_3, window_bounds = array<i64: 32, 256>}]} {
    %c0_i32 = arith.constant 0 : i32
    %0 = arith.cmpi eq, %arg2, %c0_i32 : i32
    %1 = arith.extui %0 : i1 to i32
    %c0_i32_0 = arith.constant 0 : i32
    %2 = arith.cmpi ne, %1, %c0_i32_0 : i32
    scf.if %2 {
      %cst_9 = arith.constant 0.000000e+00 : f32
      %12 = vector.broadcast %cst_9 : f32 to vector<32x256xf32>
      %c0_10 = arith.constant 0 : index
      %c0_11 = arith.constant 0 : index
      %13 = vector.load %arg7[%c0_10, %c0_11] : memref<32x256xf32, #tpu.memory_space<vmem>>, vector<32x256xf32>
      tpu.vector_store %arg7[%c0_10, %c0_11], %12 {strides = array<i32>} : memref<32x256xf32, #tpu.memory_space<vmem>>, vector<32x256xf32>,
    } else {
    }
    %c0 = arith.constant 0 : index
    %c0_1 = arith.constant 0 : index
    %3 = vector.load %arg7[%c0, %c0_1] : memref<32x256xf32, #tpu.memory_space<vmem>>, vector<32x256xf32>
    %c0_2 = arith.constant 0 : index
    %c0_3 = arith.constant 0 : index
    %4 = vector.load %arg3[%c0_2, %c0_3] : memref<32x384xbf16, #tpu.memory_space<vmem>>, vector<32x384xbf16>
    %c0_4 = arith.constant 0 : index
    %c0_5 = arith.constant 0 : index
    %5 = vector.load %arg4[%c0_4, %c0_5] : memref<384x256xbf16, #tpu.memory_space<vmem>>, vector<384x256xbf16>
    %cst = arith.constant dense<0.000000e+00> : vector<32x256xf32>
    %6 = tpu.matmul %4, %5, %cst {dimension_numbers = #tpu.dot_dimension_numbers<[1], [0], [0], [1], [0, 0, 1, 1], [], []>} : vector<32x384xbf16>, vector<384x256xbf16>, vector<32x256xf32> -> vector<32x256xf32>
    %7 = arith.addf %3, %6 : vector<32x256xf32>
    %c0_6 = arith.constant 0 : index
    %c0_7 = arith.constant 0 : index
    %8 = vector.load %arg7[%c0_6, %c0_7] : memref<32x256xf32, #tpu.memory_space<vmem>>, vector<32x256xf32>
    tpu.vector_store %arg7[%c0_6, %c0_7], %7 {strides = array<i32>} : memref<32x256xf32, #tpu.memory_space<vmem>>, vector<32x256xf32>,
    %c2_i32 = arith.constant 2 : i32
    %9 = arith.cmpi eq, %arg2, %c2_i32 : i32
    %10 = arith.extui %9 : i1 to i32
    %c0_i32_8 = arith.constant 0 : i32
    %11 = arith.cmpi ne, %10, %c0_i32_8 : i32
    scf.if %11 {
      %c0_9 = arith.constant 0 : index
      %c0_10 = arith.constant 0 : index
      %12 = vector.load %arg7[%c0_9, %c0_10] : memref<32x256xf32, #tpu.memory_space<vmem>>, vector<32x256xf32>
      %c0_11 = arith.constant 0 : index
      %c0_12 = arith.constant 0 : index
      %13 = vector.load %arg5[%c0_11, %c0_12] : memref<1x256xf32, #tpu.memory_space<vmem>>, vector<1x256xf32>
      %14 = vector.broadcast %13 : vector<1x256xf32> to vector<32x256xf32>
      %15 = arith.addf %12, %14 : vector<32x256xf32>
      %c0_13 = arith.constant 0 : index
      %c0_14 = arith.constant 0 : index
      %16 = vector.load %arg6[%c0_13, %c0_14] : memref<32x256xf32, #tpu.memory_space<vmem>>, vector<32x256xf32>
      tpu.vector_store %arg6[%c0_13, %c0_14], %15 {strides = array<i32>} : memref<32x256xf32, #tpu.memory_space<vmem>>, vector<32x256xf32>,
    } else {
    }
    return
  }
  func.func @transform_0(%arg0: i32, %arg1: i32, %arg2: i32) -> (i32, i32) {
    %c0_i32 = arith.constant 0 : i32
    return %arg0, %arg2 : i32, i32
  }
  func.func @transform_1(%arg0: i32, %arg1: i32, %arg2: i32) -> (i32, i32) {
    %c0_i32 = arith.constant 0 : i32
    return %arg2, %arg1 : i32, i32
  }
  func.func @transform_2(%arg0: i32, %arg1: i32, %arg2: i32) -> (i32, i32) {
    %c0_i32 = arith.constant 0 : i32
    %c0_i32_0 = arith.constant 0 : i32
    return %c0_i32, %arg1 : i32, i32
  }
  func.func @transform_3(%arg0: i32, %arg1: i32, %arg2: i32) -> (i32, i32) {
    %c0_i32 = arith.constant 0 : i32
    return %arg0, %arg1 : i32, i32
  }
}

module attributes {stable_mosaic.version = 11 : i64} {
  func.func @_inorm_kernel(%arg0: i32, %arg1: i32, %arg2: memref<1x16x128xf32, #tpu.memory_space<vmem>>, %arg3: memref<1x16x128xf32, #tpu.memory_space<vmem>>) attributes {dimension_semantics = [#tpu.dimension_semantics<parallel>, #tpu.dimension_semantics<parallel>], iteration_bounds = array<i64: 2, 2>, scalar_prefetch = 0 : i64, scratch_operands = 0 : i64, tpu.core_type = #tpu.core_type<tc>, window_params = [{transform_indices = @transform_0, window_bounds = array<i64: 1, 16, 128>}, {transform_indices = @transform_1, window_bounds = array<i64: 1, 16, 128>}]} {
    %c0 = arith.constant 0 : index
    %c0_0 = arith.constant 0 : index
    %c0_1 = arith.constant 0 : index
    %0 = vector.load %arg2[%c0, %c0_0, %c0_1] : memref<1x16x128xf32, #tpu.memory_space<vmem>>, vector<1x16x128xf32>
    %cst = arith.constant dense<0.000000e+00> : vector<1x128xf32>
    %1 = vector.multi_reduction <add>, %0, %cst [1] : vector<1x16x128xf32> to vector<1x128xf32>
    %2 = vector.shape_cast %1 : vector<1x128xf32> to vector<1x1x128xf32>
    %3 = arith.mulf %0, %0 : vector<1x16x128xf32>
    %cst_2 = arith.constant dense<0.000000e+00> : vector<1x128xf32>
    %4 = vector.multi_reduction <add>, %3, %cst_2 [1] : vector<1x16x128xf32> to vector<1x128xf32>
    %5 = vector.shape_cast %4 : vector<1x128xf32> to vector<1x1x128xf32>
    %cst_3 = arith.constant 6.250000e-02 : f32
    %6 = vector.broadcast %cst_3 : f32 to vector<1x1x128xf32>
    %7 = arith.mulf %2, %6 : vector<1x1x128xf32>
    %cst_4 = arith.constant 6.250000e-02 : f32
    %8 = vector.broadcast %cst_4 : f32 to vector<1x1x128xf32>
    %9 = arith.mulf %5, %8 : vector<1x1x128xf32>
    %10 = arith.mulf %7, %7 : vector<1x1x128xf32>
    %11 = arith.subf %9, %10 : vector<1x1x128xf32>
    %cst_5 = arith.constant 0.000000e+00 : f32
    %12 = vector.broadcast %cst_5 : f32 to vector<1x1x128xf32>
    %13 = arith.maximumf %11, %12 : vector<1x1x128xf32>
    %14 = vector.broadcast %7 : vector<1x1x128xf32> to vector<1x16x128xf32>
    %15 = arith.subf %0, %14 : vector<1x16x128xf32>
    %cst_6 = arith.constant 9.99999974E-6 : f32
    %16 = vector.broadcast %cst_6 : f32 to vector<1x1x128xf32>
    %17 = arith.addf %13, %16 : vector<1x1x128xf32>
    %18 = math.rsqrt %17 : vector<1x1x128xf32>
    %19 = vector.broadcast %18 : vector<1x1x128xf32> to vector<1x16x128xf32>
    %20 = arith.mulf %15, %19 : vector<1x16x128xf32>
    %cst_7 = arith.constant 0.000000e+00 : f32
    %21 = vector.broadcast %cst_7 : f32 to vector<1x16x128xf32>
    %22 = arith.maximumf %20, %21 : vector<1x16x128xf32>
    %c0_8 = arith.constant 0 : index
    %c0_9 = arith.constant 0 : index
    %c0_10 = arith.constant 0 : index
    %23 = vector.load %arg3[%c0_8, %c0_9, %c0_10] : memref<1x16x128xf32, #tpu.memory_space<vmem>>, vector<1x16x128xf32>
    tpu.vector_store %arg3[%c0_8, %c0_9, %c0_10], %22 {strides = array<i32>} : memref<1x16x128xf32, #tpu.memory_space<vmem>>, vector<1x16x128xf32>,
    return
  }
  func.func @transform_0(%arg0: i32, %arg1: i32) -> (i32, i32, i32) {
    %c0_i32 = arith.constant 0 : i32
    %c0_i32_0 = arith.constant 0 : i32
    return %arg0, %c0_i32, %arg1 : i32, i32, i32
  }
  func.func @transform_1(%arg0: i32, %arg1: i32) -> (i32, i32, i32) {
    %c0_i32 = arith.constant 0 : i32
    %c0_i32_0 = arith.constant 0 : i32
    return %arg0, %c0_i32, %arg1 : i32, i32, i32
  }
}

module attributes {stable_mosaic.version = 11 : i64} {
  func.func @_matmul_bias_kernel(%arg0: i32, %arg1: i32, %arg2: i32, %arg3: memref<32x384xbf16, #tpu.memory_space<vmem>>, %arg4: memref<384x256xbf16, #tpu.memory_space<vmem>>, %arg5: memref<1x256xf32, #tpu.memory_space<vmem>>, %arg6: memref<32x256xf32, #tpu.memory_space<vmem>>, %arg7: memref<32x256xf32, #tpu.memory_space<vmem>>) attributes {dimension_semantics = [#tpu.dimension_semantics<parallel>, #tpu.dimension_semantics<parallel>, #tpu.dimension_semantics<arbitrary>], iteration_bounds = array<i64: 1, 1, 6>, scalar_prefetch = 0 : i64, scratch_operands = 1 : i64, tpu.core_type = #tpu.core_type<tc>, window_params = [{transform_indices = @transform_0, window_bounds = array<i64: 32, 384>}, {transform_indices = @transform_1, window_bounds = array<i64: 384, 256>}, {transform_indices = @transform_2, window_bounds = array<i64: 1, 256>}, {transform_indices = @transform_3, window_bounds = array<i64: 32, 256>}]} {
    %c0_i32 = arith.constant 0 : i32
    %0 = arith.cmpi eq, %arg2, %c0_i32 : i32
    %1 = arith.extui %0 : i1 to i32
    %c0_i32_0 = arith.constant 0 : i32
    %2 = arith.cmpi ne, %1, %c0_i32_0 : i32
    scf.if %2 {
      %cst_9 = arith.constant 0.000000e+00 : f32
      %12 = vector.broadcast %cst_9 : f32 to vector<32x256xf32>
      %c0_10 = arith.constant 0 : index
      %c0_11 = arith.constant 0 : index
      %13 = vector.load %arg7[%c0_10, %c0_11] : memref<32x256xf32, #tpu.memory_space<vmem>>, vector<32x256xf32>
      tpu.vector_store %arg7[%c0_10, %c0_11], %12 {strides = array<i32>} : memref<32x256xf32, #tpu.memory_space<vmem>>, vector<32x256xf32>,
    } else {
    }
    %c0 = arith.constant 0 : index
    %c0_1 = arith.constant 0 : index
    %3 = vector.load %arg7[%c0, %c0_1] : memref<32x256xf32, #tpu.memory_space<vmem>>, vector<32x256xf32>
    %c0_2 = arith.constant 0 : index
    %c0_3 = arith.constant 0 : index
    %4 = vector.load %arg3[%c0_2, %c0_3] : memref<32x384xbf16, #tpu.memory_space<vmem>>, vector<32x384xbf16>
    %c0_4 = arith.constant 0 : index
    %c0_5 = arith.constant 0 : index
    %5 = vector.load %arg4[%c0_4, %c0_5] : memref<384x256xbf16, #tpu.memory_space<vmem>>, vector<384x256xbf16>
    %cst = arith.constant dense<0.000000e+00> : vector<32x256xf32>
    %6 = tpu.matmul %4, %5, %cst {dimension_numbers = #tpu.dot_dimension_numbers<[1], [0], [0], [1], [0, 0, 1, 1], [], []>} : vector<32x384xbf16>, vector<384x256xbf16>, vector<32x256xf32> -> vector<32x256xf32>
    %7 = arith.addf %3, %6 : vector<32x256xf32>
    %c0_6 = arith.constant 0 : index
    %c0_7 = arith.constant 0 : index
    %8 = vector.load %arg7[%c0_6, %c0_7] : memref<32x256xf32, #tpu.memory_space<vmem>>, vector<32x256xf32>
    tpu.vector_store %arg7[%c0_6, %c0_7], %7 {strides = array<i32>} : memref<32x256xf32, #tpu.memory_space<vmem>>, vector<32x256xf32>,
    %c5_i32 = arith.constant 5 : i32
    %9 = arith.cmpi eq, %arg2, %c5_i32 : i32
    %10 = arith.extui %9 : i1 to i32
    %c0_i32_8 = arith.constant 0 : i32
    %11 = arith.cmpi ne, %10, %c0_i32_8 : i32
    scf.if %11 {
      %c0_9 = arith.constant 0 : index
      %c0_10 = arith.constant 0 : index
      %12 = vector.load %arg7[%c0_9, %c0_10] : memref<32x256xf32, #tpu.memory_space<vmem>>, vector<32x256xf32>
      %c0_11 = arith.constant 0 : index
      %c0_12 = arith.constant 0 : index
      %13 = vector.load %arg5[%c0_11, %c0_12] : memref<1x256xf32, #tpu.memory_space<vmem>>, vector<1x256xf32>
      %14 = vector.broadcast %13 : vector<1x256xf32> to vector<32x256xf32>
      %15 = arith.addf %12, %14 : vector<32x256xf32>
      %c0_13 = arith.constant 0 : index
      %c0_14 = arith.constant 0 : index
      %16 = vector.load %arg6[%c0_13, %c0_14] : memref<32x256xf32, #tpu.memory_space<vmem>>, vector<32x256xf32>
      tpu.vector_store %arg6[%c0_13, %c0_14], %15 {strides = array<i32>} : memref<32x256xf32, #tpu.memory_space<vmem>>, vector<32x256xf32>,
    } else {
    }
    return
  }
  func.func @transform_0(%arg0: i32, %arg1: i32, %arg2: i32) -> (i32, i32) {
    %c0_i32 = arith.constant 0 : i32
    return %arg0, %arg2 : i32, i32
  }
  func.func @transform_1(%arg0: i32, %arg1: i32, %arg2: i32) -> (i32, i32) {
    %c0_i32 = arith.constant 0 : i32
    return %arg2, %arg1 : i32, i32
  }
  func.func @transform_2(%arg0: i32, %arg1: i32, %arg2: i32) -> (i32, i32) {
    %c0_i32 = arith.constant 0 : i32
    %c0_i32_0 = arith.constant 0 : i32
    return %c0_i32, %arg1 : i32, i32
  }
  func.func @transform_3(%arg0: i32, %arg1: i32, %arg2: i32) -> (i32, i32) {
    %c0_i32 = arith.constant 0 : i32
    return %arg0, %arg1 : i32, i32
  }
}

module attributes {stable_mosaic.version = 11 : i64} {
  func.func @_matmul_bias_kernel(%arg0: i32, %arg1: i32, %arg2: i32, %arg3: memref<32x384xbf16, #tpu.memory_space<vmem>>, %arg4: memref<384x256xbf16, #tpu.memory_space<vmem>>, %arg5: memref<1x256xf32, #tpu.memory_space<vmem>>, %arg6: memref<32x256xf32, #tpu.memory_space<vmem>>, %arg7: memref<32x256xf32, #tpu.memory_space<vmem>>) attributes {dimension_semantics = [#tpu.dimension_semantics<parallel>, #tpu.dimension_semantics<parallel>, #tpu.dimension_semantics<arbitrary>], iteration_bounds = array<i64: 1, 1, 6>, scalar_prefetch = 0 : i64, scratch_operands = 1 : i64, tpu.core_type = #tpu.core_type<tc>, window_params = [{transform_indices = @transform_0, window_bounds = array<i64: 32, 384>}, {transform_indices = @transform_1, window_bounds = array<i64: 384, 256>}, {transform_indices = @transform_2, window_bounds = array<i64: 1, 256>}, {transform_indices = @transform_3, window_bounds = array<i64: 32, 256>}]} {
    %c0_i32 = arith.constant 0 : i32
    %0 = arith.cmpi eq, %arg2, %c0_i32 : i32
    %1 = arith.extui %0 : i1 to i32
    %c0_i32_0 = arith.constant 0 : i32
    %2 = arith.cmpi ne, %1, %c0_i32_0 : i32
    scf.if %2 {
      %cst_9 = arith.constant 0.000000e+00 : f32
      %12 = vector.broadcast %cst_9 : f32 to vector<32x256xf32>
      %c0_10 = arith.constant 0 : index
      %c0_11 = arith.constant 0 : index
      %13 = vector.load %arg7[%c0_10, %c0_11] : memref<32x256xf32, #tpu.memory_space<vmem>>, vector<32x256xf32>
      tpu.vector_store %arg7[%c0_10, %c0_11], %12 {strides = array<i32>} : memref<32x256xf32, #tpu.memory_space<vmem>>, vector<32x256xf32>,
    } else {
    }
    %c0 = arith.constant 0 : index
    %c0_1 = arith.constant 0 : index
    %3 = vector.load %arg7[%c0, %c0_1] : memref<32x256xf32, #tpu.memory_space<vmem>>, vector<32x256xf32>
    %c0_2 = arith.constant 0 : index
    %c0_3 = arith.constant 0 : index
    %4 = vector.load %arg3[%c0_2, %c0_3] : memref<32x384xbf16, #tpu.memory_space<vmem>>, vector<32x384xbf16>
    %c0_4 = arith.constant 0 : index
    %c0_5 = arith.constant 0 : index
    %5 = vector.load %arg4[%c0_4, %c0_5] : memref<384x256xbf16, #tpu.memory_space<vmem>>, vector<384x256xbf16>
    %cst = arith.constant dense<0.000000e+00> : vector<32x256xf32>
    %6 = tpu.matmul %4, %5, %cst {dimension_numbers = #tpu.dot_dimension_numbers<[1], [0], [0], [1], [0, 0, 1, 1], [], []>} : vector<32x384xbf16>, vector<384x256xbf16>, vector<32x256xf32> -> vector<32x256xf32>
    %7 = arith.addf %3, %6 : vector<32x256xf32>
    %c0_6 = arith.constant 0 : index
    %c0_7 = arith.constant 0 : index
    %8 = vector.load %arg7[%c0_6, %c0_7] : memref<32x256xf32, #tpu.memory_space<vmem>>, vector<32x256xf32>
    tpu.vector_store %arg7[%c0_6, %c0_7], %7 {strides = array<i32>} : memref<32x256xf32, #tpu.memory_space<vmem>>, vector<32x256xf32>,
    %c5_i32 = arith.constant 5 : i32
    %9 = arith.cmpi eq, %arg2, %c5_i32 : i32
    %10 = arith.extui %9 : i1 to i32
    %c0_i32_8 = arith.constant 0 : i32
    %11 = arith.cmpi ne, %10, %c0_i32_8 : i32
    scf.if %11 {
      %c0_9 = arith.constant 0 : index
      %c0_10 = arith.constant 0 : index
      %12 = vector.load %arg7[%c0_9, %c0_10] : memref<32x256xf32, #tpu.memory_space<vmem>>, vector<32x256xf32>
      %c0_11 = arith.constant 0 : index
      %c0_12 = arith.constant 0 : index
      %13 = vector.load %arg5[%c0_11, %c0_12] : memref<1x256xf32, #tpu.memory_space<vmem>>, vector<1x256xf32>
      %14 = vector.broadcast %13 : vector<1x256xf32> to vector<32x256xf32>
      %15 = arith.addf %12, %14 : vector<32x256xf32>
      %c0_13 = arith.constant 0 : index
      %c0_14 = arith.constant 0 : index
      %16 = vector.load %arg6[%c0_13, %c0_14] : memref<32x256xf32, #tpu.memory_space<vmem>>, vector<32x256xf32>
      tpu.vector_store %arg6[%c0_13, %c0_14], %15 {strides = array<i32>} : memref<32x256xf32, #tpu.memory_space<vmem>>, vector<32x256xf32>,
    } else {
    }
    return
  }
  func.func @transform_0(%arg0: i32, %arg1: i32, %arg2: i32) -> (i32, i32) {
    %c0_i32 = arith.constant 0 : i32
    return %arg0, %arg2 : i32, i32
  }
  func.func @transform_1(%arg0: i32, %arg1: i32, %arg2: i32) -> (i32, i32) {
    %c0_i32 = arith.constant 0 : i32
    return %arg2, %arg1 : i32, i32
  }
  func.func @transform_2(%arg0: i32, %arg1: i32, %arg2: i32) -> (i32, i32) {
    %c0_i32 = arith.constant 0 : i32
    %c0_i32_0 = arith.constant 0 : i32
    return %c0_i32, %arg1 : i32, i32
  }
  func.func @transform_3(%arg0: i32, %arg1: i32, %arg2: i32) -> (i32, i32) {
    %c0_i32 = arith.constant 0 : i32
    return %arg0, %arg1 : i32, i32
  }
}

module attributes {stable_mosaic.version = 11 : i64} {
  func.func @_inorm_residual_kernel(%arg0: i32, %arg1: i32, %arg2: memref<1x16x128xf32, #tpu.memory_space<vmem>>, %arg3: memref<1x16x128xf32, #tpu.memory_space<vmem>>, %arg4: memref<1x16x128xf32, #tpu.memory_space<vmem>>) attributes {dimension_semantics = [#tpu.dimension_semantics<parallel>, #tpu.dimension_semantics<parallel>], iteration_bounds = array<i64: 2, 2>, scalar_prefetch = 0 : i64, scratch_operands = 0 : i64, tpu.core_type = #tpu.core_type<tc>, window_params = [{transform_indices = @transform_0, window_bounds = array<i64: 1, 16, 128>}, {transform_indices = @transform_1, window_bounds = array<i64: 1, 16, 128>}, {transform_indices = @transform_2, window_bounds = array<i64: 1, 16, 128>}]} {
    %c0 = arith.constant 0 : index
    %c0_0 = arith.constant 0 : index
    %c0_1 = arith.constant 0 : index
    %0 = vector.load %arg2[%c0, %c0_0, %c0_1] : memref<1x16x128xf32, #tpu.memory_space<vmem>>, vector<1x16x128xf32>
    %cst = arith.constant dense<0.000000e+00> : vector<1x128xf32>
    %1 = vector.multi_reduction <add>, %0, %cst [1] : vector<1x16x128xf32> to vector<1x128xf32>
    %2 = vector.shape_cast %1 : vector<1x128xf32> to vector<1x1x128xf32>
    %3 = arith.mulf %0, %0 : vector<1x16x128xf32>
    %cst_2 = arith.constant dense<0.000000e+00> : vector<1x128xf32>
    %4 = vector.multi_reduction <add>, %3, %cst_2 [1] : vector<1x16x128xf32> to vector<1x128xf32>
    %5 = vector.shape_cast %4 : vector<1x128xf32> to vector<1x1x128xf32>
    %cst_3 = arith.constant 6.250000e-02 : f32
    %6 = vector.broadcast %cst_3 : f32 to vector<1x1x128xf32>
    %7 = arith.mulf %2, %6 : vector<1x1x128xf32>
    %cst_4 = arith.constant 6.250000e-02 : f32
    %8 = vector.broadcast %cst_4 : f32 to vector<1x1x128xf32>
    %9 = arith.mulf %5, %8 : vector<1x1x128xf32>
    %10 = arith.mulf %7, %7 : vector<1x1x128xf32>
    %11 = arith.subf %9, %10 : vector<1x1x128xf32>
    %cst_5 = arith.constant 0.000000e+00 : f32
    %12 = vector.broadcast %cst_5 : f32 to vector<1x1x128xf32>
    %13 = arith.maximumf %11, %12 : vector<1x1x128xf32>
    %14 = vector.broadcast %7 : vector<1x1x128xf32> to vector<1x16x128xf32>
    %15 = arith.subf %0, %14 : vector<1x16x128xf32>
    %cst_6 = arith.constant 9.99999974E-6 : f32
    %16 = vector.broadcast %cst_6 : f32 to vector<1x1x128xf32>
    %17 = arith.addf %13, %16 : vector<1x1x128xf32>
    %18 = math.rsqrt %17 : vector<1x1x128xf32>
    %19 = vector.broadcast %18 : vector<1x1x128xf32> to vector<1x16x128xf32>
    %20 = arith.mulf %15, %19 : vector<1x16x128xf32>
    %c0_7 = arith.constant 0 : index
    %c0_8 = arith.constant 0 : index
    %c0_9 = arith.constant 0 : index
    %21 = vector.load %arg3[%c0_7, %c0_8, %c0_9] : memref<1x16x128xf32, #tpu.memory_space<vmem>>, vector<1x16x128xf32>
    %22 = arith.addf %20, %21 : vector<1x16x128xf32>
    %c0_10 = arith.constant 0 : index
    %c0_11 = arith.constant 0 : index
    %c0_12 = arith.constant 0 : index
    %23 = vector.load %arg4[%c0_10, %c0_11, %c0_12] : memref<1x16x128xf32, #tpu.memory_space<vmem>>, vector<1x16x128xf32>
    tpu.vector_store %arg4[%c0_10, %c0_11, %c0_12], %22 {strides = array<i32>} : memref<1x16x128xf32, #tpu.memory_space<vmem>>, vector<1x16x128xf32>,
    return
  }
  func.func @transform_0(%arg0: i32, %arg1: i32) -> (i32, i32, i32) {
    %c0_i32 = arith.constant 0 : i32
    %c0_i32_0 = arith.constant 0 : i32
    return %arg0, %c0_i32, %arg1 : i32, i32, i32
  }
  func.func @transform_1(%arg0: i32, %arg1: i32) -> (i32, i32, i32) {
    %c0_i32 = arith.constant 0 : i32
    %c0_i32_0 = arith.constant 0 : i32
    return %arg0, %c0_i32, %arg1 : i32, i32, i32
  }
  func.func @transform_2(%arg0: i32, %arg1: i32) -> (i32, i32, i32) {
    %c0_i32 = arith.constant 0 : i32
    %c0_i32_0 = arith.constant 0 : i32
    return %arg0, %c0_i32, %arg1 : i32, i32, i32
  }
}

module attributes {stable_mosaic.version = 11 : i64} {
  func.func @_matmul_bias_kernel(%arg0: i32, %arg1: i32, %arg2: i32, %arg3: memref<32x512xbf16, #tpu.memory_space<vmem>>, %arg4: memref<512x256xbf16, #tpu.memory_space<vmem>>, %arg5: memref<1x256xf32, #tpu.memory_space<vmem>>, %arg6: memref<32x256xf32, #tpu.memory_space<vmem>>, %arg7: memref<32x256xf32, #tpu.memory_space<vmem>>) attributes {dimension_semantics = [#tpu.dimension_semantics<parallel>, #tpu.dimension_semantics<parallel>, #tpu.dimension_semantics<arbitrary>], iteration_bounds = array<i64: 1, 2, 2>, scalar_prefetch = 0 : i64, scratch_operands = 1 : i64, tpu.core_type = #tpu.core_type<tc>, window_params = [{transform_indices = @transform_0, window_bounds = array<i64: 32, 512>}, {transform_indices = @transform_1, window_bounds = array<i64: 512, 256>}, {transform_indices = @transform_2, window_bounds = array<i64: 1, 256>}, {transform_indices = @transform_3, window_bounds = array<i64: 32, 256>}]} {
    %c0_i32 = arith.constant 0 : i32
    %0 = arith.cmpi eq, %arg2, %c0_i32 : i32
    %1 = arith.extui %0 : i1 to i32
    %c0_i32_0 = arith.constant 0 : i32
    %2 = arith.cmpi ne, %1, %c0_i32_0 : i32
    scf.if %2 {
      %cst_9 = arith.constant 0.000000e+00 : f32
      %12 = vector.broadcast %cst_9 : f32 to vector<32x256xf32>
      %c0_10 = arith.constant 0 : index
      %c0_11 = arith.constant 0 : index
      %13 = vector.load %arg7[%c0_10, %c0_11] : memref<32x256xf32, #tpu.memory_space<vmem>>, vector<32x256xf32>
      tpu.vector_store %arg7[%c0_10, %c0_11], %12 {strides = array<i32>} : memref<32x256xf32, #tpu.memory_space<vmem>>, vector<32x256xf32>,
    } else {
    }
    %c0 = arith.constant 0 : index
    %c0_1 = arith.constant 0 : index
    %3 = vector.load %arg7[%c0, %c0_1] : memref<32x256xf32, #tpu.memory_space<vmem>>, vector<32x256xf32>
    %c0_2 = arith.constant 0 : index
    %c0_3 = arith.constant 0 : index
    %4 = vector.load %arg3[%c0_2, %c0_3] : memref<32x512xbf16, #tpu.memory_space<vmem>>, vector<32x512xbf16>
    %c0_4 = arith.constant 0 : index
    %c0_5 = arith.constant 0 : index
    %5 = vector.load %arg4[%c0_4, %c0_5] : memref<512x256xbf16, #tpu.memory_space<vmem>>, vector<512x256xbf16>
    %cst = arith.constant dense<0.000000e+00> : vector<32x256xf32>
    %6 = tpu.matmul %4, %5, %cst {dimension_numbers = #tpu.dot_dimension_numbers<[1], [0], [0], [1], [0, 0, 1, 1], [], []>} : vector<32x512xbf16>, vector<512x256xbf16>, vector<32x256xf32> -> vector<32x256xf32>
    %7 = arith.addf %3, %6 : vector<32x256xf32>
    %c0_6 = arith.constant 0 : index
    %c0_7 = arith.constant 0 : index
    %8 = vector.load %arg7[%c0_6, %c0_7] : memref<32x256xf32, #tpu.memory_space<vmem>>, vector<32x256xf32>
    tpu.vector_store %arg7[%c0_6, %c0_7], %7 {strides = array<i32>} : memref<32x256xf32, #tpu.memory_space<vmem>>, vector<32x256xf32>,
    %c1_i32 = arith.constant 1 : i32
    %9 = arith.cmpi eq, %arg2, %c1_i32 : i32
    %10 = arith.extui %9 : i1 to i32
    %c0_i32_8 = arith.constant 0 : i32
    %11 = arith.cmpi ne, %10, %c0_i32_8 : i32
    scf.if %11 {
      %c0_9 = arith.constant 0 : index
      %c0_10 = arith.constant 0 : index
      %12 = vector.load %arg7[%c0_9, %c0_10] : memref<32x256xf32, #tpu.memory_space<vmem>>, vector<32x256xf32>
      %c0_11 = arith.constant 0 : index
      %c0_12 = arith.constant 0 : index
      %13 = vector.load %arg5[%c0_11, %c0_12] : memref<1x256xf32, #tpu.memory_space<vmem>>, vector<1x256xf32>
      %14 = vector.broadcast %13 : vector<1x256xf32> to vector<32x256xf32>
      %15 = arith.addf %12, %14 : vector<32x256xf32>
      %c0_13 = arith.constant 0 : index
      %c0_14 = arith.constant 0 : index
      %16 = vector.load %arg6[%c0_13, %c0_14] : memref<32x256xf32, #tpu.memory_space<vmem>>, vector<32x256xf32>
      tpu.vector_store %arg6[%c0_13, %c0_14], %15 {strides = array<i32>} : memref<32x256xf32, #tpu.memory_space<vmem>>, vector<32x256xf32>,
    } else {
    }
    return
  }
  func.func @transform_0(%arg0: i32, %arg1: i32, %arg2: i32) -> (i32, i32) {
    %c0_i32 = arith.constant 0 : i32
    return %arg0, %arg2 : i32, i32
  }
  func.func @transform_1(%arg0: i32, %arg1: i32, %arg2: i32) -> (i32, i32) {
    %c0_i32 = arith.constant 0 : i32
    return %arg2, %arg1 : i32, i32
  }
  func.func @transform_2(%arg0: i32, %arg1: i32, %arg2: i32) -> (i32, i32) {
    %c0_i32 = arith.constant 0 : i32
    %c0_i32_0 = arith.constant 0 : i32
    return %c0_i32, %arg1 : i32, i32
  }
  func.func @transform_3(%arg0: i32, %arg1: i32, %arg2: i32) -> (i32, i32) {
    %c0_i32 = arith.constant 0 : i32
    return %arg0, %arg1 : i32, i32
  }
}

module attributes {stable_mosaic.version = 11 : i64} {
  func.func @_matmul_bias_kernel(%arg0: i32, %arg1: i32, %arg2: i32, %arg3: memref<128x512xbf16, #tpu.memory_space<vmem>>, %arg4: memref<512x256xbf16, #tpu.memory_space<vmem>>, %arg5: memref<1x256xf32, #tpu.memory_space<vmem>>, %arg6: memref<128x256xf32, #tpu.memory_space<vmem>>, %arg7: memref<128x256xf32, #tpu.memory_space<vmem>>) attributes {dimension_semantics = [#tpu.dimension_semantics<parallel>, #tpu.dimension_semantics<parallel>, #tpu.dimension_semantics<arbitrary>], iteration_bounds = array<i64: 1, 1, 1>, scalar_prefetch = 0 : i64, scratch_operands = 1 : i64, tpu.core_type = #tpu.core_type<tc>, window_params = [{transform_indices = @transform_0, window_bounds = array<i64: 128, 512>}, {transform_indices = @transform_1, window_bounds = array<i64: 512, 256>}, {transform_indices = @transform_2, window_bounds = array<i64: 1, 256>}, {transform_indices = @transform_3, window_bounds = array<i64: 128, 256>}]} {
    %c0_i32 = arith.constant 0 : i32
    %0 = arith.cmpi eq, %arg2, %c0_i32 : i32
    %1 = arith.extui %0 : i1 to i32
    %c0_i32_0 = arith.constant 0 : i32
    %2 = arith.cmpi ne, %1, %c0_i32_0 : i32
    scf.if %2 {
      %cst_10 = arith.constant 0.000000e+00 : f32
      %12 = vector.broadcast %cst_10 : f32 to vector<128x256xf32>
      %c0_11 = arith.constant 0 : index
      %c0_12 = arith.constant 0 : index
      %13 = vector.load %arg7[%c0_11, %c0_12] : memref<128x256xf32, #tpu.memory_space<vmem>>, vector<128x256xf32>
      tpu.vector_store %arg7[%c0_11, %c0_12], %12 {strides = array<i32>} : memref<128x256xf32, #tpu.memory_space<vmem>>, vector<128x256xf32>,
    } else {
    }
    %c0 = arith.constant 0 : index
    %c0_1 = arith.constant 0 : index
    %3 = vector.load %arg7[%c0, %c0_1] : memref<128x256xf32, #tpu.memory_space<vmem>>, vector<128x256xf32>
    %c0_2 = arith.constant 0 : index
    %c0_3 = arith.constant 0 : index
    %4 = vector.load %arg3[%c0_2, %c0_3] : memref<128x512xbf16, #tpu.memory_space<vmem>>, vector<128x512xbf16>
    %c0_4 = arith.constant 0 : index
    %c0_5 = arith.constant 0 : index
    %5 = vector.load %arg4[%c0_4, %c0_5] : memref<512x256xbf16, #tpu.memory_space<vmem>>, vector<512x256xbf16>
    %cst = arith.constant dense<0.000000e+00> : vector<128x256xf32>
    %6 = tpu.matmul %4, %5, %cst {dimension_numbers = #tpu.dot_dimension_numbers<[1], [0], [0], [1], [0, 0, 1, 1], [], []>} : vector<128x512xbf16>, vector<512x256xbf16>, vector<128x256xf32> -> vector<128x256xf32>
    %7 = arith.addf %3, %6 : vector<128x256xf32>
    %c0_6 = arith.constant 0 : index
    %c0_7 = arith.constant 0 : index
    %8 = vector.load %arg7[%c0_6, %c0_7] : memref<128x256xf32, #tpu.memory_space<vmem>>, vector<128x256xf32>
    tpu.vector_store %arg7[%c0_6, %c0_7], %7 {strides = array<i32>} : memref<128x256xf32, #tpu.memory_space<vmem>>, vector<128x256xf32>,
    %c0_i32_8 = arith.constant 0 : i32
    %9 = arith.cmpi eq, %arg2, %c0_i32_8 : i32
    %10 = arith.extui %9 : i1 to i32
    %c0_i32_9 = arith.constant 0 : i32
    %11 = arith.cmpi ne, %10, %c0_i32_9 : i32
    scf.if %11 {
      %c0_10 = arith.constant 0 : index
      %c0_11 = arith.constant 0 : index
      %12 = vector.load %arg7[%c0_10, %c0_11] : memref<128x256xf32, #tpu.memory_space<vmem>>, vector<128x256xf32>
      %c0_12 = arith.constant 0 : index
      %c0_13 = arith.constant 0 : index
      %13 = vector.load %arg5[%c0_12, %c0_13] : memref<1x256xf32, #tpu.memory_space<vmem>>, vector<1x256xf32>
      %14 = vector.broadcast %13 : vector<1x256xf32> to vector<128x256xf32>
      %15 = arith.addf %12, %14 : vector<128x256xf32>
      %c0_14 = arith.constant 0 : index
      %c0_15 = arith.constant 0 : index
      %16 = vector.load %arg6[%c0_14, %c0_15] : memref<128x256xf32, #tpu.memory_space<vmem>>, vector<128x256xf32>
      tpu.vector_store %arg6[%c0_14, %c0_15], %15 {strides = array<i32>} : memref<128x256xf32, #tpu.memory_space<vmem>>, vector<128x256xf32>,
    } else {
    }
    return
  }
  func.func @transform_0(%arg0: i32, %arg1: i32, %arg2: i32) -> (i32, i32) {
    %c0_i32 = arith.constant 0 : i32
    return %arg0, %arg2 : i32, i32
  }
  func.func @transform_1(%arg0: i32, %arg1: i32, %arg2: i32) -> (i32, i32) {
    %c0_i32 = arith.constant 0 : i32
    return %arg2, %arg1 : i32, i32
  }
  func.func @transform_2(%arg0: i32, %arg1: i32, %arg2: i32) -> (i32, i32) {
    %c0_i32 = arith.constant 0 : i32
    %c0_i32_0 = arith.constant 0 : i32
    return %c0_i32, %arg1 : i32, i32
  }
  func.func @transform_3(%arg0: i32, %arg1: i32, %arg2: i32) -> (i32, i32) {
    %c0_i32 = arith.constant 0 : i32
    return %arg0, %arg1 : i32, i32
  }
}

module attributes {stable_mosaic.version = 11 : i64} {
  func.func @_matmul_bias_kernel(%arg0: i32, %arg1: i32, %arg2: i32, %arg3: memref<512x128xbf16, #tpu.memory_space<vmem>>, %arg4: memref<128x128xbf16, #tpu.memory_space<vmem>>, %arg5: memref<1x128xf32, #tpu.memory_space<vmem>>, %arg6: memref<512x128xf32, #tpu.memory_space<vmem>>, %arg7: memref<512x128xf32, #tpu.memory_space<vmem>>) attributes {dimension_semantics = [#tpu.dimension_semantics<parallel>, #tpu.dimension_semantics<parallel>, #tpu.dimension_semantics<arbitrary>], iteration_bounds = array<i64: 1, 1, 25>, scalar_prefetch = 0 : i64, scratch_operands = 1 : i64, tpu.core_type = #tpu.core_type<tc>, window_params = [{transform_indices = @transform_0, window_bounds = array<i64: 512, 128>}, {transform_indices = @transform_1, window_bounds = array<i64: 128, 128>}, {transform_indices = @transform_2, window_bounds = array<i64: 1, 128>}, {transform_indices = @transform_3, window_bounds = array<i64: 512, 128>}]} {
    %c0_i32 = arith.constant 0 : i32
    %0 = arith.cmpi eq, %arg2, %c0_i32 : i32
    %1 = arith.extui %0 : i1 to i32
    %c0_i32_0 = arith.constant 0 : i32
    %2 = arith.cmpi ne, %1, %c0_i32_0 : i32
    scf.if %2 {
      %cst_9 = arith.constant 0.000000e+00 : f32
      %12 = vector.broadcast %cst_9 : f32 to vector<512x128xf32>
      %c0_10 = arith.constant 0 : index
      %c0_11 = arith.constant 0 : index
      %13 = vector.load %arg7[%c0_10, %c0_11] : memref<512x128xf32, #tpu.memory_space<vmem>>, vector<512x128xf32>
      tpu.vector_store %arg7[%c0_10, %c0_11], %12 {strides = array<i32>} : memref<512x128xf32, #tpu.memory_space<vmem>>, vector<512x128xf32>,
    } else {
    }
    %c0 = arith.constant 0 : index
    %c0_1 = arith.constant 0 : index
    %3 = vector.load %arg7[%c0, %c0_1] : memref<512x128xf32, #tpu.memory_space<vmem>>, vector<512x128xf32>
    %c0_2 = arith.constant 0 : index
    %c0_3 = arith.constant 0 : index
    %4 = vector.load %arg3[%c0_2, %c0_3] : memref<512x128xbf16, #tpu.memory_space<vmem>>, vector<512x128xbf16>
    %c0_4 = arith.constant 0 : index
    %c0_5 = arith.constant 0 : index
    %5 = vector.load %arg4[%c0_4, %c0_5] : memref<128x128xbf16, #tpu.memory_space<vmem>>, vector<128x128xbf16>
    %cst = arith.constant dense<0.000000e+00> : vector<512x128xf32>
    %6 = tpu.matmul %4, %5, %cst {dimension_numbers = #tpu.dot_dimension_numbers<[1], [0], [0], [1], [0, 0, 1, 1], [], []>} : vector<512x128xbf16>, vector<128x128xbf16>, vector<512x128xf32> -> vector<512x128xf32>
    %7 = arith.addf %3, %6 : vector<512x128xf32>
    %c0_6 = arith.constant 0 : index
    %c0_7 = arith.constant 0 : index
    %8 = vector.load %arg7[%c0_6, %c0_7] : memref<512x128xf32, #tpu.memory_space<vmem>>, vector<512x128xf32>
    tpu.vector_store %arg7[%c0_6, %c0_7], %7 {strides = array<i32>} : memref<512x128xf32, #tpu.memory_space<vmem>>, vector<512x128xf32>,
    %c24_i32 = arith.constant 24 : i32
    %9 = arith.cmpi eq, %arg2, %c24_i32 : i32
    %10 = arith.extui %9 : i1 to i32
    %c0_i32_8 = arith.constant 0 : i32
    %11 = arith.cmpi ne, %10, %c0_i32_8 : i32
    scf.if %11 {
      %c0_9 = arith.constant 0 : index
      %c0_10 = arith.constant 0 : index
      %12 = vector.load %arg7[%c0_9, %c0_10] : memref<512x128xf32, #tpu.memory_space<vmem>>, vector<512x128xf32>
      %c0_11 = arith.constant 0 : index
      %c0_12 = arith.constant 0 : index
      %13 = vector.load %arg5[%c0_11, %c0_12] : memref<1x128xf32, #tpu.memory_space<vmem>>, vector<1x128xf32>
      %14 = vector.broadcast %13 : vector<1x128xf32> to vector<512x128xf32>
      %15 = arith.addf %12, %14 : vector<512x128xf32>
      %16 = math.tanh %15 : vector<512x128xf32>
      %c0_13 = arith.constant 0 : index
      %c0_14 = arith.constant 0 : index
      %17 = vector.load %arg6[%c0_13, %c0_14] : memref<512x128xf32, #tpu.memory_space<vmem>>, vector<512x128xf32>
      tpu.vector_store %arg6[%c0_13, %c0_14], %16 {strides = array<i32>} : memref<512x128xf32, #tpu.memory_space<vmem>>, vector<512x128xf32>,
    } else {
    }
    return
  }
  func.func @transform_0(%arg0: i32, %arg1: i32, %arg2: i32) -> (i32, i32) {
    %c0_i32 = arith.constant 0 : i32
    return %arg0, %arg2 : i32, i32
  }
  func.func @transform_1(%arg0: i32, %arg1: i32, %arg2: i32) -> (i32, i32) {
    %c0_i32 = arith.constant 0 : i32
    return %arg2, %arg1 : i32, i32
  }
  func.func @transform_2(%arg0: i32, %arg1: i32, %arg2: i32) -> (i32, i32) {
    %c0_i32 = arith.constant 0 : i32
    %c0_i32_0 = arith.constant 0 : i32
    return %c0_i32, %arg1 : i32, i32
  }
  func.func @transform_3(%arg0: i32, %arg1: i32, %arg2: i32) -> (i32, i32) {
    %c0_i32 = arith.constant 0 : i32
    return %arg0, %arg1 : i32, i32
  }
}

</mosaic_0001>

<bundles_post_ra>
// kernel: generator_forward.48
= control target key start
LH: loop header
LB: loop body
LE: loop exit
PB: predicated region body
PF: predicated region fallthrough
CT: control target
= control target key end

     0   :  { %s642_s6 = smov 0   ;;  %s644_s7 = smov 0   ;;  %s1144_s0 = inlined_call_operand.vmem [shape: f32[2,256,64], index: 0, kind: input, shape index: {}]   ;;  %s1145_s1 = inlined_call_operand.vmem [shape: f32[2,256,64], index: 1, kind: output, shape index: {}]  }
   0x1   :  { %s646_s8 = smov 0  }
   0x2 LB: > { %s23_s9 = sadd.s32 1, %s626_s7  ;;  %p573_p0 = scmp.ge.s32.totalorder %s630_s8, 1  ;;  %s630_s8 = sphi %s646_s8, %s11_s8   ;;  %s626_s7 = sphi %s644_s7, %s1147_s7   ;;  %s622_s6 = sphi %s642_s6, %s1146_s6  }
   0x3   : > { %p25_p1 = scmp.ge.s32.totalorder %s23_s9, 2  ;;  %p106_p2 = scmp.lt.s32.totalorder %s630_s8, 3 }
   0x5   : > { %s1149_s9 = smov (%p25_p1, %s23_s9), 0  ;;  %p107_p3 = pnand %p573_p0, %p106_p2 }
   0x6   : > { %p132_p4 = scmp.lt.s32.totalorder (!%p107_p3), %s622_s6, 1  ;;  %vm180_vm0 = vcmask (!%p107_p3), 523264  }
   0x7   : > { %110 = sbr.rel (%p107_p3) target bundleno = 141 (0x8d), region = 24 }
   0xe   : > { %s1151_s6 = smov (!%p132_p4, %s622_s6), 1 }
   0xf   : > { %s580_s10 = sshll.u32 %s1151_s6, 8 }
  0x10   : > { %s668_s13 = scalar_lea.vmem %s1144_s0, %s580_s10  ;;  %s1005_s16 = scalar_lea.vmem %s1145_s1, %s580_s10 }
  0x11   : > { %v671_v0 = vld [vmem:[%s668_s13] sm:$0xff]  ;;  %v674_v1 = vld [vmem:[%s668_s13 + $0x8] sm:$0xff]  ;;  %v677_v2 = vld [vmem:[%s668_s13 + $0x10] sm:$0xff] }
  0x12   : > { %v680_v3 = vld [vmem:[%s668_s13 + $0x18] sm:$0xff]  ;;  %v181_v4 = vsel %vm180_vm0, %v671_v0, 0.0  ;;  %v182_v5 = vsel %vm180_vm0, %v674_v1, 0.0  ;;  %v184_v6 = vsel %vm180_vm0, %v677_v2, 0.0  ;;  %v689_v7 = vld [vmem:[%s668_s13 + $0x20] sm:$0xff]  ;;  %v694_v10 = vld [vmem:[%s668_s13 + $0x28] sm:$0xff]  ;;  %v250_v29 = vmul.f32 %v671_v0, %v671_v0 }
  0x13   : > { %v183_v8 = vadd.f32 %v182_v5, %v181_v4  ;;  %v186_v9 = vsel %vm180_vm0, %v680_v3, 0.0  ;;  %v188_v12 = vsel %vm180_vm0, %v689_v7, 0.0  ;;  %v699_v13 = vld [vmem:[%s668_s13 + $0x30] sm:$0xff]  ;;  %v190_v15 = vsel %vm180_vm0, %v694_v10, 0.0  ;;  %v704_v16 = vld [vmem:[%s668_s13 + $0x38] sm:$0xff]  ;;  %v709_v19 = vld [vmem:[%s668_s13 + $0x40] sm:$0xff] }
  0x14   : > { %v192_v18 = vsel %vm180_vm0, %v699_v13, 0.0  ;;  %v194_v21 = vsel %vm180_vm0, %v704_v16, 0.0  ;;  %v714_v22 = vld [vmem:[%s668_s13 + $0x48] sm:$0xff]  ;;  %v196_v24 = vsel %vm180_vm0, %v709_v19, 0.0  ;;  %v719_v25 = vld [vmem:[%s668_s13 + $0x50] sm:$0xff]  ;;  %v722_v27 = vld [vmem:[%s668_s13 + $0x58] sm:$0xff]  ;;  %v251_v30 = vmul.f32 %v674_v1, %v674_v1 }
  0x15   : > { %v185_v11 = vadd.f32 %v184_v6, %v183_v8  ;;  %v198_v28 = vsel %vm180_vm0, %v714_v22, 0.0  ;;  %v252_v31 = vmul.f32 %v677_v2, %v677_v2  ;;  %v200_v33 = vsel %vm180_vm0, %v719_v25, 0.0  ;;  %v737_v35 = vld [vmem:[%s668_s13 + $0x60] sm:$0xff]  ;;  %v747_v42 = vld [vmem:[%s668_s13 + $0x68] sm:$0xff]  ;;  %v755_v48 = vld [vmem:[%s668_s13 + $0x70] sm:$0xff] }
  0x16   : > { %v253_v34 = vmul.f32 %v680_v3, %v680_v3  ;;  %v202_v37 = vsel %vm180_vm0, %v722_v27, 0.0  ;;  %v254_v38 = vmul.f32 %v689_v7, %v689_v7  ;;  %v282_v39 = vsel %vm180_vm0, %v250_v29, 0.0  ;;  %v763_v54 = vld [vmem:[%s668_s13 + $0x78] sm:$0xff]  ;;  %v771_v60 = vld [vmem:[%s668_s13 + $0x80] sm:$0xff]  ;;  %v779_v6 = vld [vmem:[%s668_s13 + $0x88] sm:$0xff] }
  0x17   : > { %v187_v14 = vadd.f32 %v186_v9, %v185_v11  ;;  %v283_v40 = vsel %vm180_vm0, %v251_v30, 0.0  ;;  %v285_v41 = vsel %vm180_vm0, %v252_v31, 0.0  ;;  %v204_v45 = vsel %vm180_vm0, %v737_v35, 0.0 }
  0x18   : > { %v284_v44 = vadd.f32 %v283_v40, %v282_v39  ;;  %v255_v46 = vmul.f32 %v694_v10, %v694_v10  ;;  %v287_v47 = vsel %vm180_vm0, %v253_v34, 0.0  ;;  %v206_v51 = vsel %vm180_vm0, %v747_v42, 0.0  ;;  %v811_v39 = vld [vmem:[%s668_s13 + $0xa8] sm:$0xff] }
  0x19   : > { %v189_v17 = vadd.f32 %v188_v12, %v187_v14  ;;  %v256_v52 = vmul.f32 %v699_v13, %v699_v13  ;;  %v289_v53 = vsel %vm180_vm0, %v254_v38, 0.0  ;;  %v208_v57 = vsel %vm180_vm0, %v755_v48, 0.0 }
  0x1a   : > { %v286_v50 = vadd.f32 %v285_v41, %v284_v44  ;;  %v257_v58 = vmul.f32 %v704_v16, %v704_v16  ;;  %v291_v59 = vsel %vm180_vm0, %v255_v46, 0.0  ;;  %v210_v63 = vsel %vm180_vm0, %v763_v54, 0.0  ;;  %v819_v46 = vld [vmem:[%s668_s13 + $0xb0] sm:$0xff] }
  0x1b   : > { %v191_v20 = vadd.f32 %v190_v15, %v189_v17  ;;  %v258_v4 = vmul.f32 %v709_v19, %v709_v19  ;;  %v293_v5 = vsel %vm180_vm0, %v256_v52, 0.0  ;;  %v212_v11 = vsel %vm180_vm0, %v771_v60, 0.0  ;;  %v787_v15 = vld [vmem:[%s668_s13 + $0x90] sm:$0xff] }
  0x1c   : > { %v288_v56 = vadd.f32 %v287_v47, %v286_v50  ;;  %v259_v12 = vmul.f32 %v714_v22, %v714_v22  ;;  %v295_v14 = vsel %vm180_vm0, %v257_v58, 0.0  ;;  %v216_v29 = vsel %vm180_vm0, %v787_v15, 0.0 }
  0x1d   : > { %v193_v23 = vadd.f32 %v192_v18, %v191_v20  ;;  %v214_v20 = vsel %vm180_vm0, %v779_v6, 0.0  ;;  %v261_v30 = vmul.f32 %v722_v27, %v722_v27  ;;  %v263_v44 = vmul.f32 %v747_v42, %v747_v42 }
  0x1e   : > { %v290_v62 = vadd.f32 %v289_v53, %v288_v56  ;;  %v299_v31 = vsel %vm180_vm0, %v259_v12, 0.0  ;;  %v222_v50 = vsel %vm180_vm0, %v811_v39, 0.0  ;;  %v827_v53 = vld [vmem:[%s668_s13 + $0xb8] sm:$0xff]  ;;  %v265_v58 = vmul.f32 %v763_v54, %v763_v54 }
  0x1f   : > { %v195_v26 = vadd.f32 %v194_v21, %v193_v23  ;;  %v260_v21 = vmul.f32 %v719_v25, %v719_v25  ;;  %v297_v23 = vsel %vm180_vm0, %v258_v4, 0.0  ;;  %v226_v4 = vsel %vm180_vm0, %v827_v53, 0.0 }
  0x20   : > { %v292_v9 = vadd.f32 %v291_v59, %v290_v62  ;;  %v307_v59 = vsel %vm180_vm0, %v263_v44, 0.0 }
  0x21   : > { %v197_v32 = vadd.f32 %v196_v24, %v195_v26  ;;  %v795_v24 = vld [vmem:[%s668_s13 + $0x98] sm:$0xff]  ;;  %v301_v38 = vsel %vm180_vm0, %v260_v21, 0.0 }
  0x22   : > { %v294_v18 = vadd.f32 %v293_v5, %v292_v9  ;;  %v266_v5 = vmul.f32 %v771_v60, %v771_v60  ;;  %v843_v9 = vld [vmem:[%s668_s13 + $0xc8] sm:$0xff] }
  0x23   : > { %v199_v36 = vadd.f32 %v198_v28, %v197_v32  ;;  %v803_v32 = vld [vmem:[%s668_s13 + $0xa0] sm:$0xff] }
  0x24   : > { %v296_v28 = vadd.f32 %v295_v14, %v294_v18  ;;  %v311_v18 = vsel %vm180_vm0, %v265_v58, 0.0  ;;  %v270_v44 = vmul.f32 %v803_v32, %v803_v32 }
  0x25   : > { %v201_v43 = vadd.f32 %v200_v33, %v199_v36  ;;  %v218_v36 = vsel %vm180_vm0, %v795_v24, 0.0 }
  0x26   : > { %v298_v34 = vadd.f32 %v297_v23, %v296_v28  ;;  %v268_v28 = vmul.f32 %v787_v15, %v787_v15 }
  0x27   : > { %v203_v49 = vadd.f32 %v202_v37, %v201_v43  ;;  %v262_v37 = vmul.f32 %v737_v35, %v737_v35  ;;  %v220_v43 = vsel %vm180_vm0, %v803_v32, 0.0 }
  0x28   : > { %v300_v41 = vadd.f32 %v299_v31, %v298_v34 }
  0x29   : > { %v205_v55 = vadd.f32 %v204_v45, %v203_v49  ;;  %v303_v45 = vsel %vm180_vm0, %v261_v30, 0.0  ;;  %v305_v52 = vsel %vm180_vm0, %v262_v37, 0.0  ;;  %v859_v30 = vld [vmem:[%s668_s13 + $0xd8] sm:$0xff] }
  0x2a   : > { %v302_v49 = vadd.f32 %v301_v38, %v300_v41  ;;  %v867_v38 = vld [vmem:[%s668_s13 + $0xe0] sm:$0xff] }
  0x2b   : > { %v207_v61 = vadd.f32 %v206_v51, %v205_v55  ;;  %v264_v51 = vmul.f32 %v755_v48, %v755_v48 }
  0x2c   : > { %v304_v56 = vadd.f32 %v303_v45, %v302_v49  ;;  %v317_v45 = vsel %vm180_vm0, %v268_v28, 0.0 }
  0x2d   : > { %v209_v8 = vadd.f32 %v208_v57, %v207_v61  ;;  %v224_v57 = vsel %vm180_vm0, %v819_v46, 0.0  ;;  %v835_v61 = vld [vmem:[%s668_s13 + $0xc0] sm:$0xff] }
  0x2e   : > { %v228_v14 = vsel %vm180_vm0, %v835_v61, 0.0 }
  0x2f   : > { %v211_v17 = vadd.f32 %v210_v63, %v209_v8  ;;  %v306_v63 = vadd.f32 %v305_v52, %v304_v56  ;;  %v309_v8 = vsel %vm180_vm0, %v264_v51, 0.0  ;;  %v236_v51 = vsel %vm180_vm0, %v867_v38, 0.0  ;;  %v883_v56 = vld [vmem:[%s668_s13 + $0xf0] sm:$0xff] }
  0x30   : > { %v271_v52 = vmul.f32 %v811_v39, %v811_v39 }
  0x31   : > { %v213_v26 = vadd.f32 %v212_v11, %v211_v17  ;;  %v308_v12 = vadd.f32 %v307_v59, %v306_v63  ;;  %v267_v17 = vmul.f32 %v779_v6, %v779_v6  ;;  %v321_v63 = vsel %vm180_vm0, %v270_v44, 0.0 }
  0x32   : > { %v277_v44 = vmul.f32 %v859_v30, %v859_v30 }
  0x33   : > { %v215_v33 = vadd.f32 %v214_v20, %v213_v26  ;;  %v851_v20 = vld [vmem:[%s668_s13 + $0xd0] sm:$0xff]  ;;  %v310_v23 = vadd.f32 %v309_v8, %v308_v12  ;;  %v230_v26 = vsel %vm180_vm0, %v843_v9, 0.0  ;;  %v315_v37 = vsel %vm180_vm0, %v267_v17, 0.0 }
  0x34   : > { %v232_v34 = vsel %vm180_vm0, %v851_v20, 0.0  ;;  %v273_v12 = vmul.f32 %v827_v53, %v827_v53 }
  0x35   : > { %v217_v40 = vadd.f32 %v216_v29, %v215_v33  ;;  %v313_v29 = vsel %vm180_vm0, %v266_v5, 0.0  ;;  %v312_v33 = vadd.f32 %v311_v18, %v310_v23  ;;  %v274_v23 = vmul.f32 %v835_v61, %v835_v61 }
  0x37   : > { %v219_v47 = vadd.f32 %v218_v36, %v217_v40  ;;  %v269_v36 = vmul.f32 %v795_v24, %v795_v24  ;;  %v314_v41 = vadd.f32 %v313_v29, %v312_v33  ;;  %v327_v33 = vsel %vm180_vm0, %v273_v12, 0.0 }
  0x39   : > { %v221_v55 = vadd.f32 %v220_v43, %v219_v47  ;;  %v234_v43 = vsel %vm180_vm0, %v859_v30, 0.0  ;;  %v875_v47 = vld [vmem:[%s668_s13 + $0xe8] sm:$0xff] }
  0x3a   : > { %v238_v59 = vsel %vm180_vm0, %v875_v47, 0.0 }
  0x3b   : > { %v223_v62 = vadd.f32 %v222_v50, %v221_v55  ;;  %v316_v50 = vadd.f32 %v315_v37, %v314_v41  ;;  %v319_v55 = vsel %vm180_vm0, %v269_v36, 0.0  ;;  %v276_v37 = vmul.f32 %v851_v20, %v851_v20 }
  0x3d   : > { %v225_v11 = vadd.f32 %v224_v57, %v223_v62  ;;  %v318_v58 = vadd.f32 %v317_v45, %v316_v50  ;;  %v272_v62 = vmul.f32 %v819_v46, %v819_v46  ;;  %v278_v50 = vmul.f32 %v867_v38, %v867_v38 }
  0x3f   : > { %v227_v21 = vadd.f32 %v226_v4, %v225_v11  ;;  %v891_v4 = vld [vmem:[%s668_s13 + $0xf8] sm:$0xff]  ;;  %v320_v8 = vadd.f32 %v319_v55, %v318_v58  ;;  %v240_v11 = vsel %vm180_vm0, %v883_v56, 0.0  ;;  %v335_v58 = vsel %vm180_vm0, %v277_v44, 0.0 }
  0x41   : > { %v229_v31 = vadd.f32 %v228_v14, %v227_v21  ;;  %v323_v14 = vsel %vm180_vm0, %v271_v52, 0.0  ;;  %v322_v18 = vadd.f32 %v321_v63, %v320_v8  ;;  %v242_v21 = vsel %vm180_vm0, %v891_v4, 0.0 }
  0x42   : > { %v337_v63 = vsel %vm180_vm0, %v278_v50, 0.0 }
  0x43   : > { %v231_v40 = vadd.f32 %v230_v26, %v229_v31  ;;  %v325_v26 = vsel %vm180_vm0, %v272_v62, 0.0  ;;  %v324_v29 = vadd.f32 %v323_v14, %v322_v18  ;;  %v275_v31 = vmul.f32 %v843_v9, %v843_v9 }
  0x44   : > { %v280_v62 = vmul.f32 %v883_v56, %v883_v56 }
  0x45   : > { %v233_v49 = vadd.f32 %v232_v34, %v231_v40  ;;  %v326_v36 = vadd.f32 %v325_v26, %v324_v29  ;;  %v329_v40 = vsel %vm180_vm0, %v274_v23, 0.0  ;;  %v331_v45 = vsel %vm180_vm0, %v275_v31, 0.0 }
  0x47   : > { %v235_v57 = vadd.f32 %v234_v43, %v233_v49  ;;  %v328_v43 = vadd.f32 %v327_v33, %v326_v36 }
  0x49   : > { %v237_v5 = vadd.f32 %v236_v51, %v235_v57  ;;  %v330_v49 = vadd.f32 %v329_v40, %v328_v43  ;;  %v333_v51 = vsel %vm180_vm0, %v276_v37, 0.0  ;;  %v279_v57 = vmul.f32 %v875_v47, %v875_v47 }
  0x4b   : > { %v239_v17 = vadd.f32 %v238_v59, %v237_v5  ;;  %v332_v55 = vadd.f32 %v331_v45, %v330_v49  ;;  %v339_v12 = vsel %vm180_vm0, %v279_v57, 0.0 }
  0x4d   : > { %v241_v28 = vadd.f32 %v240_v11, %v239_v17  ;;  %v334_v59 = vadd.f32 %v333_v51, %v332_v55  ;;  %v281_v11 = vmul.f32 %v891_v4, %v891_v4  ;;  %v341_v17 = vsel %vm180_vm0, %v280_v62, 0.0 }
  0x4f   : > { %v243_v34 = vadd.f32 %v242_v21, %v241_v28  ;;  %v336_v8 = vadd.f32 %v335_v58, %v334_v59  ;;  %v343_v23 = vsel %vm180_vm0, %v281_v11, 0.0 }
  0x51   : > { %v244_v41 = vrot.slane %v243_v34, 4  ;;  %v338_v14 = vadd.f32 %v337_v63, %v336_v8 }
  0x53   : > { %v245_v52 = vadd.f32 %v244_v41, %v243_v34  ;;  %v340_v21 = vadd.f32 %v339_v12, %v338_v14 }
  0x55   : > { %v246_v5 = vrot.slane %v245_v52, 2  ;;  %v342_v26 = vadd.f32 %v341_v17, %v340_v21 }
  0x57   : > { %v247_v18 = vadd.f32 %v246_v5, %v245_v52  ;;  %v344_v29 = vadd.f32 %v343_v23, %v342_v26 }
  0x59   : > { %v248_v28 = vrot.slane %v247_v18, 1  ;;  %v345_v31 = vrot.slane %v344_v29, 4 }
  0x5b   : > { %v249_v33 = vadd.f32 %v248_v28, %v247_v18  ;;  %v346_v34 = vadd.f32 %v345_v31, %v344_v29 }
  0x5d   : > { %v347_v36 = vrot.slane %v346_v34, 2  ;;  %v926_v40 = vmul.f32 0.00390625, %v249_v33 }
  0x5f   : > { %v348_v37 = vadd.f32 %v347_v36, %v346_v34  ;;  %v353_v44 = vmul.f32 %v926_v40, %v926_v40  ;;  %v356_v52 = vsub.f32 %v671_v0, %v926_v40  ;;  %v357_v55 = vsub.f32 %v674_v1, %v926_v40 }
  0x60   : > { %v358_v57 = vsub.f32 %v677_v2, %v926_v40  ;;  %v359_v58 = vsub.f32 %v680_v3, %v926_v40  ;;  %v360_v59 = vsub.f32 %v689_v7, %v926_v40  ;;  %v361_v62 = vsub.f32 %v694_v10, %v926_v40 }
  0x61   : > { %v349_v41 = vrot.slane %v348_v37, 1  ;;  %v362_v63 = vsub.f32 %v699_v13, %v926_v40  ;;  %v363_v0 = vsub.f32 %v704_v16, %v926_v40  ;;  %v364_v1 = vsub.f32 %v709_v19, %v926_v40 }
  0x62   : > { %v365_v2 = vsub.f32 %v714_v22, %v926_v40  ;;  %v366_v3 = vsub.f32 %v719_v25, %v926_v40  ;;  %v367_v7 = vsub.f32 %v722_v27, %v926_v40  ;;  %v368_v10 = vsub.f32 %v737_v35, %v926_v40 }
  0x63   : > { %v350_v43 = vadd.f32 %v349_v41, %v348_v37  ;;  %v369_v13 = vsub.f32 %v747_v42, %v926_v40  ;;  %v370_v16 = vsub.f32 %v755_v48, %v926_v40  ;;  %v371_v19 = vsub.f32 %v763_v54, %v926_v40 }
  0x64   : > { %v372_v22 = vsub.f32 %v771_v60, %v926_v40  ;;  %v373_v25 = vsub.f32 %v779_v6, %v926_v40  ;;  %v374_v27 = vsub.f32 %v787_v15, %v926_v40  ;;  %v375_v35 = vsub.f32 %v795_v24, %v926_v40 }
  0x65   : > { %v352_v45 = vmul.f32 0.00390625, %v350_v43  ;;  %v376_v42 = vsub.f32 %v803_v32, %v926_v40  ;;  %v377_v48 = vsub.f32 %v811_v39, %v926_v40  ;;  %v378_v54 = vsub.f32 %v819_v46, %v926_v40 }
  0x66   : > { %v379_v60 = vsub.f32 %v827_v53, %v926_v40  ;;  %v380_v6 = vsub.f32 %v835_v61, %v926_v40  ;;  %v381_v15 = vsub.f32 %v843_v9, %v926_v40  ;;  %v382_v24 = vsub.f32 %v851_v20, %v926_v40 }
  0x67   : > { %v354_v49 = vsub.f32 %v352_v45, %v353_v44  ;;  %v383_v5 = vsub.f32 %v859_v30, %v926_v40  ;;  %v384_v11 = vsub.f32 %v867_v38, %v926_v40  ;;  %v385_v12 = vsub.f32 %v875_v47, %v926_v40 }
  0x68   : > { %v386_v14 = vsub.f32 %v883_v56, %v926_v40  ;;  %v387_v17 = vsub.f32 %v891_v4, %v926_v40 }
  0x69   : > { %v355_v50 = vmax.f32 %v354_v49, 0.0 }
  0x6b   : > { %v388_v51 = vadd.f32 1e-05, %v355_v50 }
  0x6d   : > { %606 = vrsqrt.f32 %v388_v51 }
  0x77   : > { %v986_v8 = vpop.eup %606 }
  0x78   : > { %v390_v18 = vmul.f32 %v986_v8, %v356_v52  ;;  %v391_v21 = vmul.f32 %v986_v8, %v357_v55  ;;  %v392_v23 = vmul.f32 %v986_v8, %v358_v57  ;;  %v393_v26 = vmul.f32 %v986_v8, %v359_v58 }
  0x79   : > { %v394_v28 = vmul.f32 %v986_v8, %v360_v59  ;;  %v395_v29 = vmul.f32 %v986_v8, %v361_v62  ;;  %v396_v31 = vmul.f32 %v986_v8, %v362_v63  ;;  %v397_v33 = vmul.f32 %v986_v8, %v363_v0 }
  0x7a   : > { %v422_v34 = vmax.f32 %v390_v18, 0.0  ;;  %v423_v36 = vmax.f32 %v391_v21, 0.0  ;;  %v424_v37 = vmax.f32 %v392_v23, 0.0  ;;  %v425_v41 = vmax.f32 %v393_v26, 0.0 }
  0x7b   : > { %v426_v43 = vmax.f32 %v394_v28, 0.0  ;;  %v427_v44 = vmax.f32 %v395_v29, 0.0  ;;  %v428_v45 = vmax.f32 %v396_v31, 0.0  ;;  %v429_v49 = vmax.f32 %v397_v33, 0.0 }
  0x7c   : > { %454 = vst.msk [vmem:[%s1005_s16] sm:$0xff] %vm180_vm0, %v422_v34  ;;  %455 = vst.msk [vmem:[%s1005_s16 + $0x8] sm:$0xff] %vm180_vm0, %v423_v36  ;;  %v398_v50 = vmul.f32 %v986_v8, %v364_v1  ;;  %v399_v51 = vmul.f32 %v986_v8, %v365_v2  ;;  %v400_v52 = vmul.f32 %v986_v8, %v366_v3 }
  0x7d   : > { %456 = vst.msk [vmem:[%s1005_s16 + $0x10] sm:$0xff] %vm180_vm0, %v424_v37  ;;  %457 = vst.msk [vmem:[%s1005_s16 + $0x18] sm:$0xff] %vm180_vm0, %v425_v41  ;;  %v401_v55 = vmul.f32 %v986_v8, %v367_v7  ;;  %v402_v57 = vmul.f32 %v986_v8, %v368_v10  ;;  %v403_v58 = vmul.f32 %v986_v8, %v369_v13 }
  0x7e   : > { %458 = vst.msk [vmem:[%s1005_s16 + $0x20] sm:$0xff] %vm180_vm0, %v426_v43  ;;  %459 = vst.msk [vmem:[%s1005_s16 + $0x28] sm:$0xff] %vm180_vm0, %v427_v44  ;;  %v404_v59 = vmul.f32 %v986_v8, %v370_v16  ;;  %v405_v62 = vmul.f32 %v986_v8, %v371_v19  ;;  %v430_v63 = vmax.f32 %v398_v50, 0.0  ;;  %v431_v0 = vmax.f32 %v399_v51, 0.0 }
  0x7f   : > { %460 = vst.msk [vmem:[%s1005_s16 + $0x30] sm:$0xff] %vm180_vm0, %v428_v45  ;;  %461 = vst.msk [vmem:[%s1005_s16 + $0x38] sm:$0xff] %vm180_vm0, %v429_v49  ;;  %v432_v1 = vmax.f32 %v400_v52, 0.0  ;;  %v433_v2 = vmax.f32 %v401_v55, 0.0  ;;  %v434_v3 = vmax.f32 %v402_v57, 0.0  ;;  %v435_v7 = vmax.f32 %v403_v58, 0.0 }
  0x80   : > { %v436_v18 = vmax.f32 %v404_v59, 0.0  ;;  %v437_v21 = vmax.f32 %v405_v62, 0.0  ;;  %462 = vst.msk [vmem:[%s1005_s16 + $0x40] sm:$0xff] %vm180_vm0, %v430_v63  ;;  %463 = vst.msk [vmem:[%s1005_s16 + $0x48] sm:$0xff] %vm180_vm0, %v431_v0  ;;  %v406_v10 = vmul.f32 %v986_v8, %v372_v22  ;;  %v407_v13 = vmul.f32 %v986_v8, %v373_v25 }
  0x81   : > { %464 = vst.msk [vmem:[%s1005_s16 + $0x50] sm:$0xff] %vm180_vm0, %v432_v1  ;;  %465 = vst.msk [vmem:[%s1005_s16 + $0x58] sm:$0xff] %vm180_vm0, %v433_v2  ;;  %v408_v16 = vmul.f32 %v986_v8, %v374_v27  ;;  %v409_v19 = vmul.f32 %v986_v8, %v375_v35  ;;  %v410_v22 = vmul.f32 %v986_v8, %v376_v42 }
  0x82   : > { %466 = vst.msk [vmem:[%s1005_s16 + $0x60] sm:$0xff] %vm180_vm0, %v434_v3  ;;  %467 = vst.msk [vmem:[%s1005_s16 + $0x68] sm:$0xff] %vm180_vm0, %v435_v7  ;;  %v411_v25 = vmul.f32 %v986_v8, %v377_v48  ;;  %v412_v27 = vmul.f32 %v986_v8, %v378_v54  ;;  %v413_v35 = vmul.f32 %v986_v8, %v379_v60  ;;  %v438_v23 = vmax.f32 %v406_v10, 0.0 }
  0x83   : > { %468 = vst.msk [vmem:[%s1005_s16 + $0x70] sm:$0xff] %vm180_vm0, %v436_v18  ;;  %469 = vst.msk [vmem:[%s1005_s16 + $0x78] sm:$0xff] %vm180_vm0, %v437_v21  ;;  %v439_v32 = vmax.f32 %v407_v13, 0.0  ;;  %v440_v42 = vmax.f32 %v408_v16, 0.0  ;;  %v441_v26 = vmax.f32 %v409_v19, 0.0  ;;  %v442_v39 = vmax.f32 %v410_v22, 0.0 }
  0x84   : > { %v443_v48 = vmax.f32 %v411_v25, 0.0  ;;  %v444_v28 = vmax.f32 %v412_v27, 0.0  ;;  %v445_v29 = vmax.f32 %v413_v35, 0.0  ;;  %470 = vst.msk [vmem:[%s1005_s16 + $0x80] sm:$0xff] %vm180_vm0, %v438_v23  ;;  %v414_v46 = vmul.f32 %v986_v8, %v380_v6 }
  0x85   : > { %471 = vst.msk [vmem:[%s1005_s16 + $0x88] sm:$0xff] %vm180_vm0, %v439_v32  ;;  %472 = vst.msk [vmem:[%s1005_s16 + $0x90] sm:$0xff] %vm180_vm0, %v440_v42  ;;  %v415_v53 = vmul.f32 %v986_v8, %v381_v15  ;;  %v416_v54 = vmul.f32 %v986_v8, %v382_v24  ;;  %v417_v60 = vmul.f32 %v986_v8, %v383_v5 }
  0x86   : > { %473 = vst.msk [vmem:[%s1005_s16 + $0x98] sm:$0xff] %vm180_vm0, %v441_v26  ;;  %474 = vst.msk [vmem:[%s1005_s16 + $0xa0] sm:$0xff] %vm180_vm0, %v442_v39  ;;  %v418_v61 = vmul.f32 %v986_v8, %v384_v11  ;;  %v419_v9 = vmul.f32 %v986_v8, %v385_v12  ;;  %v420_v20 = vmul.f32 %v986_v8, %v386_v14  ;;  %v446_v38 = vmax.f32 %v414_v46, 0.0 }
  0x87   : > { %475 = vst.msk [vmem:[%s1005_s16 + $0xa8] sm:$0xff] %vm180_vm0, %v443_v48  ;;  %476 = vst.msk [vmem:[%s1005_s16 + $0xb0] sm:$0xff] %vm180_vm0, %v444_v28  ;;  %v421_v30 = vmul.f32 %v986_v8, %v387_v17  ;;  %v447_v6 = vmax.f32 %v415_v53, 0.0  ;;  %v448_v15 = vmax.f32 %v416_v54, 0.0  ;;  %v449_v47 = vmax.f32 %v417_v60, 0.0 }
  0x88   : > { %477 = vst.msk [vmem:[%s1005_s16 + $0xb8] sm:$0xff] %vm180_vm0, %v445_v29  ;;  %v450_v24 = vmax.f32 %v418_v61, 0.0  ;;  %v451_v5 = vmax.f32 %v419_v9, 0.0  ;;  %v452_v11 = vmax.f32 %v420_v20, 0.0  ;;  %478 = vst.msk [vmem:[%s1005_s16 + $0xc0] sm:$0xff] %vm180_vm0, %v446_v38 }
  0x89   : > { %v453_v12 = vmax.f32 %v421_v30, 0.0  ;;  %479 = vst.msk [vmem:[%s1005_s16 + $0xc8] sm:$0xff] %vm180_vm0, %v447_v6  ;;  %480 = vst.msk [vmem:[%s1005_s16 + $0xd0] sm:$0xff] %vm180_vm0, %v448_v15 }
  0x8a   : > { %481 = vst.msk [vmem:[%s1005_s16 + $0xd8] sm:$0xff] %vm180_vm0, %v449_v47  ;;  %482 = vst.msk [vmem:[%s1005_s16 + $0xe0] sm:$0xff] %vm180_vm0, %v450_v24 }
  0x8b   : > { %483 = vst.msk [vmem:[%s1005_s16 + $0xe8] sm:$0xff] %vm180_vm0, %v451_v5  ;;  %484 = vst.msk [vmem:[%s1005_s16 + $0xf0] sm:$0xff] %vm180_vm0, %v452_v11 }
  0x8c   : > { %485 = vst.msk [vmem:[%s1005_s16 + $0xf8] sm:$0xff] %vm180_vm0, %v453_v12 }
  0x8d PF: > { %s11_s8 = sadd.s32 1, %s630_s8   ;;  %s1146_s6 = smov %s626_s7 }
  0x8e   : > { %p8_p5 = scmp.ge.s32.totalorder %s11_s8, 4   ;;  %s1147_s7 = smov %s1149_s9 }
  0x90   :  { %10 = sbr.rel (!%p8_p5) target bundleno = 2 (0x2), region = 54 }

// kernel: generator_forward.47
= control target key start
LH: loop header
LB: loop body
LE: loop exit
PB: predicated region body
PF: predicated region fallthrough
CT: control target
= control target key end

     0   :  { %s1708_s1 = inlined_call_operand.vmem [shape: bf16[128,128], index: 1, kind: input, shape index: {}]   ;;  %s1709_s0 = inlined_call_operand.vmem [shape: bf16[512,128], index: 0, kind: input, shape index: {}]   ;;  %s1710_s2 = inlined_call_operand.vmem [shape: f32[1,128], index: 2, kind: input, shape index: {}]   ;;  %s1711_s3 = inlined_call_operand.vmem [shape: f32[512,128], index: 3, kind: output, shape index: {}]  }
   0x1   :  { %v1267_v0 = vld [vmem:[%s1708_s1] sm:$0xff]   ;;  %v1268_v1 = vld [vmem:[%s1708_s1 + $0x8] sm:$0xff]   ;;  %v1269_v2 = vld [vmem:[%s1708_s1 + $0x10] sm:$0xff]  }
   0x2   :  { %1171 = vmatprep.subr.bf16.mxu0 %v1267_v0  ;;  %1251 = vmatprep.subr.bf16.mxu1 %v1267_v0  ;;  %v1270_v3 = vld [vmem:[%s1708_s1 + $0x18] sm:$0xff]   ;;  %v1275_v4 = vld [vmem:[%s1709_s0] sm:$0xff]   ;;  %v1272_v7 = vld [vmem:[%s1708_s1 + $0x28] sm:$0xff]  }
   0x3   :  { %1172 = vmatpush3.bf16.msra.mxu0 %v1267_v0  ;;  %1259 = vmatpush3.bf16.msra.mxu1 %v1267_v0  ;;  %v1276_v5 = vld [vmem:[%s1709_s0 + $0x80] sm:$0xff]   ;;  %v1273_v8 = vld [vmem:[%s1708_s1 + $0x30] sm:$0xff]   ;;  %v1274_v9 = vld [vmem:[%s1708_s1 + $0x38] sm:$0xff]  }
   0x4   :  { %1173 = vmatprep.subr.bf16.mxu0 %v1268_v1  ;;  %1252 = vmatprep.subr.bf16.mxu1 %v1268_v1  ;;  %v1271_v6 = vld [vmem:[%s1708_s1 + $0x20] sm:$0xff]   ;;  %v1277_v10 = vld [vmem:[%s1709_s0 + $0x8] sm:$0xff]   ;;  %v1279_v12 = vld [vmem:[%s1709_s0 + $0x10] sm:$0xff]  }
   0x5   :  { %1187 = vmatprep.mubr.bf16.mxu0 %v1275_v4  ;;  %1219 = vmatprep.mubr.bf16.mxu1 %v1276_v5  ;;  %v1278_v11 = vld [vmem:[%s1709_s0 + $0x88] sm:$0xff]   ;;  %v1280_v13 = vld [vmem:[%s1709_s0 + $0x90] sm:$0xff]   ;;  %v1281_v14 = vld [vmem:[%s1709_s0 + $0x18] sm:$0xff]  }
   0x6   :  { %v1282_v15 = vld [vmem:[%s1709_s0 + $0x98] sm:$0xff]   ;;  %v1283_v16 = vld [vmem:[%s1709_s0 + $0x20] sm:$0xff]   ;;  %v1285_v18 = vld [vmem:[%s1709_s0 + $0x28] sm:$0xff]  }
   0x7   :  { %1174 = vmatpush3.bf16.msra.mxu0 %v1268_v1  ;;  %1260 = vmatpush3.bf16.msra.mxu1 %v1268_v1  ;;  %v1284_v17 = vld [vmem:[%s1709_s0 + $0xa0] sm:$0xff]   ;;  %v1286_v19 = vld [vmem:[%s1709_s0 + $0xa8] sm:$0xff]   ;;  %v1287_v20 = vld [vmem:[%s1709_s0 + $0x30] sm:$0xff]  }
   0x8   :  { %1175 = vmatprep.subr.bf16.mxu0 %v1269_v2  ;;  %1253 = vmatprep.subr.bf16.mxu1 %v1269_v2  ;;  %v1288_v21 = vld [vmem:[%s1709_s0 + $0xb0] sm:$0xff]   ;;  %v1289_v22 = vld [vmem:[%s1709_s0 + $0x38] sm:$0xff]   ;;  %v1291_v24 = vld [vmem:[%s1709_s0 + $0x40] sm:$0xff]  }
   0x9   :  { %v1290_v23 = vld [vmem:[%s1709_s0 + $0xb8] sm:$0xff]   ;;  %v1292_v25 = vld [vmem:[%s1709_s0 + $0xc0] sm:$0xff]   ;;  %v1293_v26 = vld [vmem:[%s1709_s0 + $0x48] sm:$0xff]  }
   0xa   :  { %v1294_v27 = vld [vmem:[%s1709_s0 + $0xc8] sm:$0xff]   ;;  %v1295_v28 = vld [vmem:[%s1709_s0 + $0x50] sm:$0xff]   ;;  %v1297_v30 = vld [vmem:[%s1709_s0 + $0x58] sm:$0xff]  }
   0xb   :  { %1176 = vmatpush3.bf16.msra.mxu0 %v1269_v2  ;;  %1261 = vmatpush3.bf16.msra.mxu1 %v1269_v2  ;;  %v1296_v29 = vld [vmem:[%s1709_s0 + $0xd0] sm:$0xff]   ;;  %v1298_v31 = vld [vmem:[%s1709_s0 + $0xd8] sm:$0xff]   ;;  %v1299_v32 = vld [vmem:[%s1709_s0 + $0x60] sm:$0xff]  }
   0xc   :  { %1177 = vmatprep.subr.bf16.mxu0 %v1270_v3  ;;  %1254 = vmatprep.subr.bf16.mxu1 %v1270_v3  ;;  %v1300_v33 = vld [vmem:[%s1709_s0 + $0xe0] sm:$0xff]   ;;  %v1301_v34 = vld [vmem:[%s1709_s0 + $0x68] sm:$0xff]   ;;  %v1303_v36 = vld [vmem:[%s1709_s0 + $0x70] sm:$0xff]  }
   0xd   :  { %v1302_v35 = vld [vmem:[%s1709_s0 + $0xe8] sm:$0xff]   ;;  %v1304_v37 = vld [vmem:[%s1709_s0 + $0xf0] sm:$0xff]   ;;  %v1305_v38 = vld [vmem:[%s1709_s0 + $0x78] sm:$0xff]  }
   0xe   :  { %v1306_v39 = vld [vmem:[%s1709_s0 + $0xf8] sm:$0xff]   ;;  %v1450_v40 = vld [vmem:[%s1710_s2] ss:$0 sm:$0xff] }
   0xf   :  { %1178 = vmatpush3.bf16.msra.mxu0 %v1270_v3  ;;  %1262 = vmatpush3.bf16.msra.mxu1 %v1270_v3 }
  0x10   :  { %1179 = vmatprep.subr.bf16.mxu0 %v1271_v6  ;;  %1255 = vmatprep.subr.bf16.mxu1 %v1271_v6 }
  0x13   :  { %1180 = vmatpush3.bf16.msra.mxu0 %v1271_v6  ;;  %1263 = vmatpush3.bf16.msra.mxu1 %v1271_v6 }
  0x14   :  { %1181 = vmatprep.subr.bf16.mxu0 %v1272_v7  ;;  %1256 = vmatprep.subr.bf16.mxu1 %v1272_v7 }
  0x17   :  { %1182 = vmatpush3.bf16.msra.mxu0 %v1272_v7  ;;  %1264 = vmatpush3.bf16.msra.mxu1 %v1272_v7 }
  0x18   :  { %1183 = vmatprep.subr.bf16.mxu0 %v1273_v8  ;;  %1257 = vmatprep.subr.bf16.mxu1 %v1273_v8 }
  0x1b   :  { %1184 = vmatpush3.bf16.msra.mxu0 %v1273_v8  ;;  %1265 = vmatpush3.bf16.msra.mxu1 %v1273_v8 }
  0x1c   :  { %1185 = vmatprep.subr.bf16.mxu0 %v1274_v9  ;;  %1258 = vmatprep.subr.bf16.mxu1 %v1274_v9 }
  0x1f   :  { %1186 = vmatpush3.bf16.msra.mxu0 %v1274_v9  ;;  %1266 = vmatpush3.bf16.msra.mxu1 %v1274_v9 }
  0x22   :  { %1188 = vmatmul.mubr.bf16.vlgmr.msra.gmra.mrb[0].mxu0 %v1277_v10  ;;  %1220 = vmatmul.mubr.bf16.vlgmr.msra.gmra.mrb[0].mxu1 %v1278_v11 }
  0x23   :  { %1191 = vmatprep.mubr.bf16.mxu0 %v1279_v12  ;;  %1223 = vmatprep.mubr.bf16.mxu1 %v1280_v13 }
  0x2a   :  { %1192 = vmatmul.mubr.bf16.gmra.mrb[4].mxu0 %v1281_v14  ;;  %1224 = vmatmul.mubr.bf16.gmra.mrb[4].mxu1 %v1282_v15 }
  0x2b   :  { %1195 = vmatprep.mubr.bf16.mxu0 %v1283_v16  ;;  %1227 = vmatprep.mubr.bf16.mxu1 %v1284_v17 }
  0x32   :  { %1196 = vmatmul.mubr.bf16.gmra.mrb[8].mxu0 %v1285_v18  ;;  %1228 = vmatmul.mubr.bf16.gmra.mrb[8].mxu1 %v1286_v19 }
  0x33   :  { %1199 = vmatprep.mubr.bf16.mxu0 %v1287_v20  ;;  %1231 = vmatprep.mubr.bf16.mxu1 %v1288_v21 }
  0x3a   :  { %1200 = vmatmul.mubr.bf16.gmra.mrb[12].mxu0 %v1289_v22  ;;  %1232 = vmatmul.mubr.bf16.gmra.mrb[12].mxu1 %v1290_v23 }
  0x3b   :  { %1203 = vmatprep.mubr.bf16.mxu0 %v1291_v24  ;;  %1235 = vmatprep.mubr.bf16.mxu1 %v1292_v25 }
  0x42   :  { %1204 = vmatmul.mubr.bf16.gmra.mrb[16].mxu0 %v1293_v26  ;;  %1236 = vmatmul.mubr.bf16.gmra.mrb[16].mxu1 %v1294_v27 }
  0x43   :  { %1207 = vmatprep.mubr.bf16.mxu0 %v1295_v28  ;;  %1239 = vmatprep.mubr.bf16.mxu1 %v1296_v29 }
  0x4a   :  { %1208 = vmatmul.mubr.bf16.gmra.mrb[20].mxu0 %v1297_v30  ;;  %1240 = vmatmul.mubr.bf16.gmra.mrb[20].mxu1 %v1298_v31 }
  0x4b   :  { %1211 = vmatprep.mubr.bf16.mxu0 %v1299_v32  ;;  %1243 = vmatprep.mubr.bf16.mxu1 %v1300_v33 }
  0x52   :  { %1212 = vmatmul.mubr.bf16.gmra.mrb[24].mxu0 %v1301_v34  ;;  %1244 = vmatmul.mubr.bf16.gmra.mrb[24].mxu1 %v1302_v35 }
  0x53   :  { %1215 = vmatprep.mubr.bf16.mxu0 %v1303_v36  ;;  %1247 = vmatprep.mubr.bf16.mxu1 %v1304_v37 }
  0x5a   :  { %1216 = vmatmul.mubr.bf16.gmra.mrb[28].mxu0 %v1305_v38  ;;  %1248 = vmatmul.mubr.bf16.gmra.mrb[28].mxu1 %v1306_v39 }
  0xf5   :  { %v1189_v41 = vpop.f32.mrb[0].mxu0  ;;  %v1221_v42 = vpop.f32.mrb[0].mxu1 }
  0xf6   :  { %v960_v43 = vadd.f32 %v1189_v41, %v1450_v40  ;;  %v992_v44 = vadd.f32 %v1221_v42, %v1450_v40  ;;  %v501_v45 = vpop.f32.mrb[1].mxu0  ;;  %v629_v46 = vpop.f32.mrb[1].mxu1 }
  0xf7   :  { %v958_v47 = vadd.f32 %v1450_v40, %v501_v45  ;;  %v990_v48 = vadd.f32 %v1450_v40, %v629_v46  ;;  %v1190_v49 = vpop.f32.mrb[2].mxu0  ;;  %v1222_v50 = vpop.f32.mrb[2].mxu1 }
  0xf8   :  { %1024 = vst [vmem:[%s1711_s3 + $0x10] sm:$0xff] %v960_v43  ;;  %1056 = vst [vmem:[%s1711_s3 + $0x110] sm:$0xff] %v992_v44  ;;  %v961_v51 = vadd.f32 %v1190_v49, %v1450_v40  ;;  %v993_v52 = vadd.f32 %v1222_v50, %v1450_v40  ;;  %v504_v53 = vpop.f32.mrb[3].mxu0  ;;  %v632_v54 = vpop.f32.mrb[3].mxu1 }
  0xf9   :  { %1022 = vst [vmem:[%s1711_s3] sm:$0xff] %v958_v47  ;;  %1054 = vst [vmem:[%s1711_s3 + $0x100] sm:$0xff] %v990_v48  ;;  %v959_v55 = vadd.f32 %v1450_v40, %v504_v53  ;;  %v991_v56 = vadd.f32 %v1450_v40, %v632_v54 }
  0xfa   :  { %1025 = vst [vmem:[%s1711_s3 + $0x18] sm:$0xff] %v961_v51  ;;  %1057 = vst [vmem:[%s1711_s3 + $0x118] sm:$0xff] %v993_v52 }
  0xfb   :  { %1023 = vst [vmem:[%s1711_s3 + $0x8] sm:$0xff] %v959_v55  ;;  %1055 = vst [vmem:[%s1711_s3 + $0x108] sm:$0xff] %v991_v56 }
  0xfd   :  { %v1193_v57 = vpop.f32.mrb[4].mxu0  ;;  %v1225_v58 = vpop.f32.mrb[4].mxu1 }
  0xfe   :  { %v964_v59 = vadd.f32 %v1193_v57, %v1450_v40  ;;  %v996_v60 = vadd.f32 %v1225_v58, %v1450_v40  ;;  %v517_v61 = vpop.f32.mrb[5].mxu0  ;;  %v645_v62 = vpop.f32.mrb[5].mxu1 }
  0xff   :  { %v962_v63 = vadd.f32 %v1450_v40, %v517_v61  ;;  %v994_v0 = vadd.f32 %v1450_v40, %v645_v62  ;;  %v1194_v1 = vpop.f32.mrb[6].mxu0  ;;  %v1226_v2 = vpop.f32.mrb[6].mxu1 }
 0x100   :  { %1028 = vst [vmem:[%s1711_s3 + $0x30] sm:$0xff] %v964_v59  ;;  %1060 = vst [vmem:[%s1711_s3 + $0x130] sm:$0xff] %v996_v60  ;;  %v965_v3 = vadd.f32 %v1194_v1, %v1450_v40  ;;  %v997_v4 = vadd.f32 %v1226_v2, %v1450_v40  ;;  %v520_v5 = vpop.f32.mrb[7].mxu0  ;;  %v648_v6 = vpop.f32.mrb[7].mxu1 }
 0x101   :  { %1026 = vst [vmem:[%s1711_s3 + $0x20] sm:$0xff] %v962_v63  ;;  %1058 = vst [vmem:[%s1711_s3 + $0x120] sm:$0xff] %v994_v0  ;;  %v963_v7 = vadd.f32 %v1450_v40, %v520_v5  ;;  %v995_v8 = vadd.f32 %v1450_v40, %v648_v6 }
 0x102   :  { %1029 = vst [vmem:[%s1711_s3 + $0x38] sm:$0xff] %v965_v3  ;;  %1061 = vst [vmem:[%s1711_s3 + $0x138] sm:$0xff] %v997_v4 }
 0x103   :  { %1027 = vst [vmem:[%s1711_s3 + $0x28] sm:$0xff] %v963_v7  ;;  %1059 = vst [vmem:[%s1711_s3 + $0x128] sm:$0xff] %v995_v8 }
 0x105   :  { %v1197_v9 = vpop.f32.mrb[8].mxu0  ;;  %v1229_v10 = vpop.f32.mrb[8].mxu1 }
 0x106   :  { %v968_v11 = vadd.f32 %v1197_v9, %v1450_v40  ;;  %v1000_v12 = vadd.f32 %v1229_v10, %v1450_v40  ;;  %v533_v13 = vpop.f32.mrb[9].mxu0  ;;  %v661_v14 = vpop.f32.mrb[9].mxu1 }
 0x107   :  { %v966_v15 = vadd.f32 %v1450_v40, %v533_v13  ;;  %v998_v16 = vadd.f32 %v1450_v40, %v661_v14  ;;  %v1198_v17 = vpop.f32.mrb[10].mxu0  ;;  %v1230_v18 = vpop.f32.mrb[10].mxu1 }
 0x108   :  { %1032 = vst [vmem:[%s1711_s3 + $0x50] sm:$0xff] %v968_v11  ;;  %1064 = vst [vmem:[%s1711_s3 + $0x150] sm:$0xff] %v1000_v12  ;;  %v969_v19 = vadd.f32 %v1198_v17, %v1450_v40  ;;  %v1001_v20 = vadd.f32 %v1230_v18, %v1450_v40  ;;  %v536_v21 = vpop.f32.mrb[11].mxu0  ;;  %v664_v22 = vpop.f32.mrb[11].mxu1 }
 0x109   :  { %1030 = vst [vmem:[%s1711_s3 + $0x40] sm:$0xff] %v966_v15  ;;  %1062 = vst [vmem:[%s1711_s3 + $0x140] sm:$0xff] %v998_v16  ;;  %v967_v23 = vadd.f32 %v1450_v40, %v536_v21  ;;  %v999_v24 = vadd.f32 %v1450_v40, %v664_v22 }
 0x10a   :  { %1033 = vst [vmem:[%s1711_s3 + $0x58] sm:$0xff] %v969_v19  ;;  %1065 = vst [vmem:[%s1711_s3 + $0x158] sm:$0xff] %v1001_v20 }
 0x10b   :  { %1031 = vst [vmem:[%s1711_s3 + $0x48] sm:$0xff] %v967_v23  ;;  %1063 = vst [vmem:[%s1711_s3 + $0x148] sm:$0xff] %v999_v24 }
 0x10d   :  { %v1201_v25 = vpop.f32.mrb[12].mxu0  ;;  %v1233_v26 = vpop.f32.mrb[12].mxu1 }
 0x10e   :  { %v972_v27 = vadd.f32 %v1201_v25, %v1450_v40  ;;  %v1004_v28 = vadd.f32 %v1233_v26, %v1450_v40  ;;  %v549_v29 = vpop.f32.mrb[13].mxu0  ;;  %v677_v30 = vpop.f32.mrb[13].mxu1 }
 0x10f   :  { %v970_v31 = vadd.f32 %v1450_v40, %v549_v29  ;;  %v1002_v32 = vadd.f32 %v1450_v40, %v677_v30  ;;  %v1202_v33 = vpop.f32.mrb[14].mxu0  ;;  %v1234_v34 = vpop.f32.mrb[14].mxu1 }
 0x110   :  { %1036 = vst [vmem:[%s1711_s3 + $0x70] sm:$0xff] %v972_v27  ;;  %1068 = vst [vmem:[%s1711_s3 + $0x170] sm:$0xff] %v1004_v28  ;;  %v973_v35 = vadd.f32 %v1202_v33, %v1450_v40  ;;  %v1005_v36 = vadd.f32 %v1234_v34, %v1450_v40  ;;  %v552_v37 = vpop.f32.mrb[15].mxu0  ;;  %v680_v38 = vpop.f32.mrb[15].mxu1 }
 0x111   :  { %1034 = vst [vmem:[%s1711_s3 + $0x60] sm:$0xff] %v970_v31  ;;  %1066 = vst [vmem:[%s1711_s3 + $0x160] sm:$0xff] %v1002_v32  ;;  %v971_v39 = vadd.f32 %v1450_v40, %v552_v37  ;;  %v1003_v41 = vadd.f32 %v1450_v40, %v680_v38 }
 0x112   :  { %1037 = vst [vmem:[%s1711_s3 + $0x78] sm:$0xff] %v973_v35  ;;  %1069 = vst [vmem:[%s1711_s3 + $0x178] sm:$0xff] %v1005_v36 }
 0x113   :  { %1035 = vst [vmem:[%s1711_s3 + $0x68] sm:$0xff] %v971_v39  ;;  %1067 = vst [vmem:[%s1711_s3 + $0x168] sm:$0xff] %v1003_v41 }
 0x115   :  { %v1205_v42 = vpop.f32.mrb[16].mxu0  ;;  %v1237_v43 = vpop.f32.mrb[16].mxu1 }
 0x116   :  { %v976_v44 = vadd.f32 %v1205_v42, %v1450_v40  ;;  %v1008_v45 = vadd.f32 %v1237_v43, %v1450_v40  ;;  %v565_v46 = vpop.f32.mrb[17].mxu0  ;;  %v693_v47 = vpop.f32.mrb[17].mxu1 }
 0x117   :  { %v974_v48 = vadd.f32 %v1450_v40, %v565_v46  ;;  %v1006_v49 = vadd.f32 %v1450_v40, %v693_v47  ;;  %v1206_v50 = vpop.f32.mrb[18].mxu0  ;;  %v1238_v51 = vpop.f32.mrb[18].mxu1 }
 0x118   :  { %1040 = vst [vmem:[%s1711_s3 + $0x90] sm:$0xff] %v976_v44  ;;  %1072 = vst [vmem:[%s1711_s3 + $0x190] sm:$0xff] %v1008_v45  ;;  %v977_v52 = vadd.f32 %v1206_v50, %v1450_v40  ;;  %v1009_v53 = vadd.f32 %v1238_v51, %v1450_v40  ;;  %v568_v54 = vpop.f32.mrb[19].mxu0  ;;  %v696_v55 = vpop.f32.mrb[19].mxu1 }
 0x119   :  { %1038 = vst [vmem:[%s1711_s3 + $0x80] sm:$0xff] %v974_v48  ;;  %1070 = vst [vmem:[%s1711_s3 + $0x180] sm:$0xff] %v1006_v49  ;;  %v975_v56 = vadd.f32 %v1450_v40, %v568_v54  ;;  %v1007_v57 = vadd.f32 %v1450_v40, %v696_v55 }
 0x11a   :  { %1041 = vst [vmem:[%s1711_s3 + $0x98] sm:$0xff] %v977_v52  ;;  %1073 = vst [vmem:[%s1711_s3 + $0x198] sm:$0xff] %v1009_v53 }
 0x11b   :  { %1039 = vst [vmem:[%s1711_s3 + $0x88] sm:$0xff] %v975_v56  ;;  %1071 = vst [vmem:[%s1711_s3 + $0x188] sm:$0xff] %v1007_v57 }
 0x11d   :  { %v1209_v58 = vpop.f32.mrb[20].mxu0  ;;  %v1241_v59 = vpop.f32.mrb[20].mxu1 }
 0x11e   :  { %v980_v60 = vadd.f32 %v1209_v58, %v1450_v40  ;;  %v1012_v61 = vadd.f32 %v1241_v59, %v1450_v40  ;;  %v581_v62 = vpop.f32.mrb[21].mxu0  ;;  %v709_v63 = vpop.f32.mrb[21].mxu1 }
 0x11f   :  { %v978_v0 = vadd.f32 %v1450_v40, %v581_v62  ;;  %v1010_v1 = vadd.f32 %v1450_v40, %v709_v63  ;;  %v1210_v2 = vpop.f32.mrb[22].mxu0  ;;  %v1242_v3 = vpop.f32.mrb[22].mxu1 }
 0x120   :  { %1044 = vst [vmem:[%s1711_s3 + $0xb0] sm:$0xff] %v980_v60  ;;  %1076 = vst [vmem:[%s1711_s3 + $0x1b0] sm:$0xff] %v1012_v61  ;;  %v981_v4 = vadd.f32 %v1210_v2, %v1450_v40  ;;  %v1013_v5 = vadd.f32 %v1242_v3, %v1450_v40  ;;  %v584_v6 = vpop.f32.mrb[23].mxu0  ;;  %v712_v7 = vpop.f32.mrb[23].mxu1 }
 0x121   :  { %1042 = vst [vmem:[%s1711_s3 + $0xa0] sm:$0xff] %v978_v0  ;;  %1074 = vst [vmem:[%s1711_s3 + $0x1a0] sm:$0xff] %v1010_v1  ;;  %v979_v8 = vadd.f32 %v1450_v40, %v584_v6  ;;  %v1011_v9 = vadd.f32 %v1450_v40, %v712_v7 }
 0x122   :  { %1045 = vst [vmem:[%s1711_s3 + $0xb8] sm:$0xff] %v981_v4  ;;  %1077 = vst [vmem:[%s1711_s3 + $0x1b8] sm:$0xff] %v1013_v5 }
 0x123   :  { %1043 = vst [vmem:[%s1711_s3 + $0xa8] sm:$0xff] %v979_v8  ;;  %1075 = vst [vmem:[%s1711_s3 + $0x1a8] sm:$0xff] %v1011_v9 }
 0x125   :  { %v1213_v10 = vpop.f32.mrb[24].mxu0  ;;  %v1245_v11 = vpop.f32.mrb[24].mxu1 }
 0x126   :  { %v984_v12 = vadd.f32 %v1213_v10, %v1450_v40  ;;  %v1016_v13 = vadd.f32 %v1245_v11, %v1450_v40  ;;  %v597_v14 = vpop.f32.mrb[25].mxu0  ;;  %v725_v15 = vpop.f32.mrb[25].mxu1 }
 0x127   :  { %v982_v16 = vadd.f32 %v1450_v40, %v597_v14  ;;  %v1014_v17 = vadd.f32 %v1450_v40, %v725_v15  ;;  %v1214_v18 = vpop.f32.mrb[26].mxu0  ;;  %v1246_v19 = vpop.f32.mrb[26].mxu1 }
 0x128   :  { %1048 = vst [vmem:[%s1711_s3 + $0xd0] sm:$0xff] %v984_v12  ;;  %1080 = vst [vmem:[%s1711_s3 + $0x1d0] sm:$0xff] %v1016_v13  ;;  %v985_v20 = vadd.f32 %v1214_v18, %v1450_v40  ;;  %v1017_v21 = vadd.f32 %v1246_v19, %v1450_v40  ;;  %v600_v22 = vpop.f32.mrb[27].mxu0  ;;  %v728_v23 = vpop.f32.mrb[27].mxu1 }
 0x129   :  { %1046 = vst [vmem:[%s1711_s3 + $0xc0] sm:$0xff] %v982_v16  ;;  %1078 = vst [vmem:[%s1711_s3 + $0x1c0] sm:$0xff] %v1014_v17  ;;  %v983_v24 = vadd.f32 %v1450_v40, %v600_v22  ;;  %v1015_v25 = vadd.f32 %v1450_v40, %v728_v23 }
 0x12a   :  { %1049 = vst [vmem:[%s1711_s3 + $0xd8] sm:$0xff] %v985_v20  ;;  %1081 = vst [vmem:[%s1711_s3 + $0x1d8] sm:$0xff] %v1017_v21 }
 0x12b   :  { %1047 = vst [vmem:[%s1711_s3 + $0xc8] sm:$0xff] %v983_v24  ;;  %1079 = vst [vmem:[%s1711_s3 + $0x1c8] sm:$0xff] %v1015_v25 }
 0x12d   :  { %v1217_v26 = vpop.f32.mrb[28].mxu0  ;;  %v1249_v27 = vpop.f32.mrb[28].mxu1 }
 0x12e   :  { %v988_v28 = vadd.f32 %v1217_v26, %v1450_v40  ;;  %v1020_v29 = vadd.f32 %v1249_v27, %v1450_v40  ;;  %v613_v30 = vpop.f32.mrb[29].mxu0  ;;  %v741_v31 = vpop.f32.mrb[29].mxu1 }
 0x12f   :  { %v986_v32 = vadd.f32 %v1450_v40, %v613_v30  ;;  %v1018_v33 = vadd.f32 %v1450_v40, %v741_v31  ;;  %v1218_v34 = vpop.f32.mrb[30].mxu0  ;;  %v1250_v35 = vpop.f32.mrb[30].mxu1 }
 0x130   :  { %1052 = vst [vmem:[%s1711_s3 + $0xf0] sm:$0xff] %v988_v28  ;;  %1084 = vst [vmem:[%s1711_s3 + $0x1f0] sm:$0xff] %v1020_v29  ;;  %v989_v36 = vadd.f32 %v1218_v34, %v1450_v40  ;;  %v1021_v37 = vadd.f32 %v1250_v35, %v1450_v40  ;;  %v616_v38 = vpop.f32.mrb[31].mxu0  ;;  %v744_v39 = vpop.f32.mrb[31].mxu1 }
 0x131   :  { %1050 = vst [vmem:[%s1711_s3 + $0xe0] sm:$0xff] %v986_v32  ;;  %1082 = vst [vmem:[%s1711_s3 + $0x1e0] sm:$0xff] %v1018_v33  ;;  %v987_v41 = vadd.f32 %v1450_v40, %v616_v38  ;;  %v1019_v42 = vadd.f32 %v1450_v40, %v744_v39 }
 0x132   :  { %1053 = vst [vmem:[%s1711_s3 + $0xf8] sm:$0xff] %v989_v36  ;;  %1085 = vst [vmem:[%s1711_s3 + $0x1f8] sm:$0xff] %v1021_v37 }
 0x133   :  { %1051 = vst [vmem:[%s1711_s3 + $0xe8] sm:$0xff] %v987_v41  ;;  %1083 = vst [vmem:[%s1711_s3 + $0x1e8] sm:$0xff] %v1019_v42 }

// kernel: generator_forward.49
= control target key start
LH: loop header
LB: loop body
LE: loop exit
PB: predicated region body
PF: predicated region fallthrough
CT: control target
= control target key end

     0   :  { %s1031_s12 = smov 0   ;;  %s1033_s13 = smov 0   ;;  %s1187_s0 = inlined_call_operand.vmem [shape: bf16[128,640], index: 0, kind: input, shape index: {}]   ;;  %s1188_s1 = inlined_call_operand.vmem [shape: bf16[640,128], index: 1, kind: input, shape index: {}]   ;;  %s1189_s2 = inlined_call_operand.vmem [shape: f32[1,128], index: 2, kind: input, shape index: {}]   ;;  %s1190_s3 = inlined_call_operand.vmem [shape: f32[128,128], index: 3, kind: output, shape index: {}]  }
   0x1   :  { %s1035_s14 = smov 0   ;;  %s1037_s15 = smov 0  }
   0x2   :  { %s1039_s16 = smov 0  }
   0x3 LB: > { %s25_s17 = sadd.s32 1, %s1004_s15  ;;  %p48_p1 = scmp.ne.s32.totalorder %s996_s13, %s992_s12  ;;  %s1008_s16 = sphi %s1039_s16, %s13_s16   ;;  %s1004_s15 = sphi %s1037_s15, %s1194_s15   ;;  %s1000_s14 = sphi %s1035_s14, %s1193_s14   ;;  %s996_s13 = sphi %s1033_s13, %s1192_s13   ;;  %s992_s12 = sphi %s1031_s12, %s1191_s12  }
   0x4   : > { %p26_p0 = scmp.ge.s32.totalorder %s25_s17, 5  ;;  %p49_p2 = scmp.eq.s32.totalorder %s1008_s16, 0 }
   0x5   : > { %s41_s19 = sadd.s32 1, %s996_s13  ;;  %p819_p5 = scmp.ge.s32.totalorder %s1008_s16, 5 }
   0x6   : > { %s1196_s17 = smov (%p26_p0, %s25_s17), 0  ;;  %p50_p3 = por %p49_p2, %p48_p1 }
   0x7   : > { %s37_s18 = ssub.s32 %s1004_s15, %s1196_s17  ;;  %162 = sbr.rel (%p819_p5) target bundleno = 28 (0x1c), region = 20 }
   0x8   : > { %p39_p4 = scmp.eq.s32.totalorder %s37_s18, 0 }
   0xa   : > { %s1066_s20 = scalar_select %p39_p4, %s996_s13, %s41_s19  }
   0xe   : > { %165 = sbr.rel (!%p50_p3) target bundleno = 28 (0x1c), region = 24  ;;  %s167_s21 = sand.u32 (%p50_p3), 1, %s996_s13  }
   0xf   : > { %s821_s22 = sshll.u32 (%p50_p3), %s1004_s15, 2  ;;  %s820_s23 = sshll.u32 (%p50_p3), %s167_s21, 6 }
  0x10   : > { %s1074_s26 = scalar_lea.vmem (%p50_p3), %s1187_s0, %s821_s22  ;;  %s169_s27 = scalar_lea.vmem (%p50_p3), [#allocation3], %s820_s23 }
  0x11   : > { %v190_v0 = vld [vmem:[%s1074_s26] sm:$0xf] (%p50_p3)  ;;  %v192_v1 = vld [vmem:[%s1074_s26 + $0x14] sm:$0xf] (%p50_p3)  ;;  %v194_v2 = vld [vmem:[%s1074_s26 + $0x28] sm:$0xf] (%p50_p3) }
  0x12   : > { %191 = vst [vmem:[%s169_s27] sm:$0xf] (%p50_p3), %v190_v0  ;;  %193 = vst [vmem:[%s169_s27 + $0x4] sm:$0xf] (%p50_p3), %v192_v1  ;;  %v196_v3 = vld [vmem:[%s1074_s26 + $0x3c] sm:$0xf] (%p50_p3) }
  0x13   : > { %v198_v4 = vld [vmem:[%s1074_s26 + $0x50] sm:$0xf] (%p50_p3)  ;;  %195 = vst [vmem:[%s169_s27 + $0x8] sm:$0xf] (%p50_p3), %v194_v2  ;;  %197 = vst [vmem:[%s169_s27 + $0xc] sm:$0xf] (%p50_p3), %v196_v3 }
  0x14   : > { %199 = vst [vmem:[%s169_s27 + $0x10] sm:$0xf] (%p50_p3), %v198_v4  ;;  %v200_v5 = vld [vmem:[%s1074_s26 + $0x64] sm:$0xf] (%p50_p3)  ;;  %v202_v6 = vld [vmem:[%s1074_s26 + $0x78] sm:$0xf] (%p50_p3) }
  0x15   : > { %v204_v7 = vld [vmem:[%s1074_s26 + $0x8c] sm:$0xf]  ;;  %201 = vst [vmem:[%s169_s27 + $0x14] sm:$0xf] %v200_v5  ;;  %203 = vst [vmem:[%s169_s27 + $0x18] sm:$0xf] %v202_v6 }
  0x16   : > { %205 = vst [vmem:[%s169_s27 + $0x1c] sm:$0xf] %v204_v7  ;;  %v206_v8 = vld [vmem:[%s1074_s26 + $0xa0] sm:$0xf]  ;;  %v208_v9 = vld [vmem:[%s1074_s26 + $0xb4] sm:$0xf] }
  0x17   : > { %v210_v10 = vld [vmem:[%s1074_s26 + $0xc8] sm:$0xf]  ;;  %207 = vst [vmem:[%s169_s27 + $0x20] sm:$0xf] %v206_v8  ;;  %209 = vst [vmem:[%s169_s27 + $0x24] sm:$0xf] %v208_v9 }
  0x18   : > { %211 = vst [vmem:[%s169_s27 + $0x28] sm:$0xf] %v210_v10  ;;  %v212_v11 = vld [vmem:[%s1074_s26 + $0xdc] sm:$0xf]  ;;  %v214_v12 = vld [vmem:[%s1074_s26 + $0xf0] sm:$0xf] }
  0x19   : > { %v216_v13 = vld [vmem:[%s1074_s26 + $0x104] sm:$0xf]  ;;  %213 = vst [vmem:[%s169_s27 + $0x2c] sm:$0xf] %v212_v11  ;;  %215 = vst [vmem:[%s169_s27 + $0x30] sm:$0xf] %v214_v12 }
  0x1a   : > { %217 = vst [vmem:[%s169_s27 + $0x34] sm:$0xf] %v216_v13  ;;  %v218_v14 = vld [vmem:[%s1074_s26 + $0x118] sm:$0xf]  ;;  %v220_v15 = vld [vmem:[%s1074_s26 + $0x12c] sm:$0xf] }
  0x1b   : > { %219 = vst [vmem:[%s169_s27 + $0x38] sm:$0xf] %v218_v14  ;;  %221 = vst [vmem:[%s169_s27 + $0x3c] sm:$0xf] %v220_v15 }
  0x1c PF: > { %p822_p6 = scmp.ge.s32.totalorder %s1008_s16, 1  ;;  %p287_p7 = scmp.lt.s32.totalorder %s1008_s16, 6 }
  0x1e   : > { %p288_p8 = pnand %p822_p6, %p287_p7 }
  0x1f   : > { %s294_s28 = sand.u32 (!%p288_p8), 1, %s992_s12   ;;  %s824_s29 = sshll.u32 (!%p288_p8), %s1000_s14, 4 }
  0x20   : > { %291 = sbr.rel (%p288_p8) target bundleno = 319 (0x13f), region = 69  ;;  %s823_s30 = sshll.u32 (!%p288_p8), %s294_s28, 6 }
  0x21   : > { %p333_p9 = scmp.lt.s32.totalorder (!%p288_p8), %s824_s29, 79  ;;  %s1101_s8 = scalar_lea.vmem (!%p288_p8), [#allocation3], %s823_s30 }
  0x22   : > { %p826_p10 = scmp.ne.s32.totalorder (!%p288_p8), %s1000_s14, 0 }
  0x27   : > { %s1198_s29 = smov (!%p333_p9, %s824_s29), 79  ;;  %357 = sbr.rel (%p826_p10) target bundleno = 49 (0x31), region = 77 }
  0x28   : > { %s825_s4 = sshll.u32 %s1198_s29, 2  ;;  %v1010_v16 = vmov (!%p826_p10), 0.0  }
  0x29   : > { %s1099_s7 = scalar_lea.vmem %s1188_s1, %s825_s4  ;;  %358 = vst [vmem:[#allocation2] sm:$0xff] (!%p826_p10), %v1010_v16  ;;  %359 = vst [vmem:[#allocation2 + $0x8] sm:$0xff] (!%p826_p10), %v1010_v16 }
  0x2a   : > { %360 = vst [vmem:[#allocation2 + $0x10] sm:$0xff] (!%p826_p10), %v1010_v16  ;;  %361 = vst [vmem:[#allocation2 + $0x18] sm:$0xff] (!%p826_p10), %v1010_v16 }
  0x2b   : > { %362 = vst [vmem:[#allocation2 + $0x20] sm:$0xff] (!%p826_p10), %v1010_v16  ;;  %363 = vst [vmem:[#allocation2 + $0x28] sm:$0xff] (!%p826_p10), %v1010_v16 }
  0x2c   : > { %364 = vst [vmem:[#allocation2 + $0x30] sm:$0xff] (!%p826_p10), %v1010_v16  ;;  %365 = vst [vmem:[#allocation2 + $0x38] sm:$0xff] (!%p826_p10), %v1010_v16 }
  0x2d   : > { %366 = vst [vmem:[#allocation2 + $0x40] sm:$0xff] (!%p826_p10), %v1010_v16  ;;  %367 = vst [vmem:[#allocation2 + $0x48] sm:$0xff] (!%p826_p10), %v1010_v16 }
  0x2e   : > { %368 = vst [vmem:[#allocation2 + $0x50] sm:$0xff] %v1010_v16  ;;  %369 = vst [vmem:[#allocation2 + $0x58] sm:$0xff] %v1010_v16 }
  0x2f   : > { %370 = vst [vmem:[#allocation2 + $0x60] sm:$0xff] %v1010_v16  ;;  %371 = vst [vmem:[#allocation2 + $0x68] sm:$0xff] %v1010_v16 }
  0x30   : > { %372 = vst [vmem:[#allocation2 + $0x70] sm:$0xff] %v1010_v16  ;;  %373 = vst [vmem:[#allocation2 + $0x78] sm:$0xff] %v1010_v16 }
  0x31 PF: > { %v954_v17 = vld [vmem:[%s1099_s7] sm:$0xff]   ;;  %v955_v18 = vld [vmem:[%s1099_s7 + $0x8] sm:$0xff]   ;;  %v956_v19 = vld [vmem:[%s1099_s7 + $0x10] sm:$0xff]   ;;  %p843_p11 = scmp.ne.s32.totalorder %s1000_s14, 4 }
  0x32   : > { %865 = vmatprep.subr.bf16.mxu0 %v954_v17  ;;  %897 = vmatprep.subr.bf16.mxu1 %v954_v17  ;;  %v957_v20 = vld [vmem:[%s1099_s7 + $0x18] sm:$0xff]   ;;  %v962_v21 = vld [vmem:[%s1101_s8] sm:$0xff]   ;;  %v959_v24 = vld [vmem:[%s1099_s7 + $0x28] sm:$0xff]  }
  0x33   : > { %866 = vmatpush3.bf16.msra.mxu0 %v954_v17  ;;  %905 = vmatpush3.bf16.msra.mxu1 %v954_v17  ;;  %v963_v22 = vld [vmem:[%s1101_s8 + $0x20] sm:$0xff]   ;;  %v960_v25 = vld [vmem:[%s1099_s7 + $0x30] sm:$0xff]   ;;  %v961_v26 = vld [vmem:[%s1099_s7 + $0x38] sm:$0xff]  }
  0x34   : > { %867 = vmatprep.subr.bf16.mxu0 %v955_v18  ;;  %898 = vmatprep.subr.bf16.mxu1 %v955_v18  ;;  %v958_v23 = vld [vmem:[%s1099_s7 + $0x20] sm:$0xff]   ;;  %v964_v27 = vld [vmem:[%s1101_s8 + $0x8] sm:$0xff]   ;;  %v966_v29 = vld [vmem:[%s1101_s8 + $0x10] sm:$0xff]  }
  0x35   : > { %881 = vmatprep.mubr.bf16.mxu0 %v962_v21  ;;  %889 = vmatprep.mubr.bf16.mxu1 %v963_v22  ;;  %v965_v28 = vld [vmem:[%s1101_s8 + $0x28] sm:$0xff]   ;;  %v967_v30 = vld [vmem:[%s1101_s8 + $0x30] sm:$0xff]   ;;  %v968_v31 = vld [vmem:[%s1101_s8 + $0x18] sm:$0xff]  }
  0x36   : > { %v969_v32 = vld [vmem:[%s1101_s8 + $0x38] sm:$0xff]   ;;  %v376_v33 = vld [vmem:[#allocation2 + $0x10] sm:$0xff]  ;;  %v374_v35 = vld [vmem:[#allocation2] sm:$0xff] }
  0x37   : > { %868 = vmatpush3.bf16.msra.mxu0 %v955_v18  ;;  %906 = vmatpush3.bf16.msra.mxu1 %v955_v18  ;;  %v384_v34 = vld [vmem:[#allocation2 + $0x50] sm:$0xff]  ;;  %v382_v36 = vld [vmem:[#allocation2 + $0x40] sm:$0xff]  ;;  %v377_v39 = vld [vmem:[#allocation2 + $0x18] sm:$0xff] }
  0x38   : > { %869 = vmatprep.subr.bf16.mxu0 %v956_v19  ;;  %899 = vmatprep.subr.bf16.mxu1 %v956_v19  ;;  %v385_v40 = vld [vmem:[#allocation2 + $0x58] sm:$0xff]  ;;  %v375_v45 = vld [vmem:[#allocation2 + $0x8] sm:$0xff]  ;;  %v380_v57 = vld [vmem:[#allocation2 + $0x30] sm:$0xff] }
  0x39   : > { %v383_v46 = vld [vmem:[#allocation2 + $0x48] sm:$0xff]  ;;  %v388_v58 = vld [vmem:[#allocation2 + $0x70] sm:$0xff]  ;;  %v378_v59 = vld [vmem:[#allocation2 + $0x20] sm:$0xff] }
  0x3a   : > { %v386_v60 = vld [vmem:[#allocation2 + $0x60] sm:$0xff]  ;;  %v381_v63 = vld [vmem:[#allocation2 + $0x38] sm:$0xff]  ;;  %v379_v5 = vld [vmem:[#allocation2 + $0x28] sm:$0xff] }
  0x3b   : > { %870 = vmatpush3.bf16.msra.mxu0 %v956_v19  ;;  %907 = vmatpush3.bf16.msra.mxu1 %v956_v19  ;;  %v389_v0 = vld [vmem:[#allocation2 + $0x78] sm:$0xff]  ;;  %v387_v6 = vld [vmem:[#allocation2 + $0x68] sm:$0xff]  ;;  %v844_v18 = vld [vmem:[%s1189_s2] ss:$0 sm:$0xff] (!%p843_p11) }
  0x3c   : > { %871 = vmatprep.subr.bf16.mxu0 %v957_v20  ;;  %900 = vmatprep.subr.bf16.mxu1 %v957_v20 }
  0x3f   : > { %872 = vmatpush3.bf16.msra.mxu0 %v957_v20  ;;  %908 = vmatpush3.bf16.msra.mxu1 %v957_v20 }
  0x40   : > { %873 = vmatprep.subr.bf16.mxu0 %v958_v23  ;;  %901 = vmatprep.subr.bf16.mxu1 %v958_v23 }
  0x43   : > { %874 = vmatpush3.bf16.msra.mxu0 %v958_v23  ;;  %909 = vmatpush3.bf16.msra.mxu1 %v958_v23 }
  0x44   : > { %875 = vmatprep.subr.bf16.mxu0 %v959_v24  ;;  %902 = vmatprep.subr.bf16.mxu1 %v959_v24 }
  0x47   : > { %876 = vmatpush3.bf16.msra.mxu0 %v959_v24  ;;  %910 = vmatpush3.bf16.msra.mxu1 %v959_v24 }
  0x48   : > { %877 = vmatprep.subr.bf16.mxu0 %v960_v25  ;;  %903 = vmatprep.subr.bf16.mxu1 %v960_v25 }
  0x4b   : > { %878 = vmatpush3.bf16.msra.mxu0 %v960_v25  ;;  %911 = vmatpush3.bf16.msra.mxu1 %v960_v25 }
  0x4c   : > { %879 = vmatprep.subr.bf16.mxu0 %v961_v26  ;;  %904 = vmatprep.subr.bf16.mxu1 %v961_v26 }
  0x4f   : > { %880 = vmatpush3.bf16.msra.mxu0 %v961_v26  ;;  %912 = vmatpush3.bf16.msra.mxu1 %v961_v26 }
  0x52   : > { %882 = vmatmul.mubr.bf16.vlgmr.msra.gmra.mrb[0].mxu0 %v964_v27  ;;  %890 = vmatmul.mubr.bf16.vlgmr.msra.gmra.mrb[0].mxu1 %v965_v28 }
  0x53   : > { %885 = vmatprep.mubr.bf16.mxu0 %v966_v29  ;;  %893 = vmatprep.mubr.bf16.mxu1 %v967_v30 }
  0x5a   : > { %886 = vmatmul.mubr.bf16.gmra.mrb[4].mxu0 %v968_v31  ;;  %894 = vmatmul.mubr.bf16.gmra.mrb[4].mxu1 %v969_v32 }
 0x125   : > { %v883_v37 = vpop.f32.mrb[0].mxu0  ;;  %v891_v38 = vpop.f32.mrb[0].mxu1 }
 0x126   : > { %v617_v41 = vadd.f32 %v883_v37, %v376_v33  ;;  %v625_v42 = vadd.f32 %v891_v38, %v384_v34  ;;  %v552_v43 = vpop.f32.mrb[1].mxu0  ;;  %v584_v44 = vpop.f32.mrb[1].mxu1 }
 0x127   : > { %v615_v47 = vadd.f32 %v552_v43, %v374_v35  ;;  %v623_v48 = vadd.f32 %v584_v44, %v382_v36  ;;  %v884_v49 = vpop.f32.mrb[2].mxu0  ;;  %v892_v50 = vpop.f32.mrb[2].mxu1 }
 0x128   : > { %633 = vst [vmem:[#allocation2 + $0x10] sm:$0xff] %v617_v41  ;;  %641 = vst [vmem:[#allocation2 + $0x50] sm:$0xff] %v625_v42  ;;  %v618_v51 = vadd.f32 %v884_v49, %v377_v39  ;;  %v626_v52 = vadd.f32 %v892_v50, %v385_v40  ;;  %v555_v53 = vpop.f32.mrb[3].mxu0  ;;  %v587_v54 = vpop.f32.mrb[3].mxu1 }
 0x129   : > { %631 = vst [vmem:[#allocation2] sm:$0xff] %v615_v47  ;;  %639 = vst [vmem:[#allocation2 + $0x40] sm:$0xff] %v623_v48  ;;  %v616_v55 = vadd.f32 %v555_v53, %v375_v45  ;;  %v624_v56 = vadd.f32 %v587_v54, %v383_v46 }
 0x12a   : > { %634 = vst [vmem:[#allocation2 + $0x18] sm:$0xff] %v618_v51  ;;  %642 = vst [vmem:[#allocation2 + $0x58] sm:$0xff] %v626_v52 }
 0x12b   : > { %632 = vst [vmem:[#allocation2 + $0x8] sm:$0xff] %v616_v55  ;;  %640 = vst [vmem:[#allocation2 + $0x48] sm:$0xff] %v624_v56 }
 0x12d   : > { %v887_v61 = vpop.f32.mrb[4].mxu0  ;;  %v895_v62 = vpop.f32.mrb[4].mxu1  ;;  %650 = sbr.rel (%p843_p11) target bundleno = 319 (0x13f), region = 81 }
 0x12e   : > { %v621_v1 = vadd.f32 %v887_v61, %v380_v57  ;;  %v629_v2 = vadd.f32 %v895_v62, %v388_v58  ;;  %v568_v3 = vpop.f32.mrb[5].mxu0  ;;  %v600_v4 = vpop.f32.mrb[5].mxu1 }
 0x12f   : > { %v619_v7 = vadd.f32 %v568_v3, %v378_v59  ;;  %v627_v8 = vadd.f32 %v600_v4, %v386_v60  ;;  %v888_v9 = vpop.f32.mrb[6].mxu0  ;;  %v896_v10 = vpop.f32.mrb[6].mxu1  ;;  %v653_v22 = vld [vmem:[#allocation2 + $0x10] sm:$0xff] (!%p843_p11) }
 0x130   : > { %637 = vst [vmem:[#allocation2 + $0x30] sm:$0xff] %v621_v1  ;;  %645 = vst [vmem:[#allocation2 + $0x70] sm:$0xff] %v629_v2  ;;  %v622_v11 = vadd.f32 %v888_v9, %v381_v63  ;;  %v630_v12 = vadd.f32 %v896_v10, %v389_v0  ;;  %v571_v13 = vpop.f32.mrb[7].mxu0  ;;  %v603_v14 = vpop.f32.mrb[7].mxu1  ;;  %v651_v17 = vld [vmem:[#allocation2] sm:$0xff] (!%p843_p11)  ;;  %v676_v25 = vadd.f32 (!%p843_p11), %v844_v18, %v653_v22  ;;  %v661_v36 = vld [vmem:[#allocation2 + $0x50] sm:$0xff] (!%p843_p11) }
 0x131   : > { %635 = vst [vmem:[#allocation2 + $0x20] sm:$0xff] %v619_v7  ;;  %643 = vst [vmem:[#allocation2 + $0x60] sm:$0xff] %v627_v8  ;;  %v620_v15 = vadd.f32 %v571_v13, %v379_v5  ;;  %v628_v16 = vadd.f32 %v603_v14, %v387_v6  ;;  %v674_v20 = vadd.f32 (!%p843_p11), %v844_v18, %v651_v17  ;;  %v654_v23 = vld [vmem:[#allocation2 + $0x18] sm:$0xff] (!%p843_p11)  ;;  %v659_v34 = vld [vmem:[#allocation2 + $0x40] sm:$0xff] (!%p843_p11) }
 0x132   : > { %638 = vst [vmem:[#allocation2 + $0x38] sm:$0xff] %v622_v11  ;;  %646 = vst [vmem:[#allocation2 + $0x78] sm:$0xff] %v630_v12  ;;  %v652_v19 = vld [vmem:[#allocation2 + $0x8] sm:$0xff] (!%p843_p11)  ;;  %v677_v26 = vadd.f32 (!%p843_p11), %v844_v18, %v654_v23  ;;  %v682_v37 = vadd.f32 (!%p843_p11), %v844_v18, %v659_v34  ;;  %v684_v39 = vadd.f32 (!%p843_p11), %v844_v18, %v661_v36  ;;  %v662_v40 = vld [vmem:[#allocation2 + $0x58] sm:$0xff] (!%p843_p11) }
 0x133   : > { %636 = vst [vmem:[#allocation2 + $0x28] sm:$0xff] %v620_v15  ;;  %644 = vst [vmem:[#allocation2 + $0x68] sm:$0xff] %v628_v16  ;;  %v675_v21 = vadd.f32 (!%p843_p11), %v844_v18, %v652_v19  ;;  %v660_v35 = vld [vmem:[#allocation2 + $0x48] sm:$0xff] (!%p843_p11)  ;;  %v685_v43 = vadd.f32 (!%p843_p11), %v844_v18, %v662_v40 }
 0x134   : > { %690 = vst [vmem:[%s1190_s3] sm:$0xff] %v674_v20  ;;  %692 = vst [vmem:[%s1190_s3 + $0x10] sm:$0xff] %v676_v25  ;;  %v683_v38 = vadd.f32 %v844_v18, %v660_v35 }
 0x135   : > { %691 = vst [vmem:[%s1190_s3 + $0x8] sm:$0xff] %v675_v21  ;;  %693 = vst [vmem:[%s1190_s3 + $0x18] sm:$0xff] %v677_v26 }
 0x136   : > { %698 = vst [vmem:[%s1190_s3 + $0x40] sm:$0xff] %v682_v37  ;;  %699 = vst [vmem:[%s1190_s3 + $0x48] sm:$0xff] %v683_v38 }
 0x137   : > { %v657_v29 = vld [vmem:[#allocation2 + $0x30] sm:$0xff]  ;;  %700 = vst [vmem:[%s1190_s3 + $0x50] sm:$0xff] %v684_v39  ;;  %701 = vst [vmem:[%s1190_s3 + $0x58] sm:$0xff] %v685_v43 }
 0x138   : > { %v655_v24 = vld [vmem:[#allocation2 + $0x20] sm:$0xff]  ;;  %v680_v32 = vadd.f32 %v844_v18, %v657_v29  ;;  %v665_v46 = vld [vmem:[#allocation2 + $0x70] sm:$0xff] }
 0x139   : > { %v678_v27 = vadd.f32 %v844_v18, %v655_v24  ;;  %v658_v30 = vld [vmem:[#allocation2 + $0x38] sm:$0xff]  ;;  %v663_v41 = vld [vmem:[#allocation2 + $0x60] sm:$0xff]  ;;  %v688_v48 = vadd.f32 %v844_v18, %v665_v46 }
 0x13a   : > { %v656_v28 = vld [vmem:[#allocation2 + $0x28] sm:$0xff]  ;;  %v681_v33 = vadd.f32 %v844_v18, %v658_v30  ;;  %696 = vst [vmem:[%s1190_s3 + $0x30] sm:$0xff] %v680_v32  ;;  %v686_v44 = vadd.f32 %v844_v18, %v663_v41  ;;  %v666_v47 = vld [vmem:[#allocation2 + $0x78] sm:$0xff] }
 0x13b   : > { %v679_v31 = vadd.f32 %v844_v18, %v656_v28  ;;  %694 = vst [vmem:[%s1190_s3 + $0x20] sm:$0xff] %v678_v27  ;;  %v664_v42 = vld [vmem:[#allocation2 + $0x68] sm:$0xff]  ;;  %v689_v49 = vadd.f32 %v844_v18, %v666_v47  ;;  %704 = vst [vmem:[%s1190_s3 + $0x70] sm:$0xff] %v688_v48 }
 0x13c   : > { %697 = vst [vmem:[%s1190_s3 + $0x38] sm:$0xff] %v681_v33  ;;  %v687_v45 = vadd.f32 %v844_v18, %v664_v42  ;;  %702 = vst [vmem:[%s1190_s3 + $0x60] sm:$0xff] %v686_v44 }
 0x13d   : > { %695 = vst [vmem:[%s1190_s3 + $0x28] sm:$0xff] %v679_v31  ;;  %705 = vst [vmem:[%s1190_s3 + $0x78] sm:$0xff] %v689_v49 }
 0x13e   : > { %703 = vst [vmem:[%s1190_s3 + $0x68] sm:$0xff] %v687_v45 }
 0x13f PF: > { %s13_s16 = sadd.s32 1, %s1008_s16   ;;  %s1191_s12 = smov %s996_s13 }
 0x140   : > { %p10_p12 = scmp.ge.s32.totalorder %s13_s16, 7   ;;  %s1192_s13 = smov %s1066_s20 }
 0x141   : > { %s1193_s14 = smov %s1004_s15  ;;  %s1194_s15 = smov %s1196_s17 }
 0x142   :  { %12 = sbr.rel (!%p10_p12) target bundleno = 3 (0x3), region = 122 }

// kernel: generator_forward.50
= control target key start
LH: loop header
LB: loop body
LE: loop exit
PB: predicated region body
PF: predicated region fallthrough
CT: control target
= control target key end

     0   :  { %s385_s6 = smov 0   ;;  %s387_s7 = smov 0   ;;  %s425_s0 = inlined_call_operand.vmem [shape: f32[2,64,128], index: 0, kind: input, shape index: {}]   ;;  %s426_s1 = inlined_call_operand.vmem [shape: f32[2,64,128], index: 1, kind: output, shape index: {}]  }
   0x1   :  { %s389_s8 = smov 0  }
   0x2 LB: > { %s23_s9 = sadd.s32 1, %s369_s7  ;;  %p316_p0 = scmp.ge.s32.totalorder %s373_s8, 1  ;;  %s373_s8 = sphi %s389_s8, %s11_s8   ;;  %s369_s7 = sphi %s387_s7, %s428_s7   ;;  %s365_s6 = sphi %s385_s6, %s427_s6  }
   0x3   : > { %p25_p1 = scmp.ge.s32.totalorder %s23_s9, 2  ;;  %p106_p2 = scmp.lt.s32.totalorder %s373_s8, 3 }
   0x5   : > { %s430_s9 = smov (%p25_p1, %s23_s9), 0  ;;  %p107_p3 = pnand %p316_p0, %p106_p2 }
   0x6   : > { %p132_p4 = scmp.lt.s32.totalorder (!%p107_p3), %s365_s6, 1 }
   0x7   : > { %110 = sbr.rel (%p107_p3) target bundleno = 73 (0x49), region = 24 }
   0xe   : > { %s432_s6 = smov (!%p132_p4, %s365_s6), 1 }
   0xf   : > { %s323_s10 = sshll.u32 %s432_s6, 6 }
  0x10   : > { %s139_s13 = scalar_lea.vmem %s425_s0, %s323_s10  ;;  %s147_s16 = scalar_lea.vmem %s426_s1, %s323_s10 }
  0x11   : > { %v148_v0 = vld [vmem:[%s139_s13] sm:$0xff]  ;;  %v149_v1 = vld [vmem:[%s139_s13 + $0x8] sm:$0xff]  ;;  %v150_v2 = vld [vmem:[%s139_s13 + $0x10] sm:$0xff] }
  0x12   : > { %v151_v3 = vld [vmem:[%s139_s13 + $0x18] sm:$0xff]  ;;  %v156_v4 = vadd.f32 %v149_v1, %v148_v0  ;;  %v169_v5 = vmul.f32 %v148_v0, %v148_v0  ;;  %v170_v6 = vmul.f32 %v149_v1, %v149_v1  ;;  %v171_v7 = vmul.f32 %v150_v2, %v150_v2  ;;  %v152_v8 = vld [vmem:[%s139_s13 + $0x20] sm:$0xff]  ;;  %v153_v12 = vld [vmem:[%s139_s13 + $0x28] sm:$0xff] }
  0x13   : > { %v172_v10 = vmul.f32 %v151_v3, %v151_v3  ;;  %v173_v14 = vmul.f32 %v152_v8, %v152_v8  ;;  %v154_v16 = vld [vmem:[%s139_s13 + $0x30] sm:$0xff]  ;;  %v174_v18 = vmul.f32 %v153_v12, %v153_v12  ;;  %v155_v20 = vld [vmem:[%s139_s13 + $0x38] sm:$0xff] }
  0x14   : > { %v157_v9 = vadd.f32 %v156_v4, %v150_v2  ;;  %v177_v11 = vadd.f32 %v170_v6, %v169_v5  ;;  %v175_v22 = vmul.f32 %v154_v16, %v154_v16  ;;  %v176_v25 = vmul.f32 %v155_v20, %v155_v20 }
  0x16   : > { %v158_v13 = vadd.f32 %v157_v9, %v151_v3  ;;  %v178_v15 = vadd.f32 %v177_v11, %v171_v7 }
  0x18   : > { %v159_v17 = vadd.f32 %v158_v13, %v152_v8  ;;  %v179_v19 = vadd.f32 %v178_v15, %v172_v10 }
  0x1a   : > { %v160_v21 = vadd.f32 %v159_v17, %v153_v12  ;;  %v180_v23 = vadd.f32 %v179_v19, %v173_v14 }
  0x1c   : > { %v161_v24 = vadd.f32 %v160_v21, %v154_v16  ;;  %v181_v26 = vadd.f32 %v180_v23, %v174_v18 }
  0x1e   : > { %v162_v27 = vadd.f32 %v161_v24, %v155_v20  ;;  %v182_v28 = vadd.f32 %v181_v26, %v175_v22 }
  0x20   : > { %v163_v29 = vrot.slane %v162_v27, 4  ;;  %v183_v30 = vadd.f32 %v182_v28, %v176_v25 }
  0x22   : > { %v164_v31 = vadd.f32 %v163_v29, %v162_v27  ;;  %v184_v32 = vrot.slane %v183_v30, 4 }
  0x24   : > { %v165_v33 = vrot.slane %v164_v31, 2  ;;  %v185_v34 = vadd.f32 %v184_v32, %v183_v30 }
  0x26   : > { %v166_v35 = vadd.f32 %v165_v33, %v164_v31  ;;  %v186_v36 = vrot.slane %v185_v34, 2 }
  0x28   : > { %v167_v37 = vrot.slane %v166_v35, 1  ;;  %v187_v38 = vadd.f32 %v186_v36, %v185_v34 }
  0x2a   : > { %v168_v39 = vadd.f32 %v167_v37, %v166_v35  ;;  %v188_v40 = vrot.slane %v187_v38, 1 }
  0x2c   : > { %v189_v41 = vadd.f32 %v188_v40, %v187_v38  ;;  %v190_v42 = vmul.f32 0.015625, %v168_v39 }
  0x2e   : > { %v191_v43 = vmul.f32 0.015625, %v189_v41  ;;  %v192_v44 = vmul.f32 %v190_v42, %v190_v42  ;;  %v195_v48 = vsub.f32 %v148_v0, %v190_v42  ;;  %v196_v49 = vsub.f32 %v149_v1, %v190_v42 }
  0x2f   : > { %v197_v50 = vsub.f32 %v150_v2, %v190_v42  ;;  %v198_v51 = vsub.f32 %v151_v3, %v190_v42  ;;  %v199_v52 = vsub.f32 %v152_v8, %v190_v42  ;;  %v200_v53 = vsub.f32 %v153_v12, %v190_v42 }
  0x30   : > { %v193_v45 = vsub.f32 %v191_v43, %v192_v44  ;;  %v201_v54 = vsub.f32 %v154_v16, %v190_v42  ;;  %v202_v55 = vsub.f32 %v155_v20, %v190_v42 }
  0x32   : > { %v194_v46 = vmax.f32 %v193_v45, 0.0 }
  0x34   : > { %v203_v47 = vadd.f32 1e-05, %v194_v46 }
  0x36   : > { %349 = vrsqrt.f32 %v203_v47 }
  0x40   : > { %v350_v56 = vpop.eup %349 }
  0x41   : > { %v205_v57 = vmul.f32 %v350_v56, %v195_v48  ;;  %v206_v58 = vmul.f32 %v350_v56, %v196_v49  ;;  %v207_v59 = vmul.f32 %v350_v56, %v197_v50  ;;  %v208_v60 = vmul.f32 %v350_v56, %v198_v51 }
  0x42   : > { %v209_v61 = vmul.f32 %v350_v56, %v199_v52  ;;  %v210_v62 = vmul.f32 %v350_v56, %v200_v53  ;;  %v211_v63 = vmul.f32 %v350_v56, %v201_v54  ;;  %v212_v0 = vmul.f32 %v350_v56, %v202_v55 }
  0x43   : > { %v213_v1 = vmax.f32 %v205_v57, 0.0  ;;  %v214_v2 = vmax.f32 %v206_v58, 0.0  ;;  %v215_v3 = vmax.f32 %v207_v59, 0.0  ;;  %v216_v4 = vmax.f32 %v208_v60, 0.0 }
  0x44   : > { %v217_v5 = vmax.f32 %v209_v61, 0.0  ;;  %v218_v6 = vmax.f32 %v210_v62, 0.0  ;;  %v219_v7 = vmax.f32 %v211_v63, 0.0  ;;  %v220_v8 = vmax.f32 %v212_v0, 0.0 }
  0x45   : > { %221 = vst [vmem:[%s147_s16] sm:$0xff] %v213_v1  ;;  %222 = vst [vmem:[%s147_s16 + $0x8] sm:$0xff] %v214_v2 }
  0x46   : > { %223 = vst [vmem:[%s147_s16 + $0x10] sm:$0xff] %v215_v3  ;;  %224 = vst [vmem:[%s147_s16 + $0x18] sm:$0xff] %v216_v4 }
  0x47   : > { %225 = vst [vmem:[%s147_s16 + $0x20] sm:$0xff] %v217_v5  ;;  %226 = vst [vmem:[%s147_s16 + $0x28] sm:$0xff] %v218_v6 }
  0x48   : > { %227 = vst [vmem:[%s147_s16 + $0x30] sm:$0xff] %v219_v7  ;;  %228 = vst [vmem:[%s147_s16 + $0x38] sm:$0xff] %v220_v8 }
  0x49 PF: > { %s11_s8 = sadd.s32 1, %s373_s8   ;;  %s427_s6 = smov %s369_s7 }
  0x4a   : > { %p8_p5 = scmp.ge.s32.totalorder %s11_s8, 4   ;;  %s428_s7 = smov %s430_s9 }
  0x4c   :  { %10 = sbr.rel (!%p8_p5) target bundleno = 2 (0x2), region = 54 }

// kernel: generator_forward.52
= control target key start
LH: loop header
LB: loop body
LE: loop exit
PB: predicated region body
PF: predicated region fallthrough
CT: control target
= control target key end

     0   :  { %s458_s6 = smov 0   ;;  %s460_s7 = smov 0   ;;  %s558_s0 = inlined_call_operand.vmem [shape: f32[2,16,256], index: 0, kind: input, shape index: {}]   ;;  %s559_s1 = inlined_call_operand.vmem [shape: f32[2,16,256], index: 1, kind: output, shape index: {}]  }
   0x1   :  { %s462_s8 = smov 0   ;;  %s464_s9 = smov 0  }
   0x2   :  { %s466_s10 = smov 0   ;;  %s468_s11 = smov 0  }
   0x3   :  { %s470_s12 = smov 0  }
   0x4 LB: > { %s20_s13 = sadd.s32 1, %s438_s10  ;;  %s23_s14 = sadd.s32 1, %s442_s11  ;;  %s446_s12 = sphi %s470_s12, %s11_s12   ;;  %s442_s11 = sphi %s468_s11, %s566_s11   ;;  %s438_s10 = sphi %s466_s10, %s565_s10   ;;  %s434_s9 = sphi %s464_s9, %s564_s9   ;;  %s430_s8 = sphi %s462_s8, %s563_s8   ;;  %s426_s7 = sphi %s460_s7, %s562_s7   ;;  %s422_s6 = sphi %s458_s6, %s561_s6  }
   0x5   : > { %p21_p0 = scmp.ge.s32.totalorder %s20_s13, 2  ;;  %s319_s15 = sadd.s32 4294967295, %s446_s12  }
   0x6   : > { %p39_p1 = scmp.ne.s32.totalorder %s426_s7, %s422_s6  ;;  %p40_p2 = scmp.eq.s32.totalorder %s446_s12, 0 }
   0x7   : > { %s568_s13 = smov (%p21_p0, %s20_s13), 0  ;;  %s570_s14 = smov (!%p21_p0, %s23_s14), %s442_s11 }
   0x8   : > { %p25_p3 = scmp.ge.s32.totalorder %s570_s14, 2  ;;  %p71_p4 = scmp.eq.s32.totalorder %s319_s15, 3 }
   0x9   : > { %s28_s16 = ssub.s32 %s438_s10, %s568_s13  ;;  %p41_p5 = por %p40_p2, %p39_p1 }
   0xa   : > { %s572_s14 = smov (%p25_p3, %s570_s14), 0  ;;  %p506_p6 = por %p71_p4, %p39_p1 }
   0xb   : > { %s27_s18 = ssub.s32 %s442_s11, %s572_s14  ;;  %s32_s20 = sadd.s32 1, %s426_s7 }
   0xc   : > { %s29_s19 = sor.u32 %s28_s16, %s27_s18  ;;  %p322_p8 = scmp.ge.s32.totalorder %s446_s12, 4 }
   0xd   : > { %p30_p7 = scmp.eq.s32.totalorder %s29_s19, 0 }
   0xe   : > { %93 = sbr.rel (%p322_p8) target bundleno = 28 (0x1c), region = 16 }
   0xf   : > { %s514_s21 = scalar_select %p30_p7, %s426_s7, %s32_s20  }
  0x15   : > { %96 = sbr.rel (!%p41_p5) target bundleno = 28 (0x1c), region = 20  ;;  %s98_s22 = sand.u32 (%p41_p5), 1, %s426_s7  }
  0x16   : > { %s324_s23 = sshll.u32 (%p41_p5), %s442_s11, 2  ;;  %s323_s24 = sshll.u32 (%p41_p5), %s98_s22, 4 }
  0x17   : > { %s102_s25 = sadd.s32 (%p41_p5), %s438_s10, %s324_s23  ;;  %s100_s30 = scalar_lea.vmem (%p41_p5), [#allocation2], %s323_s24 }
  0x18   : > { %s325_s26 = sshll.u32 (%p41_p5), %s102_s25, 3 }
  0x19   : > { %s104_s29 = scalar_lea.vmem (%p41_p5), %s558_s0, %s325_s26 }
  0x1a   : > { %v134_v0 = vld [vmem:[%s104_s29] sm:$0xff] (%p41_p5)  ;;  %v136_v1 = vld [vmem:[%s104_s29 + $0x10] sm:$0xff] (%p41_p5) }
  0x1b   : > { %135 = vst [vmem:[%s100_s30] sm:$0xff] (%p41_p5), %v134_v0  ;;  %137 = vst [vmem:[%s100_s30 + $0x8] sm:$0xff] (%p41_p5), %v136_v1 }
  0x1c PF: > { %p326_p9 = scmp.ge.s32.totalorder %s446_s12, 1  ;;  %p142_p10 = scmp.lt.s32.totalorder %s446_s12, 5 }
  0x1e   : > { %p143_p11 = pnand %p326_p9, %p142_p10 }
  0x1f   : > { %s149_s2 = sand.u32 (!%p143_p11), 1, %s422_s6  }
  0x20   : > { %146 = sbr.rel (%p143_p11) target bundleno = 83 (0x53), region = 58  ;;  %s526_s3 = sshll.u32 (!%p143_p11), %s149_s2, 4 }
  0x21   : > { %s151_s4 = scalar_lea.vmem (!%p143_p11), [#allocation2], %s526_s3  ;;  %s166_s5 = scalar_lea.vmem (!%p143_p11), [#allocation3], %s526_s3 }
  0x22   : > { %v167_v2 = vld [vmem:[%s151_s4] sm:$0xff] (!%p143_p11)  ;;  %v168_v3 = vld [vmem:[%s151_s4 + $0x8] sm:$0xff] (!%p143_p11) }
  0x23   : > { %v169_v4 = vadd.f32 (!%p143_p11), %v168_v3, %v167_v2  ;;  %v176_v5 = vmul.f32 (!%p143_p11), %v167_v2, %v167_v2  ;;  %v177_v6 = vmul.f32 (!%p143_p11), %v168_v3, %v168_v3 }
  0x25   : > { %v170_v7 = vrot.slane (!%p143_p11), %v169_v4, 4  ;;  %v178_v8 = vadd.f32 (!%p143_p11), %v177_v6, %v176_v5 }
  0x27   : > { %v171_v9 = vadd.f32 %v170_v7, %v169_v4  ;;  %v179_v10 = vrot.slane %v178_v8, 4  ;;  %s330_s6 = sshll.u32 (%p506_p6), %s434_s9, 2 }
  0x28   : > { %s208_s15 = sadd.s32 (%p506_p6), %s430_s8, %s330_s6 }
  0x29   : > { %v172_v11 = vrot.slane %v171_v9, 2  ;;  %v180_v12 = vadd.f32 %v179_v10, %v178_v8  ;;  %s331_s16 = sshll.u32 (%p506_p6), %s208_s15, 3 }
  0x2a   : > { %s210_s20 = scalar_lea.vmem (%p506_p6), %s559_s1, %s331_s16 }
  0x2b   : > { %v173_v13 = vadd.f32 %v172_v11, %v171_v9  ;;  %v181_v14 = vrot.slane %v180_v12, 2 }
  0x2d   : > { %v174_v15 = vrot.slane %v173_v13, 1  ;;  %v182_v16 = vadd.f32 %v181_v14, %v180_v12 }
  0x2f   : > { %v175_v17 = vadd.f32 %v174_v15, %v173_v13  ;;  %v183_v18 = vrot.slane %v182_v16, 1 }
  0x31   : > { %v184_v19 = vadd.f32 %v183_v18, %v182_v16  ;;  %v185_v20 = vmul.f32 0.0625, %v175_v17 }
  0x33   : > { %v186_v21 = vmul.f32 0.0625, %v184_v19  ;;  %v187_v22 = vmul.f32 %v185_v20, %v185_v20  ;;  %v190_v26 = vsub.f32 %v167_v2, %v185_v20  ;;  %v191_v27 = vsub.f32 %v168_v3, %v185_v20 }
  0x35   : > { %v188_v23 = vsub.f32 %v186_v21, %v187_v22 }
  0x37   : > { %v189_v24 = vmax.f32 %v188_v23, 0.0 }
  0x39   : > { %v192_v25 = vadd.f32 1e-05, %v189_v24 }
  0x3b   : > { %390 = vrsqrt.f32 %v192_v25 }
  0x44   : > { %206 = sbr.rel (!%p506_p6) target bundleno = 83 (0x53), region = 66 }
  0x45   : > { %v391_v28 = vpop.eup %390 }
  0x46   : > { %v194_v29 = vmul.f32 %v391_v28, %v190_v26  ;;  %v195_v30 = vmul.f32 %v391_v28, %v191_v27 }
  0x48   : > { %v196_v31 = vmax.f32 %v194_v29, 0.0  ;;  %v197_v32 = vmax.f32 %v195_v30, 0.0 }
  0x4a   : > { %198 = vst [vmem:[%s166_s5] sm:$0xff] %v196_v31  ;;  %199 = vst [vmem:[%s166_s5 + $0x8] sm:$0xff] %v197_v32 }
  0x51   : > { %v240_v33 = vld [vmem:[%s166_s5] sm:$0xff]  ;;  %v242_v34 = vld [vmem:[%s166_s5 + $0x8] sm:$0xff] }
  0x52   : > { %241 = vst [vmem:[%s210_s20] sm:$0xff] %v240_v33  ;;  %243 = vst [vmem:[%s210_s20 + $0x10] sm:$0xff] %v242_v34 }
  0x53 PF: > { %s11_s12 = sadd.s32 1, %s446_s12   ;;  %s561_s6 = smov %s426_s7 }
  0x54   : > { %p8_p12 = scmp.ge.s32.totalorder %s11_s12, 6   ;;  %s562_s7 = smov %s514_s21 }
  0x55   : > { %s563_s8 = smov %s438_s10  ;;  %s564_s9 = smov %s442_s11 }
  0x56   : > { %s565_s10 = smov %s568_s13  ;;  %s566_s11 = smov %s572_s14 }
  0x57   :  { %10 = sbr.rel (!%p8_p12) target bundleno = 4 (0x4), region = 135 }

// kernel: generator_forward.51
= control target key start
LH: loop header
LB: loop body
LE: loop exit
PB: predicated region body
PF: predicated region fallthrough
CT: control target
= control target key end

     0   :  { %s1224_s12 = smov 0   ;;  %s1226_s13 = smov 0   ;;  %s1378_s0 = inlined_call_operand.vmem [shape: bf16[32,1152], index: 0, kind: input, shape index: {}]   ;;  %s1379_s1 = inlined_call_operand.vmem [shape: bf16[1152,256], index: 1, kind: input, shape index: {}]   ;;  %s1380_s2 = inlined_call_operand.vmem [shape: f32[1,256], index: 2, kind: input, shape index: {}]   ;;  %s1381_s3 = inlined_call_operand.vmem [shape: f32[32,256], index: 3, kind: output, shape index: {}]  }
   0x1   :  { %s1228_s14 = smov 0   ;;  %s1230_s15 = smov 0  }
   0x2   :  { %s1232_s16 = smov 0  }
   0x3 LB: > { %s25_s17 = sadd.s32 1, %s1196_s15  ;;  %p48_p1 = scmp.ne.s32.totalorder %s1188_s13, %s1184_s12  ;;  %s1200_s16 = sphi %s1232_s16, %s13_s16   ;;  %s1196_s15 = sphi %s1230_s15, %s1385_s15   ;;  %s1192_s14 = sphi %s1228_s14, %s1384_s14   ;;  %s1188_s13 = sphi %s1226_s13, %s1383_s13   ;;  %s1184_s12 = sphi %s1224_s12, %s1382_s12  }
   0x4   : > { %p26_p0 = scmp.ge.s32.totalorder %s25_s17, 3  ;;  %p49_p2 = scmp.eq.s32.totalorder %s1200_s16, 0 }
   0x5   : > { %s41_s19 = sadd.s32 1, %s1188_s13  ;;  %p955_p5 = scmp.ge.s32.totalorder %s1200_s16, 3 }
   0x6   : > { %s1387_s17 = smov (%p26_p0, %s25_s17), 0  ;;  %p50_p3 = por %p49_p2, %p48_p1 }
   0x7   : > { %s37_s18 = ssub.s32 %s1196_s15, %s1387_s17  ;;  %164 = sbr.rel (%p955_p5) target bundleno = 23 (0x17), region = 20 }
   0x8   : > { %p39_p4 = scmp.eq.s32.totalorder %s37_s18, 0 }
   0xa   : > { %s1259_s20 = scalar_select %p39_p4, %s1188_s13, %s41_s19  }
   0xe   : > { %167 = sbr.rel (!%p50_p3) target bundleno = 23 (0x17), region = 24  ;;  %s169_s21 = sand.u32 (%p50_p3), 1, %s1188_s13  }
   0xf   : > { %s1028_s22 = smul.u32 (%p50_p3), 12, %s1196_s15 }
  0x10   : > { %s1038_s23 = smul.u32 (%p50_p3), 48, %s169_s21 }
  0x11   : > { %s177_s26 = scalar_lea.vmem (%p50_p3), %s1378_s0, %s1028_s22 }
  0x12   : > { %v192_v0 = vld [vmem:[%s177_s26] sm:$0xff] (%p50_p3)  ;;  %v196_v2 = vld [vmem:[%s177_s26 + $0x48] sm:$0xff] (%p50_p3)  ;;  %s171_s27 = scalar_lea.vmem (%p50_p3), [#allocation3], %s1038_s23  ;;  %v961_v6 = vld [vmem:[%s177_s26 + $0x50] sm:$0xf] (%p50_p3) }
  0x13   : > { %v194_v1 = vld [vmem:[%s177_s26 + $0x24] sm:$0xff] (%p50_p3)  ;;  %193 = vst [vmem:[%s171_s27] sm:$0xff] (%p50_p3), %v192_v0  ;;  %197 = vst [vmem:[%s171_s27 + $0x18] sm:$0xff] (%p50_p3), %v196_v2  ;;  %v198_v3 = vld [vmem:[%s177_s26 + $0x6c] sm:$0xff] (%p50_p3) }
  0x14   : > { %195 = vst [vmem:[%s171_s27 + $0xc] sm:$0xff] (%p50_p3), %v194_v1  ;;  %v957_v4 = vld [vmem:[%s177_s26 + $0x8] sm:$0xf] (%p50_p3)  ;;  %v959_v5 = vld [vmem:[%s177_s26 + $0x2c] sm:$0xf] (%p50_p3)  ;;  %199 = vst [vmem:[%s171_s27 + $0x24] sm:$0xff] (%p50_p3), %v198_v3 }
  0x15   : > { %958 = vst [vmem:[%s171_s27 + $0x8] sm:$0xf] %v957_v4  ;;  %960 = vst [vmem:[%s171_s27 + $0x14] sm:$0xf] %v959_v5  ;;  %v963_v7 = vld [vmem:[%s177_s26 + $0x74] sm:$0xf] }
  0x16   : > { %962 = vst [vmem:[%s171_s27 + $0x20] sm:$0xf] %v961_v6  ;;  %964 = vst [vmem:[%s171_s27 + $0x2c] sm:$0xf] %v963_v7 }
  0x17 PF: > { %p965_p6 = scmp.ge.s32.totalorder %s1200_s16, 1  ;;  %p234_p7 = scmp.lt.s32.totalorder %s1200_s16, 4 }
  0x19   : > { %p235_p8 = pnand %p965_p6, %p234_p7 }
  0x1a   : > { %s241_s28 = sand.u32 (!%p235_p8), 1, %s1184_s12   ;;  %s285_s29 = smul.u32 (!%p235_p8), 48, %s1192_s14 }
  0x1b   : > { %238 = sbr.rel (%p235_p8) target bundleno = 344 (0x158), region = 54  ;;  %p968_p10 = scmp.ne.s32.totalorder (!%p235_p8), %s1192_s14, 0 }
  0x1c   : > { %s1039_s30 = smul.u32 (!%p235_p8), 48, %s241_s28  ;;  %p287_p9 = scmp.lt.s32.totalorder (!%p235_p8), %s285_s29, 143 }
  0x1e   : > { %s1276_s8 = scalar_lea.vmem (!%p235_p8), [#allocation3], %s1039_s30 }
  0x22   : > { %s1389_s29 = smov (!%p287_p9, %s285_s29), 143  ;;  %318 = sbr.rel (%p968_p10) target bundleno = 41 (0x29), region = 62 }
  0x23   : > { %s1029_s4 = sshll.u32 %s1389_s29, 3  ;;  %v1202_v8 = vmov (!%p968_p10), 0.0  }
  0x24   : > { %s1274_s7 = scalar_lea.vmem %s1379_s1, %s1029_s4  ;;  %319 = vst [vmem:[#allocation2] sm:$0xff] (!%p968_p10), %v1202_v8  ;;  %320 = vst [vmem:[#allocation2 + $0x8] sm:$0xff] (!%p968_p10), %v1202_v8 }
  0x25   : > { %321 = vst [vmem:[#allocation2 + $0x10] sm:$0xff] (!%p968_p10), %v1202_v8  ;;  %322 = vst [vmem:[#allocation2 + $0x18] sm:$0xff] (!%p968_p10), %v1202_v8 }
  0x26   : > { %323 = vst [vmem:[#allocation2 + $0x20] sm:$0xff] (!%p968_p10), %v1202_v8  ;;  %324 = vst [vmem:[#allocation2 + $0x28] sm:$0xff] (!%p968_p10), %v1202_v8 }
  0x27   : > { %325 = vst [vmem:[#allocation2 + $0x30] sm:$0xff] (!%p968_p10), %v1202_v8  ;;  %326 = vst [vmem:[#allocation2 + $0x38] sm:$0xff] (!%p968_p10), %v1202_v8 }
  0x29 PF: > { %v1082_v9 = vld [vmem:[%s1274_s7 + $0x4] ss:$8 sps:$4 sm:$0xff]   ;;  %v1084_v10 = vld [vmem:[%s1274_s7] ss:$8 sps:$4 sm:$0xff]   ;;  %v1203_v11 = vmov 0   ;;  %p1023_p11 = scmp.ne.s32.totalorder %s1192_s14, 2 }
  0x2a   : > { %748 = vmatprep.mubr.bf16.mxu0 %v1203_v11  ;;  %663 = vmatprep.subr.bf16.mxu1 %v1082_v9  ;;  %v1085_v12 = vld [vmem:[%s1274_s7 + $0x14] ss:$8 sps:$4 sm:$0xff]   ;;  %v1087_v13 = vld [vmem:[%s1274_s7 + $0x10] ss:$8 sps:$4 sm:$0xff]   ;;  %v1088_v14 = vld [vmem:[%s1274_s7 + $0x24] ss:$8 sps:$4 sm:$0xff]  }
  0x2b   : > { %664 = vmatpush1.bf16.msra.mxu1 %v1084_v10  ;;  %v1090_v15 = vld [vmem:[%s1274_s7 + $0x20] ss:$8 sps:$4 sm:$0xff]   ;;  %v1091_v16 = vld [vmem:[%s1274_s7 + $0x34] ss:$8 sps:$4 sm:$0xff]   ;;  %v1093_v17 = vld [vmem:[%s1274_s7 + $0x30] ss:$8 sps:$4 sm:$0xff]  }
  0x2c   : > { %665 = vmatprep.subr.bf16.mxu1 %v1085_v12  ;;  %v1106_v18 = vld [vmem:[%s1274_s7 + $0x104] ss:$8 sps:$4 sm:$0xff]   ;;  %v1108_v19 = vld [vmem:[%s1274_s7 + $0x100] ss:$8 sps:$4 sm:$0xff]   ;;  %v1112_v21 = vld [vmem:[%s1274_s7 + $0x114] ss:$8 sps:$4 sm:$0xff]  }
  0x2d   : > { %v1094_v20 = vld [vmem:[%s1274_s7 + $0x44] ss:$8 sps:$4 sm:$0xff]   ;;  %716 = vmatprep.subr.bf16.mxu0 %v1106_v18  ;;  %v1114_v22 = vld [vmem:[%s1274_s7 + $0x110] ss:$8 sps:$4 sm:$0xff]   ;;  %v1096_v23 = vld [vmem:[%s1274_s7 + $0x40] ss:$8 sps:$4 sm:$0xff]  }
  0x2e   : > { %717 = vmatpush1.bf16.msra.mxu0 %v1108_v19  ;;  %v1097_v24 = vld [vmem:[%s1274_s7 + $0x54] ss:$8 sps:$4 sm:$0xff]   ;;  %v1118_v25 = vld [vmem:[%s1274_s7 + $0x124] ss:$8 sps:$4 sm:$0xff]   ;;  %v1120_v26 = vld [vmem:[%s1274_s7 + $0x120] ss:$8 sps:$4 sm:$0xff]  }
  0x2f   : > { %666 = vmatpush1.bf16.msra.mxu1 %v1087_v13  ;;  %718 = vmatprep.subr.bf16.mxu0 %v1112_v21  ;;  %v1099_v27 = vld [vmem:[%s1274_s7 + $0x50] ss:$8 sps:$4 sm:$0xff]   ;;  %v1124_v28 = vld [vmem:[%s1274_s7 + $0x134] ss:$8 sps:$4 sm:$0xff]   ;;  %v1100_v29 = vld [vmem:[%s1274_s7 + $0x64] ss:$8 sps:$4 sm:$0xff]  }
  0x30   : > { %667 = vmatprep.subr.bf16.mxu1 %v1088_v14  ;;  %v1126_v30 = vld [vmem:[%s1274_s7 + $0x130] ss:$8 sps:$4 sm:$0xff]   ;;  %v1102_v31 = vld [vmem:[%s1274_s7 + $0x60] ss:$8 sps:$4 sm:$0xff]   ;;  %v1130_v32 = vld [vmem:[%s1274_s7 + $0x144] ss:$8 sps:$4 sm:$0xff]  }
  0x31   : > { %v1103_v33 = vld [vmem:[%s1274_s7 + $0x74] ss:$8 sps:$4 sm:$0xff]   ;;  %v1132_v34 = vld [vmem:[%s1274_s7 + $0x140] ss:$8 sps:$4 sm:$0xff]   ;;  %v1105_v35 = vld [vmem:[%s1274_s7 + $0x70] ss:$8 sps:$4 sm:$0xff]  }
  0x32   : > { %719 = vmatpush1.bf16.msra.mxu0 %v1114_v22  ;;  %v1136_v36 = vld [vmem:[%s1274_s7 + $0x154] ss:$8 sps:$4 sm:$0xff]   ;;  %v1109_v37 = vld [vmem:[%s1274_s7 + $0x84] ss:$8 sps:$4 sm:$0xff]   ;;  %v1138_v38 = vld [vmem:[%s1274_s7 + $0x150] ss:$8 sps:$4 sm:$0xff]  }
  0x33   : > { %668 = vmatpush1.bf16.msra.mxu1 %v1090_v15  ;;  %720 = vmatprep.subr.bf16.mxu0 %v1118_v25  ;;  %v1111_v39 = vld [vmem:[%s1274_s7 + $0x80] ss:$8 sps:$4 sm:$0xff]   ;;  %v1142_v40 = vld [vmem:[%s1274_s7 + $0x164] ss:$8 sps:$4 sm:$0xff]   ;;  %v1115_v41 = vld [vmem:[%s1274_s7 + $0x94] ss:$8 sps:$4 sm:$0xff]  }
  0x34   : > { %669 = vmatprep.subr.bf16.mxu1 %v1091_v16  ;;  %v1117_v42 = vld [vmem:[%s1274_s7 + $0x90] ss:$8 sps:$4 sm:$0xff]   ;;  %v1144_v43 = vld [vmem:[%s1274_s7 + $0x160] ss:$8 sps:$4 sm:$0xff]   ;;  %v1148_v45 = vld [vmem:[%s1274_s7 + $0x174] ss:$8 sps:$4 sm:$0xff]  }
  0x35   : > { %v1157_v44 = vld [vmem:[%s1276_s8 + $0x4] ss:$12 sps:$4 sm:$0xff]   ;;  %v1154_v50 = vld [vmem:[%s1276_s8 + $0x8] ss:$12 sps:$4 sm:$0xff]   ;;  %v1158_v55 = vld [vmem:[%s1276_s8 + $0x20] ss:$12 sps:$4 sm:$0xff]  }
  0x36   : > { %721 = vmatpush1.bf16.msra.mxu0 %v1120_v26  ;;  %v1121_v46 = vld [vmem:[%s1274_s7 + $0xa4] ss:$8 sps:$4 sm:$0xff]   ;;  %695 = vmatprep.mubr.bf16.mxu1 %v1157_v44  ;;  %v1150_v47 = vld [vmem:[%s1274_s7 + $0x170] ss:$8 sps:$4 sm:$0xff]   ;;  %v1123_v48 = vld [vmem:[%s1274_s7 + $0xa0] ss:$8 sps:$4 sm:$0xff]  }
  0x37   : > { %670 = vmatpush1.bf16.msra.mxu1 %v1093_v17  ;;  %722 = vmatprep.subr.bf16.mxu0 %v1124_v28  ;;  %v1127_v49 = vld [vmem:[%s1274_s7 + $0xb4] ss:$8 sps:$4 sm:$0xff]   ;;  %v1129_v51 = vld [vmem:[%s1274_s7 + $0xb0] ss:$8 sps:$4 sm:$0xff]   ;;  %v1133_v52 = vld [vmem:[%s1274_s7 + $0xc4] ss:$8 sps:$4 sm:$0xff]  }
  0x38   : > { %671 = vmatprep.subr.bf16.mxu1 %v1094_v20  ;;  %v1135_v53 = vld [vmem:[%s1274_s7 + $0xc0] ss:$8 sps:$4 sm:$0xff]   ;;  %v1139_v54 = vld [vmem:[%s1274_s7 + $0xd4] ss:$8 sps:$4 sm:$0xff]   ;;  %v1141_v56 = vld [vmem:[%s1274_s7 + $0xd0] ss:$8 sps:$4 sm:$0xff]  }
  0x39   : > { %v1145_v57 = vld [vmem:[%s1274_s7 + $0xe4] ss:$8 sps:$4 sm:$0xff]   ;;  %v1147_v58 = vld [vmem:[%s1274_s7 + $0xe0] ss:$8 sps:$4 sm:$0xff]   ;;  %v1151_v59 = vld [vmem:[%s1274_s7 + $0xf4] ss:$8 sps:$4 sm:$0xff]  }
  0x3a   : > { %723 = vmatpush1.bf16.msra.mxu0 %v1126_v30  ;;  %v1153_v60 = vld [vmem:[%s1274_s7 + $0xf0] ss:$8 sps:$4 sm:$0xff]   ;;  %v327_v8 = vld [vmem:[#allocation2] sm:$0xff] }
  0x3b   : > { %672 = vmatpush1.bf16.msra.mxu1 %v1096_v23  ;;  %724 = vmatprep.subr.bf16.mxu0 %v1130_v32  ;;  %v1155_v61 = vld [vmem:[%s1276_s8] ss:$12 sps:$4 sm:$0xff]   ;;  %v1159_v62 = vld [vmem:[%s1276_s8 + $0x1c] ss:$12 sps:$4 sm:$0xff]   ;;  %v1161_v63 = vld [vmem:[%s1276_s8 + $0x18] ss:$12 sps:$4 sm:$0xff]  }
  0x3c   : > { %673 = vmatprep.subr.bf16.mxu1 %v1097_v24  ;;  %v329_v14 = vld [vmem:[#allocation2 + $0x10] sm:$0xff]  ;;  %v330_v18 = vld [vmem:[#allocation2 + $0x18] sm:$0xff]  ;;  %v331_v24 = vld [vmem:[#allocation2 + $0x20] sm:$0xff] }
  0x3d   : > { %v333_v30 = vld [vmem:[#allocation2 + $0x30] sm:$0xff] }
  0x3e   : > { %725 = vmatpush1.bf16.msra.mxu0 %v1132_v34  ;;  %v334_v34 = vld [vmem:[#allocation2 + $0x38] sm:$0xff] }
  0x3f   : > { %674 = vmatpush1.bf16.msra.mxu1 %v1099_v27  ;;  %726 = vmatprep.subr.bf16.mxu0 %v1136_v36  ;;  %v332_v27 = vld [vmem:[#allocation2 + $0x28] sm:$0xff] }
  0x40   : > { %675 = vmatprep.subr.bf16.mxu1 %v1100_v29 }
  0x42   : > { %727 = vmatpush1.bf16.msra.mxu0 %v1138_v38 }
  0x43   : > { %676 = vmatpush1.bf16.msra.mxu1 %v1102_v31  ;;  %728 = vmatprep.subr.bf16.mxu0 %v1142_v40  ;;  %v799_v40 = vlaneseq (!%p1023_p11) }
  0x44   : > { %677 = vmatprep.subr.bf16.mxu1 %v1103_v33 }
  0x46   : > { %729 = vmatpush1.bf16.msra.mxu0 %v1144_v43 }
  0x47   : > { %678 = vmatpush1.bf16.msra.mxu1 %v1105_v35  ;;  %730 = vmatprep.subr.bf16.mxu0 %v1148_v45 }
  0x48   : > { %679 = vmatprep.subr.bf16.mxu1 %v1109_v37 }
  0x4a   : > { %731 = vmatpush1.bf16.msra.mxu0 %v1150_v47 }
  0x4b   : > { %680 = vmatpush1.bf16.msra.mxu1 %v1111_v39 }
  0x4c   : > { %681 = vmatprep.subr.bf16.mxu1 %v1115_v41  ;;  %v800_v41 = vshrl.u32 (!%p1023_p11), %v799_v40, 7 }
  0x4d   : > { %749 = vmatmul.mubr.bf16.vlgmr.msra.gmra.mrb[0].mxu0 %v1154_v50 }
  0x4e   : > { %758 = vmatprep.mubr.bf16.mxu0 %v1203_v11  ;;  %v328_v11 = vld [vmem:[#allocation2 + $0x8] sm:$0xff]  ;;  %v801_v44 = vsub.s32 (!%p1023_p11), 0, %v800_v41 }
  0x4f   : > { %682 = vmatpush1.bf16.msra.mxu1 %v1117_v42  ;;  %v797_v42 = vld [vmem:[%s1380_s2] sm:$0x3] (!%p1023_p11) }
  0x50   : > { %683 = vmatprep.subr.bf16.mxu1 %v1121_v46  ;;  %v805_v46 = vsub.s32 (!%p1023_p11), 1, %v800_v41  ;;  %v802_v50 = vrot.slane (!%p1023_p11), %v797_v42, %v801_v44 }
  0x53   : > { %684 = vmatpush1.bf16.msra.mxu1 %v1123_v48 }
  0x54   : > { %685 = vmatprep.subr.bf16.mxu1 %v1127_v49 }
  0x55   : > { %759 = vmatmul.mubr.bf16.gmra.mrb[4].mxu0 %v1158_v55 }
  0x57   : > { %686 = vmatpush1.bf16.msra.mxu1 %v1129_v51  ;;  %v806_v51 = vrot.slane (!%p1023_p11), %v797_v42, %v805_v46 }
  0x58   : > { %687 = vmatprep.subr.bf16.mxu1 %v1133_v52 }
  0x5b   : > { %688 = vmatpush1.bf16.msra.mxu1 %v1135_v53 }
  0x5c   : > { %689 = vmatprep.subr.bf16.mxu1 %v1139_v54 }
  0x5f   : > { %690 = vmatpush1.bf16.msra.mxu1 %v1141_v56 }
  0x60   : > { %691 = vmatprep.subr.bf16.mxu1 %v1145_v57 }
  0x63   : > { %692 = vmatpush1.bf16.msra.mxu1 %v1147_v58 }
  0x64   : > { %693 = vmatprep.subr.bf16.mxu1 %v1151_v59 }
  0x67   : > { %694 = vmatpush1.bf16.msra.mxu1 %v1153_v60 }
  0x6a   : > { %696 = vmatmul.mubr.bf16.vlgmr.msra.gmra.mrb[0].mxu1 %v1155_v61 }
  0x6b   : > { %705 = vmatprep.mubr.bf16.mxu1 %v1159_v62 }
  0x72   : > { %706 = vmatmul.mubr.bf16.gmra.mrb[4].mxu1 %v1161_v63 }
 0x120   : > { %v750_v0 = vpop.f32.mrb[0].mxu0 }
 0x121   : > { %v752_v1 = vpop.f32.mrb[1].mxu0 }
 0x122   : > { %v754_v2 = vpop.f32.mrb[2].mxu0 }
 0x123   : > { %v756_v3 = vpop.f32.mrb[3].mxu0 }
 0x128   : > { %v760_v4 = vpop.f32.mrb[4].mxu0 }
 0x129   : > { %v762_v5 = vpop.f32.mrb[5].mxu0 }
 0x12a   : > { %v764_v6 = vpop.f32.mrb[6].mxu0 }
 0x12b   : > { %v766_v7 = vpop.f32.mrb[7].mxu0 }
 0x13d   : > { %v697_v9 = vpop.f32.mrb[0].mxu1 }
 0x13e   : > { %v751_v10 = vadd.f32 %v750_v0, %v697_v9  ;;  %v699_v12 = vpop.f32.mrb[1].mxu1 }
 0x13f   : > { %v753_v13 = vadd.f32 %v752_v1, %v699_v12  ;;  %v701_v15 = vpop.f32.mrb[2].mxu1 }
 0x140   : > { %v769_v16 = vadd.f32 %v751_v10, %v327_v8  ;;  %v755_v17 = vadd.f32 %v754_v2, %v701_v15  ;;  %v703_v19 = vpop.f32.mrb[3].mxu1 }
 0x141   : > { %v770_v20 = vadd.f32 %v753_v13, %v328_v11  ;;  %v757_v21 = vadd.f32 %v756_v3, %v703_v19 }
 0x142   : > { %777 = vst [vmem:[#allocation2] sm:$0xff] %v769_v16  ;;  %v771_v22 = vadd.f32 %v755_v17, %v329_v14 }
 0x143   : > { %778 = vst [vmem:[#allocation2 + $0x8] sm:$0xff] %v770_v20  ;;  %v772_v23 = vadd.f32 %v757_v21, %v330_v18 }
 0x144   : > { %779 = vst [vmem:[#allocation2 + $0x10] sm:$0xff] %v771_v22 }
 0x145   : > { %780 = vst [vmem:[#allocation2 + $0x18] sm:$0xff] %v772_v23  ;;  %v707_v25 = vpop.f32.mrb[4].mxu1 }
 0x146   : > { %v761_v26 = vadd.f32 %v760_v4, %v707_v25  ;;  %v709_v28 = vpop.f32.mrb[5].mxu1 }
 0x147   : > { %v763_v29 = vadd.f32 %v762_v5, %v709_v28  ;;  %v711_v31 = vpop.f32.mrb[6].mxu1  ;;  %788 = sbr.rel (%p1023_p11) target bundleno = 344 (0x158), region = 66 }
 0x148   : > { %v773_v32 = vadd.f32 %v761_v26, %v331_v24  ;;  %v765_v33 = vadd.f32 %v764_v6, %v711_v31  ;;  %v713_v35 = vpop.f32.mrb[7].mxu1 }
 0x149   : > { %v774_v36 = vadd.f32 %v763_v29, %v332_v27  ;;  %v767_v37 = vadd.f32 %v766_v7, %v713_v35  ;;  %v789_v43 = vld [vmem:[#allocation2] sm:$0xff] (!%p1023_p11) }
 0x14a   : > { %781 = vst [vmem:[#allocation2 + $0x20] sm:$0xff] %v773_v32  ;;  %v775_v38 = vadd.f32 %v765_v33, %v333_v30  ;;  %v790_v45 = vld [vmem:[#allocation2 + $0x8] sm:$0xff] (!%p1023_p11)  ;;  %v809_v55 = vadd.f32 (!%p1023_p11), %v802_v50, %v789_v43 }
 0x14b   : > { %782 = vst [vmem:[#allocation2 + $0x28] sm:$0xff] %v774_v36  ;;  %v776_v39 = vadd.f32 %v767_v37, %v334_v34  ;;  %v791_v47 = vld [vmem:[#allocation2 + $0x10] sm:$0xff] (!%p1023_p11)  ;;  %v810_v56 = vadd.f32 (!%p1023_p11), %v806_v51, %v790_v45 }
 0x14c   : > { %783 = vst [vmem:[#allocation2 + $0x30] sm:$0xff] %v775_v38  ;;  %v792_v48 = vld [vmem:[#allocation2 + $0x18] sm:$0xff] (!%p1023_p11)  ;;  %v811_v57 = vadd.f32 (!%p1023_p11), %v802_v50, %v791_v47  ;;  %817 = vst [vmem:[%s1381_s3] sm:$0xff] (!%p1023_p11), %v809_v55 }
 0x14d   : > { %784 = vst [vmem:[#allocation2 + $0x38] sm:$0xff] %v776_v39  ;;  %v812_v58 = vadd.f32 (!%p1023_p11), %v806_v51, %v792_v48  ;;  %818 = vst [vmem:[%s1381_s3 + $0x8] sm:$0xff] (!%p1023_p11), %v810_v56 }
 0x14e   : > { %819 = vst [vmem:[%s1381_s3 + $0x10] sm:$0xff] %v811_v57 }
 0x14f   : > { %820 = vst [vmem:[%s1381_s3 + $0x18] sm:$0xff] %v812_v58 }
 0x151   : > { %v793_v49 = vld [vmem:[#allocation2 + $0x20] sm:$0xff] }
 0x152   : > { %v794_v52 = vld [vmem:[#allocation2 + $0x28] sm:$0xff]  ;;  %v813_v59 = vadd.f32 %v802_v50, %v793_v49 }
 0x153   : > { %v795_v53 = vld [vmem:[#allocation2 + $0x30] sm:$0xff]  ;;  %v814_v60 = vadd.f32 %v806_v51, %v794_v52 }
 0x154   : > { %v796_v54 = vld [vmem:[#allocation2 + $0x38] sm:$0xff]  ;;  %v815_v61 = vadd.f32 %v802_v50, %v795_v53  ;;  %821 = vst [vmem:[%s1381_s3 + $0x20] sm:$0xff] %v813_v59 }
 0x155   : > { %v816_v62 = vadd.f32 %v806_v51, %v796_v54  ;;  %822 = vst [vmem:[%s1381_s3 + $0x28] sm:$0xff] %v814_v60 }
 0x156   : > { %823 = vst [vmem:[%s1381_s3 + $0x30] sm:$0xff] %v815_v61 }
 0x157   : > { %824 = vst [vmem:[%s1381_s3 + $0x38] sm:$0xff] %v816_v62 }
 0x158 PF: > { %s13_s16 = sadd.s32 1, %s1200_s16   ;;  %s1382_s12 = smov %s1188_s13 }
 0x159   : > { %p10_p12 = scmp.ge.s32.totalorder %s13_s16, 5   ;;  %s1383_s13 = smov %s1259_s20 }
 0x15a   : > { %s1384_s14 = smov %s1196_s15  ;;  %s1385_s15 = smov %s1387_s17 }
 0x15b   :  { %12 = sbr.rel (!%p10_p12) target bundleno = 3 (0x3), region = 113 }

// kernel: generator_forward.53
= control target key start
LH: loop header
LB: loop body
LE: loop exit
PB: predicated region body
PF: predicated region fallthrough
CT: control target
= control target key end

     0   :  { %s1224_s12 = smov 0   ;;  %s1226_s13 = smov 0   ;;  %s1378_s0 = inlined_call_operand.vmem [shape: bf16[32,2304], index: 0, kind: input, shape index: {}]   ;;  %s1379_s1 = inlined_call_operand.vmem [shape: bf16[2304,256], index: 1, kind: input, shape index: {}]   ;;  %s1380_s2 = inlined_call_operand.vmem [shape: f32[1,256], index: 2, kind: input, shape index: {}]   ;;  %s1381_s3 = inlined_call_operand.vmem [shape: f32[32,256], index: 3, kind: output, shape index: {}]  }
   0x1   :  { %s1228_s14 = smov 0   ;;  %s1230_s15 = smov 0  }
   0x2   :  { %s1232_s16 = smov 0  }
   0x3 LB: > { %s25_s17 = sadd.s32 1, %s1196_s15  ;;  %p48_p1 = scmp.ne.s32.totalorder %s1188_s13, %s1184_s12  ;;  %s1200_s16 = sphi %s1232_s16, %s13_s16   ;;  %s1196_s15 = sphi %s1230_s15, %s1385_s15   ;;  %s1192_s14 = sphi %s1228_s14, %s1384_s14   ;;  %s1188_s13 = sphi %s1226_s13, %s1383_s13   ;;  %s1184_s12 = sphi %s1224_s12, %s1382_s12  }
   0x4   : > { %p26_p0 = scmp.ge.s32.totalorder %s25_s17, 6  ;;  %p49_p2 = scmp.eq.s32.totalorder %s1200_s16, 0 }
   0x5   : > { %s41_s19 = sadd.s32 1, %s1188_s13  ;;  %p955_p5 = scmp.ge.s32.totalorder %s1200_s16, 6 }
   0x6   : > { %s1387_s17 = smov (%p26_p0, %s25_s17), 0  ;;  %p50_p3 = por %p49_p2, %p48_p1 }
   0x7   : > { %s37_s18 = ssub.s32 %s1196_s15, %s1387_s17  ;;  %164 = sbr.rel (%p955_p5) target bundleno = 23 (0x17), region = 20 }
   0x8   : > { %p39_p4 = scmp.eq.s32.totalorder %s37_s18, 0 }
   0xa   : > { %s1259_s20 = scalar_select %p39_p4, %s1188_s13, %s41_s19  }
   0xe   : > { %167 = sbr.rel (!%p50_p3) target bundleno = 23 (0x17), region = 24  ;;  %s169_s21 = sand.u32 (%p50_p3), 1, %s1188_s13  }
   0xf   : > { %s1028_s22 = smul.u32 (%p50_p3), 12, %s1196_s15 }
  0x10   : > { %s1038_s23 = smul.u32 (%p50_p3), 48, %s169_s21 }
  0x11   : > { %s177_s26 = scalar_lea.vmem (%p50_p3), %s1378_s0, %s1028_s22 }
  0x12   : > { %v192_v0 = vld [vmem:[%s177_s26] sm:$0xff] (%p50_p3)  ;;  %v194_v1 = vld [vmem:[%s177_s26 + $0x48] sm:$0xff] (%p50_p3)  ;;  %v196_v2 = vld [vmem:[%s177_s26 + $0x90] sm:$0xff] (%p50_p3)  ;;  %s171_s27 = scalar_lea.vmem (%p50_p3), [#allocation3], %s1038_s23 }
  0x13   : > { %193 = vst [vmem:[%s171_s27] sm:$0xff] (%p50_p3), %v192_v0  ;;  %195 = vst [vmem:[%s171_s27 + $0xc] sm:$0xff] (%p50_p3), %v194_v1  ;;  %v198_v3 = vld [vmem:[%s177_s26 + $0xd8] sm:$0xff] (%p50_p3)  ;;  %v957_v4 = vld [vmem:[%s177_s26 + $0x8] sm:$0xf] (%p50_p3) }
  0x14   : > { %197 = vst [vmem:[%s171_s27 + $0x18] sm:$0xff] (%p50_p3), %v196_v2  ;;  %v959_v5 = vld [vmem:[%s177_s26 + $0x50] sm:$0xf] (%p50_p3)  ;;  %199 = vst [vmem:[%s171_s27 + $0x24] sm:$0xff] (%p50_p3), %v198_v3  ;;  %v961_v6 = vld [vmem:[%s177_s26 + $0x98] sm:$0xf] (%p50_p3) }
  0x15   : > { %958 = vst [vmem:[%s171_s27 + $0x8] sm:$0xf] %v957_v4  ;;  %960 = vst [vmem:[%s171_s27 + $0x14] sm:$0xf] %v959_v5  ;;  %v963_v7 = vld [vmem:[%s177_s26 + $0xe0] sm:$0xf] }
  0x16   : > { %962 = vst [vmem:[%s171_s27 + $0x20] sm:$0xf] %v961_v6  ;;  %964 = vst [vmem:[%s171_s27 + $0x2c] sm:$0xf] %v963_v7 }
  0x17 PF: > { %p965_p6 = scmp.ge.s32.totalorder %s1200_s16, 1  ;;  %p234_p7 = scmp.lt.s32.totalorder %s1200_s16, 7 }
  0x19   : > { %p235_p8 = pnand %p965_p6, %p234_p7 }
  0x1a   : > { %s241_s28 = sand.u32 (!%p235_p8), 1, %s1184_s12   ;;  %s285_s29 = smul.u32 (!%p235_p8), 48, %s1192_s14 }
  0x1b   : > { %238 = sbr.rel (%p235_p8) target bundleno = 344 (0x158), region = 54  ;;  %p968_p10 = scmp.ne.s32.totalorder (!%p235_p8), %s1192_s14, 0 }
  0x1c   : > { %s1039_s30 = smul.u32 (!%p235_p8), 48, %s241_s28  ;;  %p287_p9 = scmp.lt.s32.totalorder (!%p235_p8), %s285_s29, 287 }
  0x1e   : > { %s1276_s8 = scalar_lea.vmem (!%p235_p8), [#allocation3], %s1039_s30 }
  0x22   : > { %s1389_s29 = smov (!%p287_p9, %s285_s29), 287  ;;  %318 = sbr.rel (%p968_p10) target bundleno = 41 (0x29), region = 62 }
  0x23   : > { %s1029_s4 = sshll.u32 %s1389_s29, 3  ;;  %v1202_v8 = vmov (!%p968_p10), 0.0  }
  0x24   : > { %s1274_s7 = scalar_lea.vmem %s1379_s1, %s1029_s4  ;;  %319 = vst [vmem:[#allocation2] sm:$0xff] (!%p968_p10), %v1202_v8  ;;  %320 = vst [vmem:[#allocation2 + $0x8] sm:$0xff] (!%p968_p10), %v1202_v8 }
  0x25   : > { %321 = vst [vmem:[#allocation2 + $0x10] sm:$0xff] (!%p968_p10), %v1202_v8  ;;  %322 = vst [vmem:[#allocation2 + $0x18] sm:$0xff] (!%p968_p10), %v1202_v8 }
  0x26   : > { %323 = vst [vmem:[#allocation2 + $0x20] sm:$0xff] (!%p968_p10), %v1202_v8  ;;  %324 = vst [vmem:[#allocation2 + $0x28] sm:$0xff] (!%p968_p10), %v1202_v8 }
  0x27   : > { %325 = vst [vmem:[#allocation2 + $0x30] sm:$0xff] (!%p968_p10), %v1202_v8  ;;  %326 = vst [vmem:[#allocation2 + $0x38] sm:$0xff] (!%p968_p10), %v1202_v8 }
  0x29 PF: > { %v1082_v9 = vld [vmem:[%s1274_s7 + $0x4] ss:$8 sps:$4 sm:$0xff]   ;;  %v1084_v10 = vld [vmem:[%s1274_s7] ss:$8 sps:$4 sm:$0xff]   ;;  %v1203_v11 = vmov 0   ;;  %p1023_p11 = scmp.ne.s32.totalorder %s1192_s14, 5 }
  0x2a   : > { %748 = vmatprep.mubr.bf16.mxu0 %v1203_v11  ;;  %663 = vmatprep.subr.bf16.mxu1 %v1082_v9  ;;  %v1085_v12 = vld [vmem:[%s1274_s7 + $0x14] ss:$8 sps:$4 sm:$0xff]   ;;  %v1087_v13 = vld [vmem:[%s1274_s7 + $0x10] ss:$8 sps:$4 sm:$0xff]   ;;  %v1088_v14 = vld [vmem:[%s1274_s7 + $0x24] ss:$8 sps:$4 sm:$0xff]  }
  0x2b   : > { %664 = vmatpush1.bf16.msra.mxu1 %v1084_v10  ;;  %v1090_v15 = vld [vmem:[%s1274_s7 + $0x20] ss:$8 sps:$4 sm:$0xff]   ;;  %v1091_v16 = vld [vmem:[%s1274_s7 + $0x34] ss:$8 sps:$4 sm:$0xff]   ;;  %v1093_v17 = vld [vmem:[%s1274_s7 + $0x30] ss:$8 sps:$4 sm:$0xff]  }
  0x2c   : > { %665 = vmatprep.subr.bf16.mxu1 %v1085_v12  ;;  %v1106_v18 = vld [vmem:[%s1274_s7 + $0x104] ss:$8 sps:$4 sm:$0xff]   ;;  %v1108_v19 = vld [vmem:[%s1274_s7 + $0x100] ss:$8 sps:$4 sm:$0xff]   ;;  %v1112_v21 = vld [vmem:[%s1274_s7 + $0x114] ss:$8 sps:$4 sm:$0xff]  }
  0x2d   : > { %v1094_v20 = vld [vmem:[%s1274_s7 + $0x44] ss:$8 sps:$4 sm:$0xff]   ;;  %716 = vmatprep.subr.bf16.mxu0 %v1106_v18  ;;  %v1114_v22 = vld [vmem:[%s1274_s7 + $0x110] ss:$8 sps:$4 sm:$0xff]   ;;  %v1096_v23 = vld [vmem:[%s1274_s7 + $0x40] ss:$8 sps:$4 sm:$0xff]  }
  0x2e   : > { %717 = vmatpush1.bf16.msra.mxu0 %v1108_v19  ;;  %v1097_v24 = vld [vmem:[%s1274_s7 + $0x54] ss:$8 sps:$4 sm:$0xff]   ;;  %v1118_v25 = vld [vmem:[%s1274_s7 + $0x124] ss:$8 sps:$4 sm:$0xff]   ;;  %v1120_v26 = vld [vmem:[%s1274_s7 + $0x120] ss:$8 sps:$4 sm:$0xff]  }
  0x2f   : > { %666 = vmatpush1.bf16.msra.mxu1 %v1087_v13  ;;  %718 = vmatprep.subr.bf16.mxu0 %v1112_v21  ;;  %v1099_v27 = vld [vmem:[%s1274_s7 + $0x50] ss:$8 sps:$4 sm:$0xff]   ;;  %v1124_v28 = vld [vmem:[%s1274_s7 + $0x134] ss:$8 sps:$4 sm:$0xff]   ;;  %v1100_v29 = vld [vmem:[%s1274_s7 + $0x64] ss:$8 sps:$4 sm:$0xff]  }
  0x30   : > { %667 = vmatprep.subr.bf16.mxu1 %v1088_v14  ;;  %v1126_v30 = vld [vmem:[%s1274_s7 + $0x130] ss:$8 sps:$4 sm:$0xff]   ;;  %v1102_v31 = vld [vmem:[%s1274_s7 + $0x60] ss:$8 sps:$4 sm:$0xff]   ;;  %v1130_v32 = vld [vmem:[%s1274_s7 + $0x144] ss:$8 sps:$4 sm:$0xff]  }
  0x31   : > { %v1103_v33 = vld [vmem:[%s1274_s7 + $0x74] ss:$8 sps:$4 sm:$0xff]   ;;  %v1132_v34 = vld [vmem:[%s1274_s7 + $0x140] ss:$8 sps:$4 sm:$0xff]   ;;  %v1105_v35 = vld [vmem:[%s1274_s7 + $0x70] ss:$8 sps:$4 sm:$0xff]  }
  0x32   : > { %719 = vmatpush1.bf16.msra.mxu0 %v1114_v22  ;;  %v1136_v36 = vld [vmem:[%s1274_s7 + $0x154] ss:$8 sps:$4 sm:$0xff]   ;;  %v1109_v37 = vld [vmem:[%s1274_s7 + $0x84] ss:$8 sps:$4 sm:$0xff]   ;;  %v1138_v38 = vld [vmem:[%s1274_s7 + $0x150] ss:$8 sps:$4 sm:$0xff]  }
  0x33   : > { %668 = vmatpush1.bf16.msra.mxu1 %v1090_v15  ;;  %720 = vmatprep.subr.bf16.mxu0 %v1118_v25  ;;  %v1111_v39 = vld [vmem:[%s1274_s7 + $0x80] ss:$8 sps:$4 sm:$0xff]   ;;  %v1142_v40 = vld [vmem:[%s1274_s7 + $0x164] ss:$8 sps:$4 sm:$0xff]   ;;  %v1115_v41 = vld [vmem:[%s1274_s7 + $0x94] ss:$8 sps:$4 sm:$0xff]  }
  0x34   : > { %669 = vmatprep.subr.bf16.mxu1 %v1091_v16  ;;  %v1117_v42 = vld [vmem:[%s1274_s7 + $0x90] ss:$8 sps:$4 sm:$0xff]   ;;  %v1144_v43 = vld [vmem:[%s1274_s7 + $0x160] ss:$8 sps:$4 sm:$0xff]   ;;  %v1148_v45 = vld [vmem:[%s1274_s7 + $0x174] ss:$8 sps:$4 sm:$0xff]  }
  0x35   : > { %v1157_v44 = vld [vmem:[%s1276_s8 + $0x4] ss:$12 sps:$4 sm:$0xff]   ;;  %v1154_v50 = vld [vmem:[%s1276_s8 + $0x8] ss:$12 sps:$4 sm:$0xff]   ;;  %v1158_v55 = vld [vmem:[%s1276_s8 + $0x20] ss:$12 sps:$4 sm:$0xff]  }
  0x36   : > { %721 = vmatpush1.bf16.msra.mxu0 %v1120_v26  ;;  %v1121_v46 = vld [vmem:[%s1274_s7 + $0xa4] ss:$8 sps:$4 sm:$0xff]   ;;  %695 = vmatprep.mubr.bf16.mxu1 %v1157_v44  ;;  %v1150_v47 = vld [vmem:[%s1274_s7 + $0x170] ss:$8 sps:$4 sm:$0xff]   ;;  %v1123_v48 = vld [vmem:[%s1274_s7 + $0xa0] ss:$8 sps:$4 sm:$0xff]  }
  0x37   : > { %670 = vmatpush1.bf16.msra.mxu1 %v1093_v17  ;;  %722 = vmatprep.subr.bf16.mxu0 %v1124_v28  ;;  %v1127_v49 = vld [vmem:[%s1274_s7 + $0xb4] ss:$8 sps:$4 sm:$0xff]   ;;  %v1129_v51 = vld [vmem:[%s1274_s7 + $0xb0] ss:$8 sps:$4 sm:$0xff]   ;;  %v1133_v52 = vld [vmem:[%s1274_s7 + $0xc4] ss:$8 sps:$4 sm:$0xff]  }
  0x38   : > { %671 = vmatprep.subr.bf16.mxu1 %v1094_v20  ;;  %v1135_v53 = vld [vmem:[%s1274_s7 + $0xc0] ss:$8 sps:$4 sm:$0xff]   ;;  %v1139_v54 = vld [vmem:[%s1274_s7 + $0xd4] ss:$8 sps:$4 sm:$0xff]   ;;  %v1141_v56 = vld [vmem:[%s1274_s7 + $0xd0] ss:$8 sps:$4 sm:$0xff]  }
  0x39   : > { %v1145_v57 = vld [vmem:[%s1274_s7 + $0xe4] ss:$8 sps:$4 sm:$0xff]   ;;  %v1147_v58 = vld [vmem:[%s1274_s7 + $0xe0] ss:$8 sps:$4 sm:$0xff]   ;;  %v1151_v59 = vld [vmem:[%s1274_s7 + $0xf4] ss:$8 sps:$4 sm:$0xff]  }
  0x3a   : > { %723 = vmatpush1.bf16.msra.mxu0 %v1126_v30  ;;  %v1153_v60 = vld [vmem:[%s1274_s7 + $0xf0] ss:$8 sps:$4 sm:$0xff]   ;;  %v327_v8 = vld [vmem:[#allocation2] sm:$0xff] }
  0x3b   : > { %672 = vmatpush1.bf16.msra.mxu1 %v1096_v23  ;;  %724 = vmatprep.subr.bf16.mxu0 %v1130_v32  ;;  %v1155_v61 = vld [vmem:[%s1276_s8] ss:$12 sps:$4 sm:$0xff]   ;;  %v1159_v62 = vld [vmem:[%s1276_s8 + $0x1c] ss:$12 sps:$4 sm:$0xff]   ;;  %v1161_v63 = vld [vmem:[%s1276_s8 + $0x18] ss:$12 sps:$4 sm:$0xff]  }
  0x3c   : > { %673 = vmatprep.subr.bf16.mxu1 %v1097_v24  ;;  %v329_v14 = vld [vmem:[#allocation2 + $0x10] sm:$0xff]  ;;  %v330_v18 = vld [vmem:[#allocation2 + $0x18] sm:$0xff]  ;;  %v331_v24 = vld [vmem:[#allocation2 + $0x20] sm:$0xff] }
  0x3d   : > { %v333_v30 = vld [vmem:[#allocation2 + $0x30] sm:$0xff] }
  0x3e   : > { %725 = vmatpush1.bf16.msra.mxu0 %v1132_v34  ;;  %v334_v34 = vld [vmem:[#allocation2 + $0x38] sm:$0xff] }
  0x3f   : > { %674 = vmatpush1.bf16.msra.mxu1 %v1099_v27  ;;  %726 = vmatprep.subr.bf16.mxu0 %v1136_v36  ;;  %v332_v27 = vld [vmem:[#allocation2 + $0x28] sm:$0xff] }
  0x40   : > { %675 = vmatprep.subr.bf16.mxu1 %v1100_v29 }
  0x42   : > { %727 = vmatpush1.bf16.msra.mxu0 %v1138_v38 }
  0x43   : > { %676 = vmatpush1.bf16.msra.mxu1 %v1102_v31  ;;  %728 = vmatprep.subr.bf16.mxu0 %v1142_v40  ;;  %v799_v40 = vlaneseq (!%p1023_p11) }
  0x44   : > { %677 = vmatprep.subr.bf16.mxu1 %v1103_v33 }
  0x46   : > { %729 = vmatpush1.bf16.msra.mxu0 %v1144_v43 }
  0x47   : > { %678 = vmatpush1.bf16.msra.mxu1 %v1105_v35  ;;  %730 = vmatprep.subr.bf16.mxu0 %v1148_v45 }
  0x48   : > { %679 = vmatprep.subr.bf16.mxu1 %v1109_v37 }
  0x4a   : > { %731 = vmatpush1.bf16.msra.mxu0 %v1150_v47 }
  0x4b   : > { %680 = vmatpush1.bf16.msra.mxu1 %v1111_v39 }
  0x4c   : > { %681 = vmatprep.subr.bf16.mxu1 %v1115_v41  ;;  %v800_v41 = vshrl.u32 (!%p1023_p11), %v799_v40, 7 }
  0x4d   : > { %749 = vmatmul.mubr.bf16.vlgmr.msra.gmra.mrb[0].mxu0 %v1154_v50 }
  0x4e   : > { %758 = vmatprep.mubr.bf16.mxu0 %v1203_v11  ;;  %v328_v11 = vld [vmem:[#allocation2 + $0x8] sm:$0xff]  ;;  %v801_v44 = vsub.s32 (!%p1023_p11), 0, %v800_v41 }
  0x4f   : > { %682 = vmatpush1.bf16.msra.mxu1 %v1117_v42  ;;  %v797_v42 = vld [vmem:[%s1380_s2] sm:$0x3] (!%p1023_p11) }
  0x50   : > { %683 = vmatprep.subr.bf16.mxu1 %v1121_v46  ;;  %v805_v46 = vsub.s32 (!%p1023_p11), 1, %v800_v41  ;;  %v802_v50 = vrot.slane (!%p1023_p11), %v797_v42, %v801_v44 }
  0x53   : > { %684 = vmatpush1.bf16.msra.mxu1 %v1123_v48 }
  0x54   : > { %685 = vmatprep.subr.bf16.mxu1 %v1127_v49 }
  0x55   : > { %759 = vmatmul.mubr.bf16.gmra.mrb[4].mxu0 %v1158_v55 }
  0x57   : > { %686 = vmatpush1.bf16.msra.mxu1 %v1129_v51  ;;  %v806_v51 = vrot.slane (!%p1023_p11), %v797_v42, %v805_v46 }
  0x58   : > { %687 = vmatprep.subr.bf16.mxu1 %v1133_v52 }
  0x5b   : > { %688 = vmatpush1.bf16.msra.mxu1 %v1135_v53 }
  0x5c   : > { %689 = vmatprep.subr.bf16.mxu1 %v1139_v54 }
  0x5f   : > { %690 = vmatpush1.bf16.msra.mxu1 %v1141_v56 }
  0x60   : > { %691 = vmatprep.subr.bf16.mxu1 %v1145_v57 }
  0x63   : > { %692 = vmatpush1.bf16.msra.mxu1 %v1147_v58 }
  0x64   : > { %693 = vmatprep.subr.bf16.mxu1 %v1151_v59 }
  0x67   : > { %694 = vmatpush1.bf16.msra.mxu1 %v1153_v60 }
  0x6a   : > { %696 = vmatmul.mubr.bf16.vlgmr.msra.gmra.mrb[0].mxu1 %v1155_v61 }
  0x6b   : > { %705 = vmatprep.mubr.bf16.mxu1 %v1159_v62 }
  0x72   : > { %706 = vmatmul.mubr.bf16.gmra.mrb[4].mxu1 %v1161_v63 }
 0x120   : > { %v750_v0 = vpop.f32.mrb[0].mxu0 }
 0x121   : > { %v752_v1 = vpop.f32.mrb[1].mxu0 }
 0x122   : > { %v754_v2 = vpop.f32.mrb[2].mxu0 }
 0x123   : > { %v756_v3 = vpop.f32.mrb[3].mxu0 }
 0x128   : > { %v760_v4 = vpop.f32.mrb[4].mxu0 }
 0x129   : > { %v762_v5 = vpop.f32.mrb[5].mxu0 }
 0x12a   : > { %v764_v6 = vpop.f32.mrb[6].mxu0 }
 0x12b   : > { %v766_v7 = vpop.f32.mrb[7].mxu0 }
 0x13d   : > { %v697_v9 = vpop.f32.mrb[0].mxu1 }
 0x13e   : > { %v751_v10 = vadd.f32 %v750_v0, %v697_v9  ;;  %v699_v12 = vpop.f32.mrb[1].mxu1 }
 0x13f   : > { %v753_v13 = vadd.f32 %v752_v1, %v699_v12  ;;  %v701_v15 = vpop.f32.mrb[2].mxu1 }
 0x140   : > { %v769_v16 = vadd.f32 %v751_v10, %v327_v8  ;;  %v755_v17 = vadd.f32 %v754_v2, %v701_v15  ;;  %v703_v19 = vpop.f32.mrb[3].mxu1 }
 0x141   : > { %v770_v20 = vadd.f32 %v753_v13, %v328_v11  ;;  %v757_v21 = vadd.f32 %v756_v3, %v703_v19 }
 0x142   : > { %777 = vst [vmem:[#allocation2] sm:$0xff] %v769_v16  ;;  %v771_v22 = vadd.f32 %v755_v17, %v329_v14 }
 0x143   : > { %778 = vst [vmem:[#allocation2 + $0x8] sm:$0xff] %v770_v20  ;;  %v772_v23 = vadd.f32 %v757_v21, %v330_v18 }
 0x144   : > { %779 = vst [vmem:[#allocation2 + $0x10] sm:$0xff] %v771_v22 }
 0x145   : > { %780 = vst [vmem:[#allocation2 + $0x18] sm:$0xff] %v772_v23  ;;  %v707_v25 = vpop.f32.mrb[4].mxu1 }
 0x146   : > { %v761_v26 = vadd.f32 %v760_v4, %v707_v25  ;;  %v709_v28 = vpop.f32.mrb[5].mxu1 }
 0x147   : > { %v763_v29 = vadd.f32 %v762_v5, %v709_v28  ;;  %v711_v31 = vpop.f32.mrb[6].mxu1  ;;  %788 = sbr.rel (%p1023_p11) target bundleno = 344 (0x158), region = 66 }
 0x148   : > { %v773_v32 = vadd.f32 %v761_v26, %v331_v24  ;;  %v765_v33 = vadd.f32 %v764_v6, %v711_v31  ;;  %v713_v35 = vpop.f32.mrb[7].mxu1 }
 0x149   : > { %v774_v36 = vadd.f32 %v763_v29, %v332_v27  ;;  %v767_v37 = vadd.f32 %v766_v7, %v713_v35  ;;  %v789_v43 = vld [vmem:[#allocation2] sm:$0xff] (!%p1023_p11) }
 0x14a   : > { %781 = vst [vmem:[#allocation2 + $0x20] sm:$0xff] %v773_v32  ;;  %v775_v38 = vadd.f32 %v765_v33, %v333_v30  ;;  %v790_v45 = vld [vmem:[#allocation2 + $0x8] sm:$0xff] (!%p1023_p11)  ;;  %v809_v55 = vadd.f32 (!%p1023_p11), %v802_v50, %v789_v43 }
 0x14b   : > { %782 = vst [vmem:[#allocation2 + $0x28] sm:$0xff] %v774_v36  ;;  %v776_v39 = vadd.f32 %v767_v37, %v334_v34  ;;  %v791_v47 = vld [vmem:[#allocation2 + $0x10] sm:$0xff] (!%p1023_p11)  ;;  %v810_v56 = vadd.f32 (!%p1023_p11), %v806_v51, %v790_v45 }
 0x14c   : > { %783 = vst [vmem:[#allocation2 + $0x30] sm:$0xff] %v775_v38  ;;  %v792_v48 = vld [vmem:[#allocation2 + $0x18] sm:$0xff] (!%p1023_p11)  ;;  %v811_v57 = vadd.f32 (!%p1023_p11), %v802_v50, %v791_v47  ;;  %817 = vst [vmem:[%s1381_s3] sm:$0xff] (!%p1023_p11), %v809_v55 }
 0x14d   : > { %784 = vst [vmem:[#allocation2 + $0x38] sm:$0xff] %v776_v39  ;;  %v812_v58 = vadd.f32 (!%p1023_p11), %v806_v51, %v792_v48  ;;  %818 = vst [vmem:[%s1381_s3 + $0x8] sm:$0xff] (!%p1023_p11), %v810_v56 }
 0x14e   : > { %819 = vst [vmem:[%s1381_s3 + $0x10] sm:$0xff] %v811_v57 }
 0x14f   : > { %820 = vst [vmem:[%s1381_s3 + $0x18] sm:$0xff] %v812_v58 }
 0x151   : > { %v793_v49 = vld [vmem:[#allocation2 + $0x20] sm:$0xff] }
 0x152   : > { %v794_v52 = vld [vmem:[#allocation2 + $0x28] sm:$0xff]  ;;  %v813_v59 = vadd.f32 %v802_v50, %v793_v49 }
 0x153   : > { %v795_v53 = vld [vmem:[#allocation2 + $0x30] sm:$0xff]  ;;  %v814_v60 = vadd.f32 %v806_v51, %v794_v52 }
 0x154   : > { %v796_v54 = vld [vmem:[#allocation2 + $0x38] sm:$0xff]  ;;  %v815_v61 = vadd.f32 %v802_v50, %v795_v53  ;;  %821 = vst [vmem:[%s1381_s3 + $0x20] sm:$0xff] %v813_v59 }
 0x155   : > { %v816_v62 = vadd.f32 %v806_v51, %v796_v54  ;;  %822 = vst [vmem:[%s1381_s3 + $0x28] sm:$0xff] %v814_v60 }
 0x156   : > { %823 = vst [vmem:[%s1381_s3 + $0x30] sm:$0xff] %v815_v61 }
 0x157   : > { %824 = vst [vmem:[%s1381_s3 + $0x38] sm:$0xff] %v816_v62 }
 0x158 PF: > { %s13_s16 = sadd.s32 1, %s1200_s16   ;;  %s1382_s12 = smov %s1188_s13 }
 0x159   : > { %p10_p12 = scmp.ge.s32.totalorder %s13_s16, 8   ;;  %s1383_s13 = smov %s1259_s20 }
 0x15a   : > { %s1384_s14 = smov %s1196_s15  ;;  %s1385_s15 = smov %s1387_s17 }
 0x15b   :  { %12 = sbr.rel (!%p10_p12) target bundleno = 3 (0x3), region = 113 }

// kernel: generator_forward.56
= control target key start
LH: loop header
LB: loop body
LE: loop exit
PB: predicated region body
PF: predicated region fallthrough
CT: control target
= control target key end

     0   :  { %s578_s9 = smov 0   ;;  %s580_s10 = smov 0   ;;  %s693_s0 = inlined_call_operand.vmem [shape: f32[2,16,256], index: 0, kind: input, shape index: {}]   ;;  %s694_s1 = inlined_call_operand.vmem [shape: f32[2,16,256], index: 1, kind: input, shape index: {}]   ;;  %s695_s2 = inlined_call_operand.vmem [shape: f32[2,16,256], index: 2, kind: output, shape index: {}]  }
   0x1   :  { %s582_s11 = smov 0   ;;  %s584_s12 = smov 0  }
   0x2   :  { %s586_s13 = smov 0   ;;  %s588_s14 = smov 0  }
   0x3   :  { %s590_s15 = smov 0  }
   0x4 LB: > { %s21_s16 = sadd.s32 1, %s553_s13  ;;  %s24_s17 = sadd.s32 1, %s557_s14  ;;  %s561_s15 = sphi %s590_s15, %s12_s15   ;;  %s557_s14 = sphi %s588_s14, %s703_s14   ;;  %s553_s13 = sphi %s586_s13, %s702_s13   ;;  %s549_s12 = sphi %s584_s12, %s701_s12   ;;  %s545_s11 = sphi %s582_s11, %s700_s11   ;;  %s541_s10 = sphi %s580_s10, %s699_s10   ;;  %s537_s9 = sphi %s578_s9, %s698_s9  }
   0x5   : > { %p22_p0 = scmp.ge.s32.totalorder %s21_s16, 2  ;;  %s430_s18 = sadd.s32 4294967295, %s561_s15  }
   0x6   : > { %p40_p1 = scmp.ne.s32.totalorder %s541_s10, %s537_s9  ;;  %p41_p2 = scmp.eq.s32.totalorder %s561_s15, 0 }
   0x7   : > { %s705_s16 = smov (%p22_p0, %s21_s16), 0  ;;  %s707_s17 = smov (!%p22_p0, %s24_s17), %s557_s14 }
   0x8   : > { %p26_p3 = scmp.ge.s32.totalorder %s707_s17, 2  ;;  %p100_p4 = scmp.eq.s32.totalorder %s430_s18, 3 }
   0x9   : > { %s29_s19 = ssub.s32 %s553_s13, %s705_s16  ;;  %p624_p5 = por %p41_p2, %p40_p1 }
   0xa   : > { %s709_s17 = smov (%p26_p3, %s707_s17), 0  ;;  %p630_p6 = por %p100_p4, %p40_p1 }
   0xb   : > { %s28_s22 = ssub.s32 %s557_s14, %s709_s17  ;;  %s33_s24 = sadd.s32 1, %s541_s10 }
   0xc   : > { %s30_s23 = sor.u32 %s29_s19, %s28_s22  ;;  %p433_p8 = scmp.ge.s32.totalorder %s561_s15, 4 }
   0xd   : > { %p31_p7 = scmp.eq.s32.totalorder %s30_s23, 0 }
   0xe   : > { %122 = sbr.rel (%p433_p8) target bundleno = 35 (0x23), region = 16 }
   0xf   : > { %s638_s25 = scalar_select %p31_p7, %s541_s10, %s33_s24  }
  0x15   : > { %125 = sbr.rel (!%p624_p5) target bundleno = 28 (0x1c), region = 20  ;;  %s127_s26 = sand.u32 (%p624_p5), 1, %s541_s10  }
  0x16   : > { %s435_s27 = sshll.u32 (%p624_p5), %s557_s14, 2  ;;  %s434_s28 = sshll.u32 (%p624_p5), %s127_s26, 4 }
  0x17   : > { %s131_s29 = sadd.s32 (%p624_p5), %s553_s13, %s435_s27  ;;  %s129_s6 = scalar_lea.vmem (%p624_p5), [#allocation2], %s434_s28 }
  0x18   : > { %s436_s30 = sshll.u32 (%p624_p5), %s131_s29, 3 }
  0x19   : > { %s133_s5 = scalar_lea.vmem (%p624_p5), %s693_s0, %s436_s30 }
  0x1a   : > { %v163_v0 = vld [vmem:[%s133_s5] sm:$0xff] (%p624_p5)  ;;  %v165_v1 = vld [vmem:[%s133_s5 + $0x10] sm:$0xff] (%p624_p5) }
  0x1b   : > { %164 = vst [vmem:[%s129_s6] sm:$0xff] (%p624_p5), %v163_v0  ;;  %166 = vst [vmem:[%s129_s6 + $0x8] sm:$0xff] (%p624_p5), %v165_v1 }
  0x1c PF: > { %172 = sbr.rel (!%p624_p5) target bundleno = 35 (0x23), region = 58  ;;  %s174_s7 = sand.u32 (%p624_p5), 1, %s541_s10  }
  0x1d   : > { %s438_s8 = sshll.u32 (%p624_p5), %s557_s14, 2  ;;  %s437_s18 = sshll.u32 (%p624_p5), %s174_s7, 4 }
  0x1e   : > { %s178_s19 = sadd.s32 (%p624_p5), %s553_s13, %s438_s8  ;;  %s176_s27 = scalar_lea.vmem (%p624_p5), [#allocation3], %s437_s18 }
  0x1f   : > { %s439_s22 = sshll.u32 (%p624_p5), %s178_s19, 3 }
  0x20   : > { %s180_s26 = scalar_lea.vmem (%p624_p5), %s694_s1, %s439_s22 }
  0x21   : > { %v210_v2 = vld [vmem:[%s180_s26] sm:$0xff] (%p624_p5)  ;;  %v212_v3 = vld [vmem:[%s180_s26 + $0x10] sm:$0xff] (%p624_p5) }
  0x22   : > { %211 = vst [vmem:[%s176_s27] sm:$0xff] (%p624_p5), %v210_v2  ;;  %213 = vst [vmem:[%s176_s27 + $0x8] sm:$0xff] (%p624_p5), %v212_v3 }
  0x23 PF: > { %p440_p9 = scmp.ge.s32.totalorder %s561_s15, 1  ;;  %p218_p10 = scmp.lt.s32.totalorder %s561_s15, 5 }
  0x25   : > { %p219_p11 = pnand %p440_p9, %p218_p10 }
  0x26   : > { %s225_s20 = sand.u32 (!%p219_p11), 1, %s537_s9  }
  0x27   : > { %222 = sbr.rel (%p219_p11) target bundleno = 90 (0x5a), region = 96  ;;  %s660_s28 = sshll.u32 (!%p219_p11), %s225_s20, 4 }
  0x28   : > { %s227_s29 = scalar_lea.vmem (!%p219_p11), [#allocation2], %s660_s28  ;;  %s234_s9 = scalar_lea.vmem (!%p219_p11), [#allocation3], %s660_s28 }
  0x29   : > { %v256_v4 = vld [vmem:[%s227_s29] sm:$0xff] (!%p219_p11)  ;;  %v257_v5 = vld [vmem:[%s227_s29 + $0x8] sm:$0xff] (!%p219_p11)  ;;  %s255_s30 = scalar_lea.vmem (!%p219_p11), [#allocation4], %s660_s28 }
  0x2a   : > { %v258_v6 = vadd.f32 (!%p219_p11), %v257_v5, %v256_v4  ;;  %v265_v7 = vmul.f32 (!%p219_p11), %v256_v4, %v256_v4  ;;  %v266_v8 = vmul.f32 (!%p219_p11), %v257_v5, %v257_v5  ;;  %v285_v31 = vld [vmem:[%s234_s9] sm:$0xff] (!%p219_p11)  ;;  %v286_v32 = vld [vmem:[%s234_s9 + $0x8] sm:$0xff] (!%p219_p11) }
  0x2c   : > { %v259_v9 = vrot.slane (!%p219_p11), %v258_v6, 4  ;;  %v267_v10 = vadd.f32 (!%p219_p11), %v266_v8, %v265_v7 }
  0x2e   : > { %v260_v11 = vadd.f32 %v259_v9, %v258_v6  ;;  %v268_v12 = vrot.slane %v267_v10, 4  ;;  %s445_s3 = sshll.u32 (%p630_p6), %s549_s12, 2 }
  0x2f   : > { %s299_s4 = sadd.s32 (%p630_p6), %s545_s11, %s445_s3 }
  0x30   : > { %v261_v13 = vrot.slane %v260_v11, 2  ;;  %v269_v14 = vadd.f32 %v268_v12, %v267_v10  ;;  %s446_s5 = sshll.u32 (%p630_p6), %s299_s4, 3 }
  0x31   : > { %s301_s8 = scalar_lea.vmem (%p630_p6), %s695_s2, %s446_s5 }
  0x32   : > { %v262_v15 = vadd.f32 %v261_v13, %v260_v11  ;;  %v270_v16 = vrot.slane %v269_v14, 2 }
  0x34   : > { %v263_v17 = vrot.slane %v262_v15, 1  ;;  %v271_v18 = vadd.f32 %v270_v16, %v269_v14 }
  0x36   : > { %v264_v19 = vadd.f32 %v263_v17, %v262_v15  ;;  %v272_v20 = vrot.slane %v271_v18, 1 }
  0x38   : > { %v273_v21 = vadd.f32 %v272_v20, %v271_v18  ;;  %v274_v22 = vmul.f32 0.0625, %v264_v19 }
  0x3a   : > { %v275_v23 = vmul.f32 0.0625, %v273_v21  ;;  %v276_v24 = vmul.f32 %v274_v22, %v274_v22  ;;  %v279_v28 = vsub.f32 %v256_v4, %v274_v22  ;;  %v280_v29 = vsub.f32 %v257_v5, %v274_v22 }
  0x3c   : > { %v277_v25 = vsub.f32 %v275_v23, %v276_v24 }
  0x3e   : > { %v278_v26 = vmax.f32 %v277_v25, 0.0 }
  0x40   : > { %v281_v27 = vadd.f32 1e-05, %v278_v26 }
  0x42   : > { %505 = vrsqrt.f32 %v281_v27 }
  0x4b   : > { %297 = sbr.rel (!%p630_p6) target bundleno = 90 (0x5a), region = 108 }
  0x4c   : > { %v506_v30 = vpop.eup %505 }
  0x4d   : > { %v283_v33 = vmul.f32 %v506_v30, %v279_v28  ;;  %v284_v34 = vmul.f32 %v506_v30, %v280_v29 }
  0x4f   : > { %v287_v35 = vadd.f32 %v285_v31, %v283_v33  ;;  %v288_v36 = vadd.f32 %v286_v32, %v284_v34 }
  0x51   : > { %289 = vst [vmem:[%s255_s30] sm:$0xff] %v287_v35  ;;  %290 = vst [vmem:[%s255_s30 + $0x8] sm:$0xff] %v288_v36 }
  0x58   : > { %v331_v37 = vld [vmem:[%s255_s30] sm:$0xff]  ;;  %v333_v38 = vld [vmem:[%s255_s30 + $0x8] sm:$0xff] }
  0x59   : > { %332 = vst [vmem:[%s301_s8] sm:$0xff] %v331_v37  ;;  %334 = vst [vmem:[%s301_s8 + $0x10] sm:$0xff] %v333_v38 }
  0x5a PF: > { %s12_s15 = sadd.s32 1, %s561_s15   ;;  %s698_s9 = smov %s541_s10 }
  0x5b   : > { %p9_p12 = scmp.ge.s32.totalorder %s12_s15, 6   ;;  %s699_s10 = smov %s638_s25 }
  0x5c   : > { %s700_s11 = smov %s553_s13  ;;  %s701_s12 = smov %s557_s14 }
  0x5d   : > { %s702_s13 = smov %s705_s16  ;;  %s703_s14 = smov %s709_s17 }
  0x5e   :  { %11 = sbr.rel (!%p9_p12) target bundleno = 4 (0x4), region = 185 }

// kernel: generator_forward.55
= control target key start
LH: loop header
LB: loop body
LE: loop exit
PB: predicated region body
PF: predicated region fallthrough
CT: control target
= control target key end

     0   :  { %8 = vsyncpa [#allocation4], 0  ;;  %s1466_s0 = inlined_call_operand.hbm [shape: bf16[32,2304], index: 0, kind: input, shape index: {}]   ;;  %s1467_s1 = inlined_call_operand.vmem [shape: bf16[2304,256], index: 1, kind: input, shape index: {}]   ;;  %s1468_s2 = inlined_call_operand.vmem [shape: f32[1,256], index: 2, kind: input, shape index: {}]   ;;  %s1469_s3 = inlined_call_operand.vmem [shape: f32[32,256], index: 3, kind: output, shape index: {}]  }
   0x1   :  { %10 = vsyncpa [#allocation4 + $0x1], 0  ;;  %s1258_s12 = smov 0   ;;  %s1260_s13 = smov 0  }
   0x2   :  { %s1262_s14 = smov 0   ;;  %s1264_s15 = smov 0  }
   0x3   :  { %s1266_s16 = smov 0   ;;  %s1268_s17 = smov 0  }
   0x4 LB: > { %s930_s18 = sadd.s32 4294967295, %s1230_s17   ;;  %s28_s19 = sadd.s32 1, %s1226_s16  ;;  %s1230_s17 = sphi %s1268_s17, %s16_s17   ;;  %s1226_s16 = sphi %s1266_s16, %s1477_s16   ;;  %s1222_s15 = sphi %s1264_s15, %s1476_s15   ;;  %s1218_s14 = sphi %s1262_s14, %s1475_s14   ;;  %s1214_s13 = sphi %s1260_s13, %s1474_s13   ;;  %s1210_s12 = sphi %s1258_s12, %s1473_s12  }
   0x5   : > { %p29_p0 = scmp.ge.s32.totalorder %s28_s19, 6  ;;  %s44_s20 = sadd.s32 1, %s1218_s14 }
   0x6   : > { %p51_p1 = scmp.ne.s32.totalorder %s1218_s14, %s1214_s13  ;;  %p52_p2 = scmp.eq.s32.totalorder %s1230_s17, 0 }
   0x7   : > { %s1479_s19 = smov (%p29_p0, %s28_s19), 0  ;;  %p57_p4 = scmp.ne.s32.totalorder %s1214_s13, %s1210_s12 }
   0x8   : > { %p53_p3 = por %p52_p2, %p51_p1  ;;  %s40_s21 = ssub.s32 %s1226_s16, %s1479_s19 }
   0x9   : > { %p58_p5 = scmp.eq.s32.totalorder %s930_s18, 0  ;;  %p42_p6 = scmp.eq.s32.totalorder %s40_s21, 0 }
   0xa   : > { %p1016_p8 = scmp.lt.s32.totalorder %s1230_s17, 6  ;;  %s171_s24 = sand.u32 1, %s1218_s14  }
   0xb   : > { %p1297_p7 = por %p58_p5, %p57_p4  ;;  %s998_s25 = smul.u32 192, %s1226_s16 }
   0xc   : > { %s1303_s23 = scalar_select %p42_p6, %s1218_s14, %s44_s20  }
   0xd   : > { %s1008_s26 = smul.u32 48, %s171_s24  ;;  %s1310_s29 = scalar_lea.hbm %s1466_s0, %s998_s25 }
   0xe   : > { %p1312_p9 = pnand %p1016_p8, %p53_p3  ;;  %s1319_s6 = scalar_lea.sflag [#allocation4], %s171_s24 }
   0xf   : > { %s175_s4 = scalar_lea.vmem [#allocation3], %s1008_s26  ;;  %s1150_s7 = scalar_lea.hbm %s1310_s29, 768 }
  0x10   : > { %s185_s5 = sshll.u32 %s175_s4, 4  ;;  %p1151_p11 = scmp.ne.s32.totalorder %s1310_s29, %s1150_s7  ;;  %s1316_s5 = int_to_ptr.vmem [resolvable:$true] %s185_s5 }
  0x11   : > { %p1152_p12 = pneg %p1312_p9  ;;  %s1155_s10 = scalar_lea.hbm %s1466_s0, 4608 }
  0x12   : > { %p1156_p1 = scmp.lt.u32.totalorder %s1310_s29, %s1466_s0  ;;  %p1157_p2 = scmp.lt.u32.totalorder %s1155_s10, %s1150_s7 }
  0x13   : > { %p1153_p13 = pnand %p1152_p12, %p1151_p11  ;;  %p1159_p4 = scmp.lt.u32.totalorder %s1150_s7, %s1310_s29 }
  0x14   : > { %p1158_p3 = por %p1157_p2, %p1156_p1 }
  0x15   : > { %p1154_p0 = pneg %p1153_p13 }
  0x16   : > { %p1160_p5 = por %p1159_p4, %p1158_p3 }
  0x18   : > { %p1161_p6 = pnand %p1160_p5, %p1154_p0 }
  0x1a   : > { %1164 = shalt.err (!%p1161_p6)
}
  0x1b   : > { %s1165_s18 = scalar_lea.vmem %s1316_s5, 768  ;;  %s1232_s20 = smov [#allocation3]  }
  0x1c   : > { %p1166_p8 = scmp.ne.s32.totalorder %s1316_s5, %s1165_s18  ;;  %s1170_s21 = sshll.u32 %s1232_s20, 4  ;;  %s1171_s21 = int_to_ptr.vmem [resolvable:$false] %s1170_s21 }
  0x1d   : > { %s1172_s24 = scalar_lea.vmem %s1171_s21, 1536  ;;  %p1173_p10 = scmp.lt.s32.totalorder %s1316_s5, %s1171_s21 }
  0x1e   : > { %p1168_p11 = pnand %p1166_p8, %p1152_p12  ;;  %p1174_p1 = scmp.lt.s32.totalorder %s1172_s24, %s1165_s18 }
  0x20   : > { %p1169_p13 = pneg %p1168_p11  ;;  %p1175_p2 = por %p1174_p1, %p1173_p10 }
  0x22   : > { %p1176_p3 = pnand %p1175_p2, %p1169_p13 }
  0x24   : > { %1179 = shalt.err (!%p1176_p3)
}
  0x25   : > { %s1233_s25 = smov 1152   ;;  %s1234_s26 = smov 192  }
  0x26   : > { %s1235_s27 = smov 12   ;;  %p208_p12 = scmp.lt.s32.totalorder %s1230_s17, 7 }
  0x27   : > { %1015 = dma.hbm_to_vmem [thread:$0]  (!%p1312_p9), %s1310_s29, 768, %s1316_s5, %s1319_s6, %s1233_s25, %s1234_s26, %s1235_s27  }
  0x28   : > { %p1472_p0 = scmp.ge.s32.totalorder %s1230_s17, 1 }
  0x2a   : > { %p209_p4 = pnand %p1472_p0, %p208_p12 }
  0x2b   : > { %s214_s28 = sand.u32 (!%p209_p4), 1, %s1214_s13  }
  0x2c   : > { %212 = sbr.rel (%p209_p4) target bundleno = 364 (0x16c), region = 32  ;;  %s215_s7 = scalar_lea.sflag (!%p209_p4), [#allocation4], %s214_s28 }
  0x2d   : > { %s1009_s4 = smul.u32 (!%p209_p4), 48, %s214_s28 }
  0x2f   : > { %s1351_s8 = scalar_lea.vmem (!%p209_p4), [#allocation3], %s1009_s4 }
  0x33   : > { %1205 = dma.done.wait (%p1297_p7), %s215_s7, 768  }
  0x34   : > { %1207 = vsyncadd (%p1297_p7), %s215_s7, 4294966528  ;;  %s262_s9 = smul.u32 48, %s1222_s15  ;;  %p938_p9 = scmp.ne.s32.totalorder %s1222_s15, 0 }
  0x35   : > { %v1236_v0 = vmov (!%p938_p9), 0.0  }
  0x36   : > { %p264_p10 = scmp.lt.s32.totalorder %s262_s9, 287  ;;  %295 = sbr.rel (%p938_p9) target bundleno = 61 (0x3d), region = 40  ;;  %296 = vst [vmem:[#allocation2] sm:$0xff] (!%p938_p9), %v1236_v0  ;;  %297 = vst [vmem:[#allocation2 + $0x8] sm:$0xff] (!%p938_p9), %v1236_v0 }
  0x37   : > { %298 = vst [vmem:[#allocation2 + $0x10] sm:$0xff] (!%p938_p9), %v1236_v0  ;;  %299 = vst [vmem:[#allocation2 + $0x18] sm:$0xff] (!%p938_p9), %v1236_v0 }
  0x38   : > { %s1481_s9 = smov (!%p264_p10, %s262_s9), 287  ;;  %300 = vst [vmem:[#allocation2 + $0x20] sm:$0xff] (!%p938_p9), %v1236_v0  ;;  %301 = vst [vmem:[#allocation2 + $0x28] sm:$0xff] (!%p938_p9), %v1236_v0 }
  0x39   : > { %s999_s29 = sshll.u32 %s1481_s9, 3  ;;  %302 = vst [vmem:[#allocation2 + $0x30] sm:$0xff] (!%p938_p9), %v1236_v0  ;;  %303 = vst [vmem:[#allocation2 + $0x38] sm:$0xff] (!%p938_p9), %v1236_v0 }
  0x3a   : > { %s1361_s6 = scalar_lea.vmem %s1467_s1, %s999_s29 }
  0x3d PF: > { %v1070_v1 = vld [vmem:[%s1361_s6 + $0x4] ss:$8 sps:$4 sm:$0xff]   ;;  %v1072_v2 = vld [vmem:[%s1361_s6] ss:$8 sps:$4 sm:$0xff]   ;;  %v1237_v3 = vmov 0   ;;  %p993_p7 = scmp.ne.s32.totalorder %s1222_s15, 5 }
  0x3e   : > { %725 = vmatprep.mubr.bf16.mxu0 %v1237_v3  ;;  %640 = vmatprep.subr.bf16.mxu1 %v1070_v1  ;;  %v1073_v4 = vld [vmem:[%s1361_s6 + $0x14] ss:$8 sps:$4 sm:$0xff]   ;;  %v1075_v5 = vld [vmem:[%s1361_s6 + $0x10] ss:$8 sps:$4 sm:$0xff]   ;;  %v1076_v6 = vld [vmem:[%s1361_s6 + $0x24] ss:$8 sps:$4 sm:$0xff]  }
  0x3f   : > { %641 = vmatpush1.bf16.msra.mxu1 %v1072_v2  ;;  %v1078_v7 = vld [vmem:[%s1361_s6 + $0x20] ss:$8 sps:$4 sm:$0xff]   ;;  %v1079_v8 = vld [vmem:[%s1361_s6 + $0x34] ss:$8 sps:$4 sm:$0xff]   ;;  %v1081_v9 = vld [vmem:[%s1361_s6 + $0x30] ss:$8 sps:$4 sm:$0xff]  }
  0x40   : > { %642 = vmatprep.subr.bf16.mxu1 %v1073_v4  ;;  %v1094_v10 = vld [vmem:[%s1361_s6 + $0x104] ss:$8 sps:$4 sm:$0xff]   ;;  %v1096_v11 = vld [vmem:[%s1361_s6 + $0x100] ss:$8 sps:$4 sm:$0xff]   ;;  %v1100_v13 = vld [vmem:[%s1361_s6 + $0x114] ss:$8 sps:$4 sm:$0xff]  }
  0x41   : > { %v1082_v12 = vld [vmem:[%s1361_s6 + $0x44] ss:$8 sps:$4 sm:$0xff]   ;;  %693 = vmatprep.subr.bf16.mxu0 %v1094_v10  ;;  %v1102_v14 = vld [vmem:[%s1361_s6 + $0x110] ss:$8 sps:$4 sm:$0xff]   ;;  %v1084_v15 = vld [vmem:[%s1361_s6 + $0x40] ss:$8 sps:$4 sm:$0xff]  }
  0x42   : > { %694 = vmatpush1.bf16.msra.mxu0 %v1096_v11  ;;  %v1085_v16 = vld [vmem:[%s1361_s6 + $0x54] ss:$8 sps:$4 sm:$0xff]   ;;  %v1106_v17 = vld [vmem:[%s1361_s6 + $0x124] ss:$8 sps:$4 sm:$0xff]   ;;  %v1108_v18 = vld [vmem:[%s1361_s6 + $0x120] ss:$8 sps:$4 sm:$0xff]  }
  0x43   : > { %643 = vmatpush1.bf16.msra.mxu1 %v1075_v5  ;;  %695 = vmatprep.subr.bf16.mxu0 %v1100_v13  ;;  %v1087_v19 = vld [vmem:[%s1361_s6 + $0x50] ss:$8 sps:$4 sm:$0xff]   ;;  %v1112_v20 = vld [vmem:[%s1361_s6 + $0x134] ss:$8 sps:$4 sm:$0xff]   ;;  %v1088_v21 = vld [vmem:[%s1361_s6 + $0x64] ss:$8 sps:$4 sm:$0xff]  }
  0x44   : > { %644 = vmatprep.subr.bf16.mxu1 %v1076_v6  ;;  %v1114_v22 = vld [vmem:[%s1361_s6 + $0x130] ss:$8 sps:$4 sm:$0xff]   ;;  %v1090_v23 = vld [vmem:[%s1361_s6 + $0x60] ss:$8 sps:$4 sm:$0xff]   ;;  %v1118_v24 = vld [vmem:[%s1361_s6 + $0x144] ss:$8 sps:$4 sm:$0xff]  }
  0x45   : > { %v1091_v25 = vld [vmem:[%s1361_s6 + $0x74] ss:$8 sps:$4 sm:$0xff]   ;;  %v1120_v26 = vld [vmem:[%s1361_s6 + $0x140] ss:$8 sps:$4 sm:$0xff]   ;;  %v1093_v27 = vld [vmem:[%s1361_s6 + $0x70] ss:$8 sps:$4 sm:$0xff]  }
  0x46   : > { %696 = vmatpush1.bf16.msra.mxu0 %v1102_v14  ;;  %v1124_v28 = vld [vmem:[%s1361_s6 + $0x154] ss:$8 sps:$4 sm:$0xff]   ;;  %v1097_v29 = vld [vmem:[%s1361_s6 + $0x84] ss:$8 sps:$4 sm:$0xff]   ;;  %v1126_v30 = vld [vmem:[%s1361_s6 + $0x150] ss:$8 sps:$4 sm:$0xff]  }
  0x47   : > { %645 = vmatpush1.bf16.msra.mxu1 %v1078_v7  ;;  %697 = vmatprep.subr.bf16.mxu0 %v1106_v17  ;;  %v1099_v31 = vld [vmem:[%s1361_s6 + $0x80] ss:$8 sps:$4 sm:$0xff]   ;;  %v1130_v32 = vld [vmem:[%s1361_s6 + $0x164] ss:$8 sps:$4 sm:$0xff]   ;;  %v1103_v33 = vld [vmem:[%s1361_s6 + $0x94] ss:$8 sps:$4 sm:$0xff]  }
  0x48   : > { %646 = vmatprep.subr.bf16.mxu1 %v1079_v8  ;;  %v1105_v34 = vld [vmem:[%s1361_s6 + $0x90] ss:$8 sps:$4 sm:$0xff]   ;;  %v1132_v35 = vld [vmem:[%s1361_s6 + $0x160] ss:$8 sps:$4 sm:$0xff]   ;;  %v1136_v37 = vld [vmem:[%s1361_s6 + $0x174] ss:$8 sps:$4 sm:$0xff]  }
  0x49   : > { %v1145_v36 = vld [vmem:[%s1351_s8 + $0x4] ss:$12 sps:$4 sm:$0xff]   ;;  %v1142_v42 = vld [vmem:[%s1351_s8 + $0x8] ss:$12 sps:$4 sm:$0xff]   ;;  %v1146_v47 = vld [vmem:[%s1351_s8 + $0x20] ss:$12 sps:$4 sm:$0xff]  }
  0x4a   : > { %698 = vmatpush1.bf16.msra.mxu0 %v1108_v18  ;;  %v1109_v38 = vld [vmem:[%s1361_s6 + $0xa4] ss:$8 sps:$4 sm:$0xff]   ;;  %672 = vmatprep.mubr.bf16.mxu1 %v1145_v36  ;;  %v1138_v39 = vld [vmem:[%s1361_s6 + $0x170] ss:$8 sps:$4 sm:$0xff]   ;;  %v1111_v40 = vld [vmem:[%s1361_s6 + $0xa0] ss:$8 sps:$4 sm:$0xff]  }
  0x4b   : > { %647 = vmatpush1.bf16.msra.mxu1 %v1081_v9  ;;  %699 = vmatprep.subr.bf16.mxu0 %v1112_v20  ;;  %v1115_v41 = vld [vmem:[%s1361_s6 + $0xb4] ss:$8 sps:$4 sm:$0xff]   ;;  %v1117_v43 = vld [vmem:[%s1361_s6 + $0xb0] ss:$8 sps:$4 sm:$0xff]   ;;  %v1121_v44 = vld [vmem:[%s1361_s6 + $0xc4] ss:$8 sps:$4 sm:$0xff]  }
  0x4c   : > { %648 = vmatprep.subr.bf16.mxu1 %v1082_v12  ;;  %v1123_v45 = vld [vmem:[%s1361_s6 + $0xc0] ss:$8 sps:$4 sm:$0xff]   ;;  %v1127_v46 = vld [vmem:[%s1361_s6 + $0xd4] ss:$8 sps:$4 sm:$0xff]   ;;  %v1129_v48 = vld [vmem:[%s1361_s6 + $0xd0] ss:$8 sps:$4 sm:$0xff]  }
  0x4d   : > { %v1133_v49 = vld [vmem:[%s1361_s6 + $0xe4] ss:$8 sps:$4 sm:$0xff]   ;;  %v1135_v50 = vld [vmem:[%s1361_s6 + $0xe0] ss:$8 sps:$4 sm:$0xff]   ;;  %v1139_v51 = vld [vmem:[%s1361_s6 + $0xf4] ss:$8 sps:$4 sm:$0xff]  }
  0x4e   : > { %700 = vmatpush1.bf16.msra.mxu0 %v1114_v22  ;;  %v1141_v52 = vld [vmem:[%s1361_s6 + $0xf0] ss:$8 sps:$4 sm:$0xff]   ;;  %v304_v0 = vld [vmem:[#allocation2] sm:$0xff] }
  0x4f   : > { %649 = vmatpush1.bf16.msra.mxu1 %v1084_v15  ;;  %701 = vmatprep.subr.bf16.mxu0 %v1118_v24  ;;  %v1143_v53 = vld [vmem:[%s1351_s8] ss:$12 sps:$4 sm:$0xff]   ;;  %v1147_v54 = vld [vmem:[%s1351_s8 + $0x1c] ss:$12 sps:$4 sm:$0xff]   ;;  %v1149_v55 = vld [vmem:[%s1351_s8 + $0x18] ss:$12 sps:$4 sm:$0xff]  }
  0x50   : > { %650 = vmatprep.subr.bf16.mxu1 %v1085_v16  ;;  %v306_v6 = vld [vmem:[#allocation2 + $0x10] sm:$0xff]  ;;  %v307_v10 = vld [vmem:[#allocation2 + $0x18] sm:$0xff]  ;;  %v308_v16 = vld [vmem:[#allocation2 + $0x20] sm:$0xff] }
  0x51   : > { %v310_v22 = vld [vmem:[#allocation2 + $0x30] sm:$0xff] }
  0x52   : > { %702 = vmatpush1.bf16.msra.mxu0 %v1120_v26  ;;  %v311_v26 = vld [vmem:[#allocation2 + $0x38] sm:$0xff] }
  0x53   : > { %651 = vmatpush1.bf16.msra.mxu1 %v1087_v19  ;;  %703 = vmatprep.subr.bf16.mxu0 %v1124_v28  ;;  %v309_v19 = vld [vmem:[#allocation2 + $0x28] sm:$0xff] }
  0x54   : > { %652 = vmatprep.subr.bf16.mxu1 %v1088_v21 }
  0x56   : > { %704 = vmatpush1.bf16.msra.mxu0 %v1126_v30 }
  0x57   : > { %653 = vmatpush1.bf16.msra.mxu1 %v1090_v23  ;;  %705 = vmatprep.subr.bf16.mxu0 %v1130_v32  ;;  %v776_v32 = vlaneseq (!%p993_p7) }
  0x58   : > { %654 = vmatprep.subr.bf16.mxu1 %v1091_v25 }
  0x5a   : > { %706 = vmatpush1.bf16.msra.mxu0 %v1132_v35 }
  0x5b   : > { %655 = vmatpush1.bf16.msra.mxu1 %v1093_v27  ;;  %707 = vmatprep.subr.bf16.mxu0 %v1136_v37 }
  0x5c   : > { %656 = vmatprep.subr.bf16.mxu1 %v1097_v29 }
  0x5e   : > { %708 = vmatpush1.bf16.msra.mxu0 %v1138_v39 }
  0x5f   : > { %657 = vmatpush1.bf16.msra.mxu1 %v1099_v31 }
  0x60   : > { %658 = vmatprep.subr.bf16.mxu1 %v1103_v33  ;;  %v777_v33 = vshrl.u32 (!%p993_p7), %v776_v32, 7 }
  0x61   : > { %726 = vmatmul.mubr.bf16.vlgmr.msra.gmra.mrb[0].mxu0 %v1142_v42 }
  0x62   : > { %735 = vmatprep.mubr.bf16.mxu0 %v1237_v3  ;;  %v305_v3 = vld [vmem:[#allocation2 + $0x8] sm:$0xff]  ;;  %v778_v36 = vsub.s32 (!%p993_p7), 0, %v777_v33 }
  0x63   : > { %659 = vmatpush1.bf16.msra.mxu1 %v1105_v34  ;;  %v774_v34 = vld [vmem:[%s1468_s2] sm:$0x3] (!%p993_p7) }
  0x64   : > { %660 = vmatprep.subr.bf16.mxu1 %v1109_v38  ;;  %v782_v38 = vsub.s32 (!%p993_p7), 1, %v777_v33  ;;  %v779_v42 = vrot.slane (!%p993_p7), %v774_v34, %v778_v36 }
  0x67   : > { %661 = vmatpush1.bf16.msra.mxu1 %v1111_v40 }
  0x68   : > { %662 = vmatprep.subr.bf16.mxu1 %v1115_v41 }
  0x69   : > { %736 = vmatmul.mubr.bf16.gmra.mrb[4].mxu0 %v1146_v47 }
  0x6b   : > { %663 = vmatpush1.bf16.msra.mxu1 %v1117_v43  ;;  %v783_v43 = vrot.slane (!%p993_p7), %v774_v34, %v782_v38 }
  0x6c   : > { %664 = vmatprep.subr.bf16.mxu1 %v1121_v44 }
  0x6f   : > { %665 = vmatpush1.bf16.msra.mxu1 %v1123_v45 }
  0x70   : > { %666 = vmatprep.subr.bf16.mxu1 %v1127_v46 }
  0x73   : > { %667 = vmatpush1.bf16.msra.mxu1 %v1129_v48 }
  0x74   : > { %668 = vmatprep.subr.bf16.mxu1 %v1133_v49 }
  0x77   : > { %669 = vmatpush1.bf16.msra.mxu1 %v1135_v50 }
  0x78   : > { %670 = vmatprep.subr.bf16.mxu1 %v1139_v51 }
  0x7b   : > { %671 = vmatpush1.bf16.msra.mxu1 %v1141_v52 }
  0x7e   : > { %673 = vmatmul.mubr.bf16.vlgmr.msra.gmra.mrb[0].mxu1 %v1143_v53 }
  0x7f   : > { %682 = vmatprep.mubr.bf16.mxu1 %v1147_v54 }
  0x86   : > { %683 = vmatmul.mubr.bf16.gmra.mrb[4].mxu1 %v1149_v55 }
 0x134   : > { %v727_v56 = vpop.f32.mrb[0].mxu0 }
 0x135   : > { %v729_v57 = vpop.f32.mrb[1].mxu0 }
 0x136   : > { %v731_v58 = vpop.f32.mrb[2].mxu0 }
 0x137   : > { %v733_v59 = vpop.f32.mrb[3].mxu0 }
 0x13c   : > { %v737_v60 = vpop.f32.mrb[4].mxu0 }
 0x13d   : > { %v739_v61 = vpop.f32.mrb[5].mxu0 }
 0x13e   : > { %v741_v62 = vpop.f32.mrb[6].mxu0 }
 0x13f   : > { %v743_v63 = vpop.f32.mrb[7].mxu0 }
 0x151   : > { %v674_v1 = vpop.f32.mrb[0].mxu1 }
 0x152   : > { %v728_v2 = vadd.f32 %v727_v56, %v674_v1  ;;  %v676_v4 = vpop.f32.mrb[1].mxu1 }
 0x153   : > { %v730_v5 = vadd.f32 %v729_v57, %v676_v4  ;;  %v678_v7 = vpop.f32.mrb[2].mxu1 }
 0x154   : > { %v746_v8 = vadd.f32 %v728_v2, %v304_v0  ;;  %v732_v9 = vadd.f32 %v731_v58, %v678_v7  ;;  %v680_v11 = vpop.f32.mrb[3].mxu1 }
 0x155   : > { %v747_v12 = vadd.f32 %v730_v5, %v305_v3  ;;  %v734_v13 = vadd.f32 %v733_v59, %v680_v11 }
 0x156   : > { %754 = vst [vmem:[#allocation2] sm:$0xff] %v746_v8  ;;  %v748_v14 = vadd.f32 %v732_v9, %v306_v6 }
 0x157   : > { %755 = vst [vmem:[#allocation2 + $0x8] sm:$0xff] %v747_v12  ;;  %v749_v15 = vadd.f32 %v734_v13, %v307_v10 }
 0x158   : > { %756 = vst [vmem:[#allocation2 + $0x10] sm:$0xff] %v748_v14 }
 0x159   : > { %757 = vst [vmem:[#allocation2 + $0x18] sm:$0xff] %v749_v15  ;;  %v684_v17 = vpop.f32.mrb[4].mxu1 }
 0x15a   : > { %v738_v18 = vadd.f32 %v737_v60, %v684_v17  ;;  %v686_v20 = vpop.f32.mrb[5].mxu1 }
 0x15b   : > { %v740_v21 = vadd.f32 %v739_v61, %v686_v20  ;;  %v688_v23 = vpop.f32.mrb[6].mxu1  ;;  %765 = sbr.rel (%p993_p7) target bundleno = 364 (0x16c), region = 44 }
 0x15c   : > { %v750_v24 = vadd.f32 %v738_v18, %v308_v16  ;;  %v742_v25 = vadd.f32 %v741_v62, %v688_v23  ;;  %v690_v27 = vpop.f32.mrb[7].mxu1 }
 0x15d   : > { %v751_v28 = vadd.f32 %v740_v21, %v309_v19  ;;  %v744_v29 = vadd.f32 %v743_v63, %v690_v27  ;;  %v766_v35 = vld [vmem:[#allocation2] sm:$0xff] (!%p993_p7) }
 0x15e   : > { %758 = vst [vmem:[#allocation2 + $0x20] sm:$0xff] %v750_v24  ;;  %v752_v30 = vadd.f32 %v742_v25, %v310_v22  ;;  %v767_v37 = vld [vmem:[#allocation2 + $0x8] sm:$0xff] (!%p993_p7)  ;;  %v786_v47 = vadd.f32 (!%p993_p7), %v779_v42, %v766_v35 }
 0x15f   : > { %759 = vst [vmem:[#allocation2 + $0x28] sm:$0xff] %v751_v28  ;;  %v753_v31 = vadd.f32 %v744_v29, %v311_v26  ;;  %v768_v39 = vld [vmem:[#allocation2 + $0x10] sm:$0xff] (!%p993_p7)  ;;  %v787_v48 = vadd.f32 (!%p993_p7), %v783_v43, %v767_v37 }
 0x160   : > { %760 = vst [vmem:[#allocation2 + $0x30] sm:$0xff] %v752_v30  ;;  %v769_v40 = vld [vmem:[#allocation2 + $0x18] sm:$0xff] (!%p993_p7)  ;;  %v788_v49 = vadd.f32 (!%p993_p7), %v779_v42, %v768_v39  ;;  %794 = vst [vmem:[%s1469_s3] sm:$0xff] (!%p993_p7), %v786_v47 }
 0x161   : > { %761 = vst [vmem:[#allocation2 + $0x38] sm:$0xff] %v753_v31  ;;  %v789_v50 = vadd.f32 (!%p993_p7), %v783_v43, %v769_v40  ;;  %795 = vst [vmem:[%s1469_s3 + $0x8] sm:$0xff] (!%p993_p7), %v787_v48 }
 0x162   : > { %796 = vst [vmem:[%s1469_s3 + $0x10] sm:$0xff] %v788_v49 }
 0x163   : > { %797 = vst [vmem:[%s1469_s3 + $0x18] sm:$0xff] %v789_v50 }
 0x165   : > { %v770_v41 = vld [vmem:[#allocation2 + $0x20] sm:$0xff] }
 0x166   : > { %v771_v44 = vld [vmem:[#allocation2 + $0x28] sm:$0xff]  ;;  %v790_v51 = vadd.f32 %v779_v42, %v770_v41 }
 0x167   : > { %v772_v45 = vld [vmem:[#allocation2 + $0x30] sm:$0xff]  ;;  %v791_v52 = vadd.f32 %v783_v43, %v771_v44 }
 0x168   : > { %v773_v46 = vld [vmem:[#allocation2 + $0x38] sm:$0xff]  ;;  %v792_v53 = vadd.f32 %v779_v42, %v772_v45  ;;  %798 = vst [vmem:[%s1469_s3 + $0x20] sm:$0xff] %v790_v51 }
 0x169   : > { %v793_v54 = vadd.f32 %v783_v43, %v773_v46  ;;  %799 = vst [vmem:[%s1469_s3 + $0x28] sm:$0xff] %v791_v52 }
 0x16a   : > { %800 = vst [vmem:[%s1469_s3 + $0x30] sm:$0xff] %v792_v53 }
 0x16b   : > { %801 = vst [vmem:[%s1469_s3 + $0x38] sm:$0xff] %v793_v54 }
 0x16c PF: > { %s16_s17 = sadd.s32 1, %s1230_s17   ;;  %s1473_s12 = smov %s1214_s13 }
 0x16d   : > { %p13_p5 = scmp.ge.s32.totalorder %s16_s17, 8   ;;  %s1474_s13 = smov %s1218_s14 }
 0x16e   : > { %s1475_s14 = smov %s1303_s23  ;;  %s1476_s15 = smov %s1226_s16 }
 0x16f   : > { %s1477_s16 = smov %s1479_s19  ;;  %15 = sbr.rel (!%p13_p5) target bundleno = 4 (0x4), region = 86 }
 0x176   :  { %835 = vsyncpa [#allocation4], 1 }
 0x177   :  { %837 = vsyncpa [#allocation4 + $0x1], 1 }

// kernel: generator_forward.89
= control target key start
LH: loop header
LB: loop body
LE: loop exit
PB: predicated region body
PF: predicated region fallthrough
CT: control target
= control target key end

     0   :  { %s2138_s0 = inlined_call_operand.vmem [shape: bf16[32,1024], index: 0, kind: input, shape index: {}]   ;;  %s2139_s1 = inlined_call_operand.vmem [shape: bf16[1024,512], index: 1, kind: input, shape index: {}]   ;;  %s2140_s2 = inlined_call_operand.vmem [shape: f32[1,512], index: 2, kind: input, shape index: {}]   ;;  %s2141_s3 = inlined_call_operand.vmem [shape: f32[32,512], index: 3, kind: output, shape index: {}]  }
   0x1   :  { %2143 = sst [smem:[#allocation7_spill]] %s2138_s0 }
   0x2   :  { %2144 = sst [smem:[#allocation8_spill]] %s2139_s1 }
   0x3   :  { %s1740_s12 = smov 0   ;;  %s1742_s13 = smov 0  }
   0x4   :  { %s1744_s14 = smov 0   ;;  %s1746_s15 = smov 0  }
   0x5   :  { %s1748_s16 = smov 0   ;;  %s1750_s17 = smov 0  }
   0x6   :  { %s1752_s18 = smov 0   ;;  %s1754_s19 = smov 0  }
   0x7   :  { %s1756_s20 = smov 0   ;;  %s1758_s21 = smov 0  }
   0x8   :  { %s1760_s22 = smov 0  }
   0x9 LB: > { %s1327_s23 = sadd.s32 4294967295, %s1717_s22   ;;  %s25_s24 = sadd.s32 1, %s1709_s20  ;;  %s1717_s22 = sphi %s1760_s22, %s13_s22   ;;  %s1713_s21 = sphi %s1758_s21, %s2161_s21   ;;  %s1709_s20 = sphi %s1756_s20, %s2160_s20   ;;  %s1705_s19 = sphi %s1754_s19, %s2159_s19   ;;  %s1701_s18 = sphi %s1752_s18, %s2158_s18   ;;  %s1697_s17 = sphi %s1750_s17, %s2157_s17   ;;  %s1693_s16 = sphi %s1748_s16, %s2156_s16   ;;  %s1689_s15 = sphi %s1746_s15, %s2155_s15   ;;  %s1685_s14 = sphi %s1744_s14, %s2154_s14   ;;  %s1681_s13 = sphi %s1742_s13, %s2153_s13   ;;  %s1677_s12 = sphi %s1740_s12, %s2152_s12  }
   0xa   : > { %p26_p0 = scmp.ge.s32.totalorder %s25_s24, 2  ;;  %s28_s25 = sadd.s32 1, %s1713_s21 }
   0xb   : > { %s41_s26 = sadd.s32 1, %s1697_s17  ;;  %p48_p1 = scmp.ne.s32.totalorder %s1697_s17, %s1693_s16 }
   0xc   : > { %s2163_s24 = smov (%p26_p0, %s25_s24), 0  ;;  %s2165_s25 = smov (!%p26_p0, %s28_s25), %s1713_s21 }
   0xd   : > { %s37_s27 = ssub.s32 %s1709_s20, %s2163_s24  ;;  %p49_p2 = scmp.eq.s32.totalorder %s1717_s22, 0 }
   0xe   : > { %p30_p3 = scmp.ge.s32.totalorder %s2165_s25, 2  ;;  %p39_p4 = scmp.eq.s32.totalorder %s37_s27, 0 }
   0xf   : > { %p1807_p5 = por %p49_p2, %p48_p1  ;;  %s69_s29 = sadd.s32 1, %s1689_s15 }
  0x10   : > { %s2167_s25 = smov (%p30_p3, %s2165_s25), 0  ;;  %p76_p6 = scmp.ne.s32.totalorder %s1689_s15, %s1685_s14 }
  0x11   : > { %2146 = sst [smem:[#allocation6_spill]] %s2167_s25  ;;  %s65_s4 = ssub.s32 %s1713_s21, %s2167_s25 }
  0x12   : > { %s1815_s30 = scalar_select %p39_p4, %s1697_s17, %s41_s26  }
  0x13   : > { %s66_s5 = sor.u32 %s65_s4, %s37_s27  ;;  %p121_p7 = scmp.eq.s32.totalorder %s65_s4, 0 }
  0x14   : > { %p67_p8 = scmp.eq.s32.totalorder %s66_s5, 0  ;;  %p1821_p9 = por %p76_p6, %p49_p2 }
  0x15   : > { %s123_s7 = sadd.s32 1, %s1681_s13  ;;  %p133_p10 = scmp.ne.s32.totalorder %s1681_s13, %s1677_s12 }
  0x16   : > { %s1829_s8 = scalar_select %p67_p8, %s1689_s15, %s69_s29  }
  0x17   : > { %s1832_s9 = scalar_select %p121_p7, %s1681_s13, %s123_s7  }
  0x18   : > { %p134_p11 = scmp.eq.s32.totalorder %s1327_s23, 3  ;;  %p1330_p13 = scmp.ge.s32.totalorder %s1717_s22, 4 }
  0x1a   : > { %p1834_p12 = por %p134_p11, %p133_p10  ;;  %156 = sbr.rel (%p1330_p13) target bundleno = 89 (0x59), region = 16 }
  0x21   : > { %159 = sbr.rel (!%p1807_p5) target bundleno = 47 (0x2f), region = 20  ;;  %s161_s11 = sand.u32 (%p1807_p5), 1, %s1697_s17  }
  0x22   : > { %s1423_s26 = sshll.u32 (%p1807_p5), %s1709_s20, 4  ;;  %s1331_s27 = sshll.u32 (%p1807_p5), %s161_s11, 6 }
  0x23   : > { %s2149_s0 = sld [smem:[#allocation7_spill]] (%p1807_p5)  ;;  %s163_s23 = scalar_lea.vmem (%p1807_p5), [#allocation3], %s1331_s27 }
  0x29   : > { %s169_s5 = scalar_lea.vmem %s2149_s0, %s1423_s26 }
  0x2a   : > { %v182_v0 = vld [vmem:[%s169_s5] sm:$0xff]  ;;  %v184_v1 = vld [vmem:[%s169_s5 + $0x8] sm:$0xff] }
  0x2b   : > { %v186_v2 = vld [vmem:[%s169_s5 + $0x20] sm:$0xff]  ;;  %183 = vst [vmem:[%s163_s23] sm:$0xff] %v182_v0  ;;  %185 = vst [vmem:[%s163_s23 + $0x8] sm:$0xff] %v184_v1  ;;  %v188_v3 = vld [vmem:[%s169_s5 + $0x28] sm:$0xff] }
  0x2c   : > { %187 = vst [vmem:[%s163_s23 + $0x10] sm:$0xff] %v186_v2  ;;  %v190_v4 = vld [vmem:[%s169_s5 + $0x40] sm:$0xff]  ;;  %v192_v5 = vld [vmem:[%s169_s5 + $0x48] sm:$0xff]  ;;  %189 = vst [vmem:[%s163_s23 + $0x18] sm:$0xff] %v188_v3 }
  0x2d   : > { %191 = vst [vmem:[%s163_s23 + $0x20] sm:$0xff] %v190_v4  ;;  %193 = vst [vmem:[%s163_s23 + $0x28] sm:$0xff] %v192_v5  ;;  %v194_v6 = vld [vmem:[%s169_s5 + $0x60] sm:$0xff]  ;;  %v196_v7 = vld [vmem:[%s169_s5 + $0x68] sm:$0xff] }
  0x2e   : > { %195 = vst [vmem:[%s163_s23 + $0x30] sm:$0xff] %v194_v6  ;;  %197 = vst [vmem:[%s163_s23 + $0x38] sm:$0xff] %v196_v7 }
  0x2f PF: > { %203 = sbr.rel (!%p1821_p9) target bundleno = 89 (0x59), region = 43  ;;  %s205_s28 = sand.u32 (%p1821_p9), 1, %s1689_s15  }
  0x30   : > { %s1336_s7 = sshll.u32 (%p1821_p9), %s1713_s21, 1  ;;  %s1334_s11 = sshll.u32 (%p1821_p9), %s205_s28, 9 }
  0x31   : > { %s1424_s26 = sshll.u32 (%p1821_p9), %s1709_s20, 8  ;;  %s2150_s1 = sld [smem:[#allocation8_spill]] (%p1821_p9) }
  0x32   : > { %s211_s27 = sadd.s32 (%p1821_p9), %s1424_s26, %s1336_s7  ;;  %s1859_s6 = scalar_lea.vmem (%p1821_p9), [#allocation4], %s1334_s11 }
  0x33   : > { %s1338_s29 = sshll.u32 (%p1821_p9), %s211_s27, 2 }
  0x37   : > { %s1854_s25 = scalar_lea.vmem %s2150_s1, %s1338_s29 }
  0x38   : > { %v367_v8 = vld [vmem:[%s1854_s25] sm:$0xff]  ;;  %v369_v9 = vld [vmem:[%s1854_s25 + $0x10] sm:$0xff] }
  0x39   : > { %v371_v10 = vld [vmem:[%s1854_s25 + $0x20] sm:$0xff]  ;;  %368 = vst [vmem:[%s1859_s6] sm:$0xff] %v367_v8  ;;  %370 = vst [vmem:[%s1859_s6 + $0x8] sm:$0xff] %v369_v9  ;;  %v373_v11 = vld [vmem:[%s1854_s25 + $0x30] sm:$0xff] }
  0x3a   : > { %372 = vst [vmem:[%s1859_s6 + $0x10] sm:$0xff] %v371_v10  ;;  %v375_v12 = vld [vmem:[%s1854_s25 + $0x40] sm:$0xff]  ;;  %v377_v13 = vld [vmem:[%s1854_s25 + $0x50] sm:$0xff]  ;;  %374 = vst [vmem:[%s1859_s6 + $0x18] sm:$0xff] %v373_v11 }
  0x3b   : > { %376 = vst [vmem:[%s1859_s6 + $0x20] sm:$0xff] %v375_v12  ;;  %378 = vst [vmem:[%s1859_s6 + $0x28] sm:$0xff] %v377_v13  ;;  %v379_v14 = vld [vmem:[%s1854_s25 + $0x60] sm:$0xff]  ;;  %v381_v15 = vld [vmem:[%s1854_s25 + $0x70] sm:$0xff] }
  0x3c   : > { %v383_v16 = vld [vmem:[%s1854_s25 + $0x80] sm:$0xff]  ;;  %380 = vst [vmem:[%s1859_s6 + $0x30] sm:$0xff] %v379_v14  ;;  %382 = vst [vmem:[%s1859_s6 + $0x38] sm:$0xff] %v381_v15  ;;  %v385_v17 = vld [vmem:[%s1854_s25 + $0x90] sm:$0xff] }
  0x3d   : > { %384 = vst [vmem:[%s1859_s6 + $0x40] sm:$0xff] %v383_v16  ;;  %v387_v18 = vld [vmem:[%s1854_s25 + $0xa0] sm:$0xff]  ;;  %v389_v19 = vld [vmem:[%s1854_s25 + $0xb0] sm:$0xff]  ;;  %386 = vst [vmem:[%s1859_s6 + $0x48] sm:$0xff] %v385_v17 }
  0x3e   : > { %388 = vst [vmem:[%s1859_s6 + $0x50] sm:$0xff] %v387_v18  ;;  %390 = vst [vmem:[%s1859_s6 + $0x58] sm:$0xff] %v389_v19  ;;  %v391_v20 = vld [vmem:[%s1854_s25 + $0xc0] sm:$0xff]  ;;  %v393_v21 = vld [vmem:[%s1854_s25 + $0xd0] sm:$0xff] }
  0x3f   : > { %v395_v22 = vld [vmem:[%s1854_s25 + $0xe0] sm:$0xff]  ;;  %392 = vst [vmem:[%s1859_s6 + $0x60] sm:$0xff] %v391_v20  ;;  %394 = vst [vmem:[%s1859_s6 + $0x68] sm:$0xff] %v393_v21  ;;  %v397_v23 = vld [vmem:[%s1854_s25 + $0xf0] sm:$0xff] }
  0x40   : > { %396 = vst [vmem:[%s1859_s6 + $0x70] sm:$0xff] %v395_v22  ;;  %v399_v24 = vld [vmem:[%s1854_s25 + $0x100] sm:$0xff]  ;;  %v401_v25 = vld [vmem:[%s1854_s25 + $0x110] sm:$0xff]  ;;  %398 = vst [vmem:[%s1859_s6 + $0x78] sm:$0xff] %v397_v23 }
  0x41   : > { %400 = vst [vmem:[%s1859_s6 + $0x80] sm:$0xff] %v399_v24  ;;  %402 = vst [vmem:[%s1859_s6 + $0x88] sm:$0xff] %v401_v25  ;;  %v403_v26 = vld [vmem:[%s1854_s25 + $0x120] sm:$0xff]  ;;  %v405_v27 = vld [vmem:[%s1854_s25 + $0x130] sm:$0xff] }
  0x42   : > { %v407_v28 = vld [vmem:[%s1854_s25 + $0x140] sm:$0xff]  ;;  %404 = vst [vmem:[%s1859_s6 + $0x90] sm:$0xff] %v403_v26  ;;  %406 = vst [vmem:[%s1859_s6 + $0x98] sm:$0xff] %v405_v27  ;;  %v409_v29 = vld [vmem:[%s1854_s25 + $0x150] sm:$0xff] }
  0x43   : > { %408 = vst [vmem:[%s1859_s6 + $0xa0] sm:$0xff] %v407_v28  ;;  %v411_v30 = vld [vmem:[%s1854_s25 + $0x160] sm:$0xff]  ;;  %v413_v31 = vld [vmem:[%s1854_s25 + $0x170] sm:$0xff]  ;;  %410 = vst [vmem:[%s1859_s6 + $0xa8] sm:$0xff] %v409_v29 }
  0x44   : > { %412 = vst [vmem:[%s1859_s6 + $0xb0] sm:$0xff] %v411_v30  ;;  %414 = vst [vmem:[%s1859_s6 + $0xb8] sm:$0xff] %v413_v31  ;;  %v415_v32 = vld [vmem:[%s1854_s25 + $0x180] sm:$0xff]  ;;  %v417_v33 = vld [vmem:[%s1854_s25 + $0x190] sm:$0xff] }
  0x45   : > { %v419_v34 = vld [vmem:[%s1854_s25 + $0x1a0] sm:$0xff]  ;;  %416 = vst [vmem:[%s1859_s6 + $0xc0] sm:$0xff] %v415_v32  ;;  %418 = vst [vmem:[%s1859_s6 + $0xc8] sm:$0xff] %v417_v33  ;;  %v421_v35 = vld [vmem:[%s1854_s25 + $0x1b0] sm:$0xff] }
  0x46   : > { %420 = vst [vmem:[%s1859_s6 + $0xd0] sm:$0xff] %v419_v34  ;;  %v423_v36 = vld [vmem:[%s1854_s25 + $0x1c0] sm:$0xff]  ;;  %v425_v37 = vld [vmem:[%s1854_s25 + $0x1d0] sm:$0xff]  ;;  %422 = vst [vmem:[%s1859_s6 + $0xd8] sm:$0xff] %v421_v35 }
  0x47   : > { %424 = vst [vmem:[%s1859_s6 + $0xe0] sm:$0xff] %v423_v36  ;;  %426 = vst [vmem:[%s1859_s6 + $0xe8] sm:$0xff] %v425_v37  ;;  %v427_v38 = vld [vmem:[%s1854_s25 + $0x1e0] sm:$0xff]  ;;  %v429_v39 = vld [vmem:[%s1854_s25 + $0x1f0] sm:$0xff] }
  0x48   : > { %v431_v40 = vld [vmem:[%s1854_s25 + $0x200] sm:$0xff]  ;;  %428 = vst [vmem:[%s1859_s6 + $0xf0] sm:$0xff] %v427_v38  ;;  %430 = vst [vmem:[%s1859_s6 + $0xf8] sm:$0xff] %v429_v39  ;;  %v433_v41 = vld [vmem:[%s1854_s25 + $0x210] sm:$0xff] }
  0x49   : > { %432 = vst [vmem:[%s1859_s6 + $0x100] sm:$0xff] %v431_v40  ;;  %v435_v42 = vld [vmem:[%s1854_s25 + $0x220] sm:$0xff]  ;;  %v437_v43 = vld [vmem:[%s1854_s25 + $0x230] sm:$0xff]  ;;  %434 = vst [vmem:[%s1859_s6 + $0x108] sm:$0xff] %v433_v41 }
  0x4a   : > { %436 = vst [vmem:[%s1859_s6 + $0x110] sm:$0xff] %v435_v42  ;;  %438 = vst [vmem:[%s1859_s6 + $0x118] sm:$0xff] %v437_v43  ;;  %v439_v44 = vld [vmem:[%s1854_s25 + $0x240] sm:$0xff]  ;;  %v441_v45 = vld [vmem:[%s1854_s25 + $0x250] sm:$0xff] }
  0x4b   : > { %v443_v46 = vld [vmem:[%s1854_s25 + $0x260] sm:$0xff]  ;;  %440 = vst [vmem:[%s1859_s6 + $0x120] sm:$0xff] %v439_v44  ;;  %442 = vst [vmem:[%s1859_s6 + $0x128] sm:$0xff] %v441_v45  ;;  %v445_v47 = vld [vmem:[%s1854_s25 + $0x270] sm:$0xff] }
  0x4c   : > { %444 = vst [vmem:[%s1859_s6 + $0x130] sm:$0xff] %v443_v46  ;;  %v447_v48 = vld [vmem:[%s1854_s25 + $0x280] sm:$0xff]  ;;  %v449_v49 = vld [vmem:[%s1854_s25 + $0x290] sm:$0xff]  ;;  %446 = vst [vmem:[%s1859_s6 + $0x138] sm:$0xff] %v445_v47 }
  0x4d   : > { %448 = vst [vmem:[%s1859_s6 + $0x140] sm:$0xff] %v447_v48  ;;  %450 = vst [vmem:[%s1859_s6 + $0x148] sm:$0xff] %v449_v49  ;;  %v451_v50 = vld [vmem:[%s1854_s25 + $0x2a0] sm:$0xff]  ;;  %v453_v51 = vld [vmem:[%s1854_s25 + $0x2b0] sm:$0xff] }
  0x4e   : > { %v455_v52 = vld [vmem:[%s1854_s25 + $0x2c0] sm:$0xff]  ;;  %452 = vst [vmem:[%s1859_s6 + $0x150] sm:$0xff] %v451_v50  ;;  %454 = vst [vmem:[%s1859_s6 + $0x158] sm:$0xff] %v453_v51  ;;  %v457_v53 = vld [vmem:[%s1854_s25 + $0x2d0] sm:$0xff] }
  0x4f   : > { %456 = vst [vmem:[%s1859_s6 + $0x160] sm:$0xff] %v455_v52  ;;  %v459_v54 = vld [vmem:[%s1854_s25 + $0x2e0] sm:$0xff]  ;;  %v461_v55 = vld [vmem:[%s1854_s25 + $0x2f0] sm:$0xff]  ;;  %458 = vst [vmem:[%s1859_s6 + $0x168] sm:$0xff] %v457_v53 }
  0x50   : > { %460 = vst [vmem:[%s1859_s6 + $0x170] sm:$0xff] %v459_v54  ;;  %462 = vst [vmem:[%s1859_s6 + $0x178] sm:$0xff] %v461_v55  ;;  %v463_v56 = vld [vmem:[%s1854_s25 + $0x300] sm:$0xff]  ;;  %v465_v57 = vld [vmem:[%s1854_s25 + $0x310] sm:$0xff] }
  0x51   : > { %v467_v58 = vld [vmem:[%s1854_s25 + $0x320] sm:$0xff]  ;;  %464 = vst [vmem:[%s1859_s6 + $0x180] sm:$0xff] %v463_v56  ;;  %466 = vst [vmem:[%s1859_s6 + $0x188] sm:$0xff] %v465_v57  ;;  %v469_v59 = vld [vmem:[%s1854_s25 + $0x330] sm:$0xff] }
  0x52   : > { %468 = vst [vmem:[%s1859_s6 + $0x190] sm:$0xff] %v467_v58  ;;  %v471_v60 = vld [vmem:[%s1854_s25 + $0x340] sm:$0xff]  ;;  %v473_v61 = vld [vmem:[%s1854_s25 + $0x350] sm:$0xff]  ;;  %470 = vst [vmem:[%s1859_s6 + $0x198] sm:$0xff] %v469_v59 }
  0x53   : > { %472 = vst [vmem:[%s1859_s6 + $0x1a0] sm:$0xff] %v471_v60  ;;  %474 = vst [vmem:[%s1859_s6 + $0x1a8] sm:$0xff] %v473_v61  ;;  %v475_v62 = vld [vmem:[%s1854_s25 + $0x360] sm:$0xff]  ;;  %v477_v63 = vld [vmem:[%s1854_s25 + $0x370] sm:$0xff] }
  0x54   : > { %v479_v0 = vld [vmem:[%s1854_s25 + $0x380] sm:$0xff]  ;;  %476 = vst [vmem:[%s1859_s6 + $0x1b0] sm:$0xff] %v475_v62  ;;  %478 = vst [vmem:[%s1859_s6 + $0x1b8] sm:$0xff] %v477_v63  ;;  %v481_v1 = vld [vmem:[%s1854_s25 + $0x390] sm:$0xff] }
  0x55   : > { %480 = vst [vmem:[%s1859_s6 + $0x1c0] sm:$0xff] %v479_v0  ;;  %v483_v2 = vld [vmem:[%s1854_s25 + $0x3a0] sm:$0xff]  ;;  %v485_v3 = vld [vmem:[%s1854_s25 + $0x3b0] sm:$0xff]  ;;  %482 = vst [vmem:[%s1859_s6 + $0x1c8] sm:$0xff] %v481_v1 }
  0x56   : > { %484 = vst [vmem:[%s1859_s6 + $0x1d0] sm:$0xff] %v483_v2  ;;  %486 = vst [vmem:[%s1859_s6 + $0x1d8] sm:$0xff] %v485_v3  ;;  %v487_v4 = vld [vmem:[%s1854_s25 + $0x3c0] sm:$0xff]  ;;  %v489_v5 = vld [vmem:[%s1854_s25 + $0x3d0] sm:$0xff] }
  0x57   : > { %v491_v6 = vld [vmem:[%s1854_s25 + $0x3e0] sm:$0xff]  ;;  %488 = vst [vmem:[%s1859_s6 + $0x1e0] sm:$0xff] %v487_v4  ;;  %490 = vst [vmem:[%s1859_s6 + $0x1e8] sm:$0xff] %v489_v5  ;;  %v493_v7 = vld [vmem:[%s1854_s25 + $0x3f0] sm:$0xff] }
  0x58   : > { %492 = vst [vmem:[%s1859_s6 + $0x1f0] sm:$0xff] %v491_v6  ;;  %494 = vst [vmem:[%s1859_s6 + $0x1f8] sm:$0xff] %v493_v7 }
  0x59 PF: > { %p1339_p0 = scmp.ge.s32.totalorder %s1717_s22, 1  ;;  %p507_p1 = scmp.lt.s32.totalorder %s1717_s22, 5 }
  0x5b   : > { %p508_p2 = pnand %p1339_p0, %p507_p1 }
  0x5c   : > { %s514_s0 = sand.u32 (!%p508_p2), 1, %s1693_s16   ;;  %s521_s5 = sand.u32 (!%p508_p2), 1, %s1685_s14  }
  0x5d   : > { %511 = sbr.rel (%p508_p2) target bundleno = 420 (0x1a4), region = 85  ;;  %s1340_s23 = sshll.u32 (!%p508_p2), %s514_s0, 6 }
  0x5e   : > { %s1341_s28 = sshll.u32 (!%p508_p2), %s521_s5, 9  ;;  %s548_s7 = sand.u32 (!%p508_p2), 1, %s1677_s12  }
  0x5f   : > { %s1343_s11 = sshll.u32 (!%p508_p2), %s1705_s19, 1  ;;  %s1342_s25 = sshll.u32 (!%p508_p2), %s548_s7, 6 }
  0x60   : > { %p556_p3 = scmp.lt.s32.totalorder (!%p508_p2), %s1343_s11, 3  ;;  %s1998_s4 = scalar_lea.vmem (!%p508_p2), [#allocation3], %s1340_s23 }
  0x61   : > { %s2000_s6 = scalar_lea.vmem (!%p508_p2), [#allocation4], %s1341_s28  ;;  %s2002_s1 = scalar_lea.vmem (!%p508_p2), [#allocation5], %s1342_s25 }
  0x62   : > { %p1344_p4 = scmp.ne.s32.totalorder (!%p508_p2), %s1701_s18, 0 }
  0x64   : > { %s2169_s11 = smov (!%p556_p3, %s1343_s11), 3  ;;  %565 = sbr.rel (%p1344_p4) target bundleno = 107 (0x6b), region = 97 }
  0x65   : > { %s558_s29 = scalar_lea.vmem %s2140_s2, %s2169_s11  ;;  %v1719_v8 = vmov (!%p1344_p4), 0.0  }
  0x66   : > { %566 = vst [vmem:[#allocation2] sm:$0xff] (!%p1344_p4), %v1719_v8  ;;  %567 = vst [vmem:[#allocation2 + $0x8] sm:$0xff] (!%p1344_p4), %v1719_v8 }
  0x67   : > { %568 = vst [vmem:[#allocation2 + $0x10] sm:$0xff] (!%p1344_p4), %v1719_v8  ;;  %569 = vst [vmem:[#allocation2 + $0x18] sm:$0xff] (!%p1344_p4), %v1719_v8 }
  0x68   : > { %570 = vst [vmem:[#allocation2 + $0x20] sm:$0xff] (!%p1344_p4), %v1719_v8  ;;  %571 = vst [vmem:[#allocation2 + $0x28] sm:$0xff] (!%p1344_p4), %v1719_v8 }
  0x69   : > { %572 = vst [vmem:[#allocation2 + $0x30] sm:$0xff] (!%p1344_p4), %v1719_v8  ;;  %573 = vst [vmem:[#allocation2 + $0x38] sm:$0xff] (!%p1344_p4), %v1719_v8 }
  0x6b PF: > { %v1523_v9 = vld [vmem:[%s2000_s6 + $0x4] ss:$8 sps:$4 sm:$0xff]   ;;  %v1527_v11 = vld [vmem:[%s2000_s6] ss:$8 sps:$4 sm:$0xff]   ;;  %v1529_v13 = vld [vmem:[%s2000_s6 + $0x14] ss:$8 sps:$4 sm:$0xff]  }
  0x6c   : > { %v1525_v10 = vld [vmem:[%s2000_s6 + $0x104] ss:$8 sps:$4 sm:$0xff]   ;;  %1014 = vmatprep.subr.bf16.mxu1 %v1523_v9  ;;  %v1528_v12 = vld [vmem:[%s2000_s6 + $0x100] ss:$8 sps:$4 sm:$0xff]   ;;  %v1531_v14 = vld [vmem:[%s2000_s6 + $0x114] ss:$8 sps:$4 sm:$0xff]  }
  0x6d   : > { %1067 = vmatprep.subr.bf16.mxu0 %v1525_v10  ;;  %1015 = vmatpush1.bf16.msra.mxu1 %v1527_v11  ;;  %v1533_v15 = vld [vmem:[%s2000_s6 + $0x10] ss:$8 sps:$4 sm:$0xff]   ;;  %v1535_v17 = vld [vmem:[%s2000_s6 + $0x24] ss:$8 sps:$4 sm:$0xff]   ;;  %v1539_v19 = vld [vmem:[%s2000_s6 + $0x20] ss:$8 sps:$4 sm:$0xff]  }
  0x6e   : > { %1068 = vmatpush1.bf16.msra.mxu0 %v1528_v12  ;;  %1016 = vmatprep.subr.bf16.mxu1 %v1529_v13  ;;  %v1534_v16 = vld [vmem:[%s2000_s6 + $0x110] ss:$8 sps:$4 sm:$0xff]   ;;  %v1537_v18 = vld [vmem:[%s2000_s6 + $0x124] ss:$8 sps:$4 sm:$0xff]   ;;  %v1540_v20 = vld [vmem:[%s2000_s6 + $0x120] ss:$8 sps:$4 sm:$0xff]  }
  0x6f   : > { %1069 = vmatprep.subr.bf16.mxu0 %v1531_v14  ;;  %v1541_v21 = vld [vmem:[%s2000_s6 + $0x34] ss:$8 sps:$4 sm:$0xff]   ;;  %v1545_v23 = vld [vmem:[%s2000_s6 + $0x30] ss:$8 sps:$4 sm:$0xff]   ;;  %v1547_v25 = vld [vmem:[%s2000_s6 + $0x44] ss:$8 sps:$4 sm:$0xff]  }
  0x70   : > { %v1543_v22 = vld [vmem:[%s2000_s6 + $0x134] ss:$8 sps:$4 sm:$0xff]   ;;  %v1546_v24 = vld [vmem:[%s2000_s6 + $0x130] ss:$8 sps:$4 sm:$0xff]   ;;  %v1549_v26 = vld [vmem:[%s2000_s6 + $0x144] ss:$8 sps:$4 sm:$0xff]  }
  0x71   : > { %1017 = vmatpush1.bf16.msra.mxu1 %v1533_v15  ;;  %v1551_v27 = vld [vmem:[%s2000_s6 + $0x40] ss:$8 sps:$4 sm:$0xff]   ;;  %v1553_v29 = vld [vmem:[%s2000_s6 + $0x54] ss:$8 sps:$4 sm:$0xff]   ;;  %v1557_v31 = vld [vmem:[%s2000_s6 + $0x50] ss:$8 sps:$4 sm:$0xff]  }
  0x72   : > { %1070 = vmatpush1.bf16.msra.mxu0 %v1534_v16  ;;  %1018 = vmatprep.subr.bf16.mxu1 %v1535_v17  ;;  %v1552_v28 = vld [vmem:[%s2000_s6 + $0x140] ss:$8 sps:$4 sm:$0xff]   ;;  %v1555_v30 = vld [vmem:[%s2000_s6 + $0x154] ss:$8 sps:$4 sm:$0xff]   ;;  %v1558_v32 = vld [vmem:[%s2000_s6 + $0x150] ss:$8 sps:$4 sm:$0xff]  }
  0x73   : > { %1071 = vmatprep.subr.bf16.mxu0 %v1537_v18  ;;  %v1559_v33 = vld [vmem:[%s2000_s6 + $0x64] ss:$8 sps:$4 sm:$0xff]   ;;  %v1563_v35 = vld [vmem:[%s2000_s6 + $0x60] ss:$8 sps:$4 sm:$0xff]   ;;  %v1565_v37 = vld [vmem:[%s2000_s6 + $0x74] ss:$8 sps:$4 sm:$0xff]  }
  0x74   : > { %v1561_v34 = vld [vmem:[%s2000_s6 + $0x164] ss:$8 sps:$4 sm:$0xff]   ;;  %v1564_v36 = vld [vmem:[%s2000_s6 + $0x160] ss:$8 sps:$4 sm:$0xff]   ;;  %v1567_v38 = vld [vmem:[%s2000_s6 + $0x174] ss:$8 sps:$4 sm:$0xff]  }
  0x75   : > { %1019 = vmatpush1.bf16.msra.mxu1 %v1539_v19  ;;  %v1569_v39 = vld [vmem:[%s2000_s6 + $0x70] ss:$8 sps:$4 sm:$0xff]   ;;  %v1571_v41 = vld [vmem:[%s2000_s6 + $0x84] ss:$8 sps:$4 sm:$0xff]   ;;  %v1575_v43 = vld [vmem:[%s2000_s6 + $0x80] ss:$8 sps:$4 sm:$0xff]  }
  0x76   : > { %1072 = vmatpush1.bf16.msra.mxu0 %v1540_v20  ;;  %1020 = vmatprep.subr.bf16.mxu1 %v1541_v21  ;;  %v1570_v40 = vld [vmem:[%s2000_s6 + $0x170] ss:$8 sps:$4 sm:$0xff]   ;;  %v1573_v42 = vld [vmem:[%s2000_s6 + $0x184] ss:$8 sps:$4 sm:$0xff]   ;;  %v1576_v44 = vld [vmem:[%s2000_s6 + $0x180] ss:$8 sps:$4 sm:$0xff]  }
  0x77   : > { %1073 = vmatprep.subr.bf16.mxu0 %v1543_v22  ;;  %v1577_v45 = vld [vmem:[%s2000_s6 + $0x94] ss:$8 sps:$4 sm:$0xff]   ;;  %v1581_v47 = vld [vmem:[%s2000_s6 + $0x90] ss:$8 sps:$4 sm:$0xff]   ;;  %v1583_v49 = vld [vmem:[%s2000_s6 + $0xa4] ss:$8 sps:$4 sm:$0xff]  }
  0x78   : > { %v1579_v46 = vld [vmem:[%s2000_s6 + $0x194] ss:$8 sps:$4 sm:$0xff]   ;;  %v1582_v48 = vld [vmem:[%s2000_s6 + $0x190] ss:$8 sps:$4 sm:$0xff]   ;;  %v1585_v50 = vld [vmem:[%s2000_s6 + $0x1a4] ss:$8 sps:$4 sm:$0xff]  }
  0x79   : > { %1021 = vmatpush1.bf16.msra.mxu1 %v1545_v23  ;;  %v1587_v51 = vld [vmem:[%s2000_s6 + $0xa0] ss:$8 sps:$4 sm:$0xff]   ;;  %v1589_v53 = vld [vmem:[%s2000_s6 + $0xb4] ss:$8 sps:$4 sm:$0xff]   ;;  %v1593_v55 = vld [vmem:[%s2000_s6 + $0xb0] ss:$8 sps:$4 sm:$0xff]  }
  0x7a   : > { %1074 = vmatpush1.bf16.msra.mxu0 %v1546_v24  ;;  %1022 = vmatprep.subr.bf16.mxu1 %v1547_v25  ;;  %v1588_v52 = vld [vmem:[%s2000_s6 + $0x1a0] ss:$8 sps:$4 sm:$0xff]   ;;  %v1591_v54 = vld [vmem:[%s2000_s6 + $0x1b4] ss:$8 sps:$4 sm:$0xff]   ;;  %v1594_v56 = vld [vmem:[%s2000_s6 + $0x1b0] ss:$8 sps:$4 sm:$0xff]  }
  0x7b   : > { %1075 = vmatprep.subr.bf16.mxu0 %v1549_v26  ;;  %v1595_v57 = vld [vmem:[%s2000_s6 + $0xc4] ss:$8 sps:$4 sm:$0xff]   ;;  %v1599_v61 = vld [vmem:[%s2000_s6 + $0xc0] ss:$8 sps:$4 sm:$0xff]   ;;  %v1601_v63 = vld [vmem:[%s2000_s6 + $0xd4] ss:$8 sps:$4 sm:$0xff]  }
  0x7c   : > { %v1621_v58 = vld [vmem:[%s1998_s4 + $0x4] ss:$16 sps:$4 sm:$0xff]   ;;  %v1624_v60 = vld [vmem:[%s1998_s4 + $0xc] ss:$16 sps:$4 sm:$0xff]   ;;  %v1600_v62 = vld [vmem:[%s2000_s6 + $0x1c0] ss:$8 sps:$4 sm:$0xff]  }
  0x7d   : > { %1023 = vmatpush1.bf16.msra.mxu1 %v1551_v27  ;;  %v1597_v59 = vld [vmem:[%s2000_s6 + $0x1c4] ss:$8 sps:$4 sm:$0xff]   ;;  %1046 = vmatprep.mubr.bf16.mxu1 %v1621_v58  ;;  %v1603_v0 = vld [vmem:[%s2000_s6 + $0x1d4] ss:$8 sps:$4 sm:$0xff]   ;;  %v1605_v1 = vld [vmem:[%s2000_s6 + $0xd0] ss:$8 sps:$4 sm:$0xff]  }
  0x7e   : > { %1076 = vmatpush1.bf16.msra.mxu0 %v1552_v28  ;;  %1024 = vmatprep.subr.bf16.mxu1 %v1553_v29  ;;  %v1606_v2 = vld [vmem:[%s2000_s6 + $0x1d0] ss:$8 sps:$4 sm:$0xff]   ;;  %v1607_v3 = vld [vmem:[%s2000_s6 + $0xe4] ss:$8 sps:$4 sm:$0xff]   ;;  %v1611_v5 = vld [vmem:[%s2000_s6 + $0xe0] ss:$8 sps:$4 sm:$0xff]  }
  0x7f   : > { %1077 = vmatprep.subr.bf16.mxu0 %v1555_v30  ;;  %1099 = vmatprep.mubr.bf16.mxu0 %v1624_v60  ;;  %v1609_v4 = vld [vmem:[%s2000_s6 + $0x1e4] ss:$8 sps:$4 sm:$0xff]   ;;  %v1612_v6 = vld [vmem:[%s2000_s6 + $0x1e0] ss:$8 sps:$4 sm:$0xff]   ;;  %v1613_v7 = vld [vmem:[%s2000_s6 + $0xf4] ss:$8 sps:$4 sm:$0xff]  }
  0x80   : > { %v1615_v8 = vld [vmem:[%s2000_s6 + $0x1f4] ss:$8 sps:$4 sm:$0xff]   ;;  %v1617_v9 = vld [vmem:[%s2000_s6 + $0xf0] ss:$8 sps:$4 sm:$0xff]   ;;  %v574_v18 = vld [vmem:[#allocation2] sm:$0xff]  ;;  %p1417_p5 = scmp.ne.s32.totalorder %s1701_s18, 1 }
  0x81   : > { %1025 = vmatpush1.bf16.msra.mxu1 %v1557_v31  ;;  %v1618_v10 = vld [vmem:[%s2000_s6 + $0x1f0] ss:$8 sps:$4 sm:$0xff]   ;;  %v1625_v13 = vld [vmem:[%s1998_s4 + $0x24] ss:$16 sps:$4 sm:$0xff]   ;;  %v1627_v14 = vld [vmem:[%s1998_s4 + $0x2c] ss:$16 sps:$4 sm:$0xff]  }
  0x82   : > { %1078 = vmatpush1.bf16.msra.mxu0 %v1558_v32  ;;  %1026 = vmatprep.subr.bf16.mxu1 %v1559_v33  ;;  %v1619_v11 = vld [vmem:[%s1998_s4] ss:$16 sps:$4 sm:$0xff]   ;;  %v1622_v12 = vld [vmem:[%s1998_s4 + $0x8] ss:$16 sps:$4 sm:$0xff]  }
  0x83   : > { %1079 = vmatprep.subr.bf16.mxu0 %v1561_v34  ;;  %v1629_v15 = vld [vmem:[%s1998_s4 + $0x20] ss:$16 sps:$4 sm:$0xff]   ;;  %v1630_v16 = vld [vmem:[%s1998_s4 + $0x28] ss:$16 sps:$4 sm:$0xff]  }
  0x84   : > { %v575_v22 = vld [vmem:[#allocation2 + $0x8] sm:$0xff]  ;;  %v576_v26 = vld [vmem:[#allocation2 + $0x10] sm:$0xff]  ;;  %v577_v31 = vld [vmem:[#allocation2 + $0x18] sm:$0xff] }
  0x85   : > { %1027 = vmatpush1.bf16.msra.mxu1 %v1563_v35 }
  0x86   : > { %1080 = vmatpush1.bf16.msra.mxu0 %v1564_v36  ;;  %1028 = vmatprep.subr.bf16.mxu1 %v1565_v37 }
  0x87   : > { %1081 = vmatprep.subr.bf16.mxu0 %v1567_v38  ;;  %v578_v38 = vld [vmem:[#allocation2 + $0x20] sm:$0xff] }
  0x89   : > { %1029 = vmatpush1.bf16.msra.mxu1 %v1569_v39 }
  0x8a   : > { %1082 = vmatpush1.bf16.msra.mxu0 %v1570_v40  ;;  %1030 = vmatprep.subr.bf16.mxu1 %v1571_v41 }
  0x8b   : > { %1083 = vmatprep.subr.bf16.mxu0 %v1573_v42  ;;  %v579_v42 = vld [vmem:[#allocation2 + $0x28] sm:$0xff] }
  0x8d   : > { %1031 = vmatpush1.bf16.msra.mxu1 %v1575_v43 }
  0x8e   : > { %1084 = vmatpush1.bf16.msra.mxu0 %v1576_v44  ;;  %1032 = vmatprep.subr.bf16.mxu1 %v1577_v45 }
  0x8f   : > { %1085 = vmatprep.subr.bf16.mxu0 %v1579_v46  ;;  %v580_v46 = vld [vmem:[#allocation2 + $0x30] sm:$0xff] }
  0x91   : > { %1033 = vmatpush1.bf16.msra.mxu1 %v1581_v47 }
  0x92   : > { %1086 = vmatpush1.bf16.msra.mxu0 %v1582_v48  ;;  %1034 = vmatprep.subr.bf16.mxu1 %v1583_v49 }
  0x93   : > { %1087 = vmatprep.subr.bf16.mxu0 %v1585_v50 }
  0x95   : > { %1035 = vmatpush1.bf16.msra.mxu1 %v1587_v51  ;;  %v581_v51 = vld [vmem:[#allocation2 + $0x38] sm:$0xff] }
  0x96   : > { %1088 = vmatpush1.bf16.msra.mxu0 %v1588_v52  ;;  %1036 = vmatprep.subr.bf16.mxu1 %v1589_v53 }
  0x97   : > { %1089 = vmatprep.subr.bf16.mxu0 %v1591_v54 }
  0x99   : > { %1037 = vmatpush1.bf16.msra.mxu1 %v1593_v55 }
  0x9a   : > { %1090 = vmatpush1.bf16.msra.mxu0 %v1594_v56  ;;  %1038 = vmatprep.subr.bf16.mxu1 %v1595_v57  ;;  %v1150_v57 = vlaneseq (!%p1417_p5) }
  0x9b   : > { %1091 = vmatprep.subr.bf16.mxu0 %v1597_v59  ;;  %v1148_v59 = vld [vmem:[%s558_s29] sm:$0x3] (!%p1417_p5) }
  0x9c   : > { %v1151_v58 = vshrl.u32 (!%p1417_p5), %v1150_v57, 7 }
  0x9d   : > { %1039 = vmatpush1.bf16.msra.mxu1 %v1599_v61 }
  0x9e   : > { %1092 = vmatpush1.bf16.msra.mxu0 %v1600_v62  ;;  %1040 = vmatprep.subr.bf16.mxu1 %v1601_v63  ;;  %v1152_v61 = vsub.s32 (!%p1417_p5), 0, %v1151_v58  ;;  %v1156_v63 = vsub.s32 (!%p1417_p5), 1, %v1151_v58 }
  0x9f   : > { %1093 = vmatprep.subr.bf16.mxu0 %v1603_v0 }
  0xa1   : > { %1041 = vmatpush1.bf16.msra.mxu1 %v1605_v1 }
  0xa2   : > { %1094 = vmatpush1.bf16.msra.mxu0 %v1606_v2  ;;  %1042 = vmatprep.subr.bf16.mxu1 %v1607_v3  ;;  %v1153_v3 = vrot.slane (!%p1417_p5), %v1148_v59, %v1152_v61 }
  0xa3   : > { %1095 = vmatprep.subr.bf16.mxu0 %v1609_v4  ;;  %v1157_v4 = vrot.slane (!%p1417_p5), %v1148_v59, %v1156_v63 }
  0xa5   : > { %1043 = vmatpush1.bf16.msra.mxu1 %v1611_v5 }
  0xa6   : > { %1096 = vmatpush1.bf16.msra.mxu0 %v1612_v6  ;;  %1044 = vmatprep.subr.bf16.mxu1 %v1613_v7 }
  0xa7   : > { %1097 = vmatprep.subr.bf16.mxu0 %v1615_v8 }
  0xa9   : > { %1045 = vmatpush1.bf16.msra.mxu1 %v1617_v9 }
  0xaa   : > { %1098 = vmatpush1.bf16.msra.mxu0 %v1618_v10 }
  0xac   : > { %1047 = vmatmul.mubr.bf16.vlgmr.msra.gmra.mrb[0].mxu1 %v1619_v11 }
  0xad   : > { %1100 = vmatmul.mubr.bf16.vlgmr.msra.gmra.mrb[0].mxu0 %v1622_v12  ;;  %1056 = vmatprep.mubr.bf16.mxu1 %v1625_v13 }
  0xae   : > { %1109 = vmatprep.mubr.bf16.mxu0 %v1627_v14 }
  0xb4   : > { %1057 = vmatmul.mubr.bf16.gmra.mrb[4].mxu1 %v1629_v15 }
  0xb5   : > { %1110 = vmatmul.mubr.bf16.gmra.mrb[4].mxu0 %v1630_v16 }
 0x17f   : > { %v1048_v17 = vpop.f32.mrb[0].mxu1 }
 0x180   : > { %v1101_v19 = vpop.f32.mrb[0].mxu0  ;;  %v1050_v21 = vpop.f32.mrb[1].mxu1 }
 0x181   : > { %v1102_v20 = vadd.f32 %v1101_v19, %v1048_v17  ;;  %v1103_v23 = vpop.f32.mrb[1].mxu0  ;;  %v1052_v25 = vpop.f32.mrb[2].mxu1 }
 0x182   : > { %v1104_v24 = vadd.f32 %v1103_v23, %v1050_v21  ;;  %v1105_v27 = vpop.f32.mrb[2].mxu0  ;;  %v1054_v30 = vpop.f32.mrb[3].mxu1 }
 0x183   : > { %v1120_v28 = vadd.f32 %v1102_v20, %v574_v18  ;;  %v1106_v29 = vadd.f32 %v1105_v27, %v1052_v25  ;;  %v1107_v32 = vpop.f32.mrb[3].mxu0 }
 0x184   : > { %v1121_v33 = vadd.f32 %v1104_v24, %v575_v22  ;;  %v1108_v34 = vadd.f32 %v1107_v32, %v1054_v30 }
 0x185   : > { %1128 = vst [vmem:[#allocation2] sm:$0xff] %v1120_v28  ;;  %v1122_v35 = vadd.f32 %v1106_v29, %v576_v26 }
 0x186   : > { %1129 = vst [vmem:[#allocation2 + $0x8] sm:$0xff] %v1121_v33  ;;  %v1123_v36 = vadd.f32 %v1108_v34, %v577_v31 }
 0x187   : > { %1130 = vst [vmem:[#allocation2 + $0x10] sm:$0xff] %v1122_v35  ;;  %v1058_v37 = vpop.f32.mrb[4].mxu1 }
 0x188   : > { %1131 = vst [vmem:[#allocation2 + $0x18] sm:$0xff] %v1123_v36  ;;  %v1111_v39 = vpop.f32.mrb[4].mxu0  ;;  %v1060_v41 = vpop.f32.mrb[5].mxu1 }
 0x189   : > { %v1112_v40 = vadd.f32 %v1111_v39, %v1058_v37  ;;  %v1113_v43 = vpop.f32.mrb[5].mxu0  ;;  %v1062_v45 = vpop.f32.mrb[6].mxu1 }
 0x18a   : > { %v1114_v44 = vadd.f32 %v1113_v43, %v1060_v41  ;;  %v1115_v47 = vpop.f32.mrb[6].mxu0  ;;  %v1064_v50 = vpop.f32.mrb[7].mxu1  ;;  %1139 = sbr.rel (%p1417_p5) target bundleno = 411 (0x19b), region = 101 }
 0x18b   : > { %v1124_v48 = vadd.f32 %v1112_v40, %v578_v38  ;;  %v1116_v49 = vadd.f32 %v1115_v47, %v1062_v45  ;;  %v1117_v52 = vpop.f32.mrb[7].mxu0 }
 0x18c   : > { %v1125_v53 = vadd.f32 %v1114_v44, %v579_v42  ;;  %v1118_v54 = vadd.f32 %v1117_v52, %v1064_v50  ;;  %v1140_v60 = vld [vmem:[#allocation2] sm:$0xff] (!%p1417_p5) }
 0x18d   : > { %1132 = vst [vmem:[#allocation2 + $0x20] sm:$0xff] %v1124_v48  ;;  %v1126_v55 = vadd.f32 %v1116_v49, %v580_v46  ;;  %v1141_v62 = vld [vmem:[#allocation2 + $0x8] sm:$0xff] (!%p1417_p5)  ;;  %v1160_v8 = vadd.f32 (!%p1417_p5), %v1153_v3, %v1140_v60 }
 0x18e   : > { %1133 = vst [vmem:[#allocation2 + $0x28] sm:$0xff] %v1125_v53  ;;  %v1127_v56 = vadd.f32 %v1118_v54, %v581_v51  ;;  %v1142_v0 = vld [vmem:[#allocation2 + $0x10] sm:$0xff] (!%p1417_p5)  ;;  %v1161_v9 = vadd.f32 (!%p1417_p5), %v1157_v4, %v1141_v62 }
 0x18f   : > { %1134 = vst [vmem:[#allocation2 + $0x30] sm:$0xff] %v1126_v55  ;;  %v1143_v1 = vld [vmem:[#allocation2 + $0x18] sm:$0xff] (!%p1417_p5)  ;;  %v1162_v10 = vadd.f32 (!%p1417_p5), %v1153_v3, %v1142_v0  ;;  %1168 = vst [vmem:[%s2002_s1] sm:$0xff] (!%p1417_p5), %v1160_v8 }
 0x190   : > { %1135 = vst [vmem:[#allocation2 + $0x38] sm:$0xff] %v1127_v56  ;;  %v1163_v11 = vadd.f32 (!%p1417_p5), %v1157_v4, %v1143_v1  ;;  %1169 = vst [vmem:[%s2002_s1 + $0x8] sm:$0xff] (!%p1417_p5), %v1161_v9 }
 0x191   : > { %1170 = vst [vmem:[%s2002_s1 + $0x10] sm:$0xff] %v1162_v10 }
 0x192   : > { %1171 = vst [vmem:[%s2002_s1 + $0x18] sm:$0xff] %v1163_v11 }
 0x194   : > { %v1144_v2 = vld [vmem:[#allocation2 + $0x20] sm:$0xff] }
 0x195   : > { %v1145_v5 = vld [vmem:[#allocation2 + $0x28] sm:$0xff]  ;;  %v1164_v12 = vadd.f32 %v1153_v3, %v1144_v2 }
 0x196   : > { %v1146_v6 = vld [vmem:[#allocation2 + $0x30] sm:$0xff]  ;;  %v1165_v13 = vadd.f32 %v1157_v4, %v1145_v5 }
 0x197   : > { %v1147_v7 = vld [vmem:[#allocation2 + $0x38] sm:$0xff]  ;;  %v1166_v14 = vadd.f32 %v1153_v3, %v1146_v6  ;;  %1172 = vst [vmem:[%s2002_s1 + $0x20] sm:$0xff] %v1164_v12 }
 0x198   : > { %v1167_v15 = vadd.f32 %v1157_v4, %v1147_v7  ;;  %1173 = vst [vmem:[%s2002_s1 + $0x28] sm:$0xff] %v1165_v13 }
 0x199   : > { %1174 = vst [vmem:[%s2002_s1 + $0x30] sm:$0xff] %v1166_v14 }
 0x19a   : > { %1175 = vst [vmem:[%s2002_s1 + $0x38] sm:$0xff] %v1167_v15 }
 0x19b PF: > { %1182 = sbr.rel (!%p1834_p12) target bundleno = 420 (0x1a4), region = 105  ;;  %s1425_s16 = sshll.u32 (%p1834_p12), %s1705_s19, 4  ;;  %v1207_v19 = vld [vmem:[%s2002_s1 + $0x18] sm:$0xff] (%p1834_p12) }
 0x19c   : > { %s1188_s5 = scalar_lea.vmem (%p1834_p12), %s2141_s3, %s1425_s16 }
 0x19d   : > { %1208 = vst [vmem:[%s1188_s5 + $0x28] sm:$0xff] (%p1834_p12), %v1207_v19 }
 0x19e   : > { %v1209_v20 = vld [vmem:[%s2002_s1 + $0x20] sm:$0xff] (%p1834_p12) }
 0x19f   : > { %v1211_v21 = vld [vmem:[%s2002_s1 + $0x28] sm:$0xff] (%p1834_p12)  ;;  %1210 = vst [vmem:[%s1188_s5 + $0x40] sm:$0xff] (%p1834_p12), %v1209_v20 }
 0x1a0   : > { %v1201_v16 = vld [vmem:[%s2002_s1] sm:$0xff] (%p1834_p12)  ;;  %1212 = vst [vmem:[%s1188_s5 + $0x48] sm:$0xff] (%p1834_p12), %v1211_v21  ;;  %v1213_v22 = vld [vmem:[%s2002_s1 + $0x30] sm:$0xff] (%p1834_p12) }
 0x1a1   : > { %v1203_v17 = vld [vmem:[%s2002_s1 + $0x8] sm:$0xff] (%p1834_p12)  ;;  %1202 = vst [vmem:[%s1188_s5] sm:$0xff] (%p1834_p12), %v1201_v16  ;;  %v1215_v23 = vld [vmem:[%s2002_s1 + $0x38] sm:$0xff] (%p1834_p12)  ;;  %1214 = vst [vmem:[%s1188_s5 + $0x60] sm:$0xff] (%p1834_p12), %v1213_v22 }
 0x1a2   : > { %v1205_v18 = vld [vmem:[%s2002_s1 + $0x10] sm:$0xff]  ;;  %1204 = vst [vmem:[%s1188_s5 + $0x8] sm:$0xff] %v1203_v17  ;;  %1216 = vst [vmem:[%s1188_s5 + $0x68] sm:$0xff] %v1215_v23 }
 0x1a3   : > { %1206 = vst [vmem:[%s1188_s5 + $0x20] sm:$0xff] %v1205_v18 }
 0x1a4 PF: > { %s13_s22 = sadd.s32 1, %s1717_s22   ;;  %s2151_s10 = sld [smem:[#allocation6_spill]] }
 0x1a5   : > { %p10_p6 = scmp.ge.s32.totalorder %s13_s22, 6   ;;  %s2152_s12 = smov %s1681_s13 }
 0x1a6   : > { %s2153_s13 = smov %s1832_s9  ;;  %s2154_s14 = smov %s1689_s15 }
 0x1a7   : > { %s2155_s15 = smov %s1829_s8  ;;  %s2156_s16 = smov %s1697_s17 }
 0x1a8   : > { %s2157_s17 = smov %s1815_s30  ;;  %s2158_s18 = smov %s1709_s20 }
 0x1a9   : > { %s2159_s19 = smov %s1713_s21  ;;  %s2160_s20 = smov %s2163_s24 }
 0x1aa   : > { %s2161_s21 = smov %s2151_s10  ;;  %12 = sbr.rel (!%p10_p6) target bundleno = 9 (0x9), region = 170 }

// kernel: generator_forward.91
= control target key start
LH: loop header
LB: loop body
LE: loop exit
PB: predicated region body
PF: predicated region fallthrough
CT: control target
= control target key end

     0   :  { %s1778_s1 = inlined_call_operand.vmem [shape: bf16[512,256], index: 1, kind: input, shape index: {}]   ;;  %s1779_s0 = inlined_call_operand.vmem [shape: bf16[128,512], index: 0, kind: input, shape index: {}]   ;;  %s1780_s2 = inlined_call_operand.vmem [shape: f32[1,256], index: 2, kind: input, shape index: {}]   ;;  %s1781_s3 = inlined_call_operand.vmem [shape: f32[128,256], index: 3, kind: output, shape index: {}]  }
   0x1   :  { %v1191_v0 = vld [vmem:[%s1778_s1 + $0x4] ss:$8 sps:$4 sm:$0xff]   ;;  %v1195_v2 = vld [vmem:[%s1778_s1] ss:$8 sps:$4 sm:$0xff]   ;;  %v1197_v4 = vld [vmem:[%s1778_s1 + $0x14] ss:$8 sps:$4 sm:$0xff]  }
   0x2   :  { %v1193_v1 = vld [vmem:[%s1778_s1 + $0x104] ss:$8 sps:$4 sm:$0xff]   ;;  %658 = vmatprep.subr.bf16.mxu1 %v1191_v0  ;;  %v1196_v3 = vld [vmem:[%s1778_s1 + $0x100] ss:$8 sps:$4 sm:$0xff]   ;;  %v1199_v5 = vld [vmem:[%s1778_s1 + $0x114] ss:$8 sps:$4 sm:$0xff]  }
   0x3   :  { %771 = vmatprep.subr.bf16.mxu0 %v1193_v1  ;;  %659 = vmatpush1.bf16.msra.mxu1 %v1195_v2  ;;  %v1201_v6 = vld [vmem:[%s1778_s1 + $0x10] ss:$8 sps:$4 sm:$0xff]   ;;  %v1203_v8 = vld [vmem:[%s1778_s1 + $0x24] ss:$8 sps:$4 sm:$0xff]   ;;  %v1207_v10 = vld [vmem:[%s1778_s1 + $0x20] ss:$8 sps:$4 sm:$0xff]  }
   0x4   :  { %772 = vmatpush1.bf16.msra.mxu0 %v1196_v3  ;;  %660 = vmatprep.subr.bf16.mxu1 %v1197_v4  ;;  %v1202_v7 = vld [vmem:[%s1778_s1 + $0x110] ss:$8 sps:$4 sm:$0xff]   ;;  %v1205_v9 = vld [vmem:[%s1778_s1 + $0x124] ss:$8 sps:$4 sm:$0xff]   ;;  %v1208_v11 = vld [vmem:[%s1778_s1 + $0x120] ss:$8 sps:$4 sm:$0xff]  }
   0x5   :  { %773 = vmatprep.subr.bf16.mxu0 %v1199_v5  ;;  %v1209_v12 = vld [vmem:[%s1778_s1 + $0x34] ss:$8 sps:$4 sm:$0xff]   ;;  %v1213_v14 = vld [vmem:[%s1778_s1 + $0x30] ss:$8 sps:$4 sm:$0xff]   ;;  %v1215_v16 = vld [vmem:[%s1778_s1 + $0x44] ss:$8 sps:$4 sm:$0xff]  }
   0x6   :  { %v1211_v13 = vld [vmem:[%s1778_s1 + $0x134] ss:$8 sps:$4 sm:$0xff]   ;;  %v1214_v15 = vld [vmem:[%s1778_s1 + $0x130] ss:$8 sps:$4 sm:$0xff]   ;;  %v1217_v17 = vld [vmem:[%s1778_s1 + $0x144] ss:$8 sps:$4 sm:$0xff]  }
   0x7   :  { %661 = vmatpush1.bf16.msra.mxu1 %v1201_v6  ;;  %v1219_v18 = vld [vmem:[%s1778_s1 + $0x40] ss:$8 sps:$4 sm:$0xff]   ;;  %v1221_v20 = vld [vmem:[%s1778_s1 + $0x54] ss:$8 sps:$4 sm:$0xff]   ;;  %v1225_v22 = vld [vmem:[%s1778_s1 + $0x50] ss:$8 sps:$4 sm:$0xff]  }
   0x8   :  { %774 = vmatpush1.bf16.msra.mxu0 %v1202_v7  ;;  %662 = vmatprep.subr.bf16.mxu1 %v1203_v8  ;;  %v1220_v19 = vld [vmem:[%s1778_s1 + $0x140] ss:$8 sps:$4 sm:$0xff]   ;;  %v1223_v21 = vld [vmem:[%s1778_s1 + $0x154] ss:$8 sps:$4 sm:$0xff]   ;;  %v1226_v23 = vld [vmem:[%s1778_s1 + $0x150] ss:$8 sps:$4 sm:$0xff]  }
   0x9   :  { %775 = vmatprep.subr.bf16.mxu0 %v1205_v9  ;;  %v1227_v24 = vld [vmem:[%s1778_s1 + $0x64] ss:$8 sps:$4 sm:$0xff]   ;;  %v1231_v26 = vld [vmem:[%s1778_s1 + $0x60] ss:$8 sps:$4 sm:$0xff]   ;;  %v1233_v28 = vld [vmem:[%s1778_s1 + $0x74] ss:$8 sps:$4 sm:$0xff]  }
   0xa   :  { %v1229_v25 = vld [vmem:[%s1778_s1 + $0x164] ss:$8 sps:$4 sm:$0xff]   ;;  %v1232_v27 = vld [vmem:[%s1778_s1 + $0x160] ss:$8 sps:$4 sm:$0xff]   ;;  %v1235_v29 = vld [vmem:[%s1778_s1 + $0x174] ss:$8 sps:$4 sm:$0xff]  }
   0xb   :  { %663 = vmatpush1.bf16.msra.mxu1 %v1207_v10  ;;  %v1237_v30 = vld [vmem:[%s1778_s1 + $0x70] ss:$8 sps:$4 sm:$0xff]   ;;  %v1239_v32 = vld [vmem:[%s1778_s1 + $0x84] ss:$8 sps:$4 sm:$0xff]   ;;  %v1243_v34 = vld [vmem:[%s1778_s1 + $0x80] ss:$8 sps:$4 sm:$0xff]  }
   0xc   :  { %776 = vmatpush1.bf16.msra.mxu0 %v1208_v11  ;;  %664 = vmatprep.subr.bf16.mxu1 %v1209_v12  ;;  %v1238_v31 = vld [vmem:[%s1778_s1 + $0x170] ss:$8 sps:$4 sm:$0xff]   ;;  %v1241_v33 = vld [vmem:[%s1778_s1 + $0x184] ss:$8 sps:$4 sm:$0xff]   ;;  %v1244_v35 = vld [vmem:[%s1778_s1 + $0x180] ss:$8 sps:$4 sm:$0xff]  }
   0xd   :  { %777 = vmatprep.subr.bf16.mxu0 %v1211_v13  ;;  %v1245_v36 = vld [vmem:[%s1778_s1 + $0x94] ss:$8 sps:$4 sm:$0xff]   ;;  %v1249_v38 = vld [vmem:[%s1778_s1 + $0x90] ss:$8 sps:$4 sm:$0xff]   ;;  %v1251_v40 = vld [vmem:[%s1778_s1 + $0xa4] ss:$8 sps:$4 sm:$0xff]  }
   0xe   :  { %v1247_v37 = vld [vmem:[%s1778_s1 + $0x194] ss:$8 sps:$4 sm:$0xff]   ;;  %v1250_v39 = vld [vmem:[%s1778_s1 + $0x190] ss:$8 sps:$4 sm:$0xff]   ;;  %v1253_v41 = vld [vmem:[%s1778_s1 + $0x1a4] ss:$8 sps:$4 sm:$0xff]  }
   0xf   :  { %665 = vmatpush1.bf16.msra.mxu1 %v1213_v14  ;;  %v1255_v42 = vld [vmem:[%s1778_s1 + $0xa0] ss:$8 sps:$4 sm:$0xff]   ;;  %v1257_v44 = vld [vmem:[%s1778_s1 + $0xb4] ss:$8 sps:$4 sm:$0xff]   ;;  %v1261_v46 = vld [vmem:[%s1778_s1 + $0xb0] ss:$8 sps:$4 sm:$0xff]  }
  0x10   :  { %778 = vmatpush1.bf16.msra.mxu0 %v1214_v15  ;;  %666 = vmatprep.subr.bf16.mxu1 %v1215_v16  ;;  %v1256_v43 = vld [vmem:[%s1778_s1 + $0x1a0] ss:$8 sps:$4 sm:$0xff]   ;;  %v1259_v45 = vld [vmem:[%s1778_s1 + $0x1b4] ss:$8 sps:$4 sm:$0xff]   ;;  %v1262_v47 = vld [vmem:[%s1778_s1 + $0x1b0] ss:$8 sps:$4 sm:$0xff]  }
  0x11   :  { %779 = vmatprep.subr.bf16.mxu0 %v1217_v17  ;;  %v1263_v48 = vld [vmem:[%s1778_s1 + $0xc4] ss:$8 sps:$4 sm:$0xff]   ;;  %v1267_v52 = vld [vmem:[%s1778_s1 + $0xc0] ss:$8 sps:$4 sm:$0xff]   ;;  %v1269_v54 = vld [vmem:[%s1778_s1 + $0xd4] ss:$8 sps:$4 sm:$0xff]  }
  0x12   :  { %v1289_v49 = vld [vmem:[%s1779_s0 + $0x4] ss:$16 sps:$4 sm:$0xff]   ;;  %v1292_v51 = vld [vmem:[%s1779_s0 + $0xc] ss:$16 sps:$4 sm:$0xff]   ;;  %v1268_v53 = vld [vmem:[%s1778_s1 + $0x1c0] ss:$8 sps:$4 sm:$0xff]  }
  0x13   :  { %667 = vmatpush1.bf16.msra.mxu1 %v1219_v18  ;;  %v1265_v50 = vld [vmem:[%s1778_s1 + $0x1c4] ss:$8 sps:$4 sm:$0xff]   ;;  %690 = vmatprep.mubr.bf16.mxu1 %v1289_v49  ;;  %v1271_v55 = vld [vmem:[%s1778_s1 + $0x1d4] ss:$8 sps:$4 sm:$0xff]   ;;  %v1273_v56 = vld [vmem:[%s1778_s1 + $0xd0] ss:$8 sps:$4 sm:$0xff]  }
  0x14   :  { %780 = vmatpush1.bf16.msra.mxu0 %v1220_v19  ;;  %668 = vmatprep.subr.bf16.mxu1 %v1221_v20  ;;  %v1274_v57 = vld [vmem:[%s1778_s1 + $0x1d0] ss:$8 sps:$4 sm:$0xff]   ;;  %v1275_v58 = vld [vmem:[%s1778_s1 + $0xe4] ss:$8 sps:$4 sm:$0xff]   ;;  %v1279_v60 = vld [vmem:[%s1778_s1 + $0xe0] ss:$8 sps:$4 sm:$0xff]  }
  0x15   :  { %781 = vmatprep.subr.bf16.mxu0 %v1223_v21  ;;  %803 = vmatprep.mubr.bf16.mxu0 %v1292_v51  ;;  %v1277_v59 = vld [vmem:[%s1778_s1 + $0x1e4] ss:$8 sps:$4 sm:$0xff]   ;;  %v1280_v61 = vld [vmem:[%s1778_s1 + $0x1e0] ss:$8 sps:$4 sm:$0xff]   ;;  %v1281_v62 = vld [vmem:[%s1778_s1 + $0xf4] ss:$8 sps:$4 sm:$0xff]  }
  0x16   :  { %v1283_v63 = vld [vmem:[%s1778_s1 + $0x1f4] ss:$8 sps:$4 sm:$0xff]   ;;  %v1285_v0 = vld [vmem:[%s1778_s1 + $0xf0] ss:$8 sps:$4 sm:$0xff]  }
  0x17   :  { %669 = vmatpush1.bf16.msra.mxu1 %v1225_v22  ;;  %v1286_v1 = vld [vmem:[%s1778_s1 + $0x1f0] ss:$8 sps:$4 sm:$0xff]   ;;  %v1293_v4 = vld [vmem:[%s1779_s0 + $0x24] ss:$16 sps:$4 sm:$0xff]   ;;  %v1295_v5 = vld [vmem:[%s1779_s0 + $0x2c] ss:$16 sps:$4 sm:$0xff]  }
  0x18   :  { %782 = vmatpush1.bf16.msra.mxu0 %v1226_v23  ;;  %670 = vmatprep.subr.bf16.mxu1 %v1227_v24  ;;  %v1287_v2 = vld [vmem:[%s1779_s0] ss:$16 sps:$4 sm:$0xff]   ;;  %v1290_v3 = vld [vmem:[%s1779_s0 + $0x8] ss:$16 sps:$4 sm:$0xff]   ;;  %v1299_v8 = vld [vmem:[%s1779_s0 + $0x44] ss:$16 sps:$4 sm:$0xff]  }
  0x19   :  { %783 = vmatprep.subr.bf16.mxu0 %v1229_v25  ;;  %v1297_v6 = vld [vmem:[%s1779_s0 + $0x20] ss:$16 sps:$4 sm:$0xff]   ;;  %v1298_v7 = vld [vmem:[%s1779_s0 + $0x28] ss:$16 sps:$4 sm:$0xff]   ;;  %v1301_v9 = vld [vmem:[%s1779_s0 + $0x4c] ss:$16 sps:$4 sm:$0xff]  }
  0x1a   :  { %v1303_v10 = vld [vmem:[%s1779_s0 + $0x40] ss:$16 sps:$4 sm:$0xff]   ;;  %v1304_v11 = vld [vmem:[%s1779_s0 + $0x48] ss:$16 sps:$4 sm:$0xff]   ;;  %v1305_v12 = vld [vmem:[%s1779_s0 + $0x64] ss:$16 sps:$4 sm:$0xff]  }
  0x1b   :  { %671 = vmatpush1.bf16.msra.mxu1 %v1231_v26  ;;  %v1307_v13 = vld [vmem:[%s1779_s0 + $0x6c] ss:$16 sps:$4 sm:$0xff]   ;;  %v1309_v14 = vld [vmem:[%s1779_s0 + $0x60] ss:$16 sps:$4 sm:$0xff]   ;;  %v1310_v15 = vld [vmem:[%s1779_s0 + $0x68] ss:$16 sps:$4 sm:$0xff]  }
  0x1c   :  { %784 = vmatpush1.bf16.msra.mxu0 %v1232_v27  ;;  %672 = vmatprep.subr.bf16.mxu1 %v1233_v28  ;;  %v1311_v16 = vld [vmem:[%s1779_s0 + $0x84] ss:$16 sps:$4 sm:$0xff]   ;;  %v1313_v17 = vld [vmem:[%s1779_s0 + $0x8c] ss:$16 sps:$4 sm:$0xff]   ;;  %v1315_v18 = vld [vmem:[%s1779_s0 + $0x80] ss:$16 sps:$4 sm:$0xff]  }
  0x1d   :  { %785 = vmatprep.subr.bf16.mxu0 %v1235_v29  ;;  %v1316_v19 = vld [vmem:[%s1779_s0 + $0x88] ss:$16 sps:$4 sm:$0xff]   ;;  %v1317_v20 = vld [vmem:[%s1779_s0 + $0xa4] ss:$16 sps:$4 sm:$0xff]   ;;  %v1319_v21 = vld [vmem:[%s1779_s0 + $0xac] ss:$16 sps:$4 sm:$0xff]  }
  0x1e   :  { %v1321_v22 = vld [vmem:[%s1779_s0 + $0xa0] ss:$16 sps:$4 sm:$0xff]   ;;  %v1322_v23 = vld [vmem:[%s1779_s0 + $0xa8] ss:$16 sps:$4 sm:$0xff]   ;;  %v1323_v24 = vld [vmem:[%s1779_s0 + $0xc4] ss:$16 sps:$4 sm:$0xff]  }
  0x1f   :  { %673 = vmatpush1.bf16.msra.mxu1 %v1237_v30  ;;  %v1325_v25 = vld [vmem:[%s1779_s0 + $0xcc] ss:$16 sps:$4 sm:$0xff]   ;;  %v1327_v26 = vld [vmem:[%s1779_s0 + $0xc0] ss:$16 sps:$4 sm:$0xff]   ;;  %v1328_v27 = vld [vmem:[%s1779_s0 + $0xc8] ss:$16 sps:$4 sm:$0xff]  }
  0x20   :  { %786 = vmatpush1.bf16.msra.mxu0 %v1238_v31  ;;  %674 = vmatprep.subr.bf16.mxu1 %v1239_v32  ;;  %v1329_v28 = vld [vmem:[%s1779_s0 + $0xe4] ss:$16 sps:$4 sm:$0xff]   ;;  %v1331_v29 = vld [vmem:[%s1779_s0 + $0xec] ss:$16 sps:$4 sm:$0xff]   ;;  %v1333_v30 = vld [vmem:[%s1779_s0 + $0xe0] ss:$16 sps:$4 sm:$0xff]   ;;  %v985_v32 = vlaneseq }
  0x21   :  { %787 = vmatprep.subr.bf16.mxu0 %v1241_v33  ;;  %v1334_v31 = vld [vmem:[%s1779_s0 + $0xe8] ss:$16 sps:$4 sm:$0xff]  }
  0x22   :  { %v986_v33 = vshrl.u32 %v985_v32, 7 }
  0x23   :  { %675 = vmatpush1.bf16.msra.mxu1 %v1243_v34 }
  0x24   :  { %788 = vmatpush1.bf16.msra.mxu0 %v1244_v35  ;;  %676 = vmatprep.subr.bf16.mxu1 %v1245_v36  ;;  %v987_v34 = vsub.s32 0, %v986_v33  ;;  %v983_v35 = vld [vmem:[%s1780_s2] sm:$0x3]  ;;  %v991_v36 = vsub.s32 1, %v986_v33 }
  0x25   :  { %789 = vmatprep.subr.bf16.mxu0 %v1247_v37 }
  0x26   :  { %v1646_v37 = vrot.slane %v983_v35, %v987_v34 }
  0x27   :  { %677 = vmatpush1.bf16.msra.mxu1 %v1249_v38 }
  0x28   :  { %790 = vmatpush1.bf16.msra.mxu0 %v1250_v39  ;;  %678 = vmatprep.subr.bf16.mxu1 %v1251_v40  ;;  %v1648_v40 = vrot.slane %v983_v35, %v991_v36 }
  0x29   :  { %791 = vmatprep.subr.bf16.mxu0 %v1253_v41 }
  0x2b   :  { %679 = vmatpush1.bf16.msra.mxu1 %v1255_v42 }
  0x2c   :  { %792 = vmatpush1.bf16.msra.mxu0 %v1256_v43  ;;  %680 = vmatprep.subr.bf16.mxu1 %v1257_v44 }
  0x2d   :  { %793 = vmatprep.subr.bf16.mxu0 %v1259_v45 }
  0x2f   :  { %681 = vmatpush1.bf16.msra.mxu1 %v1261_v46 }
  0x30   :  { %794 = vmatpush1.bf16.msra.mxu0 %v1262_v47  ;;  %682 = vmatprep.subr.bf16.mxu1 %v1263_v48 }
  0x31   :  { %795 = vmatprep.subr.bf16.mxu0 %v1265_v50 }
  0x33   :  { %683 = vmatpush1.bf16.msra.mxu1 %v1267_v52 }
  0x34   :  { %796 = vmatpush1.bf16.msra.mxu0 %v1268_v53  ;;  %684 = vmatprep.subr.bf16.mxu1 %v1269_v54 }
  0x35   :  { %797 = vmatprep.subr.bf16.mxu0 %v1271_v55 }
  0x37   :  { %685 = vmatpush1.bf16.msra.mxu1 %v1273_v56 }
  0x38   :  { %798 = vmatpush1.bf16.msra.mxu0 %v1274_v57  ;;  %686 = vmatprep.subr.bf16.mxu1 %v1275_v58 }
  0x39   :  { %799 = vmatprep.subr.bf16.mxu0 %v1277_v59 }
  0x3b   :  { %687 = vmatpush1.bf16.msra.mxu1 %v1279_v60 }
  0x3c   :  { %800 = vmatpush1.bf16.msra.mxu0 %v1280_v61  ;;  %688 = vmatprep.subr.bf16.mxu1 %v1281_v62 }
  0x3d   :  { %801 = vmatprep.subr.bf16.mxu0 %v1283_v63 }
  0x3f   :  { %689 = vmatpush1.bf16.msra.mxu1 %v1285_v0 }
  0x40   :  { %802 = vmatpush1.bf16.msra.mxu0 %v1286_v1 }
  0x42   :  { %691 = vmatmul.mubr.bf16.vlgmr.msra.gmra.mrb[0].mxu1 %v1287_v2 }
  0x43   :  { %804 = vmatmul.mubr.bf16.vlgmr.msra.gmra.mrb[0].mxu0 %v1290_v3  ;;  %700 = vmatprep.mubr.bf16.mxu1 %v1293_v4 }
  0x44   :  { %813 = vmatprep.mubr.bf16.mxu0 %v1295_v5 }
  0x4a   :  { %701 = vmatmul.mubr.bf16.gmra.mrb[4].mxu1 %v1297_v6 }
  0x4b   :  { %814 = vmatmul.mubr.bf16.gmra.mrb[4].mxu0 %v1298_v7  ;;  %710 = vmatprep.mubr.bf16.mxu1 %v1299_v8 }
  0x4c   :  { %823 = vmatprep.mubr.bf16.mxu0 %v1301_v9 }
  0x52   :  { %711 = vmatmul.mubr.bf16.gmra.mrb[8].mxu1 %v1303_v10 }
  0x53   :  { %824 = vmatmul.mubr.bf16.gmra.mrb[8].mxu0 %v1304_v11  ;;  %720 = vmatprep.mubr.bf16.mxu1 %v1305_v12 }
  0x54   :  { %833 = vmatprep.mubr.bf16.mxu0 %v1307_v13 }
  0x5a   :  { %721 = vmatmul.mubr.bf16.gmra.mrb[12].mxu1 %v1309_v14 }
  0x5b   :  { %834 = vmatmul.mubr.bf16.gmra.mrb[12].mxu0 %v1310_v15  ;;  %730 = vmatprep.mubr.bf16.mxu1 %v1311_v16 }
  0x5c   :  { %843 = vmatprep.mubr.bf16.mxu0 %v1313_v17 }
  0x62   :  { %731 = vmatmul.mubr.bf16.gmra.mrb[16].mxu1 %v1315_v18 }
  0x63   :  { %844 = vmatmul.mubr.bf16.gmra.mrb[16].mxu0 %v1316_v19  ;;  %740 = vmatprep.mubr.bf16.mxu1 %v1317_v20 }
  0x64   :  { %853 = vmatprep.mubr.bf16.mxu0 %v1319_v21 }
  0x6a   :  { %741 = vmatmul.mubr.bf16.gmra.mrb[20].mxu1 %v1321_v22 }
  0x6b   :  { %854 = vmatmul.mubr.bf16.gmra.mrb[20].mxu0 %v1322_v23  ;;  %750 = vmatprep.mubr.bf16.mxu1 %v1323_v24 }
  0x6c   :  { %863 = vmatprep.mubr.bf16.mxu0 %v1325_v25 }
  0x72   :  { %751 = vmatmul.mubr.bf16.gmra.mrb[24].mxu1 %v1327_v26 }
  0x73   :  { %864 = vmatmul.mubr.bf16.gmra.mrb[24].mxu0 %v1328_v27  ;;  %760 = vmatprep.mubr.bf16.mxu1 %v1329_v28 }
  0x74   :  { %873 = vmatprep.mubr.bf16.mxu0 %v1331_v29 }
  0x7a   :  { %761 = vmatmul.mubr.bf16.gmra.mrb[28].mxu1 %v1333_v30 }
  0x7b   :  { %874 = vmatmul.mubr.bf16.gmra.mrb[28].mxu0 %v1334_v31 }
 0x115   :  { %v692_v38 = vpop.f32.mrb[0].mxu1 }
 0x116   :  { %v805_v39 = vpop.f32.mrb[0].mxu0  ;;  %v694_v42 = vpop.f32.mrb[1].mxu1 }
 0x117   :  { %v806_v41 = vadd.f32 %v805_v39, %v692_v38  ;;  %v807_v43 = vpop.f32.mrb[1].mxu0  ;;  %v696_v45 = vpop.f32.mrb[2].mxu1 }
 0x118   :  { %v808_v44 = vadd.f32 %v807_v43, %v694_v42  ;;  %v809_v46 = vpop.f32.mrb[2].mxu0  ;;  %v698_v49 = vpop.f32.mrb[3].mxu1 }
 0x119   :  { %v995_v47 = vadd.f32 %v1646_v37, %v806_v41  ;;  %v810_v48 = vadd.f32 %v809_v46, %v696_v45  ;;  %v811_v50 = vpop.f32.mrb[3].mxu0 }
 0x11a   :  { %v996_v51 = vadd.f32 %v1648_v40, %v808_v44  ;;  %v812_v52 = vadd.f32 %v811_v50, %v698_v49 }
 0x11b   :  { %1027 = vst [vmem:[%s1781_s3] sm:$0xff] %v995_v47  ;;  %v997_v53 = vadd.f32 %v1646_v37, %v810_v48 }
 0x11c   :  { %1028 = vst [vmem:[%s1781_s3 + $0x8] sm:$0xff] %v996_v51  ;;  %v998_v54 = vadd.f32 %v1648_v40, %v812_v52 }
 0x11d   :  { %1029 = vst [vmem:[%s1781_s3 + $0x10] sm:$0xff] %v997_v53  ;;  %v702_v55 = vpop.f32.mrb[4].mxu1 }
 0x11e   :  { %1030 = vst [vmem:[%s1781_s3 + $0x18] sm:$0xff] %v998_v54  ;;  %v815_v56 = vpop.f32.mrb[4].mxu0  ;;  %v704_v58 = vpop.f32.mrb[5].mxu1 }
 0x11f   :  { %v816_v57 = vadd.f32 %v815_v56, %v702_v55  ;;  %v817_v59 = vpop.f32.mrb[5].mxu0  ;;  %v706_v61 = vpop.f32.mrb[6].mxu1 }
 0x120   :  { %v818_v60 = vadd.f32 %v817_v59, %v704_v58  ;;  %v819_v62 = vpop.f32.mrb[6].mxu0  ;;  %v708_v1 = vpop.f32.mrb[7].mxu1 }
 0x121   :  { %v999_v63 = vadd.f32 %v1646_v37, %v816_v57  ;;  %v820_v0 = vadd.f32 %v819_v62, %v706_v61  ;;  %v821_v2 = vpop.f32.mrb[7].mxu0 }
 0x122   :  { %v1000_v3 = vadd.f32 %v1648_v40, %v818_v60  ;;  %v822_v4 = vadd.f32 %v821_v2, %v708_v1 }
 0x123   :  { %1031 = vst [vmem:[%s1781_s3 + $0x20] sm:$0xff] %v999_v63  ;;  %v1001_v5 = vadd.f32 %v1646_v37, %v820_v0 }
 0x124   :  { %1032 = vst [vmem:[%s1781_s3 + $0x28] sm:$0xff] %v1000_v3  ;;  %v1002_v6 = vadd.f32 %v1648_v40, %v822_v4 }
 0x125   :  { %1033 = vst [vmem:[%s1781_s3 + $0x30] sm:$0xff] %v1001_v5  ;;  %v712_v7 = vpop.f32.mrb[8].mxu1 }
 0x126   :  { %1034 = vst [vmem:[%s1781_s3 + $0x38] sm:$0xff] %v1002_v6  ;;  %v825_v8 = vpop.f32.mrb[8].mxu0  ;;  %v714_v10 = vpop.f32.mrb[9].mxu1 }
 0x127   :  { %v826_v9 = vadd.f32 %v825_v8, %v712_v7  ;;  %v827_v11 = vpop.f32.mrb[9].mxu0  ;;  %v716_v13 = vpop.f32.mrb[10].mxu1 }
 0x128   :  { %v828_v12 = vadd.f32 %v827_v11, %v714_v10  ;;  %v829_v14 = vpop.f32.mrb[10].mxu0  ;;  %v718_v17 = vpop.f32.mrb[11].mxu1 }
 0x129   :  { %v1003_v15 = vadd.f32 %v1646_v37, %v826_v9  ;;  %v830_v16 = vadd.f32 %v829_v14, %v716_v13  ;;  %v831_v18 = vpop.f32.mrb[11].mxu0 }
 0x12a   :  { %v1004_v19 = vadd.f32 %v1648_v40, %v828_v12  ;;  %v832_v20 = vadd.f32 %v831_v18, %v718_v17 }
 0x12b   :  { %1035 = vst [vmem:[%s1781_s3 + $0x40] sm:$0xff] %v1003_v15  ;;  %v1005_v21 = vadd.f32 %v1646_v37, %v830_v16 }
 0x12c   :  { %1036 = vst [vmem:[%s1781_s3 + $0x48] sm:$0xff] %v1004_v19  ;;  %v1006_v22 = vadd.f32 %v1648_v40, %v832_v20 }
 0x12d   :  { %1037 = vst [vmem:[%s1781_s3 + $0x50] sm:$0xff] %v1005_v21  ;;  %v722_v23 = vpop.f32.mrb[12].mxu1 }
 0x12e   :  { %1038 = vst [vmem:[%s1781_s3 + $0x58] sm:$0xff] %v1006_v22  ;;  %v835_v24 = vpop.f32.mrb[12].mxu0  ;;  %v724_v26 = vpop.f32.mrb[13].mxu1 }
 0x12f   :  { %v836_v25 = vadd.f32 %v835_v24, %v722_v23  ;;  %v837_v27 = vpop.f32.mrb[13].mxu0  ;;  %v726_v29 = vpop.f32.mrb[14].mxu1 }
 0x130   :  { %v838_v28 = vadd.f32 %v837_v27, %v724_v26  ;;  %v839_v30 = vpop.f32.mrb[14].mxu0  ;;  %v728_v33 = vpop.f32.mrb[15].mxu1 }
 0x131   :  { %v1007_v31 = vadd.f32 %v1646_v37, %v836_v25  ;;  %v840_v32 = vadd.f32 %v839_v30, %v726_v29  ;;  %v841_v34 = vpop.f32.mrb[15].mxu0 }
 0x132   :  { %v1008_v35 = vadd.f32 %v1648_v40, %v838_v28  ;;  %v842_v36 = vadd.f32 %v841_v34, %v728_v33 }
 0x133   :  { %1039 = vst [vmem:[%s1781_s3 + $0x60] sm:$0xff] %v1007_v31  ;;  %v1009_v38 = vadd.f32 %v1646_v37, %v840_v32 }
 0x134   :  { %1040 = vst [vmem:[%s1781_s3 + $0x68] sm:$0xff] %v1008_v35  ;;  %v1010_v39 = vadd.f32 %v1648_v40, %v842_v36 }
 0x135   :  { %1041 = vst [vmem:[%s1781_s3 + $0x70] sm:$0xff] %v1009_v38  ;;  %v732_v41 = vpop.f32.mrb[16].mxu1 }
 0x136   :  { %1042 = vst [vmem:[%s1781_s3 + $0x78] sm:$0xff] %v1010_v39  ;;  %v845_v42 = vpop.f32.mrb[16].mxu0  ;;  %v734_v44 = vpop.f32.mrb[17].mxu1 }
 0x137   :  { %v846_v43 = vadd.f32 %v845_v42, %v732_v41  ;;  %v847_v45 = vpop.f32.mrb[17].mxu0  ;;  %v736_v47 = vpop.f32.mrb[18].mxu1 }
 0x138   :  { %v848_v46 = vadd.f32 %v847_v45, %v734_v44  ;;  %v849_v48 = vpop.f32.mrb[18].mxu0  ;;  %v738_v51 = vpop.f32.mrb[19].mxu1 }
 0x139   :  { %v1011_v49 = vadd.f32 %v1646_v37, %v846_v43  ;;  %v850_v50 = vadd.f32 %v849_v48, %v736_v47  ;;  %v851_v52 = vpop.f32.mrb[19].mxu0 }
 0x13a   :  { %v1012_v53 = vadd.f32 %v1648_v40, %v848_v46  ;;  %v852_v54 = vadd.f32 %v851_v52, %v738_v51 }
 0x13b   :  { %1043 = vst [vmem:[%s1781_s3 + $0x80] sm:$0xff] %v1011_v49  ;;  %v1013_v55 = vadd.f32 %v1646_v37, %v850_v50 }
 0x13c   :  { %1044 = vst [vmem:[%s1781_s3 + $0x88] sm:$0xff] %v1012_v53  ;;  %v1014_v56 = vadd.f32 %v1648_v40, %v852_v54 }
 0x13d   :  { %1045 = vst [vmem:[%s1781_s3 + $0x90] sm:$0xff] %v1013_v55  ;;  %v742_v57 = vpop.f32.mrb[20].mxu1 }
 0x13e   :  { %1046 = vst [vmem:[%s1781_s3 + $0x98] sm:$0xff] %v1014_v56  ;;  %v855_v58 = vpop.f32.mrb[20].mxu0  ;;  %v744_v60 = vpop.f32.mrb[21].mxu1 }
 0x13f   :  { %v856_v59 = vadd.f32 %v855_v58, %v742_v57  ;;  %v857_v61 = vpop.f32.mrb[21].mxu0  ;;  %v746_v63 = vpop.f32.mrb[22].mxu1 }
 0x140   :  { %v858_v62 = vadd.f32 %v857_v61, %v744_v60  ;;  %v859_v0 = vpop.f32.mrb[22].mxu0  ;;  %v748_v3 = vpop.f32.mrb[23].mxu1 }
 0x141   :  { %v1015_v1 = vadd.f32 %v1646_v37, %v856_v59  ;;  %v860_v2 = vadd.f32 %v859_v0, %v746_v63  ;;  %v861_v4 = vpop.f32.mrb[23].mxu0 }
 0x142   :  { %v1016_v5 = vadd.f32 %v1648_v40, %v858_v62  ;;  %v862_v6 = vadd.f32 %v861_v4, %v748_v3 }
 0x143   :  { %1047 = vst [vmem:[%s1781_s3 + $0xa0] sm:$0xff] %v1015_v1  ;;  %v1017_v7 = vadd.f32 %v1646_v37, %v860_v2 }
 0x144   :  { %1048 = vst [vmem:[%s1781_s3 + $0xa8] sm:$0xff] %v1016_v5  ;;  %v1018_v8 = vadd.f32 %v1648_v40, %v862_v6 }
 0x145   :  { %1049 = vst [vmem:[%s1781_s3 + $0xb0] sm:$0xff] %v1017_v7  ;;  %v752_v9 = vpop.f32.mrb[24].mxu1 }
 0x146   :  { %1050 = vst [vmem:[%s1781_s3 + $0xb8] sm:$0xff] %v1018_v8  ;;  %v865_v10 = vpop.f32.mrb[24].mxu0  ;;  %v754_v12 = vpop.f32.mrb[25].mxu1 }
 0x147   :  { %v866_v11 = vadd.f32 %v865_v10, %v752_v9  ;;  %v867_v13 = vpop.f32.mrb[25].mxu0  ;;  %v756_v15 = vpop.f32.mrb[26].mxu1 }
 0x148   :  { %v868_v14 = vadd.f32 %v867_v13, %v754_v12  ;;  %v869_v16 = vpop.f32.mrb[26].mxu0  ;;  %v758_v19 = vpop.f32.mrb[27].mxu1 }
 0x149   :  { %v1019_v17 = vadd.f32 %v1646_v37, %v866_v11  ;;  %v870_v18 = vadd.f32 %v869_v16, %v756_v15  ;;  %v871_v20 = vpop.f32.mrb[27].mxu0 }
 0x14a   :  { %v1020_v21 = vadd.f32 %v1648_v40, %v868_v14  ;;  %v872_v22 = vadd.f32 %v871_v20, %v758_v19 }
 0x14b   :  { %1051 = vst [vmem:[%s1781_s3 + $0xc0] sm:$0xff] %v1019_v17  ;;  %v1021_v23 = vadd.f32 %v1646_v37, %v870_v18 }
 0x14c   :  { %1052 = vst [vmem:[%s1781_s3 + $0xc8] sm:$0xff] %v1020_v21  ;;  %v1022_v24 = vadd.f32 %v1648_v40, %v872_v22 }
 0x14d   :  { %1053 = vst [vmem:[%s1781_s3 + $0xd0] sm:$0xff] %v1021_v23  ;;  %v762_v25 = vpop.f32.mrb[28].mxu1 }
 0x14e   :  { %1054 = vst [vmem:[%s1781_s3 + $0xd8] sm:$0xff] %v1022_v24  ;;  %v875_v26 = vpop.f32.mrb[28].mxu0  ;;  %v764_v28 = vpop.f32.mrb[29].mxu1 }
 0x14f   :  { %v876_v27 = vadd.f32 %v875_v26, %v762_v25  ;;  %v877_v29 = vpop.f32.mrb[29].mxu0  ;;  %v766_v31 = vpop.f32.mrb[30].mxu1 }
 0x150   :  { %v878_v30 = vadd.f32 %v877_v29, %v764_v28  ;;  %v879_v32 = vpop.f32.mrb[30].mxu0  ;;  %v768_v35 = vpop.f32.mrb[31].mxu1 }
 0x151   :  { %v1023_v33 = vadd.f32 %v1646_v37, %v876_v27  ;;  %v880_v34 = vadd.f32 %v879_v32, %v766_v31  ;;  %v881_v36 = vpop.f32.mrb[31].mxu0 }
 0x152   :  { %v1024_v38 = vadd.f32 %v1648_v40, %v878_v30  ;;  %v882_v39 = vadd.f32 %v881_v36, %v768_v35 }
 0x153   :  { %1055 = vst [vmem:[%s1781_s3 + $0xe0] sm:$0xff] %v1023_v33  ;;  %v1025_v41 = vadd.f32 %v1646_v37, %v880_v34 }
 0x154   :  { %1056 = vst [vmem:[%s1781_s3 + $0xe8] sm:$0xff] %v1024_v38  ;;  %v1026_v42 = vadd.f32 %v1648_v40, %v882_v39 }
 0x155   :  { %1057 = vst [vmem:[%s1781_s3 + $0xf0] sm:$0xff] %v1025_v41 }
 0x156   :  { %1058 = vst [vmem:[%s1781_s3 + $0xf8] sm:$0xff] %v1026_v42 }

// kernel: generator_forward.93
= control target key start
LH: loop header
LB: loop body
LE: loop exit
PB: predicated region body
PF: predicated region fallthrough
CT: control target
= control target key end

     0   :  { %s2255_s12 = smov 0   ;;  %s2257_s13 = smov 0   ;;  %s2823_s0 = inlined_call_operand.vmem [shape: bf16[512,3200], index: 0, kind: input, shape index: {}]   ;;  %s2824_s1 = inlined_call_operand.vmem [shape: bf16[3200,128], index: 1, kind: input, shape index: {}]   ;;  %s2825_s2 = inlined_call_operand.vmem [shape: f32[1,128], index: 2, kind: input, shape index: {}]   ;;  %s2826_s3 = inlined_call_operand.vmem [shape: f32[512,128], index: 3, kind: output, shape index: {}]  }
   0x1   :  { %s2259_s14 = smov 0   ;;  %s2261_s15 = smov 0  }
   0x2   :  { %s2263_s16 = smov 0  }
   0x3 LB: > { %s25_s17 = sadd.s32 1, %s2228_s15  ;;  %p48_p1 = scmp.ne.s32.totalorder %s2220_s13, %s2216_s12  ;;  %s2232_s16 = sphi %s2263_s16, %s13_s16   ;;  %s2228_s15 = sphi %s2261_s15, %s2830_s15   ;;  %s2224_s14 = sphi %s2259_s14, %s2829_s14   ;;  %s2220_s13 = sphi %s2257_s13, %s2828_s13   ;;  %s2216_s12 = sphi %s2255_s12, %s2827_s12  }
   0x4   : > { %p26_p0 = scmp.ge.s32.totalorder %s25_s17, 25  ;;  %p49_p2 = scmp.eq.s32.totalorder %s2232_s16, 0 }
   0x5   : > { %s41_s19 = sadd.s32 1, %s2220_s13  ;;  %p1795_p5 = scmp.ge.s32.totalorder %s2232_s16, 25 }
   0x6   : > { %s2832_s17 = smov (%p26_p0, %s25_s17), 0  ;;  %p50_p3 = por %p49_p2, %p48_p1 }
   0x7   : > { %s37_s18 = ssub.s32 %s2228_s15, %s2832_s17  ;;  %162 = sbr.rel (%p1795_p5) target bundleno = 60 (0x3c), region = 20 }
   0x8   : > { %p39_p4 = scmp.eq.s32.totalorder %s37_s18, 0 }
   0xa   : > { %s2290_s20 = scalar_select %p39_p4, %s2220_s13, %s41_s19  }
   0xe   : > { %165 = sbr.rel (!%p50_p3) target bundleno = 60 (0x3c), region = 24  ;;  %s167_s21 = sand.u32 (%p50_p3), 1, %s2220_s13  }
   0xf   : > { %s1797_s22 = sshll.u32 (%p50_p3), %s2228_s15, 2  ;;  %s1796_s23 = sshll.u32 (%p50_p3), %s167_s21, 8 }
  0x10   : > { %s2298_s26 = scalar_lea.vmem (%p50_p3), %s2823_s0, %s1797_s22  ;;  %s2302_s27 = scalar_lea.vmem (%p50_p3), [#allocation3], %s1796_s23 }
  0x11   : > { %v190_v0 = vld [vmem:[%s2298_s26] sm:$0xf] (%p50_p3)  ;;  %v192_v1 = vld [vmem:[%s2298_s26 + $0x64] sm:$0xf] (%p50_p3)  ;;  %v194_v2 = vld [vmem:[%s2298_s26 + $0xc8] sm:$0xf] (%p50_p3) }
  0x12   : > { %191 = vst [vmem:[%s2302_s27] sm:$0xf] (%p50_p3), %v190_v0  ;;  %193 = vst [vmem:[%s2302_s27 + $0x4] sm:$0xf] (%p50_p3), %v192_v1  ;;  %v196_v3 = vld [vmem:[%s2298_s26 + $0x12c] sm:$0xf] (%p50_p3) }
  0x13   : > { %v198_v4 = vld [vmem:[%s2298_s26 + $0x190] sm:$0xf] (%p50_p3)  ;;  %195 = vst [vmem:[%s2302_s27 + $0x8] sm:$0xf] (%p50_p3), %v194_v2  ;;  %197 = vst [vmem:[%s2302_s27 + $0xc] sm:$0xf] (%p50_p3), %v196_v3 }
  0x14   : > { %199 = vst [vmem:[%s2302_s27 + $0x10] sm:$0xf] (%p50_p3), %v198_v4  ;;  %v200_v5 = vld [vmem:[%s2298_s26 + $0x1f4] sm:$0xf] (%p50_p3)  ;;  %v202_v6 = vld [vmem:[%s2298_s26 + $0x258] sm:$0xf] (%p50_p3) }
  0x15   : > { %v204_v7 = vld [vmem:[%s2298_s26 + $0x2bc] sm:$0xf]  ;;  %201 = vst [vmem:[%s2302_s27 + $0x14] sm:$0xf] %v200_v5  ;;  %203 = vst [vmem:[%s2302_s27 + $0x18] sm:$0xf] %v202_v6 }
  0x16   : > { %205 = vst [vmem:[%s2302_s27 + $0x1c] sm:$0xf] %v204_v7  ;;  %v206_v8 = vld [vmem:[%s2298_s26 + $0x320] sm:$0xf]  ;;  %v208_v9 = vld [vmem:[%s2298_s26 + $0x384] sm:$0xf] }
  0x17   : > { %v210_v10 = vld [vmem:[%s2298_s26 + $0x3e8] sm:$0xf]  ;;  %207 = vst [vmem:[%s2302_s27 + $0x20] sm:$0xf] %v206_v8  ;;  %209 = vst [vmem:[%s2302_s27 + $0x24] sm:$0xf] %v208_v9 }
  0x18   : > { %211 = vst [vmem:[%s2302_s27 + $0x28] sm:$0xf] %v210_v10  ;;  %v212_v11 = vld [vmem:[%s2298_s26 + $0x44c] sm:$0xf]  ;;  %v214_v12 = vld [vmem:[%s2298_s26 + $0x4b0] sm:$0xf] }
  0x19   : > { %v216_v13 = vld [vmem:[%s2298_s26 + $0x514] sm:$0xf]  ;;  %213 = vst [vmem:[%s2302_s27 + $0x2c] sm:$0xf] %v212_v11  ;;  %215 = vst [vmem:[%s2302_s27 + $0x30] sm:$0xf] %v214_v12 }
  0x1a   : > { %217 = vst [vmem:[%s2302_s27 + $0x34] sm:$0xf] %v216_v13  ;;  %v218_v14 = vld [vmem:[%s2298_s26 + $0x578] sm:$0xf]  ;;  %v220_v15 = vld [vmem:[%s2298_s26 + $0x5dc] sm:$0xf] }
  0x1b   : > { %v222_v16 = vld [vmem:[%s2298_s26 + $0x640] sm:$0xf]  ;;  %219 = vst [vmem:[%s2302_s27 + $0x38] sm:$0xf] %v218_v14  ;;  %221 = vst [vmem:[%s2302_s27 + $0x3c] sm:$0xf] %v220_v15 }
  0x1c   : > { %223 = vst [vmem:[%s2302_s27 + $0x40] sm:$0xf] %v222_v16  ;;  %v224_v17 = vld [vmem:[%s2298_s26 + $0x6a4] sm:$0xf]  ;;  %v226_v18 = vld [vmem:[%s2298_s26 + $0x708] sm:$0xf] }
  0x1d   : > { %v228_v19 = vld [vmem:[%s2298_s26 + $0x76c] sm:$0xf]  ;;  %225 = vst [vmem:[%s2302_s27 + $0x44] sm:$0xf] %v224_v17  ;;  %227 = vst [vmem:[%s2302_s27 + $0x48] sm:$0xf] %v226_v18 }
  0x1e   : > { %229 = vst [vmem:[%s2302_s27 + $0x4c] sm:$0xf] %v228_v19  ;;  %v230_v20 = vld [vmem:[%s2298_s26 + $0x7d0] sm:$0xf]  ;;  %v232_v21 = vld [vmem:[%s2298_s26 + $0x834] sm:$0xf] }
  0x1f   : > { %v234_v22 = vld [vmem:[%s2298_s26 + $0x898] sm:$0xf]  ;;  %231 = vst [vmem:[%s2302_s27 + $0x50] sm:$0xf] %v230_v20  ;;  %233 = vst [vmem:[%s2302_s27 + $0x54] sm:$0xf] %v232_v21 }
  0x20   : > { %235 = vst [vmem:[%s2302_s27 + $0x58] sm:$0xf] %v234_v22  ;;  %v236_v23 = vld [vmem:[%s2298_s26 + $0x8fc] sm:$0xf]  ;;  %v238_v24 = vld [vmem:[%s2298_s26 + $0x960] sm:$0xf] }
  0x21   : > { %v240_v25 = vld [vmem:[%s2298_s26 + $0x9c4] sm:$0xf]  ;;  %237 = vst [vmem:[%s2302_s27 + $0x5c] sm:$0xf] %v236_v23  ;;  %239 = vst [vmem:[%s2302_s27 + $0x60] sm:$0xf] %v238_v24 }
  0x22   : > { %241 = vst [vmem:[%s2302_s27 + $0x64] sm:$0xf] %v240_v25  ;;  %v242_v26 = vld [vmem:[%s2298_s26 + $0xa28] sm:$0xf]  ;;  %v244_v27 = vld [vmem:[%s2298_s26 + $0xa8c] sm:$0xf] }
  0x23   : > { %v246_v28 = vld [vmem:[%s2298_s26 + $0xaf0] sm:$0xf]  ;;  %243 = vst [vmem:[%s2302_s27 + $0x68] sm:$0xf] %v242_v26  ;;  %245 = vst [vmem:[%s2302_s27 + $0x6c] sm:$0xf] %v244_v27 }
  0x24   : > { %247 = vst [vmem:[%s2302_s27 + $0x70] sm:$0xf] %v246_v28  ;;  %v248_v29 = vld [vmem:[%s2298_s26 + $0xb54] sm:$0xf]  ;;  %v250_v30 = vld [vmem:[%s2298_s26 + $0xbb8] sm:$0xf] }
  0x25   : > { %v252_v31 = vld [vmem:[%s2298_s26 + $0xc1c] sm:$0xf]  ;;  %249 = vst [vmem:[%s2302_s27 + $0x74] sm:$0xf] %v248_v29  ;;  %251 = vst [vmem:[%s2302_s27 + $0x78] sm:$0xf] %v250_v30 }
  0x26   : > { %253 = vst [vmem:[%s2302_s27 + $0x7c] sm:$0xf] %v252_v31  ;;  %v254_v32 = vld [vmem:[%s2298_s26 + $0xc80] sm:$0xf]  ;;  %v256_v33 = vld [vmem:[%s2298_s26 + $0xce4] sm:$0xf] }
  0x27   : > { %v258_v34 = vld [vmem:[%s2298_s26 + $0xd48] sm:$0xf]  ;;  %255 = vst [vmem:[%s2302_s27 + $0x80] sm:$0xf] %v254_v32  ;;  %257 = vst [vmem:[%s2302_s27 + $0x84] sm:$0xf] %v256_v33 }
  0x28   : > { %259 = vst [vmem:[%s2302_s27 + $0x88] sm:$0xf] %v258_v34  ;;  %v260_v35 = vld [vmem:[%s2298_s26 + $0xdac] sm:$0xf]  ;;  %v262_v36 = vld [vmem:[%s2298_s26 + $0xe10] sm:$0xf] }
  0x29   : > { %v264_v37 = vld [vmem:[%s2298_s26 + $0xe74] sm:$0xf]  ;;  %261 = vst [vmem:[%s2302_s27 + $0x8c] sm:$0xf] %v260_v35  ;;  %263 = vst [vmem:[%s2302_s27 + $0x90] sm:$0xf] %v262_v36 }
  0x2a   : > { %265 = vst [vmem:[%s2302_s27 + $0x94] sm:$0xf] %v264_v37  ;;  %v266_v38 = vld [vmem:[%s2298_s26 + $0xed8] sm:$0xf]  ;;  %v268_v39 = vld [vmem:[%s2298_s26 + $0xf3c] sm:$0xf] }
  0x2b   : > { %v270_v40 = vld [vmem:[%s2298_s26 + $0xfa0] sm:$0xf]  ;;  %267 = vst [vmem:[%s2302_s27 + $0x98] sm:$0xf] %v266_v38  ;;  %269 = vst [vmem:[%s2302_s27 + $0x9c] sm:$0xf] %v268_v39 }
  0x2c   : > { %271 = vst [vmem:[%s2302_s27 + $0xa0] sm:$0xf] %v270_v40  ;;  %v272_v41 = vld [vmem:[%s2298_s26 + $0x1004] sm:$0xf]  ;;  %v274_v42 = vld [vmem:[%s2298_s26 + $0x1068] sm:$0xf] }
  0x2d   : > { %v276_v43 = vld [vmem:[%s2298_s26 + $0x10cc] sm:$0xf]  ;;  %273 = vst [vmem:[%s2302_s27 + $0xa4] sm:$0xf] %v272_v41  ;;  %275 = vst [vmem:[%s2302_s27 + $0xa8] sm:$0xf] %v274_v42 }
  0x2e   : > { %277 = vst [vmem:[%s2302_s27 + $0xac] sm:$0xf] %v276_v43  ;;  %v278_v44 = vld [vmem:[%s2298_s26 + $0x1130] sm:$0xf]  ;;  %v280_v45 = vld [vmem:[%s2298_s26 + $0x1194] sm:$0xf] }
  0x2f   : > { %v282_v46 = vld [vmem:[%s2298_s26 + $0x11f8] sm:$0xf]  ;;  %279 = vst [vmem:[%s2302_s27 + $0xb0] sm:$0xf] %v278_v44  ;;  %281 = vst [vmem:[%s2302_s27 + $0xb4] sm:$0xf] %v280_v45 }
  0x30   : > { %283 = vst [vmem:[%s2302_s27 + $0xb8] sm:$0xf] %v282_v46  ;;  %v284_v47 = vld [vmem:[%s2298_s26 + $0x125c] sm:$0xf]  ;;  %v286_v48 = vld [vmem:[%s2298_s26 + $0x12c0] sm:$0xf] }
  0x31   : > { %v288_v49 = vld [vmem:[%s2298_s26 + $0x1324] sm:$0xf]  ;;  %285 = vst [vmem:[%s2302_s27 + $0xbc] sm:$0xf] %v284_v47  ;;  %287 = vst [vmem:[%s2302_s27 + $0xc0] sm:$0xf] %v286_v48 }
  0x32   : > { %289 = vst [vmem:[%s2302_s27 + $0xc4] sm:$0xf] %v288_v49  ;;  %v290_v50 = vld [vmem:[%s2298_s26 + $0x1388] sm:$0xf]  ;;  %v292_v51 = vld [vmem:[%s2298_s26 + $0x13ec] sm:$0xf] }
  0x33   : > { %v294_v52 = vld [vmem:[%s2298_s26 + $0x1450] sm:$0xf]  ;;  %291 = vst [vmem:[%s2302_s27 + $0xc8] sm:$0xf] %v290_v50  ;;  %293 = vst [vmem:[%s2302_s27 + $0xcc] sm:$0xf] %v292_v51 }
  0x34   : > { %295 = vst [vmem:[%s2302_s27 + $0xd0] sm:$0xf] %v294_v52  ;;  %v296_v53 = vld [vmem:[%s2298_s26 + $0x14b4] sm:$0xf]  ;;  %v298_v54 = vld [vmem:[%s2298_s26 + $0x1518] sm:$0xf] }
  0x35   : > { %v300_v55 = vld [vmem:[%s2298_s26 + $0x157c] sm:$0xf]  ;;  %297 = vst [vmem:[%s2302_s27 + $0xd4] sm:$0xf] %v296_v53  ;;  %299 = vst [vmem:[%s2302_s27 + $0xd8] sm:$0xf] %v298_v54 }
  0x36   : > { %301 = vst [vmem:[%s2302_s27 + $0xdc] sm:$0xf] %v300_v55  ;;  %v302_v56 = vld [vmem:[%s2298_s26 + $0x15e0] sm:$0xf]  ;;  %v304_v57 = vld [vmem:[%s2298_s26 + $0x1644] sm:$0xf] }
  0x37   : > { %v306_v58 = vld [vmem:[%s2298_s26 + $0x16a8] sm:$0xf]  ;;  %303 = vst [vmem:[%s2302_s27 + $0xe0] sm:$0xf] %v302_v56  ;;  %305 = vst [vmem:[%s2302_s27 + $0xe4] sm:$0xf] %v304_v57 }
  0x38   : > { %307 = vst [vmem:[%s2302_s27 + $0xe8] sm:$0xf] %v306_v58  ;;  %v308_v59 = vld [vmem:[%s2298_s26 + $0x170c] sm:$0xf]  ;;  %v310_v60 = vld [vmem:[%s2298_s26 + $0x1770] sm:$0xf] }
  0x39   : > { %v312_v61 = vld [vmem:[%s2298_s26 + $0x17d4] sm:$0xf]  ;;  %309 = vst [vmem:[%s2302_s27 + $0xec] sm:$0xf] %v308_v59  ;;  %311 = vst [vmem:[%s2302_s27 + $0xf0] sm:$0xf] %v310_v60 }
  0x3a   : > { %313 = vst [vmem:[%s2302_s27 + $0xf4] sm:$0xf] %v312_v61  ;;  %v314_v62 = vld [vmem:[%s2298_s26 + $0x1838] sm:$0xf]  ;;  %v316_v63 = vld [vmem:[%s2298_s26 + $0x189c] sm:$0xf] }
  0x3b   : > { %315 = vst [vmem:[%s2302_s27 + $0xf8] sm:$0xf] %v314_v62  ;;  %317 = vst [vmem:[%s2302_s27 + $0xfc] sm:$0xf] %v316_v63 }
  0x3c PF: > { %p1798_p6 = scmp.ge.s32.totalorder %s2232_s16, 1  ;;  %p479_p7 = scmp.lt.s32.totalorder %s2232_s16, 26 }
  0x3e   : > { %p480_p8 = pnand %p1798_p6, %p479_p7 }
  0x3f   : > { %s486_s28 = sand.u32 (!%p480_p8), 1, %s2216_s12   ;;  %s1800_s29 = sshll.u32 (!%p480_p8), %s2224_s14, 4 }
  0x40   : > { %483 = sbr.rel (%p480_p8) target bundleno = 474 (0x1da), region = 69  ;;  %s1799_s30 = sshll.u32 (!%p480_p8), %s486_s28, 8 }
  0x41   : > { %p525_p9 = scmp.lt.s32.totalorder (!%p480_p8), %s1800_s29, 399  ;;  %s2439_s8 = scalar_lea.vmem (!%p480_p8), [#allocation3], %s1799_s30 }
  0x42   : > { %p1802_p10 = scmp.ne.s32.totalorder (!%p480_p8), %s2224_s14, 0 }
  0x47   : > { %s2834_s29 = smov (!%p525_p9, %s1800_s29), 399  ;;  %549 = sbr.rel (%p1802_p10) target bundleno = 105 (0x69), region = 77 }
  0x48   : > { %s1801_s4 = sshll.u32 %s2834_s29, 2  ;;  %v2234_v0 = vmov (!%p1802_p10), 0.0  }
  0x49   : > { %s2437_s7 = scalar_lea.vmem %s2824_s1, %s1801_s4  ;;  %550 = vst [vmem:[#allocation2] sm:$0xff] (!%p1802_p10), %v2234_v0  ;;  %551 = vst [vmem:[#allocation2 + $0x8] sm:$0xff] (!%p1802_p10), %v2234_v0 }
  0x4a   : > { %552 = vst [vmem:[#allocation2 + $0x10] sm:$0xff] (!%p1802_p10), %v2234_v0  ;;  %553 = vst [vmem:[#allocation2 + $0x18] sm:$0xff] (!%p1802_p10), %v2234_v0 }
  0x4b   : > { %554 = vst [vmem:[#allocation2 + $0x20] sm:$0xff] (!%p1802_p10), %v2234_v0  ;;  %555 = vst [vmem:[#allocation2 + $0x28] sm:$0xff] (!%p1802_p10), %v2234_v0 }
  0x4c   : > { %556 = vst [vmem:[#allocation2 + $0x30] sm:$0xff] (!%p1802_p10), %v2234_v0  ;;  %557 = vst [vmem:[#allocation2 + $0x38] sm:$0xff] (!%p1802_p10), %v2234_v0 }
  0x4d   : > { %558 = vst [vmem:[#allocation2 + $0x40] sm:$0xff] (!%p1802_p10), %v2234_v0  ;;  %559 = vst [vmem:[#allocation2 + $0x48] sm:$0xff] (!%p1802_p10), %v2234_v0 }
  0x4e   : > { %560 = vst [vmem:[#allocation2 + $0x50] sm:$0xff] %v2234_v0  ;;  %561 = vst [vmem:[#allocation2 + $0x58] sm:$0xff] %v2234_v0 }
  0x4f   : > { %562 = vst [vmem:[#allocation2 + $0x60] sm:$0xff] %v2234_v0  ;;  %563 = vst [vmem:[#allocation2 + $0x68] sm:$0xff] %v2234_v0 }
  0x50   : > { %564 = vst [vmem:[#allocation2 + $0x70] sm:$0xff] %v2234_v0  ;;  %565 = vst [vmem:[#allocation2 + $0x78] sm:$0xff] %v2234_v0 }
  0x51   : > { %566 = vst [vmem:[#allocation2 + $0x80] sm:$0xff] %v2234_v0  ;;  %567 = vst [vmem:[#allocation2 + $0x88] sm:$0xff] %v2234_v0 }
  0x52   : > { %568 = vst [vmem:[#allocation2 + $0x90] sm:$0xff] %v2234_v0  ;;  %569 = vst [vmem:[#allocation2 + $0x98] sm:$0xff] %v2234_v0 }
  0x53   : > { %570 = vst [vmem:[#allocation2 + $0xa0] sm:$0xff] %v2234_v0  ;;  %571 = vst [vmem:[#allocation2 + $0xa8] sm:$0xff] %v2234_v0 }
  0x54   : > { %572 = vst [vmem:[#allocation2 + $0xb0] sm:$0xff] %v2234_v0  ;;  %573 = vst [vmem:[#allocation2 + $0xb8] sm:$0xff] %v2234_v0 }
  0x55   : > { %574 = vst [vmem:[#allocation2 + $0xc0] sm:$0xff] %v2234_v0  ;;  %575 = vst [vmem:[#allocation2 + $0xc8] sm:$0xff] %v2234_v0 }
  0x56   : > { %576 = vst [vmem:[#allocation2 + $0xd0] sm:$0xff] %v2234_v0  ;;  %577 = vst [vmem:[#allocation2 + $0xd8] sm:$0xff] %v2234_v0 }
  0x57   : > { %578 = vst [vmem:[#allocation2 + $0xe0] sm:$0xff] %v2234_v0  ;;  %579 = vst [vmem:[#allocation2 + $0xe8] sm:$0xff] %v2234_v0 }
  0x58   : > { %580 = vst [vmem:[#allocation2 + $0xf0] sm:$0xff] %v2234_v0  ;;  %581 = vst [vmem:[#allocation2 + $0xf8] sm:$0xff] %v2234_v0 }
  0x59   : > { %582 = vst [vmem:[#allocation2 + $0x100] sm:$0xff] %v2234_v0  ;;  %583 = vst [vmem:[#allocation2 + $0x108] sm:$0xff] %v2234_v0 }
  0x5a   : > { %584 = vst [vmem:[#allocation2 + $0x110] sm:$0xff] %v2234_v0  ;;  %585 = vst [vmem:[#allocation2 + $0x118] sm:$0xff] %v2234_v0 }
  0x5b   : > { %586 = vst [vmem:[#allocation2 + $0x120] sm:$0xff] %v2234_v0  ;;  %587 = vst [vmem:[#allocation2 + $0x128] sm:$0xff] %v2234_v0 }
  0x5c   : > { %588 = vst [vmem:[#allocation2 + $0x130] sm:$0xff] %v2234_v0  ;;  %589 = vst [vmem:[#allocation2 + $0x138] sm:$0xff] %v2234_v0 }
  0x5d   : > { %590 = vst [vmem:[#allocation2 + $0x140] sm:$0xff] %v2234_v0  ;;  %591 = vst [vmem:[#allocation2 + $0x148] sm:$0xff] %v2234_v0 }
  0x5e   : > { %592 = vst [vmem:[#allocation2 + $0x150] sm:$0xff] %v2234_v0  ;;  %593 = vst [vmem:[#allocation2 + $0x158] sm:$0xff] %v2234_v0 }
  0x5f   : > { %594 = vst [vmem:[#allocation2 + $0x160] sm:$0xff] %v2234_v0  ;;  %595 = vst [vmem:[#allocation2 + $0x168] sm:$0xff] %v2234_v0 }
  0x60   : > { %596 = vst [vmem:[#allocation2 + $0x170] sm:$0xff] %v2234_v0  ;;  %597 = vst [vmem:[#allocation2 + $0x178] sm:$0xff] %v2234_v0 }
  0x61   : > { %598 = vst [vmem:[#allocation2 + $0x180] sm:$0xff] %v2234_v0  ;;  %599 = vst [vmem:[#allocation2 + $0x188] sm:$0xff] %v2234_v0 }
  0x62   : > { %600 = vst [vmem:[#allocation2 + $0x190] sm:$0xff] %v2234_v0  ;;  %601 = vst [vmem:[#allocation2 + $0x198] sm:$0xff] %v2234_v0 }
  0x63   : > { %602 = vst [vmem:[#allocation2 + $0x1a0] sm:$0xff] %v2234_v0  ;;  %603 = vst [vmem:[#allocation2 + $0x1a8] sm:$0xff] %v2234_v0 }
  0x64   : > { %604 = vst [vmem:[#allocation2 + $0x1b0] sm:$0xff] %v2234_v0  ;;  %605 = vst [vmem:[#allocation2 + $0x1b8] sm:$0xff] %v2234_v0 }
  0x65   : > { %606 = vst [vmem:[#allocation2 + $0x1c0] sm:$0xff] %v2234_v0  ;;  %607 = vst [vmem:[#allocation2 + $0x1c8] sm:$0xff] %v2234_v0 }
  0x66   : > { %608 = vst [vmem:[#allocation2 + $0x1d0] sm:$0xff] %v2234_v0  ;;  %609 = vst [vmem:[#allocation2 + $0x1d8] sm:$0xff] %v2234_v0 }
  0x67   : > { %610 = vst [vmem:[#allocation2 + $0x1e0] sm:$0xff] %v2234_v0  ;;  %611 = vst [vmem:[#allocation2 + $0x1e8] sm:$0xff] %v2234_v0 }
  0x68   : > { %612 = vst [vmem:[#allocation2 + $0x1f0] sm:$0xff] %v2234_v0  ;;  %613 = vst [vmem:[#allocation2 + $0x1f8] sm:$0xff] %v2234_v0 }
  0x69 PF: > { %v2026_v1 = vld [vmem:[%s2437_s7] sm:$0xff]   ;;  %v2027_v2 = vld [vmem:[%s2437_s7 + $0x8] sm:$0xff]   ;;  %v2028_v3 = vld [vmem:[%s2437_s7 + $0x10] sm:$0xff]   ;;  %p1843_p11 = scmp.ne.s32.totalorder %s2224_s14, 24 }
  0x6a   : > { %1889 = vmatprep.subr.bf16.mxu0 %v2026_v1  ;;  %1969 = vmatprep.subr.bf16.mxu1 %v2026_v1  ;;  %v2029_v4 = vld [vmem:[%s2437_s7 + $0x18] sm:$0xff]   ;;  %v2034_v5 = vld [vmem:[%s2439_s8] sm:$0xff]   ;;  %v2031_v8 = vld [vmem:[%s2437_s7 + $0x28] sm:$0xff]  }
  0x6b   : > { %1890 = vmatpush3.bf16.msra.mxu0 %v2026_v1  ;;  %1977 = vmatpush3.bf16.msra.mxu1 %v2026_v1  ;;  %v2035_v6 = vld [vmem:[%s2439_s8 + $0x80] sm:$0xff]   ;;  %v2032_v9 = vld [vmem:[%s2437_s7 + $0x30] sm:$0xff]   ;;  %v2033_v10 = vld [vmem:[%s2437_s7 + $0x38] sm:$0xff]  }
  0x6c   : > { %1891 = vmatprep.subr.bf16.mxu0 %v2027_v2  ;;  %1970 = vmatprep.subr.bf16.mxu1 %v2027_v2  ;;  %v2030_v7 = vld [vmem:[%s2437_s7 + $0x20] sm:$0xff]   ;;  %v2036_v11 = vld [vmem:[%s2439_s8 + $0x8] sm:$0xff]   ;;  %v2038_v13 = vld [vmem:[%s2439_s8 + $0x10] sm:$0xff]  }
  0x6d   : > { %1905 = vmatprep.mubr.bf16.mxu0 %v2034_v5  ;;  %1937 = vmatprep.mubr.bf16.mxu1 %v2035_v6  ;;  %v2037_v12 = vld [vmem:[%s2439_s8 + $0x88] sm:$0xff]   ;;  %v2039_v14 = vld [vmem:[%s2439_s8 + $0x90] sm:$0xff]   ;;  %v2040_v15 = vld [vmem:[%s2439_s8 + $0x18] sm:$0xff]  }
  0x6e   : > { %v2041_v16 = vld [vmem:[%s2439_s8 + $0x98] sm:$0xff]   ;;  %v2042_v17 = vld [vmem:[%s2439_s8 + $0x20] sm:$0xff]   ;;  %v2044_v19 = vld [vmem:[%s2439_s8 + $0x28] sm:$0xff]  }
  0x6f   : > { %1892 = vmatpush3.bf16.msra.mxu0 %v2027_v2  ;;  %1978 = vmatpush3.bf16.msra.mxu1 %v2027_v2  ;;  %v2043_v18 = vld [vmem:[%s2439_s8 + $0xa0] sm:$0xff]   ;;  %v2045_v20 = vld [vmem:[%s2439_s8 + $0xa8] sm:$0xff]   ;;  %v2046_v21 = vld [vmem:[%s2439_s8 + $0x30] sm:$0xff]  }
  0x70   : > { %1893 = vmatprep.subr.bf16.mxu0 %v2028_v3  ;;  %1971 = vmatprep.subr.bf16.mxu1 %v2028_v3  ;;  %v2047_v22 = vld [vmem:[%s2439_s8 + $0xb0] sm:$0xff]   ;;  %v2048_v23 = vld [vmem:[%s2439_s8 + $0x38] sm:$0xff]   ;;  %v2050_v25 = vld [vmem:[%s2439_s8 + $0x40] sm:$0xff]  }
  0x71   : > { %v2049_v24 = vld [vmem:[%s2439_s8 + $0xb8] sm:$0xff]   ;;  %v2051_v26 = vld [vmem:[%s2439_s8 + $0xc0] sm:$0xff]   ;;  %v2052_v27 = vld [vmem:[%s2439_s8 + $0x48] sm:$0xff]  }
  0x72   : > { %v2053_v28 = vld [vmem:[%s2439_s8 + $0xc8] sm:$0xff]   ;;  %v2054_v29 = vld [vmem:[%s2439_s8 + $0x50] sm:$0xff]   ;;  %v2056_v31 = vld [vmem:[%s2439_s8 + $0x58] sm:$0xff]  }
  0x73   : > { %1894 = vmatpush3.bf16.msra.mxu0 %v2028_v3  ;;  %1979 = vmatpush3.bf16.msra.mxu1 %v2028_v3  ;;  %v2055_v30 = vld [vmem:[%s2439_s8 + $0xd0] sm:$0xff]   ;;  %v2057_v32 = vld [vmem:[%s2439_s8 + $0xd8] sm:$0xff]   ;;  %v2058_v33 = vld [vmem:[%s2439_s8 + $0x60] sm:$0xff]  }
  0x74   : > { %1895 = vmatprep.subr.bf16.mxu0 %v2029_v4  ;;  %1972 = vmatprep.subr.bf16.mxu1 %v2029_v4  ;;  %v2059_v34 = vld [vmem:[%s2439_s8 + $0xe0] sm:$0xff]   ;;  %v2060_v35 = vld [vmem:[%s2439_s8 + $0x68] sm:$0xff]   ;;  %v2062_v37 = vld [vmem:[%s2439_s8 + $0x70] sm:$0xff]  }
  0x75   : > { %v2061_v36 = vld [vmem:[%s2439_s8 + $0xe8] sm:$0xff]   ;;  %v2063_v38 = vld [vmem:[%s2439_s8 + $0xf0] sm:$0xff]   ;;  %v2064_v39 = vld [vmem:[%s2439_s8 + $0x78] sm:$0xff]  }
  0x76   : > { %v2065_v40 = vld [vmem:[%s2439_s8 + $0xf8] sm:$0xff]   ;;  %v616_v41 = vld [vmem:[#allocation2 + $0x10] sm:$0xff]  ;;  %v614_v43 = vld [vmem:[#allocation2] sm:$0xff] }
  0x77   : > { %1896 = vmatpush3.bf16.msra.mxu0 %v2029_v4  ;;  %1980 = vmatpush3.bf16.msra.mxu1 %v2029_v4  ;;  %v648_v42 = vld [vmem:[#allocation2 + $0x110] sm:$0xff]  ;;  %v646_v44 = vld [vmem:[#allocation2 + $0x100] sm:$0xff]  ;;  %v617_v47 = vld [vmem:[#allocation2 + $0x18] sm:$0xff] }
  0x78   : > { %1897 = vmatprep.subr.bf16.mxu0 %v2030_v7  ;;  %1973 = vmatprep.subr.bf16.mxu1 %v2030_v7  ;;  %v649_v48 = vld [vmem:[#allocation2 + $0x118] sm:$0xff]  ;;  %v615_v53 = vld [vmem:[#allocation2 + $0x8] sm:$0xff]  ;;  %v620_v1 = vld [vmem:[#allocation2 + $0x30] sm:$0xff] }
  0x79   : > { %v647_v54 = vld [vmem:[#allocation2 + $0x108] sm:$0xff]  ;;  %v652_v2 = vld [vmem:[#allocation2 + $0x130] sm:$0xff]  ;;  %v618_v3 = vld [vmem:[#allocation2 + $0x20] sm:$0xff] }
  0x7a   : > { %v650_v4 = vld [vmem:[#allocation2 + $0x120] sm:$0xff] }
  0x7b   : > { %1898 = vmatpush3.bf16.msra.mxu0 %v2030_v7  ;;  %1981 = vmatpush3.bf16.msra.mxu1 %v2030_v7  ;;  %v621_v7 = vld [vmem:[#allocation2 + $0x38] sm:$0xff] }
  0x7c   : > { %1899 = vmatprep.subr.bf16.mxu0 %v2031_v8  ;;  %1974 = vmatprep.subr.bf16.mxu1 %v2031_v8 }
  0x7f   : > { %1900 = vmatpush3.bf16.msra.mxu0 %v2031_v8  ;;  %1982 = vmatpush3.bf16.msra.mxu1 %v2031_v8  ;;  %v653_v8 = vld [vmem:[#allocation2 + $0x138] sm:$0xff] }
  0x80   : > { %1901 = vmatprep.subr.bf16.mxu0 %v2032_v9  ;;  %1975 = vmatprep.subr.bf16.mxu1 %v2032_v9 }
  0x83   : > { %1902 = vmatpush3.bf16.msra.mxu0 %v2032_v9  ;;  %1983 = vmatpush3.bf16.msra.mxu1 %v2032_v9 }
  0x84   : > { %1903 = vmatprep.subr.bf16.mxu0 %v2033_v10  ;;  %1976 = vmatprep.subr.bf16.mxu1 %v2033_v10 }
  0x87   : > { %1904 = vmatpush3.bf16.msra.mxu0 %v2033_v10  ;;  %1984 = vmatpush3.bf16.msra.mxu1 %v2033_v10 }
  0x8a   : > { %1906 = vmatmul.mubr.bf16.vlgmr.msra.gmra.mrb[0].mxu0 %v2036_v11  ;;  %1938 = vmatmul.mubr.bf16.vlgmr.msra.gmra.mrb[0].mxu1 %v2037_v12 }
  0x8b   : > { %1909 = vmatprep.mubr.bf16.mxu0 %v2038_v13  ;;  %1941 = vmatprep.mubr.bf16.mxu1 %v2039_v14  ;;  %v619_v13 = vld [vmem:[#allocation2 + $0x28] sm:$0xff] }
  0x8c   : > { %v651_v14 = vld [vmem:[#allocation2 + $0x128] sm:$0xff] }
  0x92   : > { %1910 = vmatmul.mubr.bf16.gmra.mrb[4].mxu0 %v2040_v15  ;;  %1942 = vmatmul.mubr.bf16.gmra.mrb[4].mxu1 %v2041_v16 }
  0x93   : > { %1913 = vmatprep.mubr.bf16.mxu0 %v2042_v17  ;;  %1945 = vmatprep.mubr.bf16.mxu1 %v2043_v18 }
  0x9a   : > { %1914 = vmatmul.mubr.bf16.gmra.mrb[8].mxu0 %v2044_v19  ;;  %1946 = vmatmul.mubr.bf16.gmra.mrb[8].mxu1 %v2045_v20 }
  0x9b   : > { %1917 = vmatprep.mubr.bf16.mxu0 %v2046_v21  ;;  %1949 = vmatprep.mubr.bf16.mxu1 %v2047_v22 }
  0xa2   : > { %1918 = vmatmul.mubr.bf16.gmra.mrb[12].mxu0 %v2048_v23  ;;  %1950 = vmatmul.mubr.bf16.gmra.mrb[12].mxu1 %v2049_v24 }
  0xa3   : > { %1921 = vmatprep.mubr.bf16.mxu0 %v2050_v25  ;;  %1953 = vmatprep.mubr.bf16.mxu1 %v2051_v26  ;;  %v624_v25 = vld [vmem:[#allocation2 + $0x50] sm:$0xff] }
  0xa4   : > { %v656_v26 = vld [vmem:[#allocation2 + $0x150] sm:$0xff] }
  0xaa   : > { %1922 = vmatmul.mubr.bf16.gmra.mrb[16].mxu0 %v2052_v27  ;;  %1954 = vmatmul.mubr.bf16.gmra.mrb[16].mxu1 %v2053_v28  ;;  %v622_v27 = vld [vmem:[#allocation2 + $0x40] sm:$0xff] }
  0xab   : > { %1925 = vmatprep.mubr.bf16.mxu0 %v2054_v29  ;;  %1957 = vmatprep.mubr.bf16.mxu1 %v2055_v30  ;;  %v654_v28 = vld [vmem:[#allocation2 + $0x140] sm:$0xff] }
  0xb2   : > { %1926 = vmatmul.mubr.bf16.gmra.mrb[20].mxu0 %v2056_v31  ;;  %1958 = vmatmul.mubr.bf16.gmra.mrb[20].mxu1 %v2057_v32  ;;  %v625_v31 = vld [vmem:[#allocation2 + $0x58] sm:$0xff] }
  0xb3   : > { %1929 = vmatprep.mubr.bf16.mxu0 %v2058_v33  ;;  %1961 = vmatprep.mubr.bf16.mxu1 %v2059_v34  ;;  %v657_v32 = vld [vmem:[#allocation2 + $0x158] sm:$0xff] }
  0xba   : > { %1930 = vmatmul.mubr.bf16.gmra.mrb[24].mxu0 %v2060_v35  ;;  %1962 = vmatmul.mubr.bf16.gmra.mrb[24].mxu1 %v2061_v36 }
  0xbb   : > { %1933 = vmatprep.mubr.bf16.mxu0 %v2062_v37  ;;  %1965 = vmatprep.mubr.bf16.mxu1 %v2063_v38  ;;  %v623_v37 = vld [vmem:[#allocation2 + $0x48] sm:$0xff] }
  0xbc   : > { %v655_v38 = vld [vmem:[#allocation2 + $0x148] sm:$0xff] }
  0xc2   : > { %1934 = vmatmul.mubr.bf16.gmra.mrb[28].mxu0 %v2064_v39  ;;  %1966 = vmatmul.mubr.bf16.gmra.mrb[28].mxu1 %v2065_v40 }
 0x15d   : > { %v1907_v45 = vpop.f32.mrb[0].mxu0  ;;  %v1939_v46 = vpop.f32.mrb[0].mxu1 }
 0x15e   : > { %v1289_v49 = vadd.f32 %v1907_v45, %v616_v41  ;;  %v1321_v50 = vadd.f32 %v1939_v46, %v648_v42  ;;  %v1032_v51 = vpop.f32.mrb[1].mxu0  ;;  %v1160_v52 = vpop.f32.mrb[1].mxu1 }
 0x15f   : > { %v1287_v55 = vadd.f32 %v1032_v51, %v614_v43  ;;  %v1319_v56 = vadd.f32 %v1160_v52, %v646_v44  ;;  %v1908_v57 = vpop.f32.mrb[2].mxu0  ;;  %v1940_v58 = vpop.f32.mrb[2].mxu1  ;;  %v626_v51 = vld [vmem:[#allocation2 + $0x60] sm:$0xff] }
 0x160   : > { %1353 = vst [vmem:[#allocation2 + $0x10] sm:$0xff] %v1289_v49  ;;  %1385 = vst [vmem:[#allocation2 + $0x110] sm:$0xff] %v1321_v50  ;;  %v1290_v59 = vadd.f32 %v1908_v57, %v617_v47  ;;  %v1322_v60 = vadd.f32 %v1940_v58, %v649_v48  ;;  %v1035_v61 = vpop.f32.mrb[3].mxu0  ;;  %v1163_v62 = vpop.f32.mrb[3].mxu1  ;;  %v628_v49 = vld [vmem:[#allocation2 + $0x70] sm:$0xff]  ;;  %v658_v52 = vld [vmem:[#allocation2 + $0x160] sm:$0xff] }
 0x161   : > { %1351 = vst [vmem:[#allocation2] sm:$0xff] %v1287_v55  ;;  %1383 = vst [vmem:[#allocation2 + $0x100] sm:$0xff] %v1319_v56  ;;  %v1288_v63 = vadd.f32 %v1035_v61, %v615_v53  ;;  %v1320_v0 = vadd.f32 %v1163_v62, %v647_v54  ;;  %v660_v50 = vld [vmem:[#allocation2 + $0x170] sm:$0xff]  ;;  %v629_v55 = vld [vmem:[#allocation2 + $0x78] sm:$0xff] }
 0x162   : > { %1354 = vst [vmem:[#allocation2 + $0x18] sm:$0xff] %v1290_v59  ;;  %1386 = vst [vmem:[#allocation2 + $0x118] sm:$0xff] %v1322_v60  ;;  %v661_v56 = vld [vmem:[#allocation2 + $0x178] sm:$0xff]  ;;  %v627_v61 = vld [vmem:[#allocation2 + $0x68] sm:$0xff] }
 0x163   : > { %1352 = vst [vmem:[#allocation2 + $0x8] sm:$0xff] %v1288_v63  ;;  %1384 = vst [vmem:[#allocation2 + $0x108] sm:$0xff] %v1320_v0  ;;  %v659_v62 = vld [vmem:[#allocation2 + $0x168] sm:$0xff] }
 0x165   : > { %v1911_v5 = vpop.f32.mrb[4].mxu0  ;;  %v1943_v6 = vpop.f32.mrb[4].mxu1 }
 0x166   : > { %v1293_v9 = vadd.f32 %v1911_v5, %v620_v1  ;;  %v1325_v10 = vadd.f32 %v1943_v6, %v652_v2  ;;  %v1048_v11 = vpop.f32.mrb[5].mxu0  ;;  %v1176_v12 = vpop.f32.mrb[5].mxu1 }
 0x167   : > { %v1291_v15 = vadd.f32 %v1048_v11, %v618_v3  ;;  %v1323_v16 = vadd.f32 %v1176_v12, %v650_v4  ;;  %v1912_v17 = vpop.f32.mrb[6].mxu0  ;;  %v1944_v18 = vpop.f32.mrb[6].mxu1  ;;  %v630_v11 = vld [vmem:[#allocation2 + $0x80] sm:$0xff] }
 0x168   : > { %1357 = vst [vmem:[#allocation2 + $0x30] sm:$0xff] %v1293_v9  ;;  %1389 = vst [vmem:[#allocation2 + $0x130] sm:$0xff] %v1325_v10  ;;  %v1294_v19 = vadd.f32 %v1912_v17, %v621_v7  ;;  %v1326_v20 = vadd.f32 %v1944_v18, %v653_v8  ;;  %v1051_v21 = vpop.f32.mrb[7].mxu0  ;;  %v1179_v22 = vpop.f32.mrb[7].mxu1  ;;  %v632_v9 = vld [vmem:[#allocation2 + $0x90] sm:$0xff]  ;;  %v662_v12 = vld [vmem:[#allocation2 + $0x180] sm:$0xff] }
 0x169   : > { %1355 = vst [vmem:[#allocation2 + $0x20] sm:$0xff] %v1291_v15  ;;  %1387 = vst [vmem:[#allocation2 + $0x120] sm:$0xff] %v1323_v16  ;;  %v1292_v23 = vadd.f32 %v1051_v21, %v619_v13  ;;  %v1324_v24 = vadd.f32 %v1179_v22, %v651_v14  ;;  %v664_v10 = vld [vmem:[#allocation2 + $0x190] sm:$0xff]  ;;  %v633_v15 = vld [vmem:[#allocation2 + $0x98] sm:$0xff] }
 0x16a   : > { %1358 = vst [vmem:[#allocation2 + $0x38] sm:$0xff] %v1294_v19  ;;  %1390 = vst [vmem:[#allocation2 + $0x138] sm:$0xff] %v1326_v20  ;;  %v665_v16 = vld [vmem:[#allocation2 + $0x198] sm:$0xff]  ;;  %v631_v21 = vld [vmem:[#allocation2 + $0x88] sm:$0xff] }
 0x16b   : > { %1356 = vst [vmem:[#allocation2 + $0x28] sm:$0xff] %v1292_v23  ;;  %1388 = vst [vmem:[#allocation2 + $0x128] sm:$0xff] %v1324_v24  ;;  %v663_v22 = vld [vmem:[#allocation2 + $0x188] sm:$0xff] }
 0x16d   : > { %v1915_v29 = vpop.f32.mrb[8].mxu0  ;;  %v1947_v30 = vpop.f32.mrb[8].mxu1 }
 0x16e   : > { %v1297_v33 = vadd.f32 %v1915_v29, %v624_v25  ;;  %v1329_v34 = vadd.f32 %v1947_v30, %v656_v26  ;;  %v1064_v35 = vpop.f32.mrb[9].mxu0  ;;  %v1192_v36 = vpop.f32.mrb[9].mxu1 }
 0x16f   : > { %v1295_v39 = vadd.f32 %v1064_v35, %v622_v27  ;;  %v1327_v40 = vadd.f32 %v1192_v36, %v654_v28  ;;  %v1916_v41 = vpop.f32.mrb[10].mxu0  ;;  %v1948_v42 = vpop.f32.mrb[10].mxu1  ;;  %v634_v35 = vld [vmem:[#allocation2 + $0xa0] sm:$0xff] }
 0x170   : > { %1361 = vst [vmem:[#allocation2 + $0x50] sm:$0xff] %v1297_v33  ;;  %1393 = vst [vmem:[#allocation2 + $0x150] sm:$0xff] %v1329_v34  ;;  %v1298_v43 = vadd.f32 %v1916_v41, %v625_v31  ;;  %v1330_v44 = vadd.f32 %v1948_v42, %v657_v32  ;;  %v1067_v45 = vpop.f32.mrb[11].mxu0  ;;  %v1195_v46 = vpop.f32.mrb[11].mxu1  ;;  %v636_v33 = vld [vmem:[#allocation2 + $0xb0] sm:$0xff]  ;;  %v666_v36 = vld [vmem:[#allocation2 + $0x1a0] sm:$0xff] }
 0x171   : > { %1359 = vst [vmem:[#allocation2 + $0x40] sm:$0xff] %v1295_v39  ;;  %1391 = vst [vmem:[#allocation2 + $0x140] sm:$0xff] %v1327_v40  ;;  %v1296_v47 = vadd.f32 %v1067_v45, %v623_v37  ;;  %v1328_v48 = vadd.f32 %v1195_v46, %v655_v38  ;;  %v668_v34 = vld [vmem:[#allocation2 + $0x1b0] sm:$0xff]  ;;  %v637_v39 = vld [vmem:[#allocation2 + $0xb8] sm:$0xff] }
 0x172   : > { %1362 = vst [vmem:[#allocation2 + $0x58] sm:$0xff] %v1298_v43  ;;  %1394 = vst [vmem:[#allocation2 + $0x158] sm:$0xff] %v1330_v44  ;;  %v669_v40 = vld [vmem:[#allocation2 + $0x1b8] sm:$0xff]  ;;  %v635_v45 = vld [vmem:[#allocation2 + $0xa8] sm:$0xff] }
 0x173   : > { %1360 = vst [vmem:[#allocation2 + $0x48] sm:$0xff] %v1296_v47  ;;  %1392 = vst [vmem:[#allocation2 + $0x148] sm:$0xff] %v1328_v48  ;;  %v667_v46 = vld [vmem:[#allocation2 + $0x1a8] sm:$0xff] }
 0x175   : > { %v1919_v53 = vpop.f32.mrb[12].mxu0  ;;  %v1951_v54 = vpop.f32.mrb[12].mxu1 }
 0x176   : > { %v1301_v57 = vadd.f32 %v1919_v53, %v628_v49  ;;  %v1333_v58 = vadd.f32 %v1951_v54, %v660_v50  ;;  %v1080_v59 = vpop.f32.mrb[13].mxu0  ;;  %v1208_v60 = vpop.f32.mrb[13].mxu1 }
 0x177   : > { %v1299_v63 = vadd.f32 %v1080_v59, %v626_v51  ;;  %v1331_v0 = vadd.f32 %v1208_v60, %v658_v52  ;;  %v1920_v1 = vpop.f32.mrb[14].mxu0  ;;  %v1952_v2 = vpop.f32.mrb[14].mxu1  ;;  %v638_v59 = vld [vmem:[#allocation2 + $0xc0] sm:$0xff] }
 0x178   : > { %1365 = vst [vmem:[#allocation2 + $0x70] sm:$0xff] %v1301_v57  ;;  %1397 = vst [vmem:[#allocation2 + $0x170] sm:$0xff] %v1333_v58  ;;  %v1302_v3 = vadd.f32 %v1920_v1, %v629_v55  ;;  %v1334_v4 = vadd.f32 %v1952_v2, %v661_v56  ;;  %v1083_v5 = vpop.f32.mrb[15].mxu0  ;;  %v1211_v6 = vpop.f32.mrb[15].mxu1  ;;  %v640_v57 = vld [vmem:[#allocation2 + $0xd0] sm:$0xff]  ;;  %v670_v60 = vld [vmem:[#allocation2 + $0x1c0] sm:$0xff] }
 0x179   : > { %1363 = vst [vmem:[#allocation2 + $0x60] sm:$0xff] %v1299_v63  ;;  %1395 = vst [vmem:[#allocation2 + $0x160] sm:$0xff] %v1331_v0  ;;  %v1300_v7 = vadd.f32 %v1083_v5, %v627_v61  ;;  %v1332_v8 = vadd.f32 %v1211_v6, %v659_v62  ;;  %v672_v58 = vld [vmem:[#allocation2 + $0x1d0] sm:$0xff]  ;;  %v641_v63 = vld [vmem:[#allocation2 + $0xd8] sm:$0xff] }
 0x17a   : > { %1366 = vst [vmem:[#allocation2 + $0x78] sm:$0xff] %v1302_v3  ;;  %1398 = vst [vmem:[#allocation2 + $0x178] sm:$0xff] %v1334_v4  ;;  %v673_v0 = vld [vmem:[#allocation2 + $0x1d8] sm:$0xff]  ;;  %v639_v5 = vld [vmem:[#allocation2 + $0xc8] sm:$0xff] }
 0x17b   : > { %1364 = vst [vmem:[#allocation2 + $0x68] sm:$0xff] %v1300_v7  ;;  %1396 = vst [vmem:[#allocation2 + $0x168] sm:$0xff] %v1332_v8  ;;  %v671_v6 = vld [vmem:[#allocation2 + $0x1c8] sm:$0xff] }
 0x17d   : > { %v1923_v13 = vpop.f32.mrb[16].mxu0  ;;  %v1955_v14 = vpop.f32.mrb[16].mxu1 }
 0x17e   : > { %v1305_v17 = vadd.f32 %v1923_v13, %v632_v9  ;;  %v1337_v18 = vadd.f32 %v1955_v14, %v664_v10  ;;  %v1096_v19 = vpop.f32.mrb[17].mxu0  ;;  %v1224_v20 = vpop.f32.mrb[17].mxu1 }
 0x17f   : > { %v1303_v23 = vadd.f32 %v1096_v19, %v630_v11  ;;  %v1335_v24 = vadd.f32 %v1224_v20, %v662_v12  ;;  %v1924_v25 = vpop.f32.mrb[18].mxu0  ;;  %v1956_v26 = vpop.f32.mrb[18].mxu1  ;;  %v642_v19 = vld [vmem:[#allocation2 + $0xe0] sm:$0xff] }
 0x180   : > { %1369 = vst [vmem:[#allocation2 + $0x90] sm:$0xff] %v1305_v17  ;;  %1401 = vst [vmem:[#allocation2 + $0x190] sm:$0xff] %v1337_v18  ;;  %v1306_v27 = vadd.f32 %v1924_v25, %v633_v15  ;;  %v1338_v28 = vadd.f32 %v1956_v26, %v665_v16  ;;  %v1099_v29 = vpop.f32.mrb[19].mxu0  ;;  %v1227_v30 = vpop.f32.mrb[19].mxu1  ;;  %v644_v17 = vld [vmem:[#allocation2 + $0xf0] sm:$0xff]  ;;  %v674_v20 = vld [vmem:[#allocation2 + $0x1e0] sm:$0xff] }
 0x181   : > { %1367 = vst [vmem:[#allocation2 + $0x80] sm:$0xff] %v1303_v23  ;;  %1399 = vst [vmem:[#allocation2 + $0x180] sm:$0xff] %v1335_v24  ;;  %v1304_v31 = vadd.f32 %v1099_v29, %v631_v21  ;;  %v1336_v32 = vadd.f32 %v1227_v30, %v663_v22  ;;  %v676_v18 = vld [vmem:[#allocation2 + $0x1f0] sm:$0xff]  ;;  %v645_v23 = vld [vmem:[#allocation2 + $0xf8] sm:$0xff] }
 0x182   : > { %1370 = vst [vmem:[#allocation2 + $0x98] sm:$0xff] %v1306_v27  ;;  %1402 = vst [vmem:[#allocation2 + $0x198] sm:$0xff] %v1338_v28  ;;  %v677_v24 = vld [vmem:[#allocation2 + $0x1f8] sm:$0xff]  ;;  %v643_v29 = vld [vmem:[#allocation2 + $0xe8] sm:$0xff] }
 0x183   : > { %1368 = vst [vmem:[#allocation2 + $0x88] sm:$0xff] %v1304_v31  ;;  %1400 = vst [vmem:[#allocation2 + $0x188] sm:$0xff] %v1336_v32  ;;  %v675_v30 = vld [vmem:[#allocation2 + $0x1e8] sm:$0xff] }
 0x185   : > { %v1927_v37 = vpop.f32.mrb[20].mxu0  ;;  %v1959_v38 = vpop.f32.mrb[20].mxu1 }
 0x186   : > { %v1309_v41 = vadd.f32 %v1927_v37, %v636_v33  ;;  %v1341_v42 = vadd.f32 %v1959_v38, %v668_v34  ;;  %v1112_v43 = vpop.f32.mrb[21].mxu0  ;;  %v1240_v44 = vpop.f32.mrb[21].mxu1 }
 0x187   : > { %v1307_v47 = vadd.f32 %v1112_v43, %v634_v35  ;;  %v1339_v48 = vadd.f32 %v1240_v44, %v666_v36  ;;  %v1928_v49 = vpop.f32.mrb[22].mxu0  ;;  %v1960_v50 = vpop.f32.mrb[22].mxu1  ;;  %v1420_v43 = vld [vmem:[#allocation2 + $0x8] sm:$0xff] (!%p1843_p11) }
 0x188   : > { %1373 = vst [vmem:[#allocation2 + $0xb0] sm:$0xff] %v1309_v41  ;;  %1405 = vst [vmem:[#allocation2 + $0x1b0] sm:$0xff] %v1341_v42  ;;  %v1310_v51 = vadd.f32 %v1928_v49, %v637_v39  ;;  %v1342_v52 = vadd.f32 %v1960_v50, %v669_v40  ;;  %v1115_v53 = vpop.f32.mrb[23].mxu0  ;;  %v1243_v54 = vpop.f32.mrb[23].mxu1  ;;  %v1419_v41 = vld [vmem:[#allocation2] sm:$0xff] (!%p1843_p11) }
 0x189   : > { %1371 = vst [vmem:[#allocation2 + $0xa0] sm:$0xff] %v1307_v47  ;;  %1403 = vst [vmem:[#allocation2 + $0x1a0] sm:$0xff] %v1339_v48  ;;  %v1308_v55 = vadd.f32 %v1115_v53, %v635_v45  ;;  %v1340_v56 = vadd.f32 %v1243_v54, %v667_v46  ;;  %v2550_v42 = vld [vmem:[%s2825_s2] ss:$0 sm:$0xff] (!%p1843_p11)  ;;  %v1421_v46 = vld [vmem:[#allocation2 + $0x10] sm:$0xff] (!%p1843_p11) }
 0x18a   : > { %1374 = vst [vmem:[#allocation2 + $0xb8] sm:$0xff] %v1310_v51  ;;  %1406 = vst [vmem:[#allocation2 + $0x1b8] sm:$0xff] %v1342_v52  ;;  %v1490_v44 = vadd.f32 (!%p1843_p11), %v2550_v42, %v1419_v41  ;;  %v1491_v45 = vadd.f32 (!%p1843_p11), %v2550_v42, %v1420_v43  ;;  %v1422_v47 = vld [vmem:[#allocation2 + $0x18] sm:$0xff] (!%p1843_p11)  ;;  %v1423_v48 = vld [vmem:[#allocation2 + $0x20] sm:$0xff] (!%p1843_p11)  ;;  %v1492_v49 = vadd.f32 (!%p1843_p11), %v2550_v42, %v1421_v46 }
 0x18b   : > { %1372 = vst [vmem:[#allocation2 + $0xa8] sm:$0xff] %v1308_v55  ;;  %1404 = vst [vmem:[#allocation2 + $0x1a8] sm:$0xff] %v1340_v56  ;;  %v1493_v50 = vadd.f32 (!%p1843_p11), %v2550_v42, %v1422_v47  ;;  %v1424_v51 = vld [vmem:[#allocation2 + $0x28] sm:$0xff] (!%p1843_p11)  ;;  %v1425_v52 = vld [vmem:[#allocation2 + $0x30] sm:$0xff] (!%p1843_p11)  ;;  %v1494_v53 = vadd.f32 (!%p1843_p11), %v2550_v42, %v1423_v48 }
 0x18c   : > { %2066 = vtanh.f32 (!%p1843_p11), %v1490_v44  ;;  %v1426_v54 = vld [vmem:[#allocation2 + $0x38] sm:$0xff] (!%p1843_p11)  ;;  %v1495_v55 = vadd.f32 (!%p1843_p11), %v2550_v42, %v1424_v51  ;;  %v1427_v56 = vld [vmem:[#allocation2 + $0x40] sm:$0xff] (!%p1843_p11) }
 0x18d   : > { %v1931_v61 = vpop.f32.mrb[24].mxu0  ;;  %v1963_v62 = vpop.f32.mrb[24].mxu1  ;;  %2068 = vtanh.f32 (!%p1843_p11), %v1491_v45 }
 0x18e   : > { %v1313_v1 = vadd.f32 %v1931_v61, %v640_v57  ;;  %v1345_v2 = vadd.f32 %v1963_v62, %v672_v58  ;;  %v1128_v3 = vpop.f32.mrb[25].mxu0  ;;  %v1256_v4 = vpop.f32.mrb[25].mxu1  ;;  %2070 = vtanh.f32 (!%p1843_p11), %v1492_v49  ;;  %v1496_v57 = vadd.f32 (!%p1843_p11), %v2550_v42, %v1425_v52  ;;  %v1428_v58 = vld [vmem:[#allocation2 + $0x48] sm:$0xff] (!%p1843_p11)  ;;  %v1430_v62 = vld [vmem:[#allocation2 + $0x58] sm:$0xff] (!%p1843_p11) }
 0x18f   : > { %v1311_v7 = vadd.f32 %v1128_v3, %v638_v59  ;;  %v1343_v8 = vadd.f32 %v1256_v4, %v670_v60  ;;  %v1932_v9 = vpop.f32.mrb[26].mxu0  ;;  %v1964_v10 = vpop.f32.mrb[26].mxu1  ;;  %2072 = vtanh.f32 (!%p1843_p11), %v1493_v50  ;;  %v1497_v59 = vadd.f32 (!%p1843_p11), %v2550_v42, %v1426_v54  ;;  %v1429_v60 = vld [vmem:[#allocation2 + $0x50] sm:$0xff] (!%p1843_p11) }
 0x190   : > { %1377 = vst [vmem:[#allocation2 + $0xd0] sm:$0xff] %v1313_v1  ;;  %1409 = vst [vmem:[#allocation2 + $0x1d0] sm:$0xff] %v1345_v2  ;;  %v1314_v11 = vadd.f32 %v1932_v9, %v641_v63  ;;  %v1346_v12 = vadd.f32 %v1964_v10, %v673_v0  ;;  %v1131_v13 = vpop.f32.mrb[27].mxu0  ;;  %v1259_v14 = vpop.f32.mrb[27].mxu1  ;;  %2074 = vtanh.f32 (!%p1843_p11), %v1494_v53  ;;  %v1498_v61 = vadd.f32 (!%p1843_p11), %v2550_v42, %v1427_v56  ;;  %v1431_v0 = vld [vmem:[#allocation2 + $0x60] sm:$0xff] (!%p1843_p11)  ;;  %v1432_v2 = vld [vmem:[#allocation2 + $0x68] sm:$0xff] (!%p1843_p11) }
 0x191   : > { %1375 = vst [vmem:[#allocation2 + $0xc0] sm:$0xff] %v1311_v7  ;;  %1407 = vst [vmem:[#allocation2 + $0x1c0] sm:$0xff] %v1343_v8  ;;  %v1312_v15 = vadd.f32 %v1131_v13, %v639_v5  ;;  %v1344_v16 = vadd.f32 %v1259_v14, %v671_v6  ;;  %2076 = vtanh.f32 (!%p1843_p11), %v1495_v55  ;;  %v1499_v63 = vadd.f32 (!%p1843_p11), %v2550_v42, %v1428_v58  ;;  %v1433_v4 = vld [vmem:[#allocation2 + $0x70] sm:$0xff] (!%p1843_p11)  ;;  %v1434_v6 = vld [vmem:[#allocation2 + $0x78] sm:$0xff] (!%p1843_p11) }
 0x192   : > { %1378 = vst [vmem:[#allocation2 + $0xd8] sm:$0xff] %v1314_v11  ;;  %1410 = vst [vmem:[#allocation2 + $0x1d8] sm:$0xff] %v1346_v12  ;;  %2078 = vtanh.f32 (!%p1843_p11), %v1496_v57  ;;  %v1500_v1 = vadd.f32 (!%p1843_p11), %v2550_v42, %v1429_v60  ;;  %v1501_v3 = vadd.f32 (!%p1843_p11), %v2550_v42, %v1430_v62  ;;  %v1502_v5 = vadd.f32 (!%p1843_p11), %v2550_v42, %v1431_v0  ;;  %v1435_v8 = vld [vmem:[#allocation2 + $0x80] sm:$0xff] (!%p1843_p11)  ;;  %v1436_v11 = vld [vmem:[#allocation2 + $0x88] sm:$0xff] (!%p1843_p11) }
 0x193   : > { %1376 = vst [vmem:[#allocation2 + $0xc8] sm:$0xff] %v1312_v15  ;;  %1408 = vst [vmem:[#allocation2 + $0x1c8] sm:$0xff] %v1344_v16  ;;  %2080 = vtanh.f32 (!%p1843_p11), %v1497_v59  ;;  %v1503_v7 = vadd.f32 (!%p1843_p11), %v2550_v42, %v1432_v2  ;;  %v1504_v10 = vadd.f32 (!%p1843_p11), %v2550_v42, %v1433_v4  ;;  %v1505_v13 = vadd.f32 (!%p1843_p11), %v2550_v42, %v1434_v6  ;;  %v1437_v14 = vld [vmem:[#allocation2 + $0x90] sm:$0xff] (!%p1843_p11)  ;;  %v1451_v57 = vld [vmem:[#allocation2 + $0x100] sm:$0xff] (!%p1843_p11) }
 0x194   : > { %2082 = vtanh.f32 (!%p1843_p11), %v1498_v61  ;;  %v1506_v16 = vadd.f32 (!%p1843_p11), %v2550_v42, %v1435_v8  ;;  %v1452_v60 = vld [vmem:[#allocation2 + $0x108] sm:$0xff] (!%p1843_p11)  ;;  %v1454_v2 = vld [vmem:[#allocation2 + $0x118] sm:$0xff] (!%p1843_p11) }
 0x195   : > { %v1935_v21 = vpop.f32.mrb[28].mxu0  ;;  %v1967_v22 = vpop.f32.mrb[28].mxu1  ;;  %1418 = sbr.rel (%p1843_p11) target bundleno = 474 (0x1da), region = 81  ;;  %2084 = vtanh.f32 (!%p1843_p11), %v1499_v63  ;;  %v1453_v63 = vld [vmem:[#allocation2 + $0x110] sm:$0xff] (!%p1843_p11)  ;;  %v1523_v4 = vadd.f32 (!%p1843_p11), %v2550_v42, %v1452_v60  ;;  %v1456_v8 = vld [vmem:[#allocation2 + $0x128] sm:$0xff] (!%p1843_p11) }
 0x196   : > { %v1317_v25 = vadd.f32 %v1935_v21, %v644_v17  ;;  %v1349_v26 = vadd.f32 %v1967_v22, %v676_v18  ;;  %v1144_v27 = vpop.f32.mrb[29].mxu0  ;;  %v1272_v28 = vpop.f32.mrb[29].mxu1  ;;  %2086 = vtanh.f32 (!%p1843_p11), %v1500_v1  ;;  %v1438_v17 = vld [vmem:[#allocation2 + $0x98] sm:$0xff] (!%p1843_p11)  ;;  %v1508_v22 = vadd.f32 (!%p1843_p11), %v2550_v42, %v1437_v14  ;;  %v1473_v60 = vld [vmem:[#allocation2 + $0x1b0] sm:$0xff] (!%p1843_p11) }
 0x197   : > { %v1315_v31 = vadd.f32 %v1144_v27, %v642_v19  ;;  %v1347_v32 = vadd.f32 %v1272_v28, %v674_v20  ;;  %v1936_v33 = vpop.f32.mrb[30].mxu0  ;;  %v1968_v34 = vpop.f32.mrb[30].mxu1  ;;  %2088 = vtanh.f32 (!%p1843_p11), %v1501_v3  ;;  %v1507_v19 = vadd.f32 (!%p1843_p11), %v2550_v42, %v1436_v11  ;;  %v1439_v20 = vld [vmem:[#allocation2 + $0xa0] sm:$0xff] (!%p1843_p11)  ;;  %v1457_v11 = vld [vmem:[#allocation2 + $0x130] sm:$0xff] (!%p1843_p11)  ;;  %v1458_v14 = vld [vmem:[#allocation2 + $0x138] sm:$0xff] (!%p1843_p11) }
 0x198   : > { %1381 = vst [vmem:[#allocation2 + $0xf0] sm:$0xff] %v1317_v25  ;;  %1413 = vst [vmem:[#allocation2 + $0x1f0] sm:$0xff] %v1349_v26  ;;  %v1318_v35 = vadd.f32 %v1936_v33, %v645_v23  ;;  %v1350_v36 = vadd.f32 %v1968_v34, %v677_v24  ;;  %v1147_v37 = vpop.f32.mrb[31].mxu0  ;;  %v1275_v38 = vpop.f32.mrb[31].mxu1  ;;  %2090 = vtanh.f32 (!%p1843_p11), %v1502_v5  ;;  %v1440_v23 = vld [vmem:[#allocation2 + $0xa8] sm:$0xff] (!%p1843_p11)  ;;  %v1509_v25 = vadd.f32 (!%p1843_p11), %v2550_v42, %v1438_v17  ;;  %v1441_v26 = vld [vmem:[#allocation2 + $0xb0] sm:$0xff] (!%p1843_p11) }
 0x199   : > { %1379 = vst [vmem:[#allocation2 + $0xe0] sm:$0xff] %v1315_v31  ;;  %1411 = vst [vmem:[#allocation2 + $0x1e0] sm:$0xff] %v1347_v32  ;;  %v1316_v39 = vadd.f32 %v1147_v37, %v643_v29  ;;  %v1348_v40 = vadd.f32 %v1275_v38, %v675_v30  ;;  %v2067_v9 = vpop.eup (!%p1843_p11), %2066  ;;  %2092 = vtanh.f32 (!%p1843_p11), %v1503_v7  ;;  %v1510_v28 = vadd.f32 (!%p1843_p11), %v2550_v42, %v1439_v20  ;;  %v1442_v29 = vld [vmem:[#allocation2 + $0xb8] sm:$0xff] (!%p1843_p11)  ;;  %v1443_v32 = vld [vmem:[#allocation2 + $0xc0] sm:$0xff] (!%p1843_p11) }
 0x19a   : > { %1382 = vst [vmem:[#allocation2 + $0xf8] sm:$0xff] %v1318_v35  ;;  %1414 = vst [vmem:[#allocation2 + $0x1f8] sm:$0xff] %v1350_v36  ;;  %v2069_v12 = vpop.eup (!%p1843_p11), %2068  ;;  %2094 = vtanh.f32 (!%p1843_p11), %v1504_v10  ;;  %v1511_v31 = vadd.f32 (!%p1843_p11), %v2550_v42, %v1440_v23  ;;  %v1512_v34 = vadd.f32 (!%p1843_p11), %v2550_v42, %v1441_v26  ;;  %v1444_v35 = vld [vmem:[#allocation2 + $0xc8] sm:$0xff] (!%p1843_p11)  ;;  %v1513_v37 = vadd.f32 (!%p1843_p11), %v2550_v42, %v1442_v29  ;;  %v1445_v38 = vld [vmem:[#allocation2 + $0xd0] sm:$0xff] (!%p1843_p11) }
 0x19b   : > { %1380 = vst [vmem:[#allocation2 + $0xe8] sm:$0xff] %v1316_v39  ;;  %1412 = vst [vmem:[#allocation2 + $0x1e8] sm:$0xff] %v1348_v40  ;;  %v2071_v15 = vpop.eup (!%p1843_p11), %2070  ;;  %2096 = vtanh.f32 (!%p1843_p11), %v1505_v13  ;;  %v1514_v40 = vadd.f32 (!%p1843_p11), %v2550_v42, %v1443_v32  ;;  %v1446_v41 = vld [vmem:[#allocation2 + $0xd8] sm:$0xff] (!%p1843_p11)  ;;  %v1515_v44 = vadd.f32 (!%p1843_p11), %v2550_v42, %v1444_v35  ;;  %v1516_v47 = vadd.f32 (!%p1843_p11), %v2550_v42, %v1445_v38  ;;  %v1455_v5 = vld [vmem:[#allocation2 + $0x120] sm:$0xff] (!%p1843_p11) }
 0x19c   : > { %1618 = vst [vmem:[%s2826_s3] sm:$0xff] %v2067_v9  ;;  %1619 = vst [vmem:[%s2826_s3 + $0x8] sm:$0xff] %v2069_v12  ;;  %v2073_v18 = vpop.eup %2072  ;;  %2098 = vtanh.f32 %v1506_v16  ;;  %v1517_v50 = vadd.f32 %v2550_v42, %v1446_v41  ;;  %v1522_v1 = vadd.f32 %v2550_v42, %v1451_v57  ;;  %v1524_v7 = vadd.f32 %v2550_v42, %v1453_v63  ;;  %v1459_v17 = vld [vmem:[#allocation2 + $0x140] sm:$0xff]  ;;  %v1460_v20 = vld [vmem:[#allocation2 + $0x148] sm:$0xff] }
 0x19d   : > { %1620 = vst [vmem:[%s2826_s3 + $0x10] sm:$0xff] %v2071_v15  ;;  %v2075_v21 = vpop.eup %2074  ;;  %1621 = vst [vmem:[%s2826_s3 + $0x18] sm:$0xff] %v2073_v18  ;;  %2100 = vtanh.f32 %v1507_v19  ;;  %v1525_v10 = vadd.f32 %v2550_v42, %v1454_v2  ;;  %v1526_v13 = vadd.f32 %v2550_v42, %v1455_v5  ;;  %v1527_v16 = vadd.f32 %v2550_v42, %v1456_v8  ;;  %v1461_v23 = vld [vmem:[#allocation2 + $0x150] sm:$0xff]  ;;  %v1462_v26 = vld [vmem:[#allocation2 + $0x158] sm:$0xff] }
 0x19e   : > { %v2077_v24 = vpop.eup %2076  ;;  %1622 = vst [vmem:[%s2826_s3 + $0x20] sm:$0xff] %v2075_v21  ;;  %2102 = vtanh.f32 %v1508_v22  ;;  %v1528_v19 = vadd.f32 %v2550_v42, %v1457_v11  ;;  %v1529_v22 = vadd.f32 %v2550_v42, %v1458_v14  ;;  %v1463_v29 = vld [vmem:[#allocation2 + $0x160] sm:$0xff]  ;;  %v1464_v32 = vld [vmem:[#allocation2 + $0x168] sm:$0xff]  ;;  %v1465_v35 = vld [vmem:[#allocation2 + $0x170] sm:$0xff] }
 0x19f   : > { %v2079_v27 = vpop.eup %2078  ;;  %1623 = vst [vmem:[%s2826_s3 + $0x28] sm:$0xff] %v2077_v24  ;;  %2104 = vtanh.f32 %v1509_v25  ;;  %v1449_v51 = vld [vmem:[#allocation2 + $0xf0] sm:$0xff]  ;;  %v1530_v25 = vadd.f32 %v2550_v42, %v1459_v17  ;;  %v1466_v38 = vld [vmem:[#allocation2 + $0x178] sm:$0xff]  ;;  %v1467_v41 = vld [vmem:[#allocation2 + $0x180] sm:$0xff] }
 0x1a0   : > { %v2081_v30 = vpop.eup %2080  ;;  %1624 = vst [vmem:[%s2826_s3 + $0x30] sm:$0xff] %v2079_v27  ;;  %2106 = vtanh.f32 %v1510_v28  ;;  %v1447_v45 = vld [vmem:[#allocation2 + $0xe0] sm:$0xff]  ;;  %v1520_v59 = vadd.f32 %v2550_v42, %v1449_v51  ;;  %v1531_v28 = vadd.f32 %v2550_v42, %v1460_v20  ;;  %v1470_v51 = vld [vmem:[#allocation2 + $0x198] sm:$0xff]  ;;  %v1472_v57 = vld [vmem:[#allocation2 + $0x1a8] sm:$0xff] }
 0x1a1   : > { %v2083_v33 = vpop.eup %2082  ;;  %1625 = vst [vmem:[%s2826_s3 + $0x38] sm:$0xff] %v2081_v30  ;;  %2108 = vtanh.f32 %v1511_v31  ;;  %v1518_v53 = vadd.f32 %v2550_v42, %v1447_v45  ;;  %v1450_v54 = vld [vmem:[#allocation2 + $0xf8] sm:$0xff]  ;;  %v1532_v31 = vadd.f32 %v2550_v42, %v1461_v23  ;;  %v1468_v45 = vld [vmem:[#allocation2 + $0x188] sm:$0xff]  ;;  %v1475_v2 = vld [vmem:[#allocation2 + $0x1c0] sm:$0xff] }
 0x1a2   : > { %v2085_v36 = vpop.eup %2084  ;;  %1626 = vst [vmem:[%s2826_s3 + $0x40] sm:$0xff] %v2083_v33  ;;  %2110 = vtanh.f32 %v1512_v34  ;;  %v1448_v48 = vld [vmem:[#allocation2 + $0xe8] sm:$0xff]  ;;  %v1521_v62 = vadd.f32 %v2550_v42, %v1450_v54  ;;  %v1533_v34 = vadd.f32 %v2550_v42, %v1462_v26  ;;  %v1471_v54 = vld [vmem:[#allocation2 + $0x1a0] sm:$0xff]  ;;  %v1474_v63 = vld [vmem:[#allocation2 + $0x1b8] sm:$0xff] }
 0x1a3   : > { %v2087_v39 = vpop.eup %2086  ;;  %1627 = vst [vmem:[%s2826_s3 + $0x48] sm:$0xff] %v2085_v36  ;;  %2112 = vtanh.f32 %v1513_v37  ;;  %v1519_v56 = vadd.f32 %v2550_v42, %v1448_v48  ;;  %v1534_v37 = vadd.f32 %v2550_v42, %v1463_v29  ;;  %v1469_v48 = vld [vmem:[#allocation2 + $0x190] sm:$0xff]  ;;  %v1476_v5 = vld [vmem:[#allocation2 + $0x1c8] sm:$0xff]  ;;  %v1478_v11 = vld [vmem:[#allocation2 + $0x1d8] sm:$0xff] }
 0x1a4   : > { %v2089_v43 = vpop.eup %2088  ;;  %1628 = vst [vmem:[%s2826_s3 + $0x50] sm:$0xff] %v2087_v39  ;;  %2114 = vtanh.f32 %v1514_v40  ;;  %v1535_v40 = vadd.f32 %v2550_v42, %v1464_v32  ;;  %v1477_v8 = vld [vmem:[#allocation2 + $0x1d0] sm:$0xff]  ;;  %v1479_v14 = vld [vmem:[#allocation2 + $0x1e0] sm:$0xff]  ;;  %v1480_v17 = vld [vmem:[#allocation2 + $0x1e8] sm:$0xff] }
 0x1a5   : > { %v2091_v46 = vpop.eup %2090  ;;  %1629 = vst [vmem:[%s2826_s3 + $0x58] sm:$0xff] %v2089_v43  ;;  %2116 = vtanh.f32 %v1515_v44  ;;  %v1536_v44 = vadd.f32 %v2550_v42, %v1465_v35  ;;  %v1481_v20 = vld [vmem:[#allocation2 + $0x1f0] sm:$0xff]  ;;  %v1482_v23 = vld [vmem:[#allocation2 + $0x1f8] sm:$0xff] }
 0x1a6   : > { %v2093_v49 = vpop.eup %2092  ;;  %1630 = vst [vmem:[%s2826_s3 + $0x60] sm:$0xff] %v2091_v46  ;;  %2118 = vtanh.f32 %v1516_v47  ;;  %v1537_v47 = vadd.f32 %v2550_v42, %v1466_v38  ;;  %v1553_v29 = vadd.f32 %v2550_v42, %v1482_v23 }
 0x1a7   : > { %v2095_v52 = vpop.eup %2094  ;;  %1631 = vst [vmem:[%s2826_s3 + $0x68] sm:$0xff] %v2093_v49  ;;  %2120 = vtanh.f32 %v1517_v50  ;;  %v1538_v50 = vadd.f32 %v2550_v42, %v1467_v41 }
 0x1a8   : > { %v2097_v55 = vpop.eup %2096  ;;  %1632 = vst [vmem:[%s2826_s3 + $0x70] sm:$0xff] %v2095_v52  ;;  %2122 = vtanh.f32 %v1518_v53  ;;  %v1539_v53 = vadd.f32 %v2550_v42, %v1468_v45 }
 0x1a9   : > { %v2099_v58 = vpop.eup %2098  ;;  %1633 = vst [vmem:[%s2826_s3 + $0x78] sm:$0xff] %v2097_v55  ;;  %2124 = vtanh.f32 %v1519_v56  ;;  %v1540_v56 = vadd.f32 %v2550_v42, %v1469_v48 }
 0x1aa   : > { %v2101_v61 = vpop.eup %2100  ;;  %1634 = vst [vmem:[%s2826_s3 + $0x80] sm:$0xff] %v2099_v58  ;;  %2126 = vtanh.f32 %v1520_v59  ;;  %v1541_v59 = vadd.f32 %v2550_v42, %v1470_v51 }
 0x1ab   : > { %v2103_v0 = vpop.eup %2102  ;;  %1635 = vst [vmem:[%s2826_s3 + $0x88] sm:$0xff] %v2101_v61  ;;  %2128 = vtanh.f32 %v1521_v62  ;;  %v1542_v62 = vadd.f32 %v2550_v42, %v1471_v54 }
 0x1ac   : > { %v2105_v3 = vpop.eup %2104  ;;  %1636 = vst [vmem:[%s2826_s3 + $0x90] sm:$0xff] %v2103_v0  ;;  %2130 = vtanh.f32 %v1522_v1  ;;  %v1543_v1 = vadd.f32 %v2550_v42, %v1472_v57 }
 0x1ad   : > { %v2107_v6 = vpop.eup %2106  ;;  %1637 = vst [vmem:[%s2826_s3 + $0x98] sm:$0xff] %v2105_v3  ;;  %2132 = vtanh.f32 %v1523_v4  ;;  %v1544_v4 = vadd.f32 %v2550_v42, %v1473_v60 }
 0x1ae   : > { %v2109_v9 = vpop.eup %2108  ;;  %1638 = vst [vmem:[%s2826_s3 + $0xa0] sm:$0xff] %v2107_v6  ;;  %2134 = vtanh.f32 %v1524_v7  ;;  %v1545_v7 = vadd.f32 %v2550_v42, %v1474_v63 }
 0x1af   : > { %v2111_v12 = vpop.eup %2110  ;;  %1639 = vst [vmem:[%s2826_s3 + $0xa8] sm:$0xff] %v2109_v9  ;;  %2136 = vtanh.f32 %v1525_v10  ;;  %v1546_v10 = vadd.f32 %v2550_v42, %v1475_v2 }
 0x1b0   : > { %v2113_v15 = vpop.eup %2112  ;;  %1640 = vst [vmem:[%s2826_s3 + $0xb0] sm:$0xff] %v2111_v12  ;;  %2138 = vtanh.f32 %v1526_v13  ;;  %v1547_v13 = vadd.f32 %v2550_v42, %v1476_v5 }
 0x1b1   : > { %v2115_v18 = vpop.eup %2114  ;;  %1641 = vst [vmem:[%s2826_s3 + $0xb8] sm:$0xff] %v2113_v15  ;;  %2140 = vtanh.f32 %v1527_v16  ;;  %v1548_v16 = vadd.f32 %v2550_v42, %v1477_v8 }
 0x1b2   : > { %v2117_v21 = vpop.eup %2116  ;;  %1642 = vst [vmem:[%s2826_s3 + $0xc0] sm:$0xff] %v2115_v18  ;;  %2142 = vtanh.f32 %v1528_v19  ;;  %v1549_v19 = vadd.f32 %v2550_v42, %v1478_v11 }
 0x1b3   : > { %v2119_v24 = vpop.eup %2118  ;;  %1643 = vst [vmem:[%s2826_s3 + $0xc8] sm:$0xff] %v2117_v21  ;;  %2144 = vtanh.f32 %v1529_v22  ;;  %v1550_v22 = vadd.f32 %v2550_v42, %v1479_v14 }
 0x1b4   : > { %v2121_v27 = vpop.eup %2120  ;;  %1644 = vst [vmem:[%s2826_s3 + $0xd0] sm:$0xff] %v2119_v24  ;;  %2146 = vtanh.f32 %v1530_v25  ;;  %v1551_v25 = vadd.f32 %v2550_v42, %v1480_v17 }
 0x1b5   : > { %v2123_v30 = vpop.eup %2122  ;;  %1645 = vst [vmem:[%s2826_s3 + $0xd8] sm:$0xff] %v2121_v27  ;;  %2148 = vtanh.f32 %v1531_v28  ;;  %v1552_v27 = vadd.f32 %v2550_v42, %v1481_v20 }
 0x1b6   : > { %v2125_v33 = vpop.eup %2124  ;;  %1646 = vst [vmem:[%s2826_s3 + $0xe0] sm:$0xff] %v2123_v30  ;;  %2150 = vtanh.f32 %v1532_v31 }
 0x1b7   : > { %v2127_v36 = vpop.eup %2126  ;;  %1647 = vst [vmem:[%s2826_s3 + $0xe8] sm:$0xff] %v2125_v33  ;;  %2152 = vtanh.f32 %v1533_v34 }
 0x1b8   : > { %v2129_v39 = vpop.eup %2128  ;;  %1648 = vst [vmem:[%s2826_s3 + $0xf0] sm:$0xff] %v2127_v36  ;;  %2154 = vtanh.f32 %v1534_v37 }
 0x1b9   : > { %v2131_v43 = vpop.eup %2130  ;;  %1649 = vst [vmem:[%s2826_s3 + $0xf8] sm:$0xff] %v2129_v39  ;;  %2156 = vtanh.f32 %v1535_v40 }
 0x1ba   : > { %v2133_v46 = vpop.eup %2132  ;;  %1650 = vst [vmem:[%s2826_s3 + $0x100] sm:$0xff] %v2131_v43  ;;  %2158 = vtanh.f32 %v1536_v44 }
 0x1bb   : > { %v2135_v49 = vpop.eup %2134  ;;  %1651 = vst [vmem:[%s2826_s3 + $0x108] sm:$0xff] %v2133_v46  ;;  %2160 = vtanh.f32 %v1537_v47 }
 0x1bc   : > { %v2137_v52 = vpop.eup %2136  ;;  %1652 = vst [vmem:[%s2826_s3 + $0x110] sm:$0xff] %v2135_v49  ;;  %2162 = vtanh.f32 %v1538_v50 }
 0x1bd   : > { %v2139_v55 = vpop.eup %2138  ;;  %1653 = vst [vmem:[%s2826_s3 + $0x118] sm:$0xff] %v2137_v52  ;;  %2164 = vtanh.f32 %v1539_v53 }
 0x1be   : > { %v2141_v58 = vpop.eup %2140  ;;  %1654 = vst [vmem:[%s2826_s3 + $0x120] sm:$0xff] %v2139_v55  ;;  %2166 = vtanh.f32 %v1540_v56 }
 0x1bf   : > { %v2143_v61 = vpop.eup %2142  ;;  %1655 = vst [vmem:[%s2826_s3 + $0x128] sm:$0xff] %v2141_v58  ;;  %2168 = vtanh.f32 %v1541_v59 }
 0x1c0   : > { %v2145_v0 = vpop.eup %2144  ;;  %1656 = vst [vmem:[%s2826_s3 + $0x130] sm:$0xff] %v2143_v61  ;;  %2170 = vtanh.f32 %v1542_v62 }
 0x1c1   : > { %v2147_v3 = vpop.eup %2146  ;;  %1657 = vst [vmem:[%s2826_s3 + $0x138] sm:$0xff] %v2145_v0  ;;  %2172 = vtanh.f32 %v1543_v1 }
 0x1c2   : > { %v2149_v6 = vpop.eup %2148  ;;  %1658 = vst [vmem:[%s2826_s3 + $0x140] sm:$0xff] %v2147_v3  ;;  %2174 = vtanh.f32 %v1544_v4 }
 0x1c3   : > { %v2151_v9 = vpop.eup %2150  ;;  %1659 = vst [vmem:[%s2826_s3 + $0x148] sm:$0xff] %v2149_v6  ;;  %2176 = vtanh.f32 %v1545_v7 }
 0x1c4   : > { %v2153_v12 = vpop.eup %2152  ;;  %1660 = vst [vmem:[%s2826_s3 + $0x150] sm:$0xff] %v2151_v9  ;;  %2178 = vtanh.f32 %v1546_v10 }
 0x1c5   : > { %v2155_v15 = vpop.eup %2154  ;;  %1661 = vst [vmem:[%s2826_s3 + $0x158] sm:$0xff] %v2153_v12  ;;  %2180 = vtanh.f32 %v1547_v13 }
 0x1c6   : > { %v2157_v18 = vpop.eup %2156  ;;  %1662 = vst [vmem:[%s2826_s3 + $0x160] sm:$0xff] %v2155_v15  ;;  %2182 = vtanh.f32 %v1548_v16 }
 0x1c7   : > { %v2159_v21 = vpop.eup %2158  ;;  %1663 = vst [vmem:[%s2826_s3 + $0x168] sm:$0xff] %v2157_v18  ;;  %2184 = vtanh.f32 %v1549_v19 }
 0x1c8   : > { %v2161_v24 = vpop.eup %2160  ;;  %1664 = vst [vmem:[%s2826_s3 + $0x170] sm:$0xff] %v2159_v21  ;;  %2186 = vtanh.f32 %v1550_v22 }
 0x1c9   : > { %v2163_v26 = vpop.eup %2162  ;;  %1665 = vst [vmem:[%s2826_s3 + $0x178] sm:$0xff] %v2161_v24  ;;  %2188 = vtanh.f32 %v1551_v25 }
 0x1ca   : > { %v2165_v28 = vpop.eup %2164  ;;  %1666 = vst [vmem:[%s2826_s3 + $0x180] sm:$0xff] %v2163_v26  ;;  %2190 = vtanh.f32 %v1552_v27 }
 0x1cb   : > { %v2167_v30 = vpop.eup %2166  ;;  %1667 = vst [vmem:[%s2826_s3 + $0x188] sm:$0xff] %v2165_v28  ;;  %2192 = vtanh.f32 %v1553_v29 }
 0x1cc   : > { %v2169_v31 = vpop.eup %2168  ;;  %1668 = vst [vmem:[%s2826_s3 + $0x190] sm:$0xff] %v2167_v30 }
 0x1cd   : > { %v2171_v32 = vpop.eup %2170  ;;  %1669 = vst [vmem:[%s2826_s3 + $0x198] sm:$0xff] %v2169_v31 }
 0x1ce   : > { %v2173_v33 = vpop.eup %2172  ;;  %1670 = vst [vmem:[%s2826_s3 + $0x1a0] sm:$0xff] %v2171_v32 }
 0x1cf   : > { %v2175_v42 = vpop.eup %2174  ;;  %1671 = vst [vmem:[%s2826_s3 + $0x1a8] sm:$0xff] %v2173_v33 }
 0x1d0   : > { %v2177_v34 = vpop.eup %2176  ;;  %1672 = vst [vmem:[%s2826_s3 + $0x1b0] sm:$0xff] %v2175_v42 }
 0x1d1   : > { %v2179_v35 = vpop.eup %2178  ;;  %1673 = vst [vmem:[%s2826_s3 + $0x1b8] sm:$0xff] %v2177_v34 }
 0x1d2   : > { %v2181_v36 = vpop.eup %2180  ;;  %1674 = vst [vmem:[%s2826_s3 + $0x1c0] sm:$0xff] %v2179_v35 }
 0x1d3   : > { %v2183_v37 = vpop.eup %2182  ;;  %1675 = vst [vmem:[%s2826_s3 + $0x1c8] sm:$0xff] %v2181_v36 }
 0x1d4   : > { %v2185_v38 = vpop.eup %2184  ;;  %1676 = vst [vmem:[%s2826_s3 + $0x1d0] sm:$0xff] %v2183_v37 }
 0x1d5   : > { %v2187_v39 = vpop.eup %2186  ;;  %1677 = vst [vmem:[%s2826_s3 + $0x1d8] sm:$0xff] %v2185_v38 }
 0x1d6   : > { %v2189_v40 = vpop.eup %2188  ;;  %1678 = vst [vmem:[%s2826_s3 + $0x1e0] sm:$0xff] %v2187_v39 }
 0x1d7   : > { %v2191_v41 = vpop.eup %2190  ;;  %1679 = vst [vmem:[%s2826_s3 + $0x1e8] sm:$0xff] %v2189_v40 }
 0x1d8   : > { %v2193_v43 = vpop.eup %2192  ;;  %1680 = vst [vmem:[%s2826_s3 + $0x1f0] sm:$0xff] %v2191_v41 }
 0x1d9   : > { %1681 = vst [vmem:[%s2826_s3 + $0x1f8] sm:$0xff] %v2193_v43 }
 0x1da PF: > { %s13_s16 = sadd.s32 1, %s2232_s16   ;;  %s2827_s12 = smov %s2220_s13 }
 0x1db   : > { %p10_p12 = scmp.ge.s32.totalorder %s13_s16, 27   ;;  %s2828_s13 = smov %s2290_s20 }
 0x1dc   : > { %s2829_s14 = smov %s2228_s15  ;;  %s2830_s15 = smov %s2832_s17 }
 0x1dd   :  { %12 = sbr.rel (!%p10_p12) target bundleno = 3 (0x3), region = 122 }

</bundles_post_ra>
